<compile_context>
chip_gen: v5e
topology: v5e:2x2
jax: 0.10.0
libtpu: 0.0.40
codegen_flags: <defaults>
</compile_context>

<pallas_src>
import functools

import jax
import jax.numpy as jnp
from jax.experimental import pallas as pl
from jax.experimental.pallas import tpu as pltpu

_VMEM_LIMIT = 32 * 1024 * 1024  # scoped-VMEM headroom (v5e default is only 16 MiB)


def _largest_tile(n, candidates):
    for c in candidates:
        if n % c == 0:
            return c
    return n  # full extent is always a legal block size


# --------------------------------------------------------------------------- #
# Pallas kernels
# --------------------------------------------------------------------------- #

def fused_attn_ln_kernel(xq_ref, xkv_ref, pmask_ref, wq_ref, wk_ref, wv_ref,
                         wo_ref, bo_ref, g_ref, b_ref, o_ref, *, heads, scale, causal):
    """LayerNorm(SelfAttention(xkv, xkv, xq, mask) + xq), one batch row per grid step.

    xq:    (1, Lq, E)  bf16  query input (also the residual)
    xkv:   (1, Lk, E)  bf16  key/value input (key == value tensor in this model)
    pmask: (1, 1, Lk)  f32   0 => masked key (padding); causal mask built in-kernel
    wq/wk/wv: (hd, hd) bf16  per-head projection weights (shared across heads)
    wo: (E, E) bf16,  bo/g/b: (1, E) f32
    """
    f32 = jnp.float32
    xq = xq_ref[0]                       # (Lq, E) bf16
    xkv = xkv_ref[0]                     # (Lk, E) bf16
    Lq, E = xq.shape
    Lk = xkv.shape[0]
    hd = E // heads
    cdt = xq.dtype                       # bf16 MXU operand dtype

    wq = wq_ref[...]
    wk = wk_ref[...]
    wv = wv_ref[...]
    wo = wo_ref[...]

    # Mask: pad vector broadcast + (optional) in-kernel causal iota.
    allowed = jnp.broadcast_to(pmask_ref[0] > 0.0, (Lq, Lk))
    if causal:
        row = jax.lax.broadcasted_iota(jnp.int32, (Lq, Lk), 0)
        col = jax.lax.broadcasted_iota(jnp.int32, (Lq, Lk), 1)
        allowed = jnp.logical_and(allowed, row >= col)
    neg_big = jnp.float32(-1e20)

    acc = jnp.zeros((Lq, E), f32)
    for h in range(heads):               # static unroll; heads is small
        sl = slice(h * hd, (h + 1) * hd)
        xq_h = xq[:, sl]                 # (Lq, hd)
        xkv_h = xkv[:, sl]               # (Lk, hd)
        # Shared per-head weights applied directly (no block-diagonal expansion).
        qh = jnp.dot(xq_h, wq, preferred_element_type=f32).astype(cdt)
        kh = jnp.dot(xkv_h, wk, preferred_element_type=f32).astype(cdt)
        vh = jnp.dot(xkv_h, wv, preferred_element_type=f32).astype(cdt)
        e = jax.lax.dot_general(qh, kh, (((1,), (1,)), ((), ())),
                                preferred_element_type=f32)            # (Lq, Lk)
        e = jnp.where(allowed, e, neg_big) * scale                     # mask, then /sqrt(E)
        m = jnp.max(e, axis=-1, keepdims=True)
        p = jnp.exp(e - m)
        s = jnp.sum(p, axis=-1, keepdims=True)
        ctx = jnp.dot(p.astype(cdt), vh, preferred_element_type=f32)   # (Lq, hd)
        ctx = ctx * pl.reciprocal(s, approx=True)                      # fold softmax denom
        # Accumulate this head straight into the output projection (no concat).
        acc = acc + jnp.dot(ctx.astype(cdt), wo[sl, :], preferred_element_type=f32)

    y = acc + bo_ref[...] + xq.astype(f32)                             # residual = query
    mean = jnp.mean(y, axis=-1, keepdims=True)
    msq = jnp.mean(y * y, axis=-1, keepdims=True)                      # single-pass variance
    var = msq - mean * mean
    yn = (y - mean) * jax.lax.rsqrt(var + 1e-5)
    o_ref[0] = (yn * g_ref[...] + b_ref[...]).astype(o_ref.dtype)


def fused_ffn_ln_kernel(x_ref, w1_ref, b1_ref, w2_ref, b2_ref, g_ref, b_ref, o_ref):
    """LayerNorm(relu(x @ W1 + b1) @ W2 + b2 + x) on a (TM, E) row tile (batch collapsed)."""
    f32 = jnp.float32
    x = x_ref[...]                                                     # (TM, E) bf16
    h = jnp.dot(x, w1_ref[...], preferred_element_type=f32) + b1_ref[...]
    h = jnp.maximum(h, 0.0)
    f = jnp.dot(h.astype(x.dtype), w2_ref[...], preferred_element_type=f32) + b2_ref[...]
    y = f + x.astype(f32)
    mean = jnp.mean(y, axis=-1, keepdims=True)
    msq = jnp.mean(y * y, axis=-1, keepdims=True)
    var = msq - mean * mean
    yn = (y - mean) * jax.lax.rsqrt(var + 1e-5)
    o_ref[...] = (yn * g_ref[...] + b_ref[...]).astype(o_ref.dtype)


def out_proj_kernel(x_ref, w_ref, b_ref, o_ref):
    """One (row-tile, vocab-tile) block of the final projection (lane-dense padded vocab)."""
    o_ref[...] = (jnp.dot(x_ref[...], w_ref[...], preferred_element_type=jnp.float32)
                  + b_ref[...]).astype(o_ref.dtype)


# --------------------------------------------------------------------------- #
# pallas_call wrappers
# --------------------------------------------------------------------------- #

def fused_attention_ln(xq, xkv, pad_mask, attn_p, ln_g, ln_b, *, heads, embed_size, causal):
    N, Lq, E = xq.shape
    Lk = xkv.shape[1]
    hd = E // heads
    scale = 1.0 / float(embed_size) ** 0.5
    kern = functools.partial(fused_attn_ln_kernel, heads=heads, scale=scale, causal=causal)
    return pl.pallas_call(
        kern,
        out_shape=jax.ShapeDtypeStruct((N, Lq, E), xq.dtype),
        grid=(N,),
        in_specs=[
            pl.BlockSpec((1, Lq, E), lambda i: (i, 0, 0)),
            pl.BlockSpec((1, Lk, E), lambda i: (i, 0, 0)),
            pl.BlockSpec((1, 1, Lk), lambda i: (i, 0, 0)),
            pl.BlockSpec((hd, hd), lambda i: (0, 0)),
            pl.BlockSpec((hd, hd), lambda i: (0, 0)),
            pl.BlockSpec((hd, hd), lambda i: (0, 0)),
            pl.BlockSpec((E, E), lambda i: (0, 0)),
            pl.BlockSpec((1, E), lambda i: (0, 0)),
            pl.BlockSpec((1, E), lambda i: (0, 0)),
            pl.BlockSpec((1, E), lambda i: (0, 0)),
        ],
        out_specs=pl.BlockSpec((1, Lq, E), lambda i: (i, 0, 0)),
        compiler_params=pltpu.CompilerParams(
            dimension_semantics=("parallel",),
            vmem_limit_bytes=_VMEM_LIMIT),
    )(xq, xkv, pad_mask, attn_p["Wq"], attn_p["Wk"], attn_p["Wv"], attn_p["Wo"],
      attn_p["bo"].reshape(1, E), ln_g.reshape(1, E), ln_b.reshape(1, E))


def fused_ffn_ln(x2, W1, b1, W2, b2, g, b):
    M, E = x2.shape
    H = W1.shape[1]
    TM = _largest_tile(M, (512, 256, 128, 64, 32, 16, 8))
    return pl.pallas_call(
        fused_ffn_ln_kernel,
        out_shape=jax.ShapeDtypeStruct((M, E), x2.dtype),
        grid=(M // TM,),
        in_specs=[
            pl.BlockSpec((TM, E), lambda i: (i, 0)),
            pl.BlockSpec((E, H), lambda i: (0, 0)),
            pl.BlockSpec((1, H), lambda i: (0, 0)),
            pl.BlockSpec((H, E), lambda i: (0, 0)),
            pl.BlockSpec((1, E), lambda i: (0, 0)),
            pl.BlockSpec((1, E), lambda i: (0, 0)),
            pl.BlockSpec((1, E), lambda i: (0, 0)),
        ],
        out_specs=pl.BlockSpec((TM, E), lambda i: (i, 0)),
        compiler_params=pltpu.CompilerParams(
            dimension_semantics=("parallel",),
            vmem_limit_bytes=_VMEM_LIMIT),
    )(x2, W1, b1.reshape(1, H), W2, b2.reshape(1, E), g.reshape(1, E), b.reshape(1, E))


def pallas_out_proj(x2, W_pad, b_pad):
    M, E = x2.shape
    Vp = W_pad.shape[1]                      # multiple of 128 -> lane-dense stores
    TM = _largest_tile(M, (512, 256, 128, 64, 32, 16, 8))
    TV = _largest_tile(Vp, (2048, 1024, 512, 256, 128))
    return pl.pallas_call(
        out_proj_kernel,
        out_shape=jax.ShapeDtypeStruct((M, Vp), jnp.float32),
        grid=(M // TM, Vp // TV),
        in_specs=[
            pl.BlockSpec((TM, E), lambda i, j: (i, 0)),
            pl.BlockSpec((E, TV), lambda i, j: (0, j)),
            pl.BlockSpec((1, TV), lambda i, j: (0, j)),
        ],
        out_specs=pl.BlockSpec((TM, TV), lambda i, j: (i, j)),
        compiler_params=pltpu.CompilerParams(
            dimension_semantics=("parallel", "parallel"),
            vmem_limit_bytes=_VMEM_LIMIT),
    )(x2, W_pad, b_pad.reshape(1, Vp))


# --------------------------------------------------------------------------- #
# Model forward (mirrors the PyTorch module structure)
# --------------------------------------------------------------------------- #

def transformer_block_fwd(p, kv, query, pad_mask, embed_size, heads):
    x = fused_attention_ln(query, kv, pad_mask, p["attn"], p["ln1_g"], p["ln1_b"],
                           heads=heads, embed_size=embed_size, causal=False)
    N, L, E = x.shape
    y = fused_ffn_ln(x.reshape(N * L, E), p["W1"], p["b1"], p["W2"], p["b2"],
                     p["ln2_g"], p["ln2_b"])
    return y.reshape(N, L, E)


def decoder_block_fwd(p, x, enc_out, src_pad_mask, trg_pad_mask, embed_size, heads):
    query = fused_attention_ln(x, x, trg_pad_mask, p["attn"], p["ln_g"], p["ln_b"],
                               heads=heads, embed_size=embed_size, causal=True)
    return transformer_block_fwd(p["tb"], enc_out, query, src_pad_mask, embed_size, heads)


def encoder_fwd(p, src, src_pad_mask, embed_size, heads):
    L = src.shape[1]
    positions = jnp.arange(L)[None, :]
    out = jnp.take(p["word_emb"], src, axis=0) + jnp.take(p["pos_emb"], positions, axis=0)
    for lp in p["layers"]:
        out = transformer_block_fwd(lp, out, out, src_pad_mask, embed_size, heads)
    return out


def decoder_fwd(p, trg, enc_out, src_pad_mask, trg_pad_mask, embed_size, heads, trg_vocab):
    N, L = trg.shape
    positions = jnp.arange(L)[None, :]
    x = jnp.take(p["word_emb"], trg, axis=0) + jnp.take(p["pos_emb"], positions, axis=0)
    for lp in p["layers"]:
        x = decoder_block_fwd(lp, x, enc_out, src_pad_mask, trg_pad_mask, embed_size, heads)
    E = x.shape[-1]
    logits_pad = pallas_out_proj(x.reshape(N * L, E), p["Wout_pad"], p["bout_pad"])
    Vp = logits_pad.shape[-1]
    return logits_pad.reshape(N, L, Vp)[:, :, :trg_vocab]               # drop padded lanes


@functools.partial(jax.jit, static_argnums=(3, 4, 5, 6, 7))
def transformer_fwd(params, src, trg, src_pad_idx, trg_pad_idx, embed_size, heads, trg_vocab):
    N, trg_len = trg.shape
    # pad masks as tiny (N, 1, L) vectors; the causal part is generated inside the kernel
    src_pad_mask = (src != src_pad_idx).astype(jnp.float32)[:, None, :]  # (N, 1, Ls)
    trg_pad_mask = jnp.ones((N, 1, trg_len), jnp.float32)                # (N, 1, Lt)
    enc_src = encoder_fwd(params["encoder"], src, src_pad_mask, embed_size, heads)
    return decoder_fwd(params["decoder"], trg, enc_src, src_pad_mask, trg_pad_mask,
                       embed_size, heads, trg_vocab)


# --------------------------------------------------------------------------- #
# Deterministic parameter init (weights bf16, biases / LN params f32)
# --------------------------------------------------------------------------- #

def _nrm(key, shape, scale=0.1, dtype=jnp.bfloat16):
    return (jax.random.normal(key, shape, jnp.float32) * scale).astype(dtype)


def init_attention(key, embed_size, heads):
    hd = embed_size // heads
    ks = jax.random.split(key, 5)
    return {
        "Wq": _nrm(ks[0], (hd, hd)),
        "Wk": _nrm(ks[1], (hd, hd)),
        "Wv": _nrm(ks[2], (hd, hd)),
        "Wo": _nrm(ks[3], (embed_size, embed_size)),
        "bo": _nrm(ks[4], (embed_size,), 0.01, jnp.float32),
    }


def init_transformer_block(key, embed_size, heads, forward_expansion):
    ks = jax.random.split(key, 5)
    hidden = forward_expansion * embed_size
    return {
        "attn": init_attention(ks[0], embed_size, heads),
        "ln1_g": jnp.ones((embed_size,), jnp.float32),
        "ln1_b": jnp.zeros((embed_size,), jnp.float32),
        "ln2_g": jnp.ones((embed_size,), jnp.float32),
        "ln2_b": jnp.zeros((embed_size,), jnp.float32),
        "W1": _nrm(ks[1], (embed_size, hidden)),
        "b1": _nrm(ks[2], (hidden,), 0.01, jnp.float32),
        "W2": _nrm(ks[3], (hidden, embed_size)),
        "b2": _nrm(ks[4], (embed_size,), 0.01, jnp.float32),
    }


def init_decoder_block(key, embed_size, heads, forward_expansion):
    ks = jax.random.split(key, 2)
    return {
        "attn": init_attention(ks[0], embed_size, heads),
        "ln_g": jnp.ones((embed_size,), jnp.float32),
        "ln_b": jnp.zeros((embed_size,), jnp.float32),
        "tb": init_transformer_block(ks[1], embed_size, heads, forward_expansion),
    }


def init_transformer(key, src_vocab, trg_vocab, embed_size, num_layers, heads,
                     forward_expansion, max_length):
    ks = jax.random.split(key, 6 + 2 * num_layers)
    enc = {
        "word_emb": _nrm(ks[0], (src_vocab, embed_size), 0.5),
        "pos_emb": _nrm(ks[1], (max_length, embed_size), 0.5),
        "layers": [
            init_transformer_block(ks[2 + i], embed_size, heads, forward_expansion)
            for i in range(num_layers)
        ],
    }
    Wout = _nrm(ks[4 + 2 * num_layers], (embed_size, trg_vocab))
    bout = _nrm(ks[5 + 2 * num_layers], (trg_vocab,), 0.01, jnp.float32)
    Vp = ((trg_vocab + 127) // 128) * 128   # pad vocab to 128 lanes for dense stores
    dec = {
        "word_emb": _nrm(ks[2 + num_layers], (trg_vocab, embed_size), 0.5),
        "pos_emb": _nrm(ks[3 + num_layers], (max_length, embed_size), 0.5),
        "layers": [
            init_decoder_block(ks[4 + num_layers + i], embed_size, heads, forward_expansion)
            for i in range(num_layers)
        ],
        "Wout_pad": jnp.pad(Wout, ((0, 0), (0, Vp - trg_vocab))),
        "bout_pad": jnp.pad(bout, (0, Vp - trg_vocab)),
    }
    return {"encoder": enc, "decoder": dec}


# --------------------------------------------------------------------------- #
# Main
# --------------------------------------------------------------------------- #

if __name__ == "__main__":
    # Small config; embed_size is a multiple of 128 so every store is lane-dense.
    src_vocab_size = 11
    trg_vocab_size = 13
    src_pad_idx = 0
    trg_pad_idx = 0
    embed_size = 128
    num_layers = 2
    heads = 4            # head_dim = 32
    forward_expansion = 4
    max_length = 16
    batch = 2
    src_len = 8
    trg_len = 8

    root = jax.random.PRNGKey(0)
    k_param, k_src, k_trg = jax.random.split(root, 3)

    params = init_transformer(
        k_param, src_vocab_size, trg_vocab_size, embed_size, num_layers, heads,
        forward_expansion, max_length,
    )

    src = jax.random.randint(k_src, (batch, src_len), 1, src_vocab_size, dtype=jnp.int32)
    trg = jax.random.randint(k_trg, (batch, trg_len), 1, trg_vocab_size, dtype=jnp.int32)
    # include a couple of pad tokens so the src pad mask is exercised
    src = src.at[0, -2:].set(src_pad_idx)

    # TODO(synk): embedding gathers and the final padded-vocab slice remain plain JAX ops.
    out = transformer_fwd(params, src, trg, src_pad_idx, trg_pad_idx,
                          embed_size, heads, trg_vocab_size)
    out = jax.block_until_ready(out)
    assert out.shape == (batch, trg_len, trg_vocab_size)
    assert bool(jnp.all(jnp.isfinite(out)))
    print("KERNEL_OK")
</pallas_src>

<mosaic_0001>
module attributes {stable_mosaic.version = 11 : i64} {
  func.func @fused_attn_ln_kernel(%arg0: i32, %arg1: memref<1x8x128xbf16, #tpu.memory_space<vmem>>, %arg2: memref<1x8x128xbf16, #tpu.memory_space<vmem>>, %arg3: memref<1x1x8xf32, #tpu.memory_space<vmem>>, %arg4: memref<32x32xbf16, #tpu.memory_space<vmem>>, %arg5: memref<32x32xbf16, #tpu.memory_space<vmem>>, %arg6: memref<32x32xbf16, #tpu.memory_space<vmem>>, %arg7: memref<128x128xbf16, #tpu.memory_space<vmem>>, %arg8: memref<1x128xf32, #tpu.memory_space<vmem>>, %arg9: memref<1x128xf32, #tpu.memory_space<vmem>>, %arg10: memref<1x128xf32, #tpu.memory_space<vmem>>, %arg11: memref<1x8x128xbf16, #tpu.memory_space<vmem>>) attributes {dimension_semantics = [#tpu.dimension_semantics<parallel>], iteration_bounds = array<i64: 2>, scalar_prefetch = 0 : i64, scratch_operands = 0 : i64, tpu.core_type = #tpu.core_type<tc>, window_params = [{transform_indices = @transform_0, window_bounds = array<i64: 1, 8, 128>}, {transform_indices = @transform_1, window_bounds = array<i64: 1, 8, 128>}, {transform_indices = @transform_2, window_bounds = array<i64: 1, 1, 8>}, {pipeline_mode = #tpu.pipeline_mode<synchronous>, transform_indices = @transform_3, window_bounds = array<i64: 32, 32>}, {pipeline_mode = #tpu.pipeline_mode<synchronous>, transform_indices = @transform_4, window_bounds = array<i64: 32, 32>}, {pipeline_mode = #tpu.pipeline_mode<synchronous>, transform_indices = @transform_5, window_bounds = array<i64: 32, 32>}, {pipeline_mode = #tpu.pipeline_mode<synchronous>, transform_indices = @transform_6, window_bounds = array<i64: 128, 128>}, {pipeline_mode = #tpu.pipeline_mode<synchronous>, transform_indices = @transform_7, window_bounds = array<i64: 1, 128>}, {pipeline_mode = #tpu.pipeline_mode<synchronous>, transform_indices = @transform_8, window_bounds = array<i64: 1, 128>}, {pipeline_mode = #tpu.pipeline_mode<synchronous>, transform_indices = @transform_9, window_bounds = array<i64: 1, 128>}, {transform_indices = @transform_10, window_bounds = array<i64: 1, 8, 128>}]} {
    %c0 = arith.constant 0 : index
    %c0_0 = arith.constant 0 : index
    %c0_1 = arith.constant 0 : index
    %0 = vector.load %arg1[%c0, %c0_0, %c0_1] : memref<1x8x128xbf16, #tpu.memory_space<vmem>>, vector<1x8x128xbf16>
    %1 = vector.shape_cast %0 : vector<1x8x128xbf16> to vector<8x128xbf16>
    %c0_2 = arith.constant 0 : index
    %c0_3 = arith.constant 0 : index
    %c0_4 = arith.constant 0 : index
    %2 = vector.load %arg2[%c0_2, %c0_3, %c0_4] : memref<1x8x128xbf16, #tpu.memory_space<vmem>>, vector<1x8x128xbf16>
    %3 = vector.shape_cast %2 : vector<1x8x128xbf16> to vector<8x128xbf16>
    %c0_5 = arith.constant 0 : index
    %c0_6 = arith.constant 0 : index
    %4 = vector.load %arg4[%c0_5, %c0_6] : memref<32x32xbf16, #tpu.memory_space<vmem>>, vector<32x32xbf16>
    %c0_7 = arith.constant 0 : index
    %c0_8 = arith.constant 0 : index
    %5 = vector.load %arg5[%c0_7, %c0_8] : memref<32x32xbf16, #tpu.memory_space<vmem>>, vector<32x32xbf16>
    %c0_9 = arith.constant 0 : index
    %c0_10 = arith.constant 0 : index
    %6 = vector.load %arg6[%c0_9, %c0_10] : memref<32x32xbf16, #tpu.memory_space<vmem>>, vector<32x32xbf16>
    %c0_11 = arith.constant 0 : index
    %c0_12 = arith.constant 0 : index
    %7 = vector.load %arg7[%c0_11, %c0_12] : memref<128x128xbf16, #tpu.memory_space<vmem>>, vector<128x128xbf16>
    %c0_13 = arith.constant 0 : index
    %c0_14 = arith.constant 0 : index
    %c0_15 = arith.constant 0 : index
    %8 = vector.load %arg3[%c0_13, %c0_14, %c0_15] : memref<1x1x8xf32, #tpu.memory_space<vmem>>, vector<1x1x8xf32>
    %9 = vector.shape_cast %8 : vector<1x1x8xf32> to vector<1x8xf32>
    %cst = arith.constant 0.000000e+00 : f32
    %10 = vector.broadcast %cst : f32 to vector<1x8xf32>
    %11 = arith.cmpf ogt, %9, %10 : vector<1x8xf32>
    %12 = vector.shape_cast %11 : vector<1x8xi1> to vector<1x8xi1>
    %13 = vector.broadcast %12 : vector<1x8xi1> to vector<8x8xi1>
    %cst_16 = arith.constant 0.000000e+00 : f32
    %14 = vector.broadcast %cst_16 : f32 to vector<8x128xf32>
    %15 = vector.extract_strided_slice %1 {offsets = [0, 0], sizes = [8, 32], strides = [1, 1]} : vector<8x128xbf16> to vector<8x32xbf16>
    %16 = vector.extract_strided_slice %3 {offsets = [0, 0], sizes = [8, 32], strides = [1, 1]} : vector<8x128xbf16> to vector<8x32xbf16>
    %cst_17 = arith.constant dense<0.000000e+00> : vector<8x32xf32>
    %17 = tpu.matmul %15, %4, %cst_17 {dimension_numbers = #tpu.dot_dimension_numbers<[1], [0], [0], [1], [0, 0, 1, 1], [], []>} : vector<8x32xbf16>, vector<32x32xbf16>, vector<8x32xf32> -> vector<8x32xf32>
    %18 = arith.truncf %17 : vector<8x32xf32> to vector<8x32xbf16>
    %cst_18 = arith.constant dense<0.000000e+00> : vector<8x32xf32>
    %19 = tpu.matmul %16, %5, %cst_18 {dimension_numbers = #tpu.dot_dimension_numbers<[1], [0], [0], [1], [0, 0, 1, 1], [], []>} : vector<8x32xbf16>, vector<32x32xbf16>, vector<8x32xf32> -> vector<8x32xf32>
    %20 = arith.truncf %19 : vector<8x32xf32> to vector<8x32xbf16>
    %cst_19 = arith.constant dense<0.000000e+00> : vector<8x32xf32>
    %21 = tpu.matmul %16, %6, %cst_19 {dimension_numbers = #tpu.dot_dimension_numbers<[1], [0], [0], [1], [0, 0, 1, 1], [], []>} : vector<8x32xbf16>, vector<32x32xbf16>, vector<8x32xf32> -> vector<8x32xf32>
    %22 = arith.truncf %21 : vector<8x32xf32> to vector<8x32xbf16>
    %cst_20 = arith.constant dense<0.000000e+00> : vector<8x8xf32>
    %23 = tpu.matmul %18, %20, %cst_20 {dimension_numbers = #tpu.dot_dimension_numbers<[1], [1], [0], [0], [0, 0, 1, 0], [], []>} : vector<8x32xbf16>, vector<8x32xbf16>, vector<8x8xf32> -> vector<8x8xf32>
    %cst_21 = arith.constant -1.000000e+20 : f32
    %24 = vector.broadcast %cst_21 : f32 to vector<8x8xf32>
    %25 = arith.select %13, %23, %24 : vector<8x8xi1>, vector<8x8xf32>
    %cst_22 = arith.constant 0.0883883461 : f32
    %26 = vector.broadcast %cst_22 : f32 to vector<8x8xf32>
    %27 = arith.mulf %25, %26 : vector<8x8xf32>
    %cst_23 = arith.constant dense<0xFF800000> : vector<8xf32>
    %28 = vector.multi_reduction <maximumf>, %27, %cst_23 [1] : vector<8x8xf32> to vector<8xf32>
    %29 = vector.shape_cast %28 : vector<8xf32> to vector<8x1xf32>
    %30 = vector.broadcast %29 : vector<8x1xf32> to vector<8x8xf32>
    %31 = arith.subf %27, %30 : vector<8x8xf32>
    %32 = math.exp %31 : vector<8x8xf32>
    %cst_24 = arith.constant dense<0.000000e+00> : vector<8xf32>
    %33 = vector.multi_reduction <add>, %32, %cst_24 [1] : vector<8x8xf32> to vector<8xf32>
    %34 = vector.shape_cast %33 : vector<8xf32> to vector<8x1xf32>
    %35 = arith.truncf %32 : vector<8x8xf32> to vector<8x8xbf16>
    %cst_25 = arith.constant dense<0.000000e+00> : vector<8x32xf32>
    %36 = tpu.matmul %35, %22, %cst_25 {dimension_numbers = #tpu.dot_dimension_numbers<[1], [0], [0], [1], [0, 0, 1, 1], [], []>} : vector<8x8xbf16>, vector<8x32xbf16>, vector<8x32xf32> -> vector<8x32xf32>
    %37 = tpu.reciprocal %34 {approx = true} : vector<8x1xf32> -> vector<8x1xf32>
    %38 = vector.broadcast %37 : vector<8x1xf32> to vector<8x32xf32>
    %39 = arith.mulf %36, %38 : vector<8x32xf32>
    %40 = arith.truncf %39 : vector<8x32xf32> to vector<8x32xbf16>
    %41 = vector.extract_strided_slice %7 {offsets = [0, 0], sizes = [32, 128], strides = [1, 1]} : vector<128x128xbf16> to vector<32x128xbf16>
    %cst_26 = arith.constant dense<0.000000e+00> : vector<8x128xf32>
    %42 = tpu.matmul %40, %41, %cst_26 {dimension_numbers = #tpu.dot_dimension_numbers<[1], [0], [0], [1], [0, 0, 1, 1], [], []>} : vector<8x32xbf16>, vector<32x128xbf16>, vector<8x128xf32> -> vector<8x128xf32>
    %43 = arith.addf %14, %42 : vector<8x128xf32>
    %44 = vector.extract_strided_slice %1 {offsets = [0, 32], sizes = [8, 32], strides = [1, 1]} : vector<8x128xbf16> to vector<8x32xbf16>
    %45 = vector.extract_strided_slice %3 {offsets = [0, 32], sizes = [8, 32], strides = [1, 1]} : vector<8x128xbf16> to vector<8x32xbf16>
    %cst_27 = arith.constant dense<0.000000e+00> : vector<8x32xf32>
    %46 = tpu.matmul %44, %4, %cst_27 {dimension_numbers = #tpu.dot_dimension_numbers<[1], [0], [0], [1], [0, 0, 1, 1], [], []>} : vector<8x32xbf16>, vector<32x32xbf16>, vector<8x32xf32> -> vector<8x32xf32>
    %47 = arith.truncf %46 : vector<8x32xf32> to vector<8x32xbf16>
    %cst_28 = arith.constant dense<0.000000e+00> : vector<8x32xf32>
    %48 = tpu.matmul %45, %5, %cst_28 {dimension_numbers = #tpu.dot_dimension_numbers<[1], [0], [0], [1], [0, 0, 1, 1], [], []>} : vector<8x32xbf16>, vector<32x32xbf16>, vector<8x32xf32> -> vector<8x32xf32>
    %49 = arith.truncf %48 : vector<8x32xf32> to vector<8x32xbf16>
    %cst_29 = arith.constant dense<0.000000e+00> : vector<8x32xf32>
    %50 = tpu.matmul %45, %6, %cst_29 {dimension_numbers = #tpu.dot_dimension_numbers<[1], [0], [0], [1], [0, 0, 1, 1], [], []>} : vector<8x32xbf16>, vector<32x32xbf16>, vector<8x32xf32> -> vector<8x32xf32>
    %51 = arith.truncf %50 : vector<8x32xf32> to vector<8x32xbf16>
    %cst_30 = arith.constant dense<0.000000e+00> : vector<8x8xf32>
    %52 = tpu.matmul %47, %49, %cst_30 {dimension_numbers = #tpu.dot_dimension_numbers<[1], [1], [0], [0], [0, 0, 1, 0], [], []>} : vector<8x32xbf16>, vector<8x32xbf16>, vector<8x8xf32> -> vector<8x8xf32>
    %cst_31 = arith.constant -1.000000e+20 : f32
    %53 = vector.broadcast %cst_31 : f32 to vector<8x8xf32>
    %54 = arith.select %13, %52, %53 : vector<8x8xi1>, vector<8x8xf32>
    %cst_32 = arith.constant 0.0883883461 : f32
    %55 = vector.broadcast %cst_32 : f32 to vector<8x8xf32>
    %56 = arith.mulf %54, %55 : vector<8x8xf32>
    %cst_33 = arith.constant dense<0xFF800000> : vector<8xf32>
    %57 = vector.multi_reduction <maximumf>, %56, %cst_33 [1] : vector<8x8xf32> to vector<8xf32>
    %58 = vector.shape_cast %57 : vector<8xf32> to vector<8x1xf32>
    %59 = vector.broadcast %58 : vector<8x1xf32> to vector<8x8xf32>
    %60 = arith.subf %56, %59 : vector<8x8xf32>
    %61 = math.exp %60 : vector<8x8xf32>
    %cst_34 = arith.constant dense<0.000000e+00> : vector<8xf32>
    %62 = vector.multi_reduction <add>, %61, %cst_34 [1] : vector<8x8xf32> to vector<8xf32>
    %63 = vector.shape_cast %62 : vector<8xf32> to vector<8x1xf32>
    %64 = arith.truncf %61 : vector<8x8xf32> to vector<8x8xbf16>
    %cst_35 = arith.constant dense<0.000000e+00> : vector<8x32xf32>
    %65 = tpu.matmul %64, %51, %cst_35 {dimension_numbers = #tpu.dot_dimension_numbers<[1], [0], [0], [1], [0, 0, 1, 1], [], []>} : vector<8x8xbf16>, vector<8x32xbf16>, vector<8x32xf32> -> vector<8x32xf32>
    %66 = tpu.reciprocal %63 {approx = true} : vector<8x1xf32> -> vector<8x1xf32>
    %67 = vector.broadcast %66 : vector<8x1xf32> to vector<8x32xf32>
    %68 = arith.mulf %65, %67 : vector<8x32xf32>
    %69 = arith.truncf %68 : vector<8x32xf32> to vector<8x32xbf16>
    %70 = vector.extract_strided_slice %7 {offsets = [32, 0], sizes = [32, 128], strides = [1, 1]} : vector<128x128xbf16> to vector<32x128xbf16>
    %cst_36 = arith.constant dense<0.000000e+00> : vector<8x128xf32>
    %71 = tpu.matmul %69, %70, %cst_36 {dimension_numbers = #tpu.dot_dimension_numbers<[1], [0], [0], [1], [0, 0, 1, 1], [], []>} : vector<8x32xbf16>, vector<32x128xbf16>, vector<8x128xf32> -> vector<8x128xf32>
    %72 = arith.addf %43, %71 : vector<8x128xf32>
    %73 = vector.extract_strided_slice %1 {offsets = [0, 64], sizes = [8, 32], strides = [1, 1]} : vector<8x128xbf16> to vector<8x32xbf16>
    %74 = vector.extract_strided_slice %3 {offsets = [0, 64], sizes = [8, 32], strides = [1, 1]} : vector<8x128xbf16> to vector<8x32xbf16>
    %cst_37 = arith.constant dense<0.000000e+00> : vector<8x32xf32>
    %75 = tpu.matmul %73, %4, %cst_37 {dimension_numbers = #tpu.dot_dimension_numbers<[1], [0], [0], [1], [0, 0, 1, 1], [], []>} : vector<8x32xbf16>, vector<32x32xbf16>, vector<8x32xf32> -> vector<8x32xf32>
    %76 = arith.truncf %75 : vector<8x32xf32> to vector<8x32xbf16>
    %cst_38 = arith.constant dense<0.000000e+00> : vector<8x32xf32>
    %77 = tpu.matmul %74, %5, %cst_38 {dimension_numbers = #tpu.dot_dimension_numbers<[1], [0], [0], [1], [0, 0, 1, 1], [], []>} : vector<8x32xbf16>, vector<32x32xbf16>, vector<8x32xf32> -> vector<8x32xf32>
    %78 = arith.truncf %77 : vector<8x32xf32> to vector<8x32xbf16>
    %cst_39 = arith.constant dense<0.000000e+00> : vector<8x32xf32>
    %79 = tpu.matmul %74, %6, %cst_39 {dimension_numbers = #tpu.dot_dimension_numbers<[1], [0], [0], [1], [0, 0, 1, 1], [], []>} : vector<8x32xbf16>, vector<32x32xbf16>, vector<8x32xf32> -> vector<8x32xf32>
    %80 = arith.truncf %79 : vector<8x32xf32> to vector<8x32xbf16>
    %cst_40 = arith.constant dense<0.000000e+00> : vector<8x8xf32>
    %81 = tpu.matmul %76, %78, %cst_40 {dimension_numbers = #tpu.dot_dimension_numbers<[1], [1], [0], [0], [0, 0, 1, 0], [], []>} : vector<8x32xbf16>, vector<8x32xbf16>, vector<8x8xf32> -> vector<8x8xf32>
    %cst_41 = arith.constant -1.000000e+20 : f32
    %82 = vector.broadcast %cst_41 : f32 to vector<8x8xf32>
    %83 = arith.select %13, %81, %82 : vector<8x8xi1>, vector<8x8xf32>
    %cst_42 = arith.constant 0.0883883461 : f32
    %84 = vector.broadcast %cst_42 : f32 to vector<8x8xf32>
    %85 = arith.mulf %83, %84 : vector<8x8xf32>
    %cst_43 = arith.constant dense<0xFF800000> : vector<8xf32>
    %86 = vector.multi_reduction <maximumf>, %85, %cst_43 [1] : vector<8x8xf32> to vector<8xf32>
    %87 = vector.shape_cast %86 : vector<8xf32> to vector<8x1xf32>
    %88 = vector.broadcast %87 : vector<8x1xf32> to vector<8x8xf32>
    %89 = arith.subf %85, %88 : vector<8x8xf32>
    %90 = math.exp %89 : vector<8x8xf32>
    %cst_44 = arith.constant dense<0.000000e+00> : vector<8xf32>
    %91 = vector.multi_reduction <add>, %90, %cst_44 [1] : vector<8x8xf32> to vector<8xf32>
    %92 = vector.shape_cast %91 : vector<8xf32> to vector<8x1xf32>
    %93 = arith.truncf %90 : vector<8x8xf32> to vector<8x8xbf16>
    %cst_45 = arith.constant dense<0.000000e+00> : vector<8x32xf32>
    %94 = tpu.matmul %93, %80, %cst_45 {dimension_numbers = #tpu.dot_dimension_numbers<[1], [0], [0], [1], [0, 0, 1, 1], [], []>} : vector<8x8xbf16>, vector<8x32xbf16>, vector<8x32xf32> -> vector<8x32xf32>
    %95 = tpu.reciprocal %92 {approx = true} : vector<8x1xf32> -> vector<8x1xf32>
    %96 = vector.broadcast %95 : vector<8x1xf32> to vector<8x32xf32>
    %97 = arith.mulf %94, %96 : vector<8x32xf32>
    %98 = arith.truncf %97 : vector<8x32xf32> to vector<8x32xbf16>
    %99 = vector.extract_strided_slice %7 {offsets = [64, 0], sizes = [32, 128], strides = [1, 1]} : vector<128x128xbf16> to vector<32x128xbf16>
    %cst_46 = arith.constant dense<0.000000e+00> : vector<8x128xf32>
    %100 = tpu.matmul %98, %99, %cst_46 {dimension_numbers = #tpu.dot_dimension_numbers<[1], [0], [0], [1], [0, 0, 1, 1], [], []>} : vector<8x32xbf16>, vector<32x128xbf16>, vector<8x128xf32> -> vector<8x128xf32>
    %101 = arith.addf %72, %100 : vector<8x128xf32>
    %102 = vector.extract_strided_slice %1 {offsets = [0, 96], sizes = [8, 32], strides = [1, 1]} : vector<8x128xbf16> to vector<8x32xbf16>
    %103 = vector.extract_strided_slice %3 {offsets = [0, 96], sizes = [8, 32], strides = [1, 1]} : vector<8x128xbf16> to vector<8x32xbf16>
    %cst_47 = arith.constant dense<0.000000e+00> : vector<8x32xf32>
    %104 = tpu.matmul %102, %4, %cst_47 {dimension_numbers = #tpu.dot_dimension_numbers<[1], [0], [0], [1], [0, 0, 1, 1], [], []>} : vector<8x32xbf16>, vector<32x32xbf16>, vector<8x32xf32> -> vector<8x32xf32>
    %105 = arith.truncf %104 : vector<8x32xf32> to vector<8x32xbf16>
    %cst_48 = arith.constant dense<0.000000e+00> : vector<8x32xf32>
    %106 = tpu.matmul %103, %5, %cst_48 {dimension_numbers = #tpu.dot_dimension_numbers<[1], [0], [0], [1], [0, 0, 1, 1], [], []>} : vector<8x32xbf16>, vector<32x32xbf16>, vector<8x32xf32> -> vector<8x32xf32>
    %107 = arith.truncf %106 : vector<8x32xf32> to vector<8x32xbf16>
    %cst_49 = arith.constant dense<0.000000e+00> : vector<8x32xf32>
    %108 = tpu.matmul %103, %6, %cst_49 {dimension_numbers = #tpu.dot_dimension_numbers<[1], [0], [0], [1], [0, 0, 1, 1], [], []>} : vector<8x32xbf16>, vector<32x32xbf16>, vector<8x32xf32> -> vector<8x32xf32>
    %109 = arith.truncf %108 : vector<8x32xf32> to vector<8x32xbf16>
    %cst_50 = arith.constant dense<0.000000e+00> : vector<8x8xf32>
    %110 = tpu.matmul %105, %107, %cst_50 {dimension_numbers = #tpu.dot_dimension_numbers<[1], [1], [0], [0], [0, 0, 1, 0], [], []>} : vector<8x32xbf16>, vector<8x32xbf16>, vector<8x8xf32> -> vector<8x8xf32>
    %cst_51 = arith.constant -1.000000e+20 : f32
    %111 = vector.broadcast %cst_51 : f32 to vector<8x8xf32>
    %112 = arith.select %13, %110, %111 : vector<8x8xi1>, vector<8x8xf32>
    %cst_52 = arith.constant 0.0883883461 : f32
    %113 = vector.broadcast %cst_52 : f32 to vector<8x8xf32>
    %114 = arith.mulf %112, %113 : vector<8x8xf32>
    %cst_53 = arith.constant dense<0xFF800000> : vector<8xf32>
    %115 = vector.multi_reduction <maximumf>, %114, %cst_53 [1] : vector<8x8xf32> to vector<8xf32>
    %116 = vector.shape_cast %115 : vector<8xf32> to vector<8x1xf32>
    %117 = vector.broadcast %116 : vector<8x1xf32> to vector<8x8xf32>
    %118 = arith.subf %114, %117 : vector<8x8xf32>
    %119 = math.exp %118 : vector<8x8xf32>
    %cst_54 = arith.constant dense<0.000000e+00> : vector<8xf32>
    %120 = vector.multi_reduction <add>, %119, %cst_54 [1] : vector<8x8xf32> to vector<8xf32>
    %121 = vector.shape_cast %120 : vector<8xf32> to vector<8x1xf32>
    %122 = arith.truncf %119 : vector<8x8xf32> to vector<8x8xbf16>
    %cst_55 = arith.constant dense<0.000000e+00> : vector<8x32xf32>
    %123 = tpu.matmul %122, %109, %cst_55 {dimension_numbers = #tpu.dot_dimension_numbers<[1], [0], [0], [1], [0, 0, 1, 1], [], []>} : vector<8x8xbf16>, vector<8x32xbf16>, vector<8x32xf32> -> vector<8x32xf32>
    %124 = tpu.reciprocal %121 {approx = true} : vector<8x1xf32> -> vector<8x1xf32>
    %125 = vector.broadcast %124 : vector<8x1xf32> to vector<8x32xf32>
    %126 = arith.mulf %123, %125 : vector<8x32xf32>
    %127 = arith.truncf %126 : vector<8x32xf32> to vector<8x32xbf16>
    %128 = vector.extract_strided_slice %7 {offsets = [96, 0], sizes = [32, 128], strides = [1, 1]} : vector<128x128xbf16> to vector<32x128xbf16>
    %cst_56 = arith.constant dense<0.000000e+00> : vector<8x128xf32>
    %129 = tpu.matmul %127, %128, %cst_56 {dimension_numbers = #tpu.dot_dimension_numbers<[1], [0], [0], [1], [0, 0, 1, 1], [], []>} : vector<8x32xbf16>, vector<32x128xbf16>, vector<8x128xf32> -> vector<8x128xf32>
    %130 = arith.addf %101, %129 : vector<8x128xf32>
    %c0_57 = arith.constant 0 : index
    %c0_58 = arith.constant 0 : index
    %131 = vector.load %arg8[%c0_57, %c0_58] : memref<1x128xf32, #tpu.memory_space<vmem>>, vector<1x128xf32>
    %132 = vector.broadcast %131 : vector<1x128xf32> to vector<8x128xf32>
    %133 = arith.addf %130, %132 : vector<8x128xf32>
    %134 = arith.extf %1 : vector<8x128xbf16> to vector<8x128xf32>
    %135 = arith.addf %133, %134 : vector<8x128xf32>
    %cst_59 = arith.constant dense<0.000000e+00> : vector<8xf32>
    %136 = vector.multi_reduction <add>, %135, %cst_59 [1] : vector<8x128xf32> to vector<8xf32>
    %137 = vector.shape_cast %136 : vector<8xf32> to vector<8x1xf32>
    %cst_60 = arith.constant 1.280000e+02 : f32
    %138 = vector.broadcast %cst_60 : f32 to vector<8x1xf32>
    %139 = arith.divf %137, %138 : vector<8x1xf32>
    %140 = arith.mulf %135, %135 : vector<8x128xf32>
    %cst_61 = arith.constant dense<0.000000e+00> : vector<8xf32>
    %141 = vector.multi_reduction <add>, %140, %cst_61 [1] : vector<8x128xf32> to vector<8xf32>
    %142 = vector.shape_cast %141 : vector<8xf32> to vector<8x1xf32>
    %cst_62 = arith.constant 1.280000e+02 : f32
    %143 = vector.broadcast %cst_62 : f32 to vector<8x1xf32>
    %144 = arith.divf %142, %143 : vector<8x1xf32>
    %145 = arith.mulf %139, %139 : vector<8x1xf32>
    %146 = arith.subf %144, %145 : vector<8x1xf32>
    %147 = vector.broadcast %139 : vector<8x1xf32> to vector<8x128xf32>
    %148 = arith.subf %135, %147 : vector<8x128xf32>
    %cst_63 = arith.constant 9.99999974E-6 : f32
    %149 = vector.broadcast %cst_63 : f32 to vector<8x1xf32>
    %150 = arith.addf %146, %149 : vector<8x1xf32>
    %151 = math.rsqrt %150 : vector<8x1xf32>
    %152 = vector.broadcast %151 : vector<8x1xf32> to vector<8x128xf32>
    %153 = arith.mulf %148, %152 : vector<8x128xf32>
    %c0_64 = arith.constant 0 : index
    %c0_65 = arith.constant 0 : index
    %154 = vector.load %arg9[%c0_64, %c0_65] : memref<1x128xf32, #tpu.memory_space<vmem>>, vector<1x128xf32>
    %155 = vector.broadcast %154 : vector<1x128xf32> to vector<8x128xf32>
    %156 = arith.mulf %153, %155 : vector<8x128xf32>
    %c0_66 = arith.constant 0 : index
    %c0_67 = arith.constant 0 : index
    %157 = vector.load %arg10[%c0_66, %c0_67] : memref<1x128xf32, #tpu.memory_space<vmem>>, vector<1x128xf32>
    %158 = vector.broadcast %157 : vector<1x128xf32> to vector<8x128xf32>
    %159 = arith.addf %156, %158 : vector<8x128xf32>
    %160 = arith.truncf %159 : vector<8x128xf32> to vector<8x128xbf16>
    %c0_68 = arith.constant 0 : index
    %c0_69 = arith.constant 0 : index
    %c0_70 = arith.constant 0 : index
    %161 = vector.load %arg11[%c0_68, %c0_69, %c0_70] : memref<1x8x128xbf16, #tpu.memory_space<vmem>>, vector<1x8x128xbf16>
    %162 = vector.shape_cast %161 : vector<1x8x128xbf16> to vector<8x128xbf16>
    %163 = vector.shape_cast %160 : vector<8x128xbf16> to vector<1x8x128xbf16>
    tpu.vector_store %arg11[%c0_68, %c0_69, %c0_70], %163 {strides = array<i32>} : memref<1x8x128xbf16, #tpu.memory_space<vmem>>, vector<1x8x128xbf16>,
    return
  }
  func.func @transform_0(%arg0: i32) -> (i32, i32, i32) {
    %c0_i32 = arith.constant 0 : i32
    %c0_i32_0 = arith.constant 0 : i32
    %c0_i32_1 = arith.constant 0 : i32
    return %arg0, %c0_i32, %c0_i32_0 : i32, i32, i32
  }
  func.func @transform_1(%arg0: i32) -> (i32, i32, i32) {
    %c0_i32 = arith.constant 0 : i32
    %c0_i32_0 = arith.constant 0 : i32
    %c0_i32_1 = arith.constant 0 : i32
    return %arg0, %c0_i32, %c0_i32_0 : i32, i32, i32
  }
  func.func @transform_2(%arg0: i32) -> (i32, i32, i32) {
    %c0_i32 = arith.constant 0 : i32
    %c0_i32_0 = arith.constant 0 : i32
    %c0_i32_1 = arith.constant 0 : i32
    return %arg0, %c0_i32, %c0_i32_0 : i32, i32, i32
  }
  func.func @transform_3(%arg0: i32) -> (i32, i32) {
    %c0_i32 = arith.constant 0 : i32
    %c0_i32_0 = arith.constant 0 : i32
    %c0_i32_1 = arith.constant 0 : i32
    return %c0_i32, %c0_i32_0 : i32, i32
  }
  func.func @transform_4(%arg0: i32) -> (i32, i32) {
    %c0_i32 = arith.constant 0 : i32
    %c0_i32_0 = arith.constant 0 : i32
    %c0_i32_1 = arith.constant 0 : i32
    return %c0_i32, %c0_i32_0 : i32, i32
  }
  func.func @transform_5(%arg0: i32) -> (i32, i32) {
    %c0_i32 = arith.constant 0 : i32
    %c0_i32_0 = arith.constant 0 : i32
    %c0_i32_1 = arith.constant 0 : i32
    return %c0_i32, %c0_i32_0 : i32, i32
  }
  func.func @transform_6(%arg0: i32) -> (i32, i32) {
    %c0_i32 = arith.constant 0 : i32
    %c0_i32_0 = arith.constant 0 : i32
    %c0_i32_1 = arith.constant 0 : i32
    return %c0_i32, %c0_i32_0 : i32, i32
  }
  func.func @transform_7(%arg0: i32) -> (i32, i32) {
    %c0_i32 = arith.constant 0 : i32
    %c0_i32_0 = arith.constant 0 : i32
    %c0_i32_1 = arith.constant 0 : i32
    return %c0_i32, %c0_i32_0 : i32, i32
  }
  func.func @transform_8(%arg0: i32) -> (i32, i32) {
    %c0_i32 = arith.constant 0 : i32
    %c0_i32_0 = arith.constant 0 : i32
    %c0_i32_1 = arith.constant 0 : i32
    return %c0_i32, %c0_i32_0 : i32, i32
  }
  func.func @transform_9(%arg0: i32) -> (i32, i32) {
    %c0_i32 = arith.constant 0 : i32
    %c0_i32_0 = arith.constant 0 : i32
    %c0_i32_1 = arith.constant 0 : i32
    return %c0_i32, %c0_i32_0 : i32, i32
  }
  func.func @transform_10(%arg0: i32) -> (i32, i32, i32) {
    %c0_i32 = arith.constant 0 : i32
    %c0_i32_0 = arith.constant 0 : i32
    %c0_i32_1 = arith.constant 0 : i32
    return %arg0, %c0_i32, %c0_i32_0 : i32, i32, i32
  }
}

module attributes {stable_mosaic.version = 11 : i64} {
  func.func @fused_ffn_ln_kernel(%arg0: i32, %arg1: memref<16x128xbf16, #tpu.memory_space<vmem>>, %arg2: memref<128x512xbf16, #tpu.memory_space<vmem>>, %arg3: memref<1x512xf32, #tpu.memory_space<vmem>>, %arg4: memref<512x128xbf16, #tpu.memory_space<vmem>>, %arg5: memref<1x128xf32, #tpu.memory_space<vmem>>, %arg6: memref<1x128xf32, #tpu.memory_space<vmem>>, %arg7: memref<1x128xf32, #tpu.memory_space<vmem>>, %arg8: memref<16x128xbf16, #tpu.memory_space<vmem>>) attributes {dimension_semantics = [#tpu.dimension_semantics<parallel>], iteration_bounds = array<i64: 1>, scalar_prefetch = 0 : i64, scratch_operands = 0 : i64, tpu.core_type = #tpu.core_type<tc>, window_params = [{transform_indices = @transform_0, window_bounds = array<i64: 16, 128>}, {pipeline_mode = #tpu.pipeline_mode<synchronous>, transform_indices = @transform_1, window_bounds = array<i64: 128, 512>}, {pipeline_mode = #tpu.pipeline_mode<synchronous>, transform_indices = @transform_2, window_bounds = array<i64: 1, 512>}, {pipeline_mode = #tpu.pipeline_mode<synchronous>, transform_indices = @transform_3, window_bounds = array<i64: 512, 128>}, {pipeline_mode = #tpu.pipeline_mode<synchronous>, transform_indices = @transform_4, window_bounds = array<i64: 1, 128>}, {pipeline_mode = #tpu.pipeline_mode<synchronous>, transform_indices = @transform_5, window_bounds = array<i64: 1, 128>}, {pipeline_mode = #tpu.pipeline_mode<synchronous>, transform_indices = @transform_6, window_bounds = array<i64: 1, 128>}, {transform_indices = @transform_7, window_bounds = array<i64: 16, 128>}]} {
    %c0 = arith.constant 0 : index
    %c0_0 = arith.constant 0 : index
    %0 = vector.load %arg1[%c0, %c0_0] : memref<16x128xbf16, #tpu.memory_space<vmem>>, vector<16x128xbf16>
    %c0_1 = arith.constant 0 : index
    %c0_2 = arith.constant 0 : index
    %1 = vector.load %arg2[%c0_1, %c0_2] : memref<128x512xbf16, #tpu.memory_space<vmem>>, vector<128x512xbf16>
    %cst = arith.constant dense<0.000000e+00> : vector<16x512xf32>
    %2 = tpu.matmul %0, %1, %cst {dimension_numbers = #tpu.dot_dimension_numbers<[1], [0], [0], [1], [0, 0, 1, 1], [], []>} : vector<16x128xbf16>, vector<128x512xbf16>, vector<16x512xf32> -> vector<16x512xf32>
    %c0_3 = arith.constant 0 : index
    %c0_4 = arith.constant 0 : index
    %3 = vector.load %arg3[%c0_3, %c0_4] : memref<1x512xf32, #tpu.memory_space<vmem>>, vector<1x512xf32>
    %4 = vector.broadcast %3 : vector<1x512xf32> to vector<16x512xf32>
    %5 = arith.addf %2, %4 : vector<16x512xf32>
    %cst_5 = arith.constant 0.000000e+00 : f32
    %6 = vector.broadcast %cst_5 : f32 to vector<16x512xf32>
    %7 = arith.maximumf %5, %6 : vector<16x512xf32>
    %8 = arith.truncf %7 : vector<16x512xf32> to vector<16x512xbf16>
    %c0_6 = arith.constant 0 : index
    %c0_7 = arith.constant 0 : index
    %9 = vector.load %arg4[%c0_6, %c0_7] : memref<512x128xbf16, #tpu.memory_space<vmem>>, vector<512x128xbf16>
    %cst_8 = arith.constant dense<0.000000e+00> : vector<16x128xf32>
    %10 = tpu.matmul %8, %9, %cst_8 {dimension_numbers = #tpu.dot_dimension_numbers<[1], [0], [0], [1], [0, 0, 1, 1], [], []>} : vector<16x512xbf16>, vector<512x128xbf16>, vector<16x128xf32> -> vector<16x128xf32>
    %c0_9 = arith.constant 0 : index
    %c0_10 = arith.constant 0 : index
    %11 = vector.load %arg5[%c0_9, %c0_10] : memref<1x128xf32, #tpu.memory_space<vmem>>, vector<1x128xf32>
    %12 = vector.broadcast %11 : vector<1x128xf32> to vector<16x128xf32>
    %13 = arith.addf %10, %12 : vector<16x128xf32>
    %14 = arith.extf %0 : vector<16x128xbf16> to vector<16x128xf32>
    %15 = arith.addf %13, %14 : vector<16x128xf32>
    %cst_11 = arith.constant dense<0.000000e+00> : vector<16xf32>
    %16 = vector.multi_reduction <add>, %15, %cst_11 [1] : vector<16x128xf32> to vector<16xf32>
    %17 = vector.shape_cast %16 : vector<16xf32> to vector<16x1xf32>
    %cst_12 = arith.constant 1.280000e+02 : f32
    %18 = vector.broadcast %cst_12 : f32 to vector<16x1xf32>
    %19 = arith.divf %17, %18 : vector<16x1xf32>
    %20 = arith.mulf %15, %15 : vector<16x128xf32>
    %cst_13 = arith.constant dense<0.000000e+00> : vector<16xf32>
    %21 = vector.multi_reduction <add>, %20, %cst_13 [1] : vector<16x128xf32> to vector<16xf32>
    %22 = vector.shape_cast %21 : vector<16xf32> to vector<16x1xf32>
    %cst_14 = arith.constant 1.280000e+02 : f32
    %23 = vector.broadcast %cst_14 : f32 to vector<16x1xf32>
    %24 = arith.divf %22, %23 : vector<16x1xf32>
    %25 = arith.mulf %19, %19 : vector<16x1xf32>
    %26 = arith.subf %24, %25 : vector<16x1xf32>
    %27 = vector.broadcast %19 : vector<16x1xf32> to vector<16x128xf32>
    %28 = arith.subf %15, %27 : vector<16x128xf32>
    %cst_15 = arith.constant 9.99999974E-6 : f32
    %29 = vector.broadcast %cst_15 : f32 to vector<16x1xf32>
    %30 = arith.addf %26, %29 : vector<16x1xf32>
    %31 = math.rsqrt %30 : vector<16x1xf32>
    %32 = vector.broadcast %31 : vector<16x1xf32> to vector<16x128xf32>
    %33 = arith.mulf %28, %32 : vector<16x128xf32>
    %c0_16 = arith.constant 0 : index
    %c0_17 = arith.constant 0 : index
    %34 = vector.load %arg6[%c0_16, %c0_17] : memref<1x128xf32, #tpu.memory_space<vmem>>, vector<1x128xf32>
    %35 = vector.broadcast %34 : vector<1x128xf32> to vector<16x128xf32>
    %36 = arith.mulf %33, %35 : vector<16x128xf32>
    %c0_18 = arith.constant 0 : index
    %c0_19 = arith.constant 0 : index
    %37 = vector.load %arg7[%c0_18, %c0_19] : memref<1x128xf32, #tpu.memory_space<vmem>>, vector<1x128xf32>
    %38 = vector.broadcast %37 : vector<1x128xf32> to vector<16x128xf32>
    %39 = arith.addf %36, %38 : vector<16x128xf32>
    %40 = arith.truncf %39 : vector<16x128xf32> to vector<16x128xbf16>
    %c0_20 = arith.constant 0 : index
    %c0_21 = arith.constant 0 : index
    %41 = vector.load %arg8[%c0_20, %c0_21] : memref<16x128xbf16, #tpu.memory_space<vmem>>, vector<16x128xbf16>
    tpu.vector_store %arg8[%c0_20, %c0_21], %40 {strides = array<i32>} : memref<16x128xbf16, #tpu.memory_space<vmem>>, vector<16x128xbf16>,
    return
  }
  func.func @transform_0(%arg0: i32) -> (i32, i32) {
    %c0_i32 = arith.constant 0 : i32
    %c0_i32_0 = arith.constant 0 : i32
    return %arg0, %c0_i32 : i32, i32
  }
  func.func @transform_1(%arg0: i32) -> (i32, i32) {
    %c0_i32 = arith.constant 0 : i32
    %c0_i32_0 = arith.constant 0 : i32
    %c0_i32_1 = arith.constant 0 : i32
    return %c0_i32, %c0_i32_0 : i32, i32
  }
  func.func @transform_2(%arg0: i32) -> (i32, i32) {
    %c0_i32 = arith.constant 0 : i32
    %c0_i32_0 = arith.constant 0 : i32
    %c0_i32_1 = arith.constant 0 : i32
    return %c0_i32, %c0_i32_0 : i32, i32
  }
  func.func @transform_3(%arg0: i32) -> (i32, i32) {
    %c0_i32 = arith.constant 0 : i32
    %c0_i32_0 = arith.constant 0 : i32
    %c0_i32_1 = arith.constant 0 : i32
    return %c0_i32, %c0_i32_0 : i32, i32
  }
  func.func @transform_4(%arg0: i32) -> (i32, i32) {
    %c0_i32 = arith.constant 0 : i32
    %c0_i32_0 = arith.constant 0 : i32
    %c0_i32_1 = arith.constant 0 : i32
    return %c0_i32, %c0_i32_0 : i32, i32
  }
  func.func @transform_5(%arg0: i32) -> (i32, i32) {
    %c0_i32 = arith.constant 0 : i32
    %c0_i32_0 = arith.constant 0 : i32
    %c0_i32_1 = arith.constant 0 : i32
    return %c0_i32, %c0_i32_0 : i32, i32
  }
  func.func @transform_6(%arg0: i32) -> (i32, i32) {
    %c0_i32 = arith.constant 0 : i32
    %c0_i32_0 = arith.constant 0 : i32
    %c0_i32_1 = arith.constant 0 : i32
    return %c0_i32, %c0_i32_0 : i32, i32
  }
  func.func @transform_7(%arg0: i32) -> (i32, i32) {
    %c0_i32 = arith.constant 0 : i32
    %c0_i32_0 = arith.constant 0 : i32
    return %arg0, %c0_i32 : i32, i32
  }
}

module attributes {stable_mosaic.version = 11 : i64} {
  func.func @fused_attn_ln_kernel(%arg0: i32, %arg1: memref<1x8x128xbf16, #tpu.memory_space<vmem>>, %arg2: memref<1x8x128xbf16, #tpu.memory_space<vmem>>, %arg3: memref<1x1x8xf32, #tpu.memory_space<vmem>>, %arg4: memref<32x32xbf16, #tpu.memory_space<vmem>>, %arg5: memref<32x32xbf16, #tpu.memory_space<vmem>>, %arg6: memref<32x32xbf16, #tpu.memory_space<vmem>>, %arg7: memref<128x128xbf16, #tpu.memory_space<vmem>>, %arg8: memref<1x128xf32, #tpu.memory_space<vmem>>, %arg9: memref<1x128xf32, #tpu.memory_space<vmem>>, %arg10: memref<1x128xf32, #tpu.memory_space<vmem>>, %arg11: memref<1x8x128xbf16, #tpu.memory_space<vmem>>) attributes {dimension_semantics = [#tpu.dimension_semantics<parallel>], iteration_bounds = array<i64: 2>, scalar_prefetch = 0 : i64, scratch_operands = 0 : i64, tpu.core_type = #tpu.core_type<tc>, window_params = [{transform_indices = @transform_0, window_bounds = array<i64: 1, 8, 128>}, {transform_indices = @transform_1, window_bounds = array<i64: 1, 8, 128>}, {transform_indices = @transform_2, window_bounds = array<i64: 1, 1, 8>}, {pipeline_mode = #tpu.pipeline_mode<synchronous>, transform_indices = @transform_3, window_bounds = array<i64: 32, 32>}, {pipeline_mode = #tpu.pipeline_mode<synchronous>, transform_indices = @transform_4, window_bounds = array<i64: 32, 32>}, {pipeline_mode = #tpu.pipeline_mode<synchronous>, transform_indices = @transform_5, window_bounds = array<i64: 32, 32>}, {pipeline_mode = #tpu.pipeline_mode<synchronous>, transform_indices = @transform_6, window_bounds = array<i64: 128, 128>}, {pipeline_mode = #tpu.pipeline_mode<synchronous>, transform_indices = @transform_7, window_bounds = array<i64: 1, 128>}, {pipeline_mode = #tpu.pipeline_mode<synchronous>, transform_indices = @transform_8, window_bounds = array<i64: 1, 128>}, {pipeline_mode = #tpu.pipeline_mode<synchronous>, transform_indices = @transform_9, window_bounds = array<i64: 1, 128>}, {transform_indices = @transform_10, window_bounds = array<i64: 1, 8, 128>}]} {
    %c0 = arith.constant 0 : index
    %c0_0 = arith.constant 0 : index
    %c0_1 = arith.constant 0 : index
    %0 = vector.load %arg1[%c0, %c0_0, %c0_1] : memref<1x8x128xbf16, #tpu.memory_space<vmem>>, vector<1x8x128xbf16>
    %1 = vector.shape_cast %0 : vector<1x8x128xbf16> to vector<8x128xbf16>
    %c0_2 = arith.constant 0 : index
    %c0_3 = arith.constant 0 : index
    %c0_4 = arith.constant 0 : index
    %2 = vector.load %arg2[%c0_2, %c0_3, %c0_4] : memref<1x8x128xbf16, #tpu.memory_space<vmem>>, vector<1x8x128xbf16>
    %3 = vector.shape_cast %2 : vector<1x8x128xbf16> to vector<8x128xbf16>
    %c0_5 = arith.constant 0 : index
    %c0_6 = arith.constant 0 : index
    %4 = vector.load %arg4[%c0_5, %c0_6] : memref<32x32xbf16, #tpu.memory_space<vmem>>, vector<32x32xbf16>
    %c0_7 = arith.constant 0 : index
    %c0_8 = arith.constant 0 : index
    %5 = vector.load %arg5[%c0_7, %c0_8] : memref<32x32xbf16, #tpu.memory_space<vmem>>, vector<32x32xbf16>
    %c0_9 = arith.constant 0 : index
    %c0_10 = arith.constant 0 : index
    %6 = vector.load %arg6[%c0_9, %c0_10] : memref<32x32xbf16, #tpu.memory_space<vmem>>, vector<32x32xbf16>
    %c0_11 = arith.constant 0 : index
    %c0_12 = arith.constant 0 : index
    %7 = vector.load %arg7[%c0_11, %c0_12] : memref<128x128xbf16, #tpu.memory_space<vmem>>, vector<128x128xbf16>
    %c0_13 = arith.constant 0 : index
    %c0_14 = arith.constant 0 : index
    %c0_15 = arith.constant 0 : index
    %8 = vector.load %arg3[%c0_13, %c0_14, %c0_15] : memref<1x1x8xf32, #tpu.memory_space<vmem>>, vector<1x1x8xf32>
    %9 = vector.shape_cast %8 : vector<1x1x8xf32> to vector<1x8xf32>
    %cst = arith.constant 0.000000e+00 : f32
    %10 = vector.broadcast %cst : f32 to vector<1x8xf32>
    %11 = arith.cmpf ogt, %9, %10 : vector<1x8xf32>
    %12 = vector.shape_cast %11 : vector<1x8xi1> to vector<1x8xi1>
    %13 = vector.broadcast %12 : vector<1x8xi1> to vector<8x8xi1>
    %cst_16 = arith.constant 0.000000e+00 : f32
    %14 = vector.broadcast %cst_16 : f32 to vector<8x128xf32>
    %15 = vector.extract_strided_slice %1 {offsets = [0, 0], sizes = [8, 32], strides = [1, 1]} : vector<8x128xbf16> to vector<8x32xbf16>
    %16 = vector.extract_strided_slice %3 {offsets = [0, 0], sizes = [8, 32], strides = [1, 1]} : vector<8x128xbf16> to vector<8x32xbf16>
    %cst_17 = arith.constant dense<0.000000e+00> : vector<8x32xf32>
    %17 = tpu.matmul %15, %4, %cst_17 {dimension_numbers = #tpu.dot_dimension_numbers<[1], [0], [0], [1], [0, 0, 1, 1], [], []>} : vector<8x32xbf16>, vector<32x32xbf16>, vector<8x32xf32> -> vector<8x32xf32>
    %18 = arith.truncf %17 : vector<8x32xf32> to vector<8x32xbf16>
    %cst_18 = arith.constant dense<0.000000e+00> : vector<8x32xf32>
    %19 = tpu.matmul %16, %5, %cst_18 {dimension_numbers = #tpu.dot_dimension_numbers<[1], [0], [0], [1], [0, 0, 1, 1], [], []>} : vector<8x32xbf16>, vector<32x32xbf16>, vector<8x32xf32> -> vector<8x32xf32>
    %20 = arith.truncf %19 : vector<8x32xf32> to vector<8x32xbf16>
    %cst_19 = arith.constant dense<0.000000e+00> : vector<8x32xf32>
    %21 = tpu.matmul %16, %6, %cst_19 {dimension_numbers = #tpu.dot_dimension_numbers<[1], [0], [0], [1], [0, 0, 1, 1], [], []>} : vector<8x32xbf16>, vector<32x32xbf16>, vector<8x32xf32> -> vector<8x32xf32>
    %22 = arith.truncf %21 : vector<8x32xf32> to vector<8x32xbf16>
    %cst_20 = arith.constant dense<0.000000e+00> : vector<8x8xf32>
    %23 = tpu.matmul %18, %20, %cst_20 {dimension_numbers = #tpu.dot_dimension_numbers<[1], [1], [0], [0], [0, 0, 1, 0], [], []>} : vector<8x32xbf16>, vector<8x32xbf16>, vector<8x8xf32> -> vector<8x8xf32>
    %cst_21 = arith.constant -1.000000e+20 : f32
    %24 = vector.broadcast %cst_21 : f32 to vector<8x8xf32>
    %25 = arith.select %13, %23, %24 : vector<8x8xi1>, vector<8x8xf32>
    %cst_22 = arith.constant 0.0883883461 : f32
    %26 = vector.broadcast %cst_22 : f32 to vector<8x8xf32>
    %27 = arith.mulf %25, %26 : vector<8x8xf32>
    %cst_23 = arith.constant dense<0xFF800000> : vector<8xf32>
    %28 = vector.multi_reduction <maximumf>, %27, %cst_23 [1] : vector<8x8xf32> to vector<8xf32>
    %29 = vector.shape_cast %28 : vector<8xf32> to vector<8x1xf32>
    %30 = vector.broadcast %29 : vector<8x1xf32> to vector<8x8xf32>
    %31 = arith.subf %27, %30 : vector<8x8xf32>
    %32 = math.exp %31 : vector<8x8xf32>
    %cst_24 = arith.constant dense<0.000000e+00> : vector<8xf32>
    %33 = vector.multi_reduction <add>, %32, %cst_24 [1] : vector<8x8xf32> to vector<8xf32>
    %34 = vector.shape_cast %33 : vector<8xf32> to vector<8x1xf32>
    %35 = arith.truncf %32 : vector<8x8xf32> to vector<8x8xbf16>
    %cst_25 = arith.constant dense<0.000000e+00> : vector<8x32xf32>
    %36 = tpu.matmul %35, %22, %cst_25 {dimension_numbers = #tpu.dot_dimension_numbers<[1], [0], [0], [1], [0, 0, 1, 1], [], []>} : vector<8x8xbf16>, vector<8x32xbf16>, vector<8x32xf32> -> vector<8x32xf32>
    %37 = tpu.reciprocal %34 {approx = true} : vector<8x1xf32> -> vector<8x1xf32>
    %38 = vector.broadcast %37 : vector<8x1xf32> to vector<8x32xf32>
    %39 = arith.mulf %36, %38 : vector<8x32xf32>
    %40 = arith.truncf %39 : vector<8x32xf32> to vector<8x32xbf16>
    %41 = vector.extract_strided_slice %7 {offsets = [0, 0], sizes = [32, 128], strides = [1, 1]} : vector<128x128xbf16> to vector<32x128xbf16>
    %cst_26 = arith.constant dense<0.000000e+00> : vector<8x128xf32>
    %42 = tpu.matmul %40, %41, %cst_26 {dimension_numbers = #tpu.dot_dimension_numbers<[1], [0], [0], [1], [0, 0, 1, 1], [], []>} : vector<8x32xbf16>, vector<32x128xbf16>, vector<8x128xf32> -> vector<8x128xf32>
    %43 = arith.addf %14, %42 : vector<8x128xf32>
    %44 = vector.extract_strided_slice %1 {offsets = [0, 32], sizes = [8, 32], strides = [1, 1]} : vector<8x128xbf16> to vector<8x32xbf16>
    %45 = vector.extract_strided_slice %3 {offsets = [0, 32], sizes = [8, 32], strides = [1, 1]} : vector<8x128xbf16> to vector<8x32xbf16>
    %cst_27 = arith.constant dense<0.000000e+00> : vector<8x32xf32>
    %46 = tpu.matmul %44, %4, %cst_27 {dimension_numbers = #tpu.dot_dimension_numbers<[1], [0], [0], [1], [0, 0, 1, 1], [], []>} : vector<8x32xbf16>, vector<32x32xbf16>, vector<8x32xf32> -> vector<8x32xf32>
    %47 = arith.truncf %46 : vector<8x32xf32> to vector<8x32xbf16>
    %cst_28 = arith.constant dense<0.000000e+00> : vector<8x32xf32>
    %48 = tpu.matmul %45, %5, %cst_28 {dimension_numbers = #tpu.dot_dimension_numbers<[1], [0], [0], [1], [0, 0, 1, 1], [], []>} : vector<8x32xbf16>, vector<32x32xbf16>, vector<8x32xf32> -> vector<8x32xf32>
    %49 = arith.truncf %48 : vector<8x32xf32> to vector<8x32xbf16>
    %cst_29 = arith.constant dense<0.000000e+00> : vector<8x32xf32>
    %50 = tpu.matmul %45, %6, %cst_29 {dimension_numbers = #tpu.dot_dimension_numbers<[1], [0], [0], [1], [0, 0, 1, 1], [], []>} : vector<8x32xbf16>, vector<32x32xbf16>, vector<8x32xf32> -> vector<8x32xf32>
    %51 = arith.truncf %50 : vector<8x32xf32> to vector<8x32xbf16>
    %cst_30 = arith.constant dense<0.000000e+00> : vector<8x8xf32>
    %52 = tpu.matmul %47, %49, %cst_30 {dimension_numbers = #tpu.dot_dimension_numbers<[1], [1], [0], [0], [0, 0, 1, 0], [], []>} : vector<8x32xbf16>, vector<8x32xbf16>, vector<8x8xf32> -> vector<8x8xf32>
    %cst_31 = arith.constant -1.000000e+20 : f32
    %53 = vector.broadcast %cst_31 : f32 to vector<8x8xf32>
    %54 = arith.select %13, %52, %53 : vector<8x8xi1>, vector<8x8xf32>
    %cst_32 = arith.constant 0.0883883461 : f32
    %55 = vector.broadcast %cst_32 : f32 to vector<8x8xf32>
    %56 = arith.mulf %54, %55 : vector<8x8xf32>
    %cst_33 = arith.constant dense<0xFF800000> : vector<8xf32>
    %57 = vector.multi_reduction <maximumf>, %56, %cst_33 [1] : vector<8x8xf32> to vector<8xf32>
    %58 = vector.shape_cast %57 : vector<8xf32> to vector<8x1xf32>
    %59 = vector.broadcast %58 : vector<8x1xf32> to vector<8x8xf32>
    %60 = arith.subf %56, %59 : vector<8x8xf32>
    %61 = math.exp %60 : vector<8x8xf32>
    %cst_34 = arith.constant dense<0.000000e+00> : vector<8xf32>
    %62 = vector.multi_reduction <add>, %61, %cst_34 [1] : vector<8x8xf32> to vector<8xf32>
    %63 = vector.shape_cast %62 : vector<8xf32> to vector<8x1xf32>
    %64 = arith.truncf %61 : vector<8x8xf32> to vector<8x8xbf16>
    %cst_35 = arith.constant dense<0.000000e+00> : vector<8x32xf32>
    %65 = tpu.matmul %64, %51, %cst_35 {dimension_numbers = #tpu.dot_dimension_numbers<[1], [0], [0], [1], [0, 0, 1, 1], [], []>} : vector<8x8xbf16>, vector<8x32xbf16>, vector<8x32xf32> -> vector<8x32xf32>
    %66 = tpu.reciprocal %63 {approx = true} : vector<8x1xf32> -> vector<8x1xf32>
    %67 = vector.broadcast %66 : vector<8x1xf32> to vector<8x32xf32>
    %68 = arith.mulf %65, %67 : vector<8x32xf32>
    %69 = arith.truncf %68 : vector<8x32xf32> to vector<8x32xbf16>
    %70 = vector.extract_strided_slice %7 {offsets = [32, 0], sizes = [32, 128], strides = [1, 1]} : vector<128x128xbf16> to vector<32x128xbf16>
    %cst_36 = arith.constant dense<0.000000e+00> : vector<8x128xf32>
    %71 = tpu.matmul %69, %70, %cst_36 {dimension_numbers = #tpu.dot_dimension_numbers<[1], [0], [0], [1], [0, 0, 1, 1], [], []>} : vector<8x32xbf16>, vector<32x128xbf16>, vector<8x128xf32> -> vector<8x128xf32>
    %72 = arith.addf %43, %71 : vector<8x128xf32>
    %73 = vector.extract_strided_slice %1 {offsets = [0, 64], sizes = [8, 32], strides = [1, 1]} : vector<8x128xbf16> to vector<8x32xbf16>
    %74 = vector.extract_strided_slice %3 {offsets = [0, 64], sizes = [8, 32], strides = [1, 1]} : vector<8x128xbf16> to vector<8x32xbf16>
    %cst_37 = arith.constant dense<0.000000e+00> : vector<8x32xf32>
    %75 = tpu.matmul %73, %4, %cst_37 {dimension_numbers = #tpu.dot_dimension_numbers<[1], [0], [0], [1], [0, 0, 1, 1], [], []>} : vector<8x32xbf16>, vector<32x32xbf16>, vector<8x32xf32> -> vector<8x32xf32>
    %76 = arith.truncf %75 : vector<8x32xf32> to vector<8x32xbf16>
    %cst_38 = arith.constant dense<0.000000e+00> : vector<8x32xf32>
    %77 = tpu.matmul %74, %5, %cst_38 {dimension_numbers = #tpu.dot_dimension_numbers<[1], [0], [0], [1], [0, 0, 1, 1], [], []>} : vector<8x32xbf16>, vector<32x32xbf16>, vector<8x32xf32> -> vector<8x32xf32>
    %78 = arith.truncf %77 : vector<8x32xf32> to vector<8x32xbf16>
    %cst_39 = arith.constant dense<0.000000e+00> : vector<8x32xf32>
    %79 = tpu.matmul %74, %6, %cst_39 {dimension_numbers = #tpu.dot_dimension_numbers<[1], [0], [0], [1], [0, 0, 1, 1], [], []>} : vector<8x32xbf16>, vector<32x32xbf16>, vector<8x32xf32> -> vector<8x32xf32>
    %80 = arith.truncf %79 : vector<8x32xf32> to vector<8x32xbf16>
    %cst_40 = arith.constant dense<0.000000e+00> : vector<8x8xf32>
    %81 = tpu.matmul %76, %78, %cst_40 {dimension_numbers = #tpu.dot_dimension_numbers<[1], [1], [0], [0], [0, 0, 1, 0], [], []>} : vector<8x32xbf16>, vector<8x32xbf16>, vector<8x8xf32> -> vector<8x8xf32>
    %cst_41 = arith.constant -1.000000e+20 : f32
    %82 = vector.broadcast %cst_41 : f32 to vector<8x8xf32>
    %83 = arith.select %13, %81, %82 : vector<8x8xi1>, vector<8x8xf32>
    %cst_42 = arith.constant 0.0883883461 : f32
    %84 = vector.broadcast %cst_42 : f32 to vector<8x8xf32>
    %85 = arith.mulf %83, %84 : vector<8x8xf32>
    %cst_43 = arith.constant dense<0xFF800000> : vector<8xf32>
    %86 = vector.multi_reduction <maximumf>, %85, %cst_43 [1] : vector<8x8xf32> to vector<8xf32>
    %87 = vector.shape_cast %86 : vector<8xf32> to vector<8x1xf32>
    %88 = vector.broadcast %87 : vector<8x1xf32> to vector<8x8xf32>
    %89 = arith.subf %85, %88 : vector<8x8xf32>
    %90 = math.exp %89 : vector<8x8xf32>
    %cst_44 = arith.constant dense<0.000000e+00> : vector<8xf32>
    %91 = vector.multi_reduction <add>, %90, %cst_44 [1] : vector<8x8xf32> to vector<8xf32>
    %92 = vector.shape_cast %91 : vector<8xf32> to vector<8x1xf32>
    %93 = arith.truncf %90 : vector<8x8xf32> to vector<8x8xbf16>
    %cst_45 = arith.constant dense<0.000000e+00> : vector<8x32xf32>
    %94 = tpu.matmul %93, %80, %cst_45 {dimension_numbers = #tpu.dot_dimension_numbers<[1], [0], [0], [1], [0, 0, 1, 1], [], []>} : vector<8x8xbf16>, vector<8x32xbf16>, vector<8x32xf32> -> vector<8x32xf32>
    %95 = tpu.reciprocal %92 {approx = true} : vector<8x1xf32> -> vector<8x1xf32>
    %96 = vector.broadcast %95 : vector<8x1xf32> to vector<8x32xf32>
    %97 = arith.mulf %94, %96 : vector<8x32xf32>
    %98 = arith.truncf %97 : vector<8x32xf32> to vector<8x32xbf16>
    %99 = vector.extract_strided_slice %7 {offsets = [64, 0], sizes = [32, 128], strides = [1, 1]} : vector<128x128xbf16> to vector<32x128xbf16>
    %cst_46 = arith.constant dense<0.000000e+00> : vector<8x128xf32>
    %100 = tpu.matmul %98, %99, %cst_46 {dimension_numbers = #tpu.dot_dimension_numbers<[1], [0], [0], [1], [0, 0, 1, 1], [], []>} : vector<8x32xbf16>, vector<32x128xbf16>, vector<8x128xf32> -> vector<8x128xf32>
    %101 = arith.addf %72, %100 : vector<8x128xf32>
    %102 = vector.extract_strided_slice %1 {offsets = [0, 96], sizes = [8, 32], strides = [1, 1]} : vector<8x128xbf16> to vector<8x32xbf16>
    %103 = vector.extract_strided_slice %3 {offsets = [0, 96], sizes = [8, 32], strides = [1, 1]} : vector<8x128xbf16> to vector<8x32xbf16>
    %cst_47 = arith.constant dense<0.000000e+00> : vector<8x32xf32>
    %104 = tpu.matmul %102, %4, %cst_47 {dimension_numbers = #tpu.dot_dimension_numbers<[1], [0], [0], [1], [0, 0, 1, 1], [], []>} : vector<8x32xbf16>, vector<32x32xbf16>, vector<8x32xf32> -> vector<8x32xf32>
    %105 = arith.truncf %104 : vector<8x32xf32> to vector<8x32xbf16>
    %cst_48 = arith.constant dense<0.000000e+00> : vector<8x32xf32>
    %106 = tpu.matmul %103, %5, %cst_48 {dimension_numbers = #tpu.dot_dimension_numbers<[1], [0], [0], [1], [0, 0, 1, 1], [], []>} : vector<8x32xbf16>, vector<32x32xbf16>, vector<8x32xf32> -> vector<8x32xf32>
    %107 = arith.truncf %106 : vector<8x32xf32> to vector<8x32xbf16>
    %cst_49 = arith.constant dense<0.000000e+00> : vector<8x32xf32>
    %108 = tpu.matmul %103, %6, %cst_49 {dimension_numbers = #tpu.dot_dimension_numbers<[1], [0], [0], [1], [0, 0, 1, 1], [], []>} : vector<8x32xbf16>, vector<32x32xbf16>, vector<8x32xf32> -> vector<8x32xf32>
    %109 = arith.truncf %108 : vector<8x32xf32> to vector<8x32xbf16>
    %cst_50 = arith.constant dense<0.000000e+00> : vector<8x8xf32>
    %110 = tpu.matmul %105, %107, %cst_50 {dimension_numbers = #tpu.dot_dimension_numbers<[1], [1], [0], [0], [0, 0, 1, 0], [], []>} : vector<8x32xbf16>, vector<8x32xbf16>, vector<8x8xf32> -> vector<8x8xf32>
    %cst_51 = arith.constant -1.000000e+20 : f32
    %111 = vector.broadcast %cst_51 : f32 to vector<8x8xf32>
    %112 = arith.select %13, %110, %111 : vector<8x8xi1>, vector<8x8xf32>
    %cst_52 = arith.constant 0.0883883461 : f32
    %113 = vector.broadcast %cst_52 : f32 to vector<8x8xf32>
    %114 = arith.mulf %112, %113 : vector<8x8xf32>
    %cst_53 = arith.constant dense<0xFF800000> : vector<8xf32>
    %115 = vector.multi_reduction <maximumf>, %114, %cst_53 [1] : vector<8x8xf32> to vector<8xf32>
    %116 = vector.shape_cast %115 : vector<8xf32> to vector<8x1xf32>
    %117 = vector.broadcast %116 : vector<8x1xf32> to vector<8x8xf32>
    %118 = arith.subf %114, %117 : vector<8x8xf32>
    %119 = math.exp %118 : vector<8x8xf32>
    %cst_54 = arith.constant dense<0.000000e+00> : vector<8xf32>
    %120 = vector.multi_reduction <add>, %119, %cst_54 [1] : vector<8x8xf32> to vector<8xf32>
    %121 = vector.shape_cast %120 : vector<8xf32> to vector<8x1xf32>
    %122 = arith.truncf %119 : vector<8x8xf32> to vector<8x8xbf16>
    %cst_55 = arith.constant dense<0.000000e+00> : vector<8x32xf32>
    %123 = tpu.matmul %122, %109, %cst_55 {dimension_numbers = #tpu.dot_dimension_numbers<[1], [0], [0], [1], [0, 0, 1, 1], [], []>} : vector<8x8xbf16>, vector<8x32xbf16>, vector<8x32xf32> -> vector<8x32xf32>
    %124 = tpu.reciprocal %121 {approx = true} : vector<8x1xf32> -> vector<8x1xf32>
    %125 = vector.broadcast %124 : vector<8x1xf32> to vector<8x32xf32>
    %126 = arith.mulf %123, %125 : vector<8x32xf32>
    %127 = arith.truncf %126 : vector<8x32xf32> to vector<8x32xbf16>
    %128 = vector.extract_strided_slice %7 {offsets = [96, 0], sizes = [32, 128], strides = [1, 1]} : vector<128x128xbf16> to vector<32x128xbf16>
    %cst_56 = arith.constant dense<0.000000e+00> : vector<8x128xf32>
    %129 = tpu.matmul %127, %128, %cst_56 {dimension_numbers = #tpu.dot_dimension_numbers<[1], [0], [0], [1], [0, 0, 1, 1], [], []>} : vector<8x32xbf16>, vector<32x128xbf16>, vector<8x128xf32> -> vector<8x128xf32>
    %130 = arith.addf %101, %129 : vector<8x128xf32>
    %c0_57 = arith.constant 0 : index
    %c0_58 = arith.constant 0 : index
    %131 = vector.load %arg8[%c0_57, %c0_58] : memref<1x128xf32, #tpu.memory_space<vmem>>, vector<1x128xf32>
    %132 = vector.broadcast %131 : vector<1x128xf32> to vector<8x128xf32>
    %133 = arith.addf %130, %132 : vector<8x128xf32>
    %134 = arith.extf %1 : vector<8x128xbf16> to vector<8x128xf32>
    %135 = arith.addf %133, %134 : vector<8x128xf32>
    %cst_59 = arith.constant dense<0.000000e+00> : vector<8xf32>
    %136 = vector.multi_reduction <add>, %135, %cst_59 [1] : vector<8x128xf32> to vector<8xf32>
    %137 = vector.shape_cast %136 : vector<8xf32> to vector<8x1xf32>
    %cst_60 = arith.constant 1.280000e+02 : f32
    %138 = vector.broadcast %cst_60 : f32 to vector<8x1xf32>
    %139 = arith.divf %137, %138 : vector<8x1xf32>
    %140 = arith.mulf %135, %135 : vector<8x128xf32>
    %cst_61 = arith.constant dense<0.000000e+00> : vector<8xf32>
    %141 = vector.multi_reduction <add>, %140, %cst_61 [1] : vector<8x128xf32> to vector<8xf32>
    %142 = vector.shape_cast %141 : vector<8xf32> to vector<8x1xf32>
    %cst_62 = arith.constant 1.280000e+02 : f32
    %143 = vector.broadcast %cst_62 : f32 to vector<8x1xf32>
    %144 = arith.divf %142, %143 : vector<8x1xf32>
    %145 = arith.mulf %139, %139 : vector<8x1xf32>
    %146 = arith.subf %144, %145 : vector<8x1xf32>
    %147 = vector.broadcast %139 : vector<8x1xf32> to vector<8x128xf32>
    %148 = arith.subf %135, %147 : vector<8x128xf32>
    %cst_63 = arith.constant 9.99999974E-6 : f32
    %149 = vector.broadcast %cst_63 : f32 to vector<8x1xf32>
    %150 = arith.addf %146, %149 : vector<8x1xf32>
    %151 = math.rsqrt %150 : vector<8x1xf32>
    %152 = vector.broadcast %151 : vector<8x1xf32> to vector<8x128xf32>
    %153 = arith.mulf %148, %152 : vector<8x128xf32>
    %c0_64 = arith.constant 0 : index
    %c0_65 = arith.constant 0 : index
    %154 = vector.load %arg9[%c0_64, %c0_65] : memref<1x128xf32, #tpu.memory_space<vmem>>, vector<1x128xf32>
    %155 = vector.broadcast %154 : vector<1x128xf32> to vector<8x128xf32>
    %156 = arith.mulf %153, %155 : vector<8x128xf32>
    %c0_66 = arith.constant 0 : index
    %c0_67 = arith.constant 0 : index
    %157 = vector.load %arg10[%c0_66, %c0_67] : memref<1x128xf32, #tpu.memory_space<vmem>>, vector<1x128xf32>
    %158 = vector.broadcast %157 : vector<1x128xf32> to vector<8x128xf32>
    %159 = arith.addf %156, %158 : vector<8x128xf32>
    %160 = arith.truncf %159 : vector<8x128xf32> to vector<8x128xbf16>
    %c0_68 = arith.constant 0 : index
    %c0_69 = arith.constant 0 : index
    %c0_70 = arith.constant 0 : index
    %161 = vector.load %arg11[%c0_68, %c0_69, %c0_70] : memref<1x8x128xbf16, #tpu.memory_space<vmem>>, vector<1x8x128xbf16>
    %162 = vector.shape_cast %161 : vector<1x8x128xbf16> to vector<8x128xbf16>
    %163 = vector.shape_cast %160 : vector<8x128xbf16> to vector<1x8x128xbf16>
    tpu.vector_store %arg11[%c0_68, %c0_69, %c0_70], %163 {strides = array<i32>} : memref<1x8x128xbf16, #tpu.memory_space<vmem>>, vector<1x8x128xbf16>,
    return
  }
  func.func @transform_0(%arg0: i32) -> (i32, i32, i32) {
    %c0_i32 = arith.constant 0 : i32
    %c0_i32_0 = arith.constant 0 : i32
    %c0_i32_1 = arith.constant 0 : i32
    return %arg0, %c0_i32, %c0_i32_0 : i32, i32, i32
  }
  func.func @transform_1(%arg0: i32) -> (i32, i32, i32) {
    %c0_i32 = arith.constant 0 : i32
    %c0_i32_0 = arith.constant 0 : i32
    %c0_i32_1 = arith.constant 0 : i32
    return %arg0, %c0_i32, %c0_i32_0 : i32, i32, i32
  }
  func.func @transform_2(%arg0: i32) -> (i32, i32, i32) {
    %c0_i32 = arith.constant 0 : i32
    %c0_i32_0 = arith.constant 0 : i32
    %c0_i32_1 = arith.constant 0 : i32
    return %arg0, %c0_i32, %c0_i32_0 : i32, i32, i32
  }
  func.func @transform_3(%arg0: i32) -> (i32, i32) {
    %c0_i32 = arith.constant 0 : i32
    %c0_i32_0 = arith.constant 0 : i32
    %c0_i32_1 = arith.constant 0 : i32
    return %c0_i32, %c0_i32_0 : i32, i32
  }
  func.func @transform_4(%arg0: i32) -> (i32, i32) {
    %c0_i32 = arith.constant 0 : i32
    %c0_i32_0 = arith.constant 0 : i32
    %c0_i32_1 = arith.constant 0 : i32
    return %c0_i32, %c0_i32_0 : i32, i32
  }
  func.func @transform_5(%arg0: i32) -> (i32, i32) {
    %c0_i32 = arith.constant 0 : i32
    %c0_i32_0 = arith.constant 0 : i32
    %c0_i32_1 = arith.constant 0 : i32
    return %c0_i32, %c0_i32_0 : i32, i32
  }
  func.func @transform_6(%arg0: i32) -> (i32, i32) {
    %c0_i32 = arith.constant 0 : i32
    %c0_i32_0 = arith.constant 0 : i32
    %c0_i32_1 = arith.constant 0 : i32
    return %c0_i32, %c0_i32_0 : i32, i32
  }
  func.func @transform_7(%arg0: i32) -> (i32, i32) {
    %c0_i32 = arith.constant 0 : i32
    %c0_i32_0 = arith.constant 0 : i32
    %c0_i32_1 = arith.constant 0 : i32
    return %c0_i32, %c0_i32_0 : i32, i32
  }
  func.func @transform_8(%arg0: i32) -> (i32, i32) {
    %c0_i32 = arith.constant 0 : i32
    %c0_i32_0 = arith.constant 0 : i32
    %c0_i32_1 = arith.constant 0 : i32
    return %c0_i32, %c0_i32_0 : i32, i32
  }
  func.func @transform_9(%arg0: i32) -> (i32, i32) {
    %c0_i32 = arith.constant 0 : i32
    %c0_i32_0 = arith.constant 0 : i32
    %c0_i32_1 = arith.constant 0 : i32
    return %c0_i32, %c0_i32_0 : i32, i32
  }
  func.func @transform_10(%arg0: i32) -> (i32, i32, i32) {
    %c0_i32 = arith.constant 0 : i32
    %c0_i32_0 = arith.constant 0 : i32
    %c0_i32_1 = arith.constant 0 : i32
    return %arg0, %c0_i32, %c0_i32_0 : i32, i32, i32
  }
}

module attributes {stable_mosaic.version = 11 : i64} {
  func.func @fused_ffn_ln_kernel(%arg0: i32, %arg1: memref<16x128xbf16, #tpu.memory_space<vmem>>, %arg2: memref<128x512xbf16, #tpu.memory_space<vmem>>, %arg3: memref<1x512xf32, #tpu.memory_space<vmem>>, %arg4: memref<512x128xbf16, #tpu.memory_space<vmem>>, %arg5: memref<1x128xf32, #tpu.memory_space<vmem>>, %arg6: memref<1x128xf32, #tpu.memory_space<vmem>>, %arg7: memref<1x128xf32, #tpu.memory_space<vmem>>, %arg8: memref<16x128xbf16, #tpu.memory_space<vmem>>) attributes {dimension_semantics = [#tpu.dimension_semantics<parallel>], iteration_bounds = array<i64: 1>, scalar_prefetch = 0 : i64, scratch_operands = 0 : i64, tpu.core_type = #tpu.core_type<tc>, window_params = [{transform_indices = @transform_0, window_bounds = array<i64: 16, 128>}, {pipeline_mode = #tpu.pipeline_mode<synchronous>, transform_indices = @transform_1, window_bounds = array<i64: 128, 512>}, {pipeline_mode = #tpu.pipeline_mode<synchronous>, transform_indices = @transform_2, window_bounds = array<i64: 1, 512>}, {pipeline_mode = #tpu.pipeline_mode<synchronous>, transform_indices = @transform_3, window_bounds = array<i64: 512, 128>}, {pipeline_mode = #tpu.pipeline_mode<synchronous>, transform_indices = @transform_4, window_bounds = array<i64: 1, 128>}, {pipeline_mode = #tpu.pipeline_mode<synchronous>, transform_indices = @transform_5, window_bounds = array<i64: 1, 128>}, {pipeline_mode = #tpu.pipeline_mode<synchronous>, transform_indices = @transform_6, window_bounds = array<i64: 1, 128>}, {transform_indices = @transform_7, window_bounds = array<i64: 16, 128>}]} {
    %c0 = arith.constant 0 : index
    %c0_0 = arith.constant 0 : index
    %0 = vector.load %arg1[%c0, %c0_0] : memref<16x128xbf16, #tpu.memory_space<vmem>>, vector<16x128xbf16>
    %c0_1 = arith.constant 0 : index
    %c0_2 = arith.constant 0 : index
    %1 = vector.load %arg2[%c0_1, %c0_2] : memref<128x512xbf16, #tpu.memory_space<vmem>>, vector<128x512xbf16>
    %cst = arith.constant dense<0.000000e+00> : vector<16x512xf32>
    %2 = tpu.matmul %0, %1, %cst {dimension_numbers = #tpu.dot_dimension_numbers<[1], [0], [0], [1], [0, 0, 1, 1], [], []>} : vector<16x128xbf16>, vector<128x512xbf16>, vector<16x512xf32> -> vector<16x512xf32>
    %c0_3 = arith.constant 0 : index
    %c0_4 = arith.constant 0 : index
    %3 = vector.load %arg3[%c0_3, %c0_4] : memref<1x512xf32, #tpu.memory_space<vmem>>, vector<1x512xf32>
    %4 = vector.broadcast %3 : vector<1x512xf32> to vector<16x512xf32>
    %5 = arith.addf %2, %4 : vector<16x512xf32>
    %cst_5 = arith.constant 0.000000e+00 : f32
    %6 = vector.broadcast %cst_5 : f32 to vector<16x512xf32>
    %7 = arith.maximumf %5, %6 : vector<16x512xf32>
    %8 = arith.truncf %7 : vector<16x512xf32> to vector<16x512xbf16>
    %c0_6 = arith.constant 0 : index
    %c0_7 = arith.constant 0 : index
    %9 = vector.load %arg4[%c0_6, %c0_7] : memref<512x128xbf16, #tpu.memory_space<vmem>>, vector<512x128xbf16>
    %cst_8 = arith.constant dense<0.000000e+00> : vector<16x128xf32>
    %10 = tpu.matmul %8, %9, %cst_8 {dimension_numbers = #tpu.dot_dimension_numbers<[1], [0], [0], [1], [0, 0, 1, 1], [], []>} : vector<16x512xbf16>, vector<512x128xbf16>, vector<16x128xf32> -> vector<16x128xf32>
    %c0_9 = arith.constant 0 : index
    %c0_10 = arith.constant 0 : index
    %11 = vector.load %arg5[%c0_9, %c0_10] : memref<1x128xf32, #tpu.memory_space<vmem>>, vector<1x128xf32>
    %12 = vector.broadcast %11 : vector<1x128xf32> to vector<16x128xf32>
    %13 = arith.addf %10, %12 : vector<16x128xf32>
    %14 = arith.extf %0 : vector<16x128xbf16> to vector<16x128xf32>
    %15 = arith.addf %13, %14 : vector<16x128xf32>
    %cst_11 = arith.constant dense<0.000000e+00> : vector<16xf32>
    %16 = vector.multi_reduction <add>, %15, %cst_11 [1] : vector<16x128xf32> to vector<16xf32>
    %17 = vector.shape_cast %16 : vector<16xf32> to vector<16x1xf32>
    %cst_12 = arith.constant 1.280000e+02 : f32
    %18 = vector.broadcast %cst_12 : f32 to vector<16x1xf32>
    %19 = arith.divf %17, %18 : vector<16x1xf32>
    %20 = arith.mulf %15, %15 : vector<16x128xf32>
    %cst_13 = arith.constant dense<0.000000e+00> : vector<16xf32>
    %21 = vector.multi_reduction <add>, %20, %cst_13 [1] : vector<16x128xf32> to vector<16xf32>
    %22 = vector.shape_cast %21 : vector<16xf32> to vector<16x1xf32>
    %cst_14 = arith.constant 1.280000e+02 : f32
    %23 = vector.broadcast %cst_14 : f32 to vector<16x1xf32>
    %24 = arith.divf %22, %23 : vector<16x1xf32>
    %25 = arith.mulf %19, %19 : vector<16x1xf32>
    %26 = arith.subf %24, %25 : vector<16x1xf32>
    %27 = vector.broadcast %19 : vector<16x1xf32> to vector<16x128xf32>
    %28 = arith.subf %15, %27 : vector<16x128xf32>
    %cst_15 = arith.constant 9.99999974E-6 : f32
    %29 = vector.broadcast %cst_15 : f32 to vector<16x1xf32>
    %30 = arith.addf %26, %29 : vector<16x1xf32>
    %31 = math.rsqrt %30 : vector<16x1xf32>
    %32 = vector.broadcast %31 : vector<16x1xf32> to vector<16x128xf32>
    %33 = arith.mulf %28, %32 : vector<16x128xf32>
    %c0_16 = arith.constant 0 : index
    %c0_17 = arith.constant 0 : index
    %34 = vector.load %arg6[%c0_16, %c0_17] : memref<1x128xf32, #tpu.memory_space<vmem>>, vector<1x128xf32>
    %35 = vector.broadcast %34 : vector<1x128xf32> to vector<16x128xf32>
    %36 = arith.mulf %33, %35 : vector<16x128xf32>
    %c0_18 = arith.constant 0 : index
    %c0_19 = arith.constant 0 : index
    %37 = vector.load %arg7[%c0_18, %c0_19] : memref<1x128xf32, #tpu.memory_space<vmem>>, vector<1x128xf32>
    %38 = vector.broadcast %37 : vector<1x128xf32> to vector<16x128xf32>
    %39 = arith.addf %36, %38 : vector<16x128xf32>
    %40 = arith.truncf %39 : vector<16x128xf32> to vector<16x128xbf16>
    %c0_20 = arith.constant 0 : index
    %c0_21 = arith.constant 0 : index
    %41 = vector.load %arg8[%c0_20, %c0_21] : memref<16x128xbf16, #tpu.memory_space<vmem>>, vector<16x128xbf16>
    tpu.vector_store %arg8[%c0_20, %c0_21], %40 {strides = array<i32>} : memref<16x128xbf16, #tpu.memory_space<vmem>>, vector<16x128xbf16>,
    return
  }
  func.func @transform_0(%arg0: i32) -> (i32, i32) {
    %c0_i32 = arith.constant 0 : i32
    %c0_i32_0 = arith.constant 0 : i32
    return %arg0, %c0_i32 : i32, i32
  }
  func.func @transform_1(%arg0: i32) -> (i32, i32) {
    %c0_i32 = arith.constant 0 : i32
    %c0_i32_0 = arith.constant 0 : i32
    %c0_i32_1 = arith.constant 0 : i32
    return %c0_i32, %c0_i32_0 : i32, i32
  }
  func.func @transform_2(%arg0: i32) -> (i32, i32) {
    %c0_i32 = arith.constant 0 : i32
    %c0_i32_0 = arith.constant 0 : i32
    %c0_i32_1 = arith.constant 0 : i32
    return %c0_i32, %c0_i32_0 : i32, i32
  }
  func.func @transform_3(%arg0: i32) -> (i32, i32) {
    %c0_i32 = arith.constant 0 : i32
    %c0_i32_0 = arith.constant 0 : i32
    %c0_i32_1 = arith.constant 0 : i32
    return %c0_i32, %c0_i32_0 : i32, i32
  }
  func.func @transform_4(%arg0: i32) -> (i32, i32) {
    %c0_i32 = arith.constant 0 : i32
    %c0_i32_0 = arith.constant 0 : i32
    %c0_i32_1 = arith.constant 0 : i32
    return %c0_i32, %c0_i32_0 : i32, i32
  }
  func.func @transform_5(%arg0: i32) -> (i32, i32) {
    %c0_i32 = arith.constant 0 : i32
    %c0_i32_0 = arith.constant 0 : i32
    %c0_i32_1 = arith.constant 0 : i32
    return %c0_i32, %c0_i32_0 : i32, i32
  }
  func.func @transform_6(%arg0: i32) -> (i32, i32) {
    %c0_i32 = arith.constant 0 : i32
    %c0_i32_0 = arith.constant 0 : i32
    %c0_i32_1 = arith.constant 0 : i32
    return %c0_i32, %c0_i32_0 : i32, i32
  }
  func.func @transform_7(%arg0: i32) -> (i32, i32) {
    %c0_i32 = arith.constant 0 : i32
    %c0_i32_0 = arith.constant 0 : i32
    return %arg0, %c0_i32 : i32, i32
  }
}

module attributes {stable_mosaic.version = 11 : i64} {
  func.func @fused_ffn_ln_kernel(%arg0: i32, %arg1: memref<16x128xbf16, #tpu.memory_space<vmem>>, %arg2: memref<128x512xbf16, #tpu.memory_space<vmem>>, %arg3: memref<1x512xf32, #tpu.memory_space<vmem>>, %arg4: memref<512x128xbf16, #tpu.memory_space<vmem>>, %arg5: memref<1x128xf32, #tpu.memory_space<vmem>>, %arg6: memref<1x128xf32, #tpu.memory_space<vmem>>, %arg7: memref<1x128xf32, #tpu.memory_space<vmem>>, %arg8: memref<16x128xbf16, #tpu.memory_space<vmem>>) attributes {dimension_semantics = [#tpu.dimension_semantics<parallel>], iteration_bounds = array<i64: 1>, scalar_prefetch = 0 : i64, scratch_operands = 0 : i64, tpu.core_type = #tpu.core_type<tc>, window_params = [{transform_indices = @transform_0, window_bounds = array<i64: 16, 128>}, {pipeline_mode = #tpu.pipeline_mode<synchronous>, transform_indices = @transform_1, window_bounds = array<i64: 128, 512>}, {pipeline_mode = #tpu.pipeline_mode<synchronous>, transform_indices = @transform_2, window_bounds = array<i64: 1, 512>}, {pipeline_mode = #tpu.pipeline_mode<synchronous>, transform_indices = @transform_3, window_bounds = array<i64: 512, 128>}, {pipeline_mode = #tpu.pipeline_mode<synchronous>, transform_indices = @transform_4, window_bounds = array<i64: 1, 128>}, {pipeline_mode = #tpu.pipeline_mode<synchronous>, transform_indices = @transform_5, window_bounds = array<i64: 1, 128>}, {pipeline_mode = #tpu.pipeline_mode<synchronous>, transform_indices = @transform_6, window_bounds = array<i64: 1, 128>}, {transform_indices = @transform_7, window_bounds = array<i64: 16, 128>}]} {
    %c0 = arith.constant 0 : index
    %c0_0 = arith.constant 0 : index
    %0 = vector.load %arg1[%c0, %c0_0] : memref<16x128xbf16, #tpu.memory_space<vmem>>, vector<16x128xbf16>
    %c0_1 = arith.constant 0 : index
    %c0_2 = arith.constant 0 : index
    %1 = vector.load %arg2[%c0_1, %c0_2] : memref<128x512xbf16, #tpu.memory_space<vmem>>, vector<128x512xbf16>
    %cst = arith.constant dense<0.000000e+00> : vector<16x512xf32>
    %2 = tpu.matmul %0, %1, %cst {dimension_numbers = #tpu.dot_dimension_numbers<[1], [0], [0], [1], [0, 0, 1, 1], [], []>} : vector<16x128xbf16>, vector<128x512xbf16>, vector<16x512xf32> -> vector<16x512xf32>
    %c0_3 = arith.constant 0 : index
    %c0_4 = arith.constant 0 : index
    %3 = vector.load %arg3[%c0_3, %c0_4] : memref<1x512xf32, #tpu.memory_space<vmem>>, vector<1x512xf32>
    %4 = vector.broadcast %3 : vector<1x512xf32> to vector<16x512xf32>
    %5 = arith.addf %2, %4 : vector<16x512xf32>
    %cst_5 = arith.constant 0.000000e+00 : f32
    %6 = vector.broadcast %cst_5 : f32 to vector<16x512xf32>
    %7 = arith.maximumf %5, %6 : vector<16x512xf32>
    %8 = arith.truncf %7 : vector<16x512xf32> to vector<16x512xbf16>
    %c0_6 = arith.constant 0 : index
    %c0_7 = arith.constant 0 : index
    %9 = vector.load %arg4[%c0_6, %c0_7] : memref<512x128xbf16, #tpu.memory_space<vmem>>, vector<512x128xbf16>
    %cst_8 = arith.constant dense<0.000000e+00> : vector<16x128xf32>
    %10 = tpu.matmul %8, %9, %cst_8 {dimension_numbers = #tpu.dot_dimension_numbers<[1], [0], [0], [1], [0, 0, 1, 1], [], []>} : vector<16x512xbf16>, vector<512x128xbf16>, vector<16x128xf32> -> vector<16x128xf32>
    %c0_9 = arith.constant 0 : index
    %c0_10 = arith.constant 0 : index
    %11 = vector.load %arg5[%c0_9, %c0_10] : memref<1x128xf32, #tpu.memory_space<vmem>>, vector<1x128xf32>
    %12 = vector.broadcast %11 : vector<1x128xf32> to vector<16x128xf32>
    %13 = arith.addf %10, %12 : vector<16x128xf32>
    %14 = arith.extf %0 : vector<16x128xbf16> to vector<16x128xf32>
    %15 = arith.addf %13, %14 : vector<16x128xf32>
    %cst_11 = arith.constant dense<0.000000e+00> : vector<16xf32>
    %16 = vector.multi_reduction <add>, %15, %cst_11 [1] : vector<16x128xf32> to vector<16xf32>
    %17 = vector.shape_cast %16 : vector<16xf32> to vector<16x1xf32>
    %cst_12 = arith.constant 1.280000e+02 : f32
    %18 = vector.broadcast %cst_12 : f32 to vector<16x1xf32>
    %19 = arith.divf %17, %18 : vector<16x1xf32>
    %20 = arith.mulf %15, %15 : vector<16x128xf32>
    %cst_13 = arith.constant dense<0.000000e+00> : vector<16xf32>
    %21 = vector.multi_reduction <add>, %20, %cst_13 [1] : vector<16x128xf32> to vector<16xf32>
    %22 = vector.shape_cast %21 : vector<16xf32> to vector<16x1xf32>
    %cst_14 = arith.constant 1.280000e+02 : f32
    %23 = vector.broadcast %cst_14 : f32 to vector<16x1xf32>
    %24 = arith.divf %22, %23 : vector<16x1xf32>
    %25 = arith.mulf %19, %19 : vector<16x1xf32>
    %26 = arith.subf %24, %25 : vector<16x1xf32>
    %27 = vector.broadcast %19 : vector<16x1xf32> to vector<16x128xf32>
    %28 = arith.subf %15, %27 : vector<16x128xf32>
    %cst_15 = arith.constant 9.99999974E-6 : f32
    %29 = vector.broadcast %cst_15 : f32 to vector<16x1xf32>
    %30 = arith.addf %26, %29 : vector<16x1xf32>
    %31 = math.rsqrt %30 : vector<16x1xf32>
    %32 = vector.broadcast %31 : vector<16x1xf32> to vector<16x128xf32>
    %33 = arith.mulf %28, %32 : vector<16x128xf32>
    %c0_16 = arith.constant 0 : index
    %c0_17 = arith.constant 0 : index
    %34 = vector.load %arg6[%c0_16, %c0_17] : memref<1x128xf32, #tpu.memory_space<vmem>>, vector<1x128xf32>
    %35 = vector.broadcast %34 : vector<1x128xf32> to vector<16x128xf32>
    %36 = arith.mulf %33, %35 : vector<16x128xf32>
    %c0_18 = arith.constant 0 : index
    %c0_19 = arith.constant 0 : index
    %37 = vector.load %arg7[%c0_18, %c0_19] : memref<1x128xf32, #tpu.memory_space<vmem>>, vector<1x128xf32>
    %38 = vector.broadcast %37 : vector<1x128xf32> to vector<16x128xf32>
    %39 = arith.addf %36, %38 : vector<16x128xf32>
    %40 = arith.truncf %39 : vector<16x128xf32> to vector<16x128xbf16>
    %c0_20 = arith.constant 0 : index
    %c0_21 = arith.constant 0 : index
    %41 = vector.load %arg8[%c0_20, %c0_21] : memref<16x128xbf16, #tpu.memory_space<vmem>>, vector<16x128xbf16>
    tpu.vector_store %arg8[%c0_20, %c0_21], %40 {strides = array<i32>} : memref<16x128xbf16, #tpu.memory_space<vmem>>, vector<16x128xbf16>,
    return
  }
  func.func @transform_0(%arg0: i32) -> (i32, i32) {
    %c0_i32 = arith.constant 0 : i32
    %c0_i32_0 = arith.constant 0 : i32
    return %arg0, %c0_i32 : i32, i32
  }
  func.func @transform_1(%arg0: i32) -> (i32, i32) {
    %c0_i32 = arith.constant 0 : i32
    %c0_i32_0 = arith.constant 0 : i32
    %c0_i32_1 = arith.constant 0 : i32
    return %c0_i32, %c0_i32_0 : i32, i32
  }
  func.func @transform_2(%arg0: i32) -> (i32, i32) {
    %c0_i32 = arith.constant 0 : i32
    %c0_i32_0 = arith.constant 0 : i32
    %c0_i32_1 = arith.constant 0 : i32
    return %c0_i32, %c0_i32_0 : i32, i32
  }
  func.func @transform_3(%arg0: i32) -> (i32, i32) {
    %c0_i32 = arith.constant 0 : i32
    %c0_i32_0 = arith.constant 0 : i32
    %c0_i32_1 = arith.constant 0 : i32
    return %c0_i32, %c0_i32_0 : i32, i32
  }
  func.func @transform_4(%arg0: i32) -> (i32, i32) {
    %c0_i32 = arith.constant 0 : i32
    %c0_i32_0 = arith.constant 0 : i32
    %c0_i32_1 = arith.constant 0 : i32
    return %c0_i32, %c0_i32_0 : i32, i32
  }
  func.func @transform_5(%arg0: i32) -> (i32, i32) {
    %c0_i32 = arith.constant 0 : i32
    %c0_i32_0 = arith.constant 0 : i32
    %c0_i32_1 = arith.constant 0 : i32
    return %c0_i32, %c0_i32_0 : i32, i32
  }
  func.func @transform_6(%arg0: i32) -> (i32, i32) {
    %c0_i32 = arith.constant 0 : i32
    %c0_i32_0 = arith.constant 0 : i32
    %c0_i32_1 = arith.constant 0 : i32
    return %c0_i32, %c0_i32_0 : i32, i32
  }
  func.func @transform_7(%arg0: i32) -> (i32, i32) {
    %c0_i32 = arith.constant 0 : i32
    %c0_i32_0 = arith.constant 0 : i32
    return %arg0, %c0_i32 : i32, i32
  }
}

module attributes {stable_mosaic.version = 11 : i64} {
  func.func @fused_attn_ln_kernel(%arg0: i32, %arg1: memref<1x8x128xbf16, #tpu.memory_space<vmem>>, %arg2: memref<1x8x128xbf16, #tpu.memory_space<vmem>>, %arg3: memref<1x1x8xf32, #tpu.memory_space<vmem>>, %arg4: memref<32x32xbf16, #tpu.memory_space<vmem>>, %arg5: memref<32x32xbf16, #tpu.memory_space<vmem>>, %arg6: memref<32x32xbf16, #tpu.memory_space<vmem>>, %arg7: memref<128x128xbf16, #tpu.memory_space<vmem>>, %arg8: memref<1x128xf32, #tpu.memory_space<vmem>>, %arg9: memref<1x128xf32, #tpu.memory_space<vmem>>, %arg10: memref<1x128xf32, #tpu.memory_space<vmem>>, %arg11: memref<1x8x128xbf16, #tpu.memory_space<vmem>>) attributes {dimension_semantics = [#tpu.dimension_semantics<parallel>], iteration_bounds = array<i64: 2>, scalar_prefetch = 0 : i64, scratch_operands = 0 : i64, tpu.core_type = #tpu.core_type<tc>, window_params = [{transform_indices = @transform_0, window_bounds = array<i64: 1, 8, 128>}, {transform_indices = @transform_1, window_bounds = array<i64: 1, 8, 128>}, {transform_indices = @transform_2, window_bounds = array<i64: 1, 1, 8>}, {pipeline_mode = #tpu.pipeline_mode<synchronous>, transform_indices = @transform_3, window_bounds = array<i64: 32, 32>}, {pipeline_mode = #tpu.pipeline_mode<synchronous>, transform_indices = @transform_4, window_bounds = array<i64: 32, 32>}, {pipeline_mode = #tpu.pipeline_mode<synchronous>, transform_indices = @transform_5, window_bounds = array<i64: 32, 32>}, {pipeline_mode = #tpu.pipeline_mode<synchronous>, transform_indices = @transform_6, window_bounds = array<i64: 128, 128>}, {pipeline_mode = #tpu.pipeline_mode<synchronous>, transform_indices = @transform_7, window_bounds = array<i64: 1, 128>}, {pipeline_mode = #tpu.pipeline_mode<synchronous>, transform_indices = @transform_8, window_bounds = array<i64: 1, 128>}, {pipeline_mode = #tpu.pipeline_mode<synchronous>, transform_indices = @transform_9, window_bounds = array<i64: 1, 128>}, {transform_indices = @transform_10, window_bounds = array<i64: 1, 8, 128>}]} {
    %c0 = arith.constant 0 : index
    %c0_0 = arith.constant 0 : index
    %c0_1 = arith.constant 0 : index
    %0 = vector.load %arg1[%c0, %c0_0, %c0_1] : memref<1x8x128xbf16, #tpu.memory_space<vmem>>, vector<1x8x128xbf16>
    %1 = vector.shape_cast %0 : vector<1x8x128xbf16> to vector<8x128xbf16>
    %c0_2 = arith.constant 0 : index
    %c0_3 = arith.constant 0 : index
    %c0_4 = arith.constant 0 : index
    %2 = vector.load %arg2[%c0_2, %c0_3, %c0_4] : memref<1x8x128xbf16, #tpu.memory_space<vmem>>, vector<1x8x128xbf16>
    %3 = vector.shape_cast %2 : vector<1x8x128xbf16> to vector<8x128xbf16>
    %c0_5 = arith.constant 0 : index
    %c0_6 = arith.constant 0 : index
    %4 = vector.load %arg4[%c0_5, %c0_6] : memref<32x32xbf16, #tpu.memory_space<vmem>>, vector<32x32xbf16>
    %c0_7 = arith.constant 0 : index
    %c0_8 = arith.constant 0 : index
    %5 = vector.load %arg5[%c0_7, %c0_8] : memref<32x32xbf16, #tpu.memory_space<vmem>>, vector<32x32xbf16>
    %c0_9 = arith.constant 0 : index
    %c0_10 = arith.constant 0 : index
    %6 = vector.load %arg6[%c0_9, %c0_10] : memref<32x32xbf16, #tpu.memory_space<vmem>>, vector<32x32xbf16>
    %c0_11 = arith.constant 0 : index
    %c0_12 = arith.constant 0 : index
    %7 = vector.load %arg7[%c0_11, %c0_12] : memref<128x128xbf16, #tpu.memory_space<vmem>>, vector<128x128xbf16>
    %c0_13 = arith.constant 0 : index
    %c0_14 = arith.constant 0 : index
    %c0_15 = arith.constant 0 : index
    %8 = vector.load %arg3[%c0_13, %c0_14, %c0_15] : memref<1x1x8xf32, #tpu.memory_space<vmem>>, vector<1x1x8xf32>
    %9 = vector.shape_cast %8 : vector<1x1x8xf32> to vector<1x8xf32>
    %cst = arith.constant 0.000000e+00 : f32
    %10 = vector.broadcast %cst : f32 to vector<1x8xf32>
    %11 = arith.cmpf ogt, %9, %10 : vector<1x8xf32>
    %12 = vector.shape_cast %11 : vector<1x8xi1> to vector<1x8xi1>
    %13 = vector.broadcast %12 : vector<1x8xi1> to vector<8x8xi1>
    %14 = tpu.iota {dimensions = array<i32: 0>} : vector<8x8xi32>
    %15 = tpu.iota {dimensions = array<i32: 1>} : vector<8x8xi32>
    %16 = arith.cmpi sge, %14, %15 : vector<8x8xi32>
    %17 = arith.andi %13, %16 : vector<8x8xi1>
    %cst_16 = arith.constant 0.000000e+00 : f32
    %18 = vector.broadcast %cst_16 : f32 to vector<8x128xf32>
    %19 = vector.extract_strided_slice %1 {offsets = [0, 0], sizes = [8, 32], strides = [1, 1]} : vector<8x128xbf16> to vector<8x32xbf16>
    %20 = vector.extract_strided_slice %3 {offsets = [0, 0], sizes = [8, 32], strides = [1, 1]} : vector<8x128xbf16> to vector<8x32xbf16>
    %cst_17 = arith.constant dense<0.000000e+00> : vector<8x32xf32>
    %21 = tpu.matmul %19, %4, %cst_17 {dimension_numbers = #tpu.dot_dimension_numbers<[1], [0], [0], [1], [0, 0, 1, 1], [], []>} : vector<8x32xbf16>, vector<32x32xbf16>, vector<8x32xf32> -> vector<8x32xf32>
    %22 = arith.truncf %21 : vector<8x32xf32> to vector<8x32xbf16>
    %cst_18 = arith.constant dense<0.000000e+00> : vector<8x32xf32>
    %23 = tpu.matmul %20, %5, %cst_18 {dimension_numbers = #tpu.dot_dimension_numbers<[1], [0], [0], [1], [0, 0, 1, 1], [], []>} : vector<8x32xbf16>, vector<32x32xbf16>, vector<8x32xf32> -> vector<8x32xf32>
    %24 = arith.truncf %23 : vector<8x32xf32> to vector<8x32xbf16>
    %cst_19 = arith.constant dense<0.000000e+00> : vector<8x32xf32>
    %25 = tpu.matmul %20, %6, %cst_19 {dimension_numbers = #tpu.dot_dimension_numbers<[1], [0], [0], [1], [0, 0, 1, 1], [], []>} : vector<8x32xbf16>, vector<32x32xbf16>, vector<8x32xf32> -> vector<8x32xf32>
    %26 = arith.truncf %25 : vector<8x32xf32> to vector<8x32xbf16>
    %cst_20 = arith.constant dense<0.000000e+00> : vector<8x8xf32>
    %27 = tpu.matmul %22, %24, %cst_20 {dimension_numbers = #tpu.dot_dimension_numbers<[1], [1], [0], [0], [0, 0, 1, 0], [], []>} : vector<8x32xbf16>, vector<8x32xbf16>, vector<8x8xf32> -> vector<8x8xf32>
    %cst_21 = arith.constant -1.000000e+20 : f32
    %28 = vector.broadcast %cst_21 : f32 to vector<8x8xf32>
    %29 = arith.select %17, %27, %28 : vector<8x8xi1>, vector<8x8xf32>
    %cst_22 = arith.constant 0.0883883461 : f32
    %30 = vector.broadcast %cst_22 : f32 to vector<8x8xf32>
    %31 = arith.mulf %29, %30 : vector<8x8xf32>
    %cst_23 = arith.constant dense<0xFF800000> : vector<8xf32>
    %32 = vector.multi_reduction <maximumf>, %31, %cst_23 [1] : vector<8x8xf32> to vector<8xf32>
    %33 = vector.shape_cast %32 : vector<8xf32> to vector<8x1xf32>
    %34 = vector.broadcast %33 : vector<8x1xf32> to vector<8x8xf32>
    %35 = arith.subf %31, %34 : vector<8x8xf32>
    %36 = math.exp %35 : vector<8x8xf32>
    %cst_24 = arith.constant dense<0.000000e+00> : vector<8xf32>
    %37 = vector.multi_reduction <add>, %36, %cst_24 [1] : vector<8x8xf32> to vector<8xf32>
    %38 = vector.shape_cast %37 : vector<8xf32> to vector<8x1xf32>
    %39 = arith.truncf %36 : vector<8x8xf32> to vector<8x8xbf16>
    %cst_25 = arith.constant dense<0.000000e+00> : vector<8x32xf32>
    %40 = tpu.matmul %39, %26, %cst_25 {dimension_numbers = #tpu.dot_dimension_numbers<[1], [0], [0], [1], [0, 0, 1, 1], [], []>} : vector<8x8xbf16>, vector<8x32xbf16>, vector<8x32xf32> -> vector<8x32xf32>
    %41 = tpu.reciprocal %38 {approx = true} : vector<8x1xf32> -> vector<8x1xf32>
    %42 = vector.broadcast %41 : vector<8x1xf32> to vector<8x32xf32>
    %43 = arith.mulf %40, %42 : vector<8x32xf32>
    %44 = arith.truncf %43 : vector<8x32xf32> to vector<8x32xbf16>
    %45 = vector.extract_strided_slice %7 {offsets = [0, 0], sizes = [32, 128], strides = [1, 1]} : vector<128x128xbf16> to vector<32x128xbf16>
    %cst_26 = arith.constant dense<0.000000e+00> : vector<8x128xf32>
    %46 = tpu.matmul %44, %45, %cst_26 {dimension_numbers = #tpu.dot_dimension_numbers<[1], [0], [0], [1], [0, 0, 1, 1], [], []>} : vector<8x32xbf16>, vector<32x128xbf16>, vector<8x128xf32> -> vector<8x128xf32>
    %47 = arith.addf %18, %46 : vector<8x128xf32>
    %48 = vector.extract_strided_slice %1 {offsets = [0, 32], sizes = [8, 32], strides = [1, 1]} : vector<8x128xbf16> to vector<8x32xbf16>
    %49 = vector.extract_strided_slice %3 {offsets = [0, 32], sizes = [8, 32], strides = [1, 1]} : vector<8x128xbf16> to vector<8x32xbf16>
    %cst_27 = arith.constant dense<0.000000e+00> : vector<8x32xf32>
    %50 = tpu.matmul %48, %4, %cst_27 {dimension_numbers = #tpu.dot_dimension_numbers<[1], [0], [0], [1], [0, 0, 1, 1], [], []>} : vector<8x32xbf16>, vector<32x32xbf16>, vector<8x32xf32> -> vector<8x32xf32>
    %51 = arith.truncf %50 : vector<8x32xf32> to vector<8x32xbf16>
    %cst_28 = arith.constant dense<0.000000e+00> : vector<8x32xf32>
    %52 = tpu.matmul %49, %5, %cst_28 {dimension_numbers = #tpu.dot_dimension_numbers<[1], [0], [0], [1], [0, 0, 1, 1], [], []>} : vector<8x32xbf16>, vector<32x32xbf16>, vector<8x32xf32> -> vector<8x32xf32>
    %53 = arith.truncf %52 : vector<8x32xf32> to vector<8x32xbf16>
    %cst_29 = arith.constant dense<0.000000e+00> : vector<8x32xf32>
    %54 = tpu.matmul %49, %6, %cst_29 {dimension_numbers = #tpu.dot_dimension_numbers<[1], [0], [0], [1], [0, 0, 1, 1], [], []>} : vector<8x32xbf16>, vector<32x32xbf16>, vector<8x32xf32> -> vector<8x32xf32>
    %55 = arith.truncf %54 : vector<8x32xf32> to vector<8x32xbf16>
    %cst_30 = arith.constant dense<0.000000e+00> : vector<8x8xf32>
    %56 = tpu.matmul %51, %53, %cst_30 {dimension_numbers = #tpu.dot_dimension_numbers<[1], [1], [0], [0], [0, 0, 1, 0], [], []>} : vector<8x32xbf16>, vector<8x32xbf16>, vector<8x8xf32> -> vector<8x8xf32>
    %cst_31 = arith.constant -1.000000e+20 : f32
    %57 = vector.broadcast %cst_31 : f32 to vector<8x8xf32>
    %58 = arith.select %17, %56, %57 : vector<8x8xi1>, vector<8x8xf32>
    %cst_32 = arith.constant 0.0883883461 : f32
    %59 = vector.broadcast %cst_32 : f32 to vector<8x8xf32>
    %60 = arith.mulf %58, %59 : vector<8x8xf32>
    %cst_33 = arith.constant dense<0xFF800000> : vector<8xf32>
    %61 = vector.multi_reduction <maximumf>, %60, %cst_33 [1] : vector<8x8xf32> to vector<8xf32>
    %62 = vector.shape_cast %61 : vector<8xf32> to vector<8x1xf32>
    %63 = vector.broadcast %62 : vector<8x1xf32> to vector<8x8xf32>
    %64 = arith.subf %60, %63 : vector<8x8xf32>
    %65 = math.exp %64 : vector<8x8xf32>
    %cst_34 = arith.constant dense<0.000000e+00> : vector<8xf32>
    %66 = vector.multi_reduction <add>, %65, %cst_34 [1] : vector<8x8xf32> to vector<8xf32>
    %67 = vector.shape_cast %66 : vector<8xf32> to vector<8x1xf32>
    %68 = arith.truncf %65 : vector<8x8xf32> to vector<8x8xbf16>
    %cst_35 = arith.constant dense<0.000000e+00> : vector<8x32xf32>
    %69 = tpu.matmul %68, %55, %cst_35 {dimension_numbers = #tpu.dot_dimension_numbers<[1], [0], [0], [1], [0, 0, 1, 1], [], []>} : vector<8x8xbf16>, vector<8x32xbf16>, vector<8x32xf32> -> vector<8x32xf32>
    %70 = tpu.reciprocal %67 {approx = true} : vector<8x1xf32> -> vector<8x1xf32>
    %71 = vector.broadcast %70 : vector<8x1xf32> to vector<8x32xf32>
    %72 = arith.mulf %69, %71 : vector<8x32xf32>
    %73 = arith.truncf %72 : vector<8x32xf32> to vector<8x32xbf16>
    %74 = vector.extract_strided_slice %7 {offsets = [32, 0], sizes = [32, 128], strides = [1, 1]} : vector<128x128xbf16> to vector<32x128xbf16>
    %cst_36 = arith.constant dense<0.000000e+00> : vector<8x128xf32>
    %75 = tpu.matmul %73, %74, %cst_36 {dimension_numbers = #tpu.dot_dimension_numbers<[1], [0], [0], [1], [0, 0, 1, 1], [], []>} : vector<8x32xbf16>, vector<32x128xbf16>, vector<8x128xf32> -> vector<8x128xf32>
    %76 = arith.addf %47, %75 : vector<8x128xf32>
    %77 = vector.extract_strided_slice %1 {offsets = [0, 64], sizes = [8, 32], strides = [1, 1]} : vector<8x128xbf16> to vector<8x32xbf16>
    %78 = vector.extract_strided_slice %3 {offsets = [0, 64], sizes = [8, 32], strides = [1, 1]} : vector<8x128xbf16> to vector<8x32xbf16>
    %cst_37 = arith.constant dense<0.000000e+00> : vector<8x32xf32>
    %79 = tpu.matmul %77, %4, %cst_37 {dimension_numbers = #tpu.dot_dimension_numbers<[1], [0], [0], [1], [0, 0, 1, 1], [], []>} : vector<8x32xbf16>, vector<32x32xbf16>, vector<8x32xf32> -> vector<8x32xf32>
    %80 = arith.truncf %79 : vector<8x32xf32> to vector<8x32xbf16>
    %cst_38 = arith.constant dense<0.000000e+00> : vector<8x32xf32>
    %81 = tpu.matmul %78, %5, %cst_38 {dimension_numbers = #tpu.dot_dimension_numbers<[1], [0], [0], [1], [0, 0, 1, 1], [], []>} : vector<8x32xbf16>, vector<32x32xbf16>, vector<8x32xf32> -> vector<8x32xf32>
    %82 = arith.truncf %81 : vector<8x32xf32> to vector<8x32xbf16>
    %cst_39 = arith.constant dense<0.000000e+00> : vector<8x32xf32>
    %83 = tpu.matmul %78, %6, %cst_39 {dimension_numbers = #tpu.dot_dimension_numbers<[1], [0], [0], [1], [0, 0, 1, 1], [], []>} : vector<8x32xbf16>, vector<32x32xbf16>, vector<8x32xf32> -> vector<8x32xf32>
    %84 = arith.truncf %83 : vector<8x32xf32> to vector<8x32xbf16>
    %cst_40 = arith.constant dense<0.000000e+00> : vector<8x8xf32>
    %85 = tpu.matmul %80, %82, %cst_40 {dimension_numbers = #tpu.dot_dimension_numbers<[1], [1], [0], [0], [0, 0, 1, 0], [], []>} : vector<8x32xbf16>, vector<8x32xbf16>, vector<8x8xf32> -> vector<8x8xf32>
    %cst_41 = arith.constant -1.000000e+20 : f32
    %86 = vector.broadcast %cst_41 : f32 to vector<8x8xf32>
    %87 = arith.select %17, %85, %86 : vector<8x8xi1>, vector<8x8xf32>
    %cst_42 = arith.constant 0.0883883461 : f32
    %88 = vector.broadcast %cst_42 : f32 to vector<8x8xf32>
    %89 = arith.mulf %87, %88 : vector<8x8xf32>
    %cst_43 = arith.constant dense<0xFF800000> : vector<8xf32>
    %90 = vector.multi_reduction <maximumf>, %89, %cst_43 [1] : vector<8x8xf32> to vector<8xf32>
    %91 = vector.shape_cast %90 : vector<8xf32> to vector<8x1xf32>
    %92 = vector.broadcast %91 : vector<8x1xf32> to vector<8x8xf32>
    %93 = arith.subf %89, %92 : vector<8x8xf32>
    %94 = math.exp %93 : vector<8x8xf32>
    %cst_44 = arith.constant dense<0.000000e+00> : vector<8xf32>
    %95 = vector.multi_reduction <add>, %94, %cst_44 [1] : vector<8x8xf32> to vector<8xf32>
    %96 = vector.shape_cast %95 : vector<8xf32> to vector<8x1xf32>
    %97 = arith.truncf %94 : vector<8x8xf32> to vector<8x8xbf16>
    %cst_45 = arith.constant dense<0.000000e+00> : vector<8x32xf32>
    %98 = tpu.matmul %97, %84, %cst_45 {dimension_numbers = #tpu.dot_dimension_numbers<[1], [0], [0], [1], [0, 0, 1, 1], [], []>} : vector<8x8xbf16>, vector<8x32xbf16>, vector<8x32xf32> -> vector<8x32xf32>
    %99 = tpu.reciprocal %96 {approx = true} : vector<8x1xf32> -> vector<8x1xf32>
    %100 = vector.broadcast %99 : vector<8x1xf32> to vector<8x32xf32>
    %101 = arith.mulf %98, %100 : vector<8x32xf32>
    %102 = arith.truncf %101 : vector<8x32xf32> to vector<8x32xbf16>
    %103 = vector.extract_strided_slice %7 {offsets = [64, 0], sizes = [32, 128], strides = [1, 1]} : vector<128x128xbf16> to vector<32x128xbf16>
    %cst_46 = arith.constant dense<0.000000e+00> : vector<8x128xf32>
    %104 = tpu.matmul %102, %103, %cst_46 {dimension_numbers = #tpu.dot_dimension_numbers<[1], [0], [0], [1], [0, 0, 1, 1], [], []>} : vector<8x32xbf16>, vector<32x128xbf16>, vector<8x128xf32> -> vector<8x128xf32>
    %105 = arith.addf %76, %104 : vector<8x128xf32>
    %106 = vector.extract_strided_slice %1 {offsets = [0, 96], sizes = [8, 32], strides = [1, 1]} : vector<8x128xbf16> to vector<8x32xbf16>
    %107 = vector.extract_strided_slice %3 {offsets = [0, 96], sizes = [8, 32], strides = [1, 1]} : vector<8x128xbf16> to vector<8x32xbf16>
    %cst_47 = arith.constant dense<0.000000e+00> : vector<8x32xf32>
    %108 = tpu.matmul %106, %4, %cst_47 {dimension_numbers = #tpu.dot_dimension_numbers<[1], [0], [0], [1], [0, 0, 1, 1], [], []>} : vector<8x32xbf16>, vector<32x32xbf16>, vector<8x32xf32> -> vector<8x32xf32>
    %109 = arith.truncf %108 : vector<8x32xf32> to vector<8x32xbf16>
    %cst_48 = arith.constant dense<0.000000e+00> : vector<8x32xf32>
    %110 = tpu.matmul %107, %5, %cst_48 {dimension_numbers = #tpu.dot_dimension_numbers<[1], [0], [0], [1], [0, 0, 1, 1], [], []>} : vector<8x32xbf16>, vector<32x32xbf16>, vector<8x32xf32> -> vector<8x32xf32>
    %111 = arith.truncf %110 : vector<8x32xf32> to vector<8x32xbf16>
    %cst_49 = arith.constant dense<0.000000e+00> : vector<8x32xf32>
    %112 = tpu.matmul %107, %6, %cst_49 {dimension_numbers = #tpu.dot_dimension_numbers<[1], [0], [0], [1], [0, 0, 1, 1], [], []>} : vector<8x32xbf16>, vector<32x32xbf16>, vector<8x32xf32> -> vector<8x32xf32>
    %113 = arith.truncf %112 : vector<8x32xf32> to vector<8x32xbf16>
    %cst_50 = arith.constant dense<0.000000e+00> : vector<8x8xf32>
    %114 = tpu.matmul %109, %111, %cst_50 {dimension_numbers = #tpu.dot_dimension_numbers<[1], [1], [0], [0], [0, 0, 1, 0], [], []>} : vector<8x32xbf16>, vector<8x32xbf16>, vector<8x8xf32> -> vector<8x8xf32>
    %cst_51 = arith.constant -1.000000e+20 : f32
    %115 = vector.broadcast %cst_51 : f32 to vector<8x8xf32>
    %116 = arith.select %17, %114, %115 : vector<8x8xi1>, vector<8x8xf32>
    %cst_52 = arith.constant 0.0883883461 : f32
    %117 = vector.broadcast %cst_52 : f32 to vector<8x8xf32>
    %118 = arith.mulf %116, %117 : vector<8x8xf32>
    %cst_53 = arith.constant dense<0xFF800000> : vector<8xf32>
    %119 = vector.multi_reduction <maximumf>, %118, %cst_53 [1] : vector<8x8xf32> to vector<8xf32>
    %120 = vector.shape_cast %119 : vector<8xf32> to vector<8x1xf32>
    %121 = vector.broadcast %120 : vector<8x1xf32> to vector<8x8xf32>
    %122 = arith.subf %118, %121 : vector<8x8xf32>
    %123 = math.exp %122 : vector<8x8xf32>
    %cst_54 = arith.constant dense<0.000000e+00> : vector<8xf32>
    %124 = vector.multi_reduction <add>, %123, %cst_54 [1] : vector<8x8xf32> to vector<8xf32>
    %125 = vector.shape_cast %124 : vector<8xf32> to vector<8x1xf32>
    %126 = arith.truncf %123 : vector<8x8xf32> to vector<8x8xbf16>
    %cst_55 = arith.constant dense<0.000000e+00> : vector<8x32xf32>
    %127 = tpu.matmul %126, %113, %cst_55 {dimension_numbers = #tpu.dot_dimension_numbers<[1], [0], [0], [1], [0, 0, 1, 1], [], []>} : vector<8x8xbf16>, vector<8x32xbf16>, vector<8x32xf32> -> vector<8x32xf32>
    %128 = tpu.reciprocal %125 {approx = true} : vector<8x1xf32> -> vector<8x1xf32>
    %129 = vector.broadcast %128 : vector<8x1xf32> to vector<8x32xf32>
    %130 = arith.mulf %127, %129 : vector<8x32xf32>
    %131 = arith.truncf %130 : vector<8x32xf32> to vector<8x32xbf16>
    %132 = vector.extract_strided_slice %7 {offsets = [96, 0], sizes = [32, 128], strides = [1, 1]} : vector<128x128xbf16> to vector<32x128xbf16>
    %cst_56 = arith.constant dense<0.000000e+00> : vector<8x128xf32>
    %133 = tpu.matmul %131, %132, %cst_56 {dimension_numbers = #tpu.dot_dimension_numbers<[1], [0], [0], [1], [0, 0, 1, 1], [], []>} : vector<8x32xbf16>, vector<32x128xbf16>, vector<8x128xf32> -> vector<8x128xf32>
    %134 = arith.addf %105, %133 : vector<8x128xf32>
    %c0_57 = arith.constant 0 : index
    %c0_58 = arith.constant 0 : index
    %135 = vector.load %arg8[%c0_57, %c0_58] : memref<1x128xf32, #tpu.memory_space<vmem>>, vector<1x128xf32>
    %136 = vector.broadcast %135 : vector<1x128xf32> to vector<8x128xf32>
    %137 = arith.addf %134, %136 : vector<8x128xf32>
    %138 = arith.extf %1 : vector<8x128xbf16> to vector<8x128xf32>
    %139 = arith.addf %137, %138 : vector<8x128xf32>
    %cst_59 = arith.constant dense<0.000000e+00> : vector<8xf32>
    %140 = vector.multi_reduction <add>, %139, %cst_59 [1] : vector<8x128xf32> to vector<8xf32>
    %141 = vector.shape_cast %140 : vector<8xf32> to vector<8x1xf32>
    %cst_60 = arith.constant 1.280000e+02 : f32
    %142 = vector.broadcast %cst_60 : f32 to vector<8x1xf32>
    %143 = arith.divf %141, %142 : vector<8x1xf32>
    %144 = arith.mulf %139, %139 : vector<8x128xf32>
    %cst_61 = arith.constant dense<0.000000e+00> : vector<8xf32>
    %145 = vector.multi_reduction <add>, %144, %cst_61 [1] : vector<8x128xf32> to vector<8xf32>
    %146 = vector.shape_cast %145 : vector<8xf32> to vector<8x1xf32>
    %cst_62 = arith.constant 1.280000e+02 : f32
    %147 = vector.broadcast %cst_62 : f32 to vector<8x1xf32>
    %148 = arith.divf %146, %147 : vector<8x1xf32>
    %149 = arith.mulf %143, %143 : vector<8x1xf32>
    %150 = arith.subf %148, %149 : vector<8x1xf32>
    %151 = vector.broadcast %143 : vector<8x1xf32> to vector<8x128xf32>
    %152 = arith.subf %139, %151 : vector<8x128xf32>
    %cst_63 = arith.constant 9.99999974E-6 : f32
    %153 = vector.broadcast %cst_63 : f32 to vector<8x1xf32>
    %154 = arith.addf %150, %153 : vector<8x1xf32>
    %155 = math.rsqrt %154 : vector<8x1xf32>
    %156 = vector.broadcast %155 : vector<8x1xf32> to vector<8x128xf32>
    %157 = arith.mulf %152, %156 : vector<8x128xf32>
    %c0_64 = arith.constant 0 : index
    %c0_65 = arith.constant 0 : index
    %158 = vector.load %arg9[%c0_64, %c0_65] : memref<1x128xf32, #tpu.memory_space<vmem>>, vector<1x128xf32>
    %159 = vector.broadcast %158 : vector<1x128xf32> to vector<8x128xf32>
    %160 = arith.mulf %157, %159 : vector<8x128xf32>
    %c0_66 = arith.constant 0 : index
    %c0_67 = arith.constant 0 : index
    %161 = vector.load %arg10[%c0_66, %c0_67] : memref<1x128xf32, #tpu.memory_space<vmem>>, vector<1x128xf32>
    %162 = vector.broadcast %161 : vector<1x128xf32> to vector<8x128xf32>
    %163 = arith.addf %160, %162 : vector<8x128xf32>
    %164 = arith.truncf %163 : vector<8x128xf32> to vector<8x128xbf16>
    %c0_68 = arith.constant 0 : index
    %c0_69 = arith.constant 0 : index
    %c0_70 = arith.constant 0 : index
    %165 = vector.load %arg11[%c0_68, %c0_69, %c0_70] : memref<1x8x128xbf16, #tpu.memory_space<vmem>>, vector<1x8x128xbf16>
    %166 = vector.shape_cast %165 : vector<1x8x128xbf16> to vector<8x128xbf16>
    %167 = vector.shape_cast %164 : vector<8x128xbf16> to vector<1x8x128xbf16>
    tpu.vector_store %arg11[%c0_68, %c0_69, %c0_70], %167 {strides = array<i32>} : memref<1x8x128xbf16, #tpu.memory_space<vmem>>, vector<1x8x128xbf16>,
    return
  }
  func.func @transform_0(%arg0: i32) -> (i32, i32, i32) {
    %c0_i32 = arith.constant 0 : i32
    %c0_i32_0 = arith.constant 0 : i32
    %c0_i32_1 = arith.constant 0 : i32
    return %arg0, %c0_i32, %c0_i32_0 : i32, i32, i32
  }
  func.func @transform_1(%arg0: i32) -> (i32, i32, i32) {
    %c0_i32 = arith.constant 0 : i32
    %c0_i32_0 = arith.constant 0 : i32
    %c0_i32_1 = arith.constant 0 : i32
    return %arg0, %c0_i32, %c0_i32_0 : i32, i32, i32
  }
  func.func @transform_2(%arg0: i32) -> (i32, i32, i32) {
    %c0_i32 = arith.constant 0 : i32
    %c0_i32_0 = arith.constant 0 : i32
    %c0_i32_1 = arith.constant 0 : i32
    return %arg0, %c0_i32, %c0_i32_0 : i32, i32, i32
  }
  func.func @transform_3(%arg0: i32) -> (i32, i32) {
    %c0_i32 = arith.constant 0 : i32
    %c0_i32_0 = arith.constant 0 : i32
    %c0_i32_1 = arith.constant 0 : i32
    return %c0_i32, %c0_i32_0 : i32, i32
  }
  func.func @transform_4(%arg0: i32) -> (i32, i32) {
    %c0_i32 = arith.constant 0 : i32
    %c0_i32_0 = arith.constant 0 : i32
    %c0_i32_1 = arith.constant 0 : i32
    return %c0_i32, %c0_i32_0 : i32, i32
  }
  func.func @transform_5(%arg0: i32) -> (i32, i32) {
    %c0_i32 = arith.constant 0 : i32
    %c0_i32_0 = arith.constant 0 : i32
    %c0_i32_1 = arith.constant 0 : i32
    return %c0_i32, %c0_i32_0 : i32, i32
  }
  func.func @transform_6(%arg0: i32) -> (i32, i32) {
    %c0_i32 = arith.constant 0 : i32
    %c0_i32_0 = arith.constant 0 : i32
    %c0_i32_1 = arith.constant 0 : i32
    return %c0_i32, %c0_i32_0 : i32, i32
  }
  func.func @transform_7(%arg0: i32) -> (i32, i32) {
    %c0_i32 = arith.constant 0 : i32
    %c0_i32_0 = arith.constant 0 : i32
    %c0_i32_1 = arith.constant 0 : i32
    return %c0_i32, %c0_i32_0 : i32, i32
  }
  func.func @transform_8(%arg0: i32) -> (i32, i32) {
    %c0_i32 = arith.constant 0 : i32
    %c0_i32_0 = arith.constant 0 : i32
    %c0_i32_1 = arith.constant 0 : i32
    return %c0_i32, %c0_i32_0 : i32, i32
  }
  func.func @transform_9(%arg0: i32) -> (i32, i32) {
    %c0_i32 = arith.constant 0 : i32
    %c0_i32_0 = arith.constant 0 : i32
    %c0_i32_1 = arith.constant 0 : i32
    return %c0_i32, %c0_i32_0 : i32, i32
  }
  func.func @transform_10(%arg0: i32) -> (i32, i32, i32) {
    %c0_i32 = arith.constant 0 : i32
    %c0_i32_0 = arith.constant 0 : i32
    %c0_i32_1 = arith.constant 0 : i32
    return %arg0, %c0_i32, %c0_i32_0 : i32, i32, i32
  }
}

module attributes {stable_mosaic.version = 11 : i64} {
  func.func @fused_attn_ln_kernel(%arg0: i32, %arg1: memref<1x8x128xbf16, #tpu.memory_space<vmem>>, %arg2: memref<1x8x128xbf16, #tpu.memory_space<vmem>>, %arg3: memref<1x1x8xf32, #tpu.memory_space<vmem>>, %arg4: memref<32x32xbf16, #tpu.memory_space<vmem>>, %arg5: memref<32x32xbf16, #tpu.memory_space<vmem>>, %arg6: memref<32x32xbf16, #tpu.memory_space<vmem>>, %arg7: memref<128x128xbf16, #tpu.memory_space<vmem>>, %arg8: memref<1x128xf32, #tpu.memory_space<vmem>>, %arg9: memref<1x128xf32, #tpu.memory_space<vmem>>, %arg10: memref<1x128xf32, #tpu.memory_space<vmem>>, %arg11: memref<1x8x128xbf16, #tpu.memory_space<vmem>>) attributes {dimension_semantics = [#tpu.dimension_semantics<parallel>], iteration_bounds = array<i64: 2>, scalar_prefetch = 0 : i64, scratch_operands = 0 : i64, tpu.core_type = #tpu.core_type<tc>, window_params = [{transform_indices = @transform_0, window_bounds = array<i64: 1, 8, 128>}, {transform_indices = @transform_1, window_bounds = array<i64: 1, 8, 128>}, {transform_indices = @transform_2, window_bounds = array<i64: 1, 1, 8>}, {pipeline_mode = #tpu.pipeline_mode<synchronous>, transform_indices = @transform_3, window_bounds = array<i64: 32, 32>}, {pipeline_mode = #tpu.pipeline_mode<synchronous>, transform_indices = @transform_4, window_bounds = array<i64: 32, 32>}, {pipeline_mode = #tpu.pipeline_mode<synchronous>, transform_indices = @transform_5, window_bounds = array<i64: 32, 32>}, {pipeline_mode = #tpu.pipeline_mode<synchronous>, transform_indices = @transform_6, window_bounds = array<i64: 128, 128>}, {pipeline_mode = #tpu.pipeline_mode<synchronous>, transform_indices = @transform_7, window_bounds = array<i64: 1, 128>}, {pipeline_mode = #tpu.pipeline_mode<synchronous>, transform_indices = @transform_8, window_bounds = array<i64: 1, 128>}, {pipeline_mode = #tpu.pipeline_mode<synchronous>, transform_indices = @transform_9, window_bounds = array<i64: 1, 128>}, {transform_indices = @transform_10, window_bounds = array<i64: 1, 8, 128>}]} {
    %c0 = arith.constant 0 : index
    %c0_0 = arith.constant 0 : index
    %c0_1 = arith.constant 0 : index
    %0 = vector.load %arg1[%c0, %c0_0, %c0_1] : memref<1x8x128xbf16, #tpu.memory_space<vmem>>, vector<1x8x128xbf16>
    %1 = vector.shape_cast %0 : vector<1x8x128xbf16> to vector<8x128xbf16>
    %c0_2 = arith.constant 0 : index
    %c0_3 = arith.constant 0 : index
    %c0_4 = arith.constant 0 : index
    %2 = vector.load %arg2[%c0_2, %c0_3, %c0_4] : memref<1x8x128xbf16, #tpu.memory_space<vmem>>, vector<1x8x128xbf16>
    %3 = vector.shape_cast %2 : vector<1x8x128xbf16> to vector<8x128xbf16>
    %c0_5 = arith.constant 0 : index
    %c0_6 = arith.constant 0 : index
    %4 = vector.load %arg4[%c0_5, %c0_6] : memref<32x32xbf16, #tpu.memory_space<vmem>>, vector<32x32xbf16>
    %c0_7 = arith.constant 0 : index
    %c0_8 = arith.constant 0 : index
    %5 = vector.load %arg5[%c0_7, %c0_8] : memref<32x32xbf16, #tpu.memory_space<vmem>>, vector<32x32xbf16>
    %c0_9 = arith.constant 0 : index
    %c0_10 = arith.constant 0 : index
    %6 = vector.load %arg6[%c0_9, %c0_10] : memref<32x32xbf16, #tpu.memory_space<vmem>>, vector<32x32xbf16>
    %c0_11 = arith.constant 0 : index
    %c0_12 = arith.constant 0 : index
    %7 = vector.load %arg7[%c0_11, %c0_12] : memref<128x128xbf16, #tpu.memory_space<vmem>>, vector<128x128xbf16>
    %c0_13 = arith.constant 0 : index
    %c0_14 = arith.constant 0 : index
    %c0_15 = arith.constant 0 : index
    %8 = vector.load %arg3[%c0_13, %c0_14, %c0_15] : memref<1x1x8xf32, #tpu.memory_space<vmem>>, vector<1x1x8xf32>
    %9 = vector.shape_cast %8 : vector<1x1x8xf32> to vector<1x8xf32>
    %cst = arith.constant 0.000000e+00 : f32
    %10 = vector.broadcast %cst : f32 to vector<1x8xf32>
    %11 = arith.cmpf ogt, %9, %10 : vector<1x8xf32>
    %12 = vector.shape_cast %11 : vector<1x8xi1> to vector<1x8xi1>
    %13 = vector.broadcast %12 : vector<1x8xi1> to vector<8x8xi1>
    %cst_16 = arith.constant 0.000000e+00 : f32
    %14 = vector.broadcast %cst_16 : f32 to vector<8x128xf32>
    %15 = vector.extract_strided_slice %1 {offsets = [0, 0], sizes = [8, 32], strides = [1, 1]} : vector<8x128xbf16> to vector<8x32xbf16>
    %16 = vector.extract_strided_slice %3 {offsets = [0, 0], sizes = [8, 32], strides = [1, 1]} : vector<8x128xbf16> to vector<8x32xbf16>
    %cst_17 = arith.constant dense<0.000000e+00> : vector<8x32xf32>
    %17 = tpu.matmul %15, %4, %cst_17 {dimension_numbers = #tpu.dot_dimension_numbers<[1], [0], [0], [1], [0, 0, 1, 1], [], []>} : vector<8x32xbf16>, vector<32x32xbf16>, vector<8x32xf32> -> vector<8x32xf32>
    %18 = arith.truncf %17 : vector<8x32xf32> to vector<8x32xbf16>
    %cst_18 = arith.constant dense<0.000000e+00> : vector<8x32xf32>
    %19 = tpu.matmul %16, %5, %cst_18 {dimension_numbers = #tpu.dot_dimension_numbers<[1], [0], [0], [1], [0, 0, 1, 1], [], []>} : vector<8x32xbf16>, vector<32x32xbf16>, vector<8x32xf32> -> vector<8x32xf32>
    %20 = arith.truncf %19 : vector<8x32xf32> to vector<8x32xbf16>
    %cst_19 = arith.constant dense<0.000000e+00> : vector<8x32xf32>
    %21 = tpu.matmul %16, %6, %cst_19 {dimension_numbers = #tpu.dot_dimension_numbers<[1], [0], [0], [1], [0, 0, 1, 1], [], []>} : vector<8x32xbf16>, vector<32x32xbf16>, vector<8x32xf32> -> vector<8x32xf32>
    %22 = arith.truncf %21 : vector<8x32xf32> to vector<8x32xbf16>
    %cst_20 = arith.constant dense<0.000000e+00> : vector<8x8xf32>
    %23 = tpu.matmul %18, %20, %cst_20 {dimension_numbers = #tpu.dot_dimension_numbers<[1], [1], [0], [0], [0, 0, 1, 0], [], []>} : vector<8x32xbf16>, vector<8x32xbf16>, vector<8x8xf32> -> vector<8x8xf32>
    %cst_21 = arith.constant -1.000000e+20 : f32
    %24 = vector.broadcast %cst_21 : f32 to vector<8x8xf32>
    %25 = arith.select %13, %23, %24 : vector<8x8xi1>, vector<8x8xf32>
    %cst_22 = arith.constant 0.0883883461 : f32
    %26 = vector.broadcast %cst_22 : f32 to vector<8x8xf32>
    %27 = arith.mulf %25, %26 : vector<8x8xf32>
    %cst_23 = arith.constant dense<0xFF800000> : vector<8xf32>
    %28 = vector.multi_reduction <maximumf>, %27, %cst_23 [1] : vector<8x8xf32> to vector<8xf32>
    %29 = vector.shape_cast %28 : vector<8xf32> to vector<8x1xf32>
    %30 = vector.broadcast %29 : vector<8x1xf32> to vector<8x8xf32>
    %31 = arith.subf %27, %30 : vector<8x8xf32>
    %32 = math.exp %31 : vector<8x8xf32>
    %cst_24 = arith.constant dense<0.000000e+00> : vector<8xf32>
    %33 = vector.multi_reduction <add>, %32, %cst_24 [1] : vector<8x8xf32> to vector<8xf32>
    %34 = vector.shape_cast %33 : vector<8xf32> to vector<8x1xf32>
    %35 = arith.truncf %32 : vector<8x8xf32> to vector<8x8xbf16>
    %cst_25 = arith.constant dense<0.000000e+00> : vector<8x32xf32>
    %36 = tpu.matmul %35, %22, %cst_25 {dimension_numbers = #tpu.dot_dimension_numbers<[1], [0], [0], [1], [0, 0, 1, 1], [], []>} : vector<8x8xbf16>, vector<8x32xbf16>, vector<8x32xf32> -> vector<8x32xf32>
    %37 = tpu.reciprocal %34 {approx = true} : vector<8x1xf32> -> vector<8x1xf32>
    %38 = vector.broadcast %37 : vector<8x1xf32> to vector<8x32xf32>
    %39 = arith.mulf %36, %38 : vector<8x32xf32>
    %40 = arith.truncf %39 : vector<8x32xf32> to vector<8x32xbf16>
    %41 = vector.extract_strided_slice %7 {offsets = [0, 0], sizes = [32, 128], strides = [1, 1]} : vector<128x128xbf16> to vector<32x128xbf16>
    %cst_26 = arith.constant dense<0.000000e+00> : vector<8x128xf32>
    %42 = tpu.matmul %40, %41, %cst_26 {dimension_numbers = #tpu.dot_dimension_numbers<[1], [0], [0], [1], [0, 0, 1, 1], [], []>} : vector<8x32xbf16>, vector<32x128xbf16>, vector<8x128xf32> -> vector<8x128xf32>
    %43 = arith.addf %14, %42 : vector<8x128xf32>
    %44 = vector.extract_strided_slice %1 {offsets = [0, 32], sizes = [8, 32], strides = [1, 1]} : vector<8x128xbf16> to vector<8x32xbf16>
    %45 = vector.extract_strided_slice %3 {offsets = [0, 32], sizes = [8, 32], strides = [1, 1]} : vector<8x128xbf16> to vector<8x32xbf16>
    %cst_27 = arith.constant dense<0.000000e+00> : vector<8x32xf32>
    %46 = tpu.matmul %44, %4, %cst_27 {dimension_numbers = #tpu.dot_dimension_numbers<[1], [0], [0], [1], [0, 0, 1, 1], [], []>} : vector<8x32xbf16>, vector<32x32xbf16>, vector<8x32xf32> -> vector<8x32xf32>
    %47 = arith.truncf %46 : vector<8x32xf32> to vector<8x32xbf16>
    %cst_28 = arith.constant dense<0.000000e+00> : vector<8x32xf32>
    %48 = tpu.matmul %45, %5, %cst_28 {dimension_numbers = #tpu.dot_dimension_numbers<[1], [0], [0], [1], [0, 0, 1, 1], [], []>} : vector<8x32xbf16>, vector<32x32xbf16>, vector<8x32xf32> -> vector<8x32xf32>
    %49 = arith.truncf %48 : vector<8x32xf32> to vector<8x32xbf16>
    %cst_29 = arith.constant dense<0.000000e+00> : vector<8x32xf32>
    %50 = tpu.matmul %45, %6, %cst_29 {dimension_numbers = #tpu.dot_dimension_numbers<[1], [0], [0], [1], [0, 0, 1, 1], [], []>} : vector<8x32xbf16>, vector<32x32xbf16>, vector<8x32xf32> -> vector<8x32xf32>
    %51 = arith.truncf %50 : vector<8x32xf32> to vector<8x32xbf16>
    %cst_30 = arith.constant dense<0.000000e+00> : vector<8x8xf32>
    %52 = tpu.matmul %47, %49, %cst_30 {dimension_numbers = #tpu.dot_dimension_numbers<[1], [1], [0], [0], [0, 0, 1, 0], [], []>} : vector<8x32xbf16>, vector<8x32xbf16>, vector<8x8xf32> -> vector<8x8xf32>
    %cst_31 = arith.constant -1.000000e+20 : f32
    %53 = vector.broadcast %cst_31 : f32 to vector<8x8xf32>
    %54 = arith.select %13, %52, %53 : vector<8x8xi1>, vector<8x8xf32>
    %cst_32 = arith.constant 0.0883883461 : f32
    %55 = vector.broadcast %cst_32 : f32 to vector<8x8xf32>
    %56 = arith.mulf %54, %55 : vector<8x8xf32>
    %cst_33 = arith.constant dense<0xFF800000> : vector<8xf32>
    %57 = vector.multi_reduction <maximumf>, %56, %cst_33 [1] : vector<8x8xf32> to vector<8xf32>
    %58 = vector.shape_cast %57 : vector<8xf32> to vector<8x1xf32>
    %59 = vector.broadcast %58 : vector<8x1xf32> to vector<8x8xf32>
    %60 = arith.subf %56, %59 : vector<8x8xf32>
    %61 = math.exp %60 : vector<8x8xf32>
    %cst_34 = arith.constant dense<0.000000e+00> : vector<8xf32>
    %62 = vector.multi_reduction <add>, %61, %cst_34 [1] : vector<8x8xf32> to vector<8xf32>
    %63 = vector.shape_cast %62 : vector<8xf32> to vector<8x1xf32>
    %64 = arith.truncf %61 : vector<8x8xf32> to vector<8x8xbf16>
    %cst_35 = arith.constant dense<0.000000e+00> : vector<8x32xf32>
    %65 = tpu.matmul %64, %51, %cst_35 {dimension_numbers = #tpu.dot_dimension_numbers<[1], [0], [0], [1], [0, 0, 1, 1], [], []>} : vector<8x8xbf16>, vector<8x32xbf16>, vector<8x32xf32> -> vector<8x32xf32>
    %66 = tpu.reciprocal %63 {approx = true} : vector<8x1xf32> -> vector<8x1xf32>
    %67 = vector.broadcast %66 : vector<8x1xf32> to vector<8x32xf32>
    %68 = arith.mulf %65, %67 : vector<8x32xf32>
    %69 = arith.truncf %68 : vector<8x32xf32> to vector<8x32xbf16>
    %70 = vector.extract_strided_slice %7 {offsets = [32, 0], sizes = [32, 128], strides = [1, 1]} : vector<128x128xbf16> to vector<32x128xbf16>
    %cst_36 = arith.constant dense<0.000000e+00> : vector<8x128xf32>
    %71 = tpu.matmul %69, %70, %cst_36 {dimension_numbers = #tpu.dot_dimension_numbers<[1], [0], [0], [1], [0, 0, 1, 1], [], []>} : vector<8x32xbf16>, vector<32x128xbf16>, vector<8x128xf32> -> vector<8x128xf32>
    %72 = arith.addf %43, %71 : vector<8x128xf32>
    %73 = vector.extract_strided_slice %1 {offsets = [0, 64], sizes = [8, 32], strides = [1, 1]} : vector<8x128xbf16> to vector<8x32xbf16>
    %74 = vector.extract_strided_slice %3 {offsets = [0, 64], sizes = [8, 32], strides = [1, 1]} : vector<8x128xbf16> to vector<8x32xbf16>
    %cst_37 = arith.constant dense<0.000000e+00> : vector<8x32xf32>
    %75 = tpu.matmul %73, %4, %cst_37 {dimension_numbers = #tpu.dot_dimension_numbers<[1], [0], [0], [1], [0, 0, 1, 1], [], []>} : vector<8x32xbf16>, vector<32x32xbf16>, vector<8x32xf32> -> vector<8x32xf32>
    %76 = arith.truncf %75 : vector<8x32xf32> to vector<8x32xbf16>
    %cst_38 = arith.constant dense<0.000000e+00> : vector<8x32xf32>
    %77 = tpu.matmul %74, %5, %cst_38 {dimension_numbers = #tpu.dot_dimension_numbers<[1], [0], [0], [1], [0, 0, 1, 1], [], []>} : vector<8x32xbf16>, vector<32x32xbf16>, vector<8x32xf32> -> vector<8x32xf32>
    %78 = arith.truncf %77 : vector<8x32xf32> to vector<8x32xbf16>
    %cst_39 = arith.constant dense<0.000000e+00> : vector<8x32xf32>
    %79 = tpu.matmul %74, %6, %cst_39 {dimension_numbers = #tpu.dot_dimension_numbers<[1], [0], [0], [1], [0, 0, 1, 1], [], []>} : vector<8x32xbf16>, vector<32x32xbf16>, vector<8x32xf32> -> vector<8x32xf32>
    %80 = arith.truncf %79 : vector<8x32xf32> to vector<8x32xbf16>
    %cst_40 = arith.constant dense<0.000000e+00> : vector<8x8xf32>
    %81 = tpu.matmul %76, %78, %cst_40 {dimension_numbers = #tpu.dot_dimension_numbers<[1], [1], [0], [0], [0, 0, 1, 0], [], []>} : vector<8x32xbf16>, vector<8x32xbf16>, vector<8x8xf32> -> vector<8x8xf32>
    %cst_41 = arith.constant -1.000000e+20 : f32
    %82 = vector.broadcast %cst_41 : f32 to vector<8x8xf32>
    %83 = arith.select %13, %81, %82 : vector<8x8xi1>, vector<8x8xf32>
    %cst_42 = arith.constant 0.0883883461 : f32
    %84 = vector.broadcast %cst_42 : f32 to vector<8x8xf32>
    %85 = arith.mulf %83, %84 : vector<8x8xf32>
    %cst_43 = arith.constant dense<0xFF800000> : vector<8xf32>
    %86 = vector.multi_reduction <maximumf>, %85, %cst_43 [1] : vector<8x8xf32> to vector<8xf32>
    %87 = vector.shape_cast %86 : vector<8xf32> to vector<8x1xf32>
    %88 = vector.broadcast %87 : vector<8x1xf32> to vector<8x8xf32>
    %89 = arith.subf %85, %88 : vector<8x8xf32>
    %90 = math.exp %89 : vector<8x8xf32>
    %cst_44 = arith.constant dense<0.000000e+00> : vector<8xf32>
    %91 = vector.multi_reduction <add>, %90, %cst_44 [1] : vector<8x8xf32> to vector<8xf32>
    %92 = vector.shape_cast %91 : vector<8xf32> to vector<8x1xf32>
    %93 = arith.truncf %90 : vector<8x8xf32> to vector<8x8xbf16>
    %cst_45 = arith.constant dense<0.000000e+00> : vector<8x32xf32>
    %94 = tpu.matmul %93, %80, %cst_45 {dimension_numbers = #tpu.dot_dimension_numbers<[1], [0], [0], [1], [0, 0, 1, 1], [], []>} : vector<8x8xbf16>, vector<8x32xbf16>, vector<8x32xf32> -> vector<8x32xf32>
    %95 = tpu.reciprocal %92 {approx = true} : vector<8x1xf32> -> vector<8x1xf32>
    %96 = vector.broadcast %95 : vector<8x1xf32> to vector<8x32xf32>
    %97 = arith.mulf %94, %96 : vector<8x32xf32>
    %98 = arith.truncf %97 : vector<8x32xf32> to vector<8x32xbf16>
    %99 = vector.extract_strided_slice %7 {offsets = [64, 0], sizes = [32, 128], strides = [1, 1]} : vector<128x128xbf16> to vector<32x128xbf16>
    %cst_46 = arith.constant dense<0.000000e+00> : vector<8x128xf32>
    %100 = tpu.matmul %98, %99, %cst_46 {dimension_numbers = #tpu.dot_dimension_numbers<[1], [0], [0], [1], [0, 0, 1, 1], [], []>} : vector<8x32xbf16>, vector<32x128xbf16>, vector<8x128xf32> -> vector<8x128xf32>
    %101 = arith.addf %72, %100 : vector<8x128xf32>
    %102 = vector.extract_strided_slice %1 {offsets = [0, 96], sizes = [8, 32], strides = [1, 1]} : vector<8x128xbf16> to vector<8x32xbf16>
    %103 = vector.extract_strided_slice %3 {offsets = [0, 96], sizes = [8, 32], strides = [1, 1]} : vector<8x128xbf16> to vector<8x32xbf16>
    %cst_47 = arith.constant dense<0.000000e+00> : vector<8x32xf32>
    %104 = tpu.matmul %102, %4, %cst_47 {dimension_numbers = #tpu.dot_dimension_numbers<[1], [0], [0], [1], [0, 0, 1, 1], [], []>} : vector<8x32xbf16>, vector<32x32xbf16>, vector<8x32xf32> -> vector<8x32xf32>
    %105 = arith.truncf %104 : vector<8x32xf32> to vector<8x32xbf16>
    %cst_48 = arith.constant dense<0.000000e+00> : vector<8x32xf32>
    %106 = tpu.matmul %103, %5, %cst_48 {dimension_numbers = #tpu.dot_dimension_numbers<[1], [0], [0], [1], [0, 0, 1, 1], [], []>} : vector<8x32xbf16>, vector<32x32xbf16>, vector<8x32xf32> -> vector<8x32xf32>
    %107 = arith.truncf %106 : vector<8x32xf32> to vector<8x32xbf16>
    %cst_49 = arith.constant dense<0.000000e+00> : vector<8x32xf32>
    %108 = tpu.matmul %103, %6, %cst_49 {dimension_numbers = #tpu.dot_dimension_numbers<[1], [0], [0], [1], [0, 0, 1, 1], [], []>} : vector<8x32xbf16>, vector<32x32xbf16>, vector<8x32xf32> -> vector<8x32xf32>
    %109 = arith.truncf %108 : vector<8x32xf32> to vector<8x32xbf16>
    %cst_50 = arith.constant dense<0.000000e+00> : vector<8x8xf32>
    %110 = tpu.matmul %105, %107, %cst_50 {dimension_numbers = #tpu.dot_dimension_numbers<[1], [1], [0], [0], [0, 0, 1, 0], [], []>} : vector<8x32xbf16>, vector<8x32xbf16>, vector<8x8xf32> -> vector<8x8xf32>
    %cst_51 = arith.constant -1.000000e+20 : f32
    %111 = vector.broadcast %cst_51 : f32 to vector<8x8xf32>
    %112 = arith.select %13, %110, %111 : vector<8x8xi1>, vector<8x8xf32>
    %cst_52 = arith.constant 0.0883883461 : f32
    %113 = vector.broadcast %cst_52 : f32 to vector<8x8xf32>
    %114 = arith.mulf %112, %113 : vector<8x8xf32>
    %cst_53 = arith.constant dense<0xFF800000> : vector<8xf32>
    %115 = vector.multi_reduction <maximumf>, %114, %cst_53 [1] : vector<8x8xf32> to vector<8xf32>
    %116 = vector.shape_cast %115 : vector<8xf32> to vector<8x1xf32>
    %117 = vector.broadcast %116 : vector<8x1xf32> to vector<8x8xf32>
    %118 = arith.subf %114, %117 : vector<8x8xf32>
    %119 = math.exp %118 : vector<8x8xf32>
    %cst_54 = arith.constant dense<0.000000e+00> : vector<8xf32>
    %120 = vector.multi_reduction <add>, %119, %cst_54 [1] : vector<8x8xf32> to vector<8xf32>
    %121 = vector.shape_cast %120 : vector<8xf32> to vector<8x1xf32>
    %122 = arith.truncf %119 : vector<8x8xf32> to vector<8x8xbf16>
    %cst_55 = arith.constant dense<0.000000e+00> : vector<8x32xf32>
    %123 = tpu.matmul %122, %109, %cst_55 {dimension_numbers = #tpu.dot_dimension_numbers<[1], [0], [0], [1], [0, 0, 1, 1], [], []>} : vector<8x8xbf16>, vector<8x32xbf16>, vector<8x32xf32> -> vector<8x32xf32>
    %124 = tpu.reciprocal %121 {approx = true} : vector<8x1xf32> -> vector<8x1xf32>
    %125 = vector.broadcast %124 : vector<8x1xf32> to vector<8x32xf32>
    %126 = arith.mulf %123, %125 : vector<8x32xf32>
    %127 = arith.truncf %126 : vector<8x32xf32> to vector<8x32xbf16>
    %128 = vector.extract_strided_slice %7 {offsets = [96, 0], sizes = [32, 128], strides = [1, 1]} : vector<128x128xbf16> to vector<32x128xbf16>
    %cst_56 = arith.constant dense<0.000000e+00> : vector<8x128xf32>
    %129 = tpu.matmul %127, %128, %cst_56 {dimension_numbers = #tpu.dot_dimension_numbers<[1], [0], [0], [1], [0, 0, 1, 1], [], []>} : vector<8x32xbf16>, vector<32x128xbf16>, vector<8x128xf32> -> vector<8x128xf32>
    %130 = arith.addf %101, %129 : vector<8x128xf32>
    %c0_57 = arith.constant 0 : index
    %c0_58 = arith.constant 0 : index
    %131 = vector.load %arg8[%c0_57, %c0_58] : memref<1x128xf32, #tpu.memory_space<vmem>>, vector<1x128xf32>
    %132 = vector.broadcast %131 : vector<1x128xf32> to vector<8x128xf32>
    %133 = arith.addf %130, %132 : vector<8x128xf32>
    %134 = arith.extf %1 : vector<8x128xbf16> to vector<8x128xf32>
    %135 = arith.addf %133, %134 : vector<8x128xf32>
    %cst_59 = arith.constant dense<0.000000e+00> : vector<8xf32>
    %136 = vector.multi_reduction <add>, %135, %cst_59 [1] : vector<8x128xf32> to vector<8xf32>
    %137 = vector.shape_cast %136 : vector<8xf32> to vector<8x1xf32>
    %cst_60 = arith.constant 1.280000e+02 : f32
    %138 = vector.broadcast %cst_60 : f32 to vector<8x1xf32>
    %139 = arith.divf %137, %138 : vector<8x1xf32>
    %140 = arith.mulf %135, %135 : vector<8x128xf32>
    %cst_61 = arith.constant dense<0.000000e+00> : vector<8xf32>
    %141 = vector.multi_reduction <add>, %140, %cst_61 [1] : vector<8x128xf32> to vector<8xf32>
    %142 = vector.shape_cast %141 : vector<8xf32> to vector<8x1xf32>
    %cst_62 = arith.constant 1.280000e+02 : f32
    %143 = vector.broadcast %cst_62 : f32 to vector<8x1xf32>
    %144 = arith.divf %142, %143 : vector<8x1xf32>
    %145 = arith.mulf %139, %139 : vector<8x1xf32>
    %146 = arith.subf %144, %145 : vector<8x1xf32>
    %147 = vector.broadcast %139 : vector<8x1xf32> to vector<8x128xf32>
    %148 = arith.subf %135, %147 : vector<8x128xf32>
    %cst_63 = arith.constant 9.99999974E-6 : f32
    %149 = vector.broadcast %cst_63 : f32 to vector<8x1xf32>
    %150 = arith.addf %146, %149 : vector<8x1xf32>
    %151 = math.rsqrt %150 : vector<8x1xf32>
    %152 = vector.broadcast %151 : vector<8x1xf32> to vector<8x128xf32>
    %153 = arith.mulf %148, %152 : vector<8x128xf32>
    %c0_64 = arith.constant 0 : index
    %c0_65 = arith.constant 0 : index
    %154 = vector.load %arg9[%c0_64, %c0_65] : memref<1x128xf32, #tpu.memory_space<vmem>>, vector<1x128xf32>
    %155 = vector.broadcast %154 : vector<1x128xf32> to vector<8x128xf32>
    %156 = arith.mulf %153, %155 : vector<8x128xf32>
    %c0_66 = arith.constant 0 : index
    %c0_67 = arith.constant 0 : index
    %157 = vector.load %arg10[%c0_66, %c0_67] : memref<1x128xf32, #tpu.memory_space<vmem>>, vector<1x128xf32>
    %158 = vector.broadcast %157 : vector<1x128xf32> to vector<8x128xf32>
    %159 = arith.addf %156, %158 : vector<8x128xf32>
    %160 = arith.truncf %159 : vector<8x128xf32> to vector<8x128xbf16>
    %c0_68 = arith.constant 0 : index
    %c0_69 = arith.constant 0 : index
    %c0_70 = arith.constant 0 : index
    %161 = vector.load %arg11[%c0_68, %c0_69, %c0_70] : memref<1x8x128xbf16, #tpu.memory_space<vmem>>, vector<1x8x128xbf16>
    %162 = vector.shape_cast %161 : vector<1x8x128xbf16> to vector<8x128xbf16>
    %163 = vector.shape_cast %160 : vector<8x128xbf16> to vector<1x8x128xbf16>
    tpu.vector_store %arg11[%c0_68, %c0_69, %c0_70], %163 {strides = array<i32>} : memref<1x8x128xbf16, #tpu.memory_space<vmem>>, vector<1x8x128xbf16>,
    return
  }
  func.func @transform_0(%arg0: i32) -> (i32, i32, i32) {
    %c0_i32 = arith.constant 0 : i32
    %c0_i32_0 = arith.constant 0 : i32
    %c0_i32_1 = arith.constant 0 : i32
    return %arg0, %c0_i32, %c0_i32_0 : i32, i32, i32
  }
  func.func @transform_1(%arg0: i32) -> (i32, i32, i32) {
    %c0_i32 = arith.constant 0 : i32
    %c0_i32_0 = arith.constant 0 : i32
    %c0_i32_1 = arith.constant 0 : i32
    return %arg0, %c0_i32, %c0_i32_0 : i32, i32, i32
  }
  func.func @transform_2(%arg0: i32) -> (i32, i32, i32) {
    %c0_i32 = arith.constant 0 : i32
    %c0_i32_0 = arith.constant 0 : i32
    %c0_i32_1 = arith.constant 0 : i32
    return %arg0, %c0_i32, %c0_i32_0 : i32, i32, i32
  }
  func.func @transform_3(%arg0: i32) -> (i32, i32) {
    %c0_i32 = arith.constant 0 : i32
    %c0_i32_0 = arith.constant 0 : i32
    %c0_i32_1 = arith.constant 0 : i32
    return %c0_i32, %c0_i32_0 : i32, i32
  }
  func.func @transform_4(%arg0: i32) -> (i32, i32) {
    %c0_i32 = arith.constant 0 : i32
    %c0_i32_0 = arith.constant 0 : i32
    %c0_i32_1 = arith.constant 0 : i32
    return %c0_i32, %c0_i32_0 : i32, i32
  }
  func.func @transform_5(%arg0: i32) -> (i32, i32) {
    %c0_i32 = arith.constant 0 : i32
    %c0_i32_0 = arith.constant 0 : i32
    %c0_i32_1 = arith.constant 0 : i32
    return %c0_i32, %c0_i32_0 : i32, i32
  }
  func.func @transform_6(%arg0: i32) -> (i32, i32) {
    %c0_i32 = arith.constant 0 : i32
    %c0_i32_0 = arith.constant 0 : i32
    %c0_i32_1 = arith.constant 0 : i32
    return %c0_i32, %c0_i32_0 : i32, i32
  }
  func.func @transform_7(%arg0: i32) -> (i32, i32) {
    %c0_i32 = arith.constant 0 : i32
    %c0_i32_0 = arith.constant 0 : i32
    %c0_i32_1 = arith.constant 0 : i32
    return %c0_i32, %c0_i32_0 : i32, i32
  }
  func.func @transform_8(%arg0: i32) -> (i32, i32) {
    %c0_i32 = arith.constant 0 : i32
    %c0_i32_0 = arith.constant 0 : i32
    %c0_i32_1 = arith.constant 0 : i32
    return %c0_i32, %c0_i32_0 : i32, i32
  }
  func.func @transform_9(%arg0: i32) -> (i32, i32) {
    %c0_i32 = arith.constant 0 : i32
    %c0_i32_0 = arith.constant 0 : i32
    %c0_i32_1 = arith.constant 0 : i32
    return %c0_i32, %c0_i32_0 : i32, i32
  }
  func.func @transform_10(%arg0: i32) -> (i32, i32, i32) {
    %c0_i32 = arith.constant 0 : i32
    %c0_i32_0 = arith.constant 0 : i32
    %c0_i32_1 = arith.constant 0 : i32
    return %arg0, %c0_i32, %c0_i32_0 : i32, i32, i32
  }
}

module attributes {stable_mosaic.version = 11 : i64} {
  func.func @fused_attn_ln_kernel(%arg0: i32, %arg1: memref<1x8x128xbf16, #tpu.memory_space<vmem>>, %arg2: memref<1x8x128xbf16, #tpu.memory_space<vmem>>, %arg3: memref<1x1x8xf32, #tpu.memory_space<vmem>>, %arg4: memref<32x32xbf16, #tpu.memory_space<vmem>>, %arg5: memref<32x32xbf16, #tpu.memory_space<vmem>>, %arg6: memref<32x32xbf16, #tpu.memory_space<vmem>>, %arg7: memref<128x128xbf16, #tpu.memory_space<vmem>>, %arg8: memref<1x128xf32, #tpu.memory_space<vmem>>, %arg9: memref<1x128xf32, #tpu.memory_space<vmem>>, %arg10: memref<1x128xf32, #tpu.memory_space<vmem>>, %arg11: memref<1x8x128xbf16, #tpu.memory_space<vmem>>) attributes {dimension_semantics = [#tpu.dimension_semantics<parallel>], iteration_bounds = array<i64: 2>, scalar_prefetch = 0 : i64, scratch_operands = 0 : i64, tpu.core_type = #tpu.core_type<tc>, window_params = [{transform_indices = @transform_0, window_bounds = array<i64: 1, 8, 128>}, {transform_indices = @transform_1, window_bounds = array<i64: 1, 8, 128>}, {transform_indices = @transform_2, window_bounds = array<i64: 1, 1, 8>}, {pipeline_mode = #tpu.pipeline_mode<synchronous>, transform_indices = @transform_3, window_bounds = array<i64: 32, 32>}, {pipeline_mode = #tpu.pipeline_mode<synchronous>, transform_indices = @transform_4, window_bounds = array<i64: 32, 32>}, {pipeline_mode = #tpu.pipeline_mode<synchronous>, transform_indices = @transform_5, window_bounds = array<i64: 32, 32>}, {pipeline_mode = #tpu.pipeline_mode<synchronous>, transform_indices = @transform_6, window_bounds = array<i64: 128, 128>}, {pipeline_mode = #tpu.pipeline_mode<synchronous>, transform_indices = @transform_7, window_bounds = array<i64: 1, 128>}, {pipeline_mode = #tpu.pipeline_mode<synchronous>, transform_indices = @transform_8, window_bounds = array<i64: 1, 128>}, {pipeline_mode = #tpu.pipeline_mode<synchronous>, transform_indices = @transform_9, window_bounds = array<i64: 1, 128>}, {transform_indices = @transform_10, window_bounds = array<i64: 1, 8, 128>}]} {
    %c0 = arith.constant 0 : index
    %c0_0 = arith.constant 0 : index
    %c0_1 = arith.constant 0 : index
    %0 = vector.load %arg1[%c0, %c0_0, %c0_1] : memref<1x8x128xbf16, #tpu.memory_space<vmem>>, vector<1x8x128xbf16>
    %1 = vector.shape_cast %0 : vector<1x8x128xbf16> to vector<8x128xbf16>
    %c0_2 = arith.constant 0 : index
    %c0_3 = arith.constant 0 : index
    %c0_4 = arith.constant 0 : index
    %2 = vector.load %arg2[%c0_2, %c0_3, %c0_4] : memref<1x8x128xbf16, #tpu.memory_space<vmem>>, vector<1x8x128xbf16>
    %3 = vector.shape_cast %2 : vector<1x8x128xbf16> to vector<8x128xbf16>
    %c0_5 = arith.constant 0 : index
    %c0_6 = arith.constant 0 : index
    %4 = vector.load %arg4[%c0_5, %c0_6] : memref<32x32xbf16, #tpu.memory_space<vmem>>, vector<32x32xbf16>
    %c0_7 = arith.constant 0 : index
    %c0_8 = arith.constant 0 : index
    %5 = vector.load %arg5[%c0_7, %c0_8] : memref<32x32xbf16, #tpu.memory_space<vmem>>, vector<32x32xbf16>
    %c0_9 = arith.constant 0 : index
    %c0_10 = arith.constant 0 : index
    %6 = vector.load %arg6[%c0_9, %c0_10] : memref<32x32xbf16, #tpu.memory_space<vmem>>, vector<32x32xbf16>
    %c0_11 = arith.constant 0 : index
    %c0_12 = arith.constant 0 : index
    %7 = vector.load %arg7[%c0_11, %c0_12] : memref<128x128xbf16, #tpu.memory_space<vmem>>, vector<128x128xbf16>
    %c0_13 = arith.constant 0 : index
    %c0_14 = arith.constant 0 : index
    %c0_15 = arith.constant 0 : index
    %8 = vector.load %arg3[%c0_13, %c0_14, %c0_15] : memref<1x1x8xf32, #tpu.memory_space<vmem>>, vector<1x1x8xf32>
    %9 = vector.shape_cast %8 : vector<1x1x8xf32> to vector<1x8xf32>
    %cst = arith.constant 0.000000e+00 : f32
    %10 = vector.broadcast %cst : f32 to vector<1x8xf32>
    %11 = arith.cmpf ogt, %9, %10 : vector<1x8xf32>
    %12 = vector.shape_cast %11 : vector<1x8xi1> to vector<1x8xi1>
    %13 = vector.broadcast %12 : vector<1x8xi1> to vector<8x8xi1>
    %14 = tpu.iota {dimensions = array<i32: 0>} : vector<8x8xi32>
    %15 = tpu.iota {dimensions = array<i32: 1>} : vector<8x8xi32>
    %16 = arith.cmpi sge, %14, %15 : vector<8x8xi32>
    %17 = arith.andi %13, %16 : vector<8x8xi1>
    %cst_16 = arith.constant 0.000000e+00 : f32
    %18 = vector.broadcast %cst_16 : f32 to vector<8x128xf32>
    %19 = vector.extract_strided_slice %1 {offsets = [0, 0], sizes = [8, 32], strides = [1, 1]} : vector<8x128xbf16> to vector<8x32xbf16>
    %20 = vector.extract_strided_slice %3 {offsets = [0, 0], sizes = [8, 32], strides = [1, 1]} : vector<8x128xbf16> to vector<8x32xbf16>
    %cst_17 = arith.constant dense<0.000000e+00> : vector<8x32xf32>
    %21 = tpu.matmul %19, %4, %cst_17 {dimension_numbers = #tpu.dot_dimension_numbers<[1], [0], [0], [1], [0, 0, 1, 1], [], []>} : vector<8x32xbf16>, vector<32x32xbf16>, vector<8x32xf32> -> vector<8x32xf32>
    %22 = arith.truncf %21 : vector<8x32xf32> to vector<8x32xbf16>
    %cst_18 = arith.constant dense<0.000000e+00> : vector<8x32xf32>
    %23 = tpu.matmul %20, %5, %cst_18 {dimension_numbers = #tpu.dot_dimension_numbers<[1], [0], [0], [1], [0, 0, 1, 1], [], []>} : vector<8x32xbf16>, vector<32x32xbf16>, vector<8x32xf32> -> vector<8x32xf32>
    %24 = arith.truncf %23 : vector<8x32xf32> to vector<8x32xbf16>
    %cst_19 = arith.constant dense<0.000000e+00> : vector<8x32xf32>
    %25 = tpu.matmul %20, %6, %cst_19 {dimension_numbers = #tpu.dot_dimension_numbers<[1], [0], [0], [1], [0, 0, 1, 1], [], []>} : vector<8x32xbf16>, vector<32x32xbf16>, vector<8x32xf32> -> vector<8x32xf32>
    %26 = arith.truncf %25 : vector<8x32xf32> to vector<8x32xbf16>
    %cst_20 = arith.constant dense<0.000000e+00> : vector<8x8xf32>
    %27 = tpu.matmul %22, %24, %cst_20 {dimension_numbers = #tpu.dot_dimension_numbers<[1], [1], [0], [0], [0, 0, 1, 0], [], []>} : vector<8x32xbf16>, vector<8x32xbf16>, vector<8x8xf32> -> vector<8x8xf32>
    %cst_21 = arith.constant -1.000000e+20 : f32
    %28 = vector.broadcast %cst_21 : f32 to vector<8x8xf32>
    %29 = arith.select %17, %27, %28 : vector<8x8xi1>, vector<8x8xf32>
    %cst_22 = arith.constant 0.0883883461 : f32
    %30 = vector.broadcast %cst_22 : f32 to vector<8x8xf32>
    %31 = arith.mulf %29, %30 : vector<8x8xf32>
    %cst_23 = arith.constant dense<0xFF800000> : vector<8xf32>
    %32 = vector.multi_reduction <maximumf>, %31, %cst_23 [1] : vector<8x8xf32> to vector<8xf32>
    %33 = vector.shape_cast %32 : vector<8xf32> to vector<8x1xf32>
    %34 = vector.broadcast %33 : vector<8x1xf32> to vector<8x8xf32>
    %35 = arith.subf %31, %34 : vector<8x8xf32>
    %36 = math.exp %35 : vector<8x8xf32>
    %cst_24 = arith.constant dense<0.000000e+00> : vector<8xf32>
    %37 = vector.multi_reduction <add>, %36, %cst_24 [1] : vector<8x8xf32> to vector<8xf32>
    %38 = vector.shape_cast %37 : vector<8xf32> to vector<8x1xf32>
    %39 = arith.truncf %36 : vector<8x8xf32> to vector<8x8xbf16>
    %cst_25 = arith.constant dense<0.000000e+00> : vector<8x32xf32>
    %40 = tpu.matmul %39, %26, %cst_25 {dimension_numbers = #tpu.dot_dimension_numbers<[1], [0], [0], [1], [0, 0, 1, 1], [], []>} : vector<8x8xbf16>, vector<8x32xbf16>, vector<8x32xf32> -> vector<8x32xf32>
    %41 = tpu.reciprocal %38 {approx = true} : vector<8x1xf32> -> vector<8x1xf32>
    %42 = vector.broadcast %41 : vector<8x1xf32> to vector<8x32xf32>
    %43 = arith.mulf %40, %42 : vector<8x32xf32>
    %44 = arith.truncf %43 : vector<8x32xf32> to vector<8x32xbf16>
    %45 = vector.extract_strided_slice %7 {offsets = [0, 0], sizes = [32, 128], strides = [1, 1]} : vector<128x128xbf16> to vector<32x128xbf16>
    %cst_26 = arith.constant dense<0.000000e+00> : vector<8x128xf32>
    %46 = tpu.matmul %44, %45, %cst_26 {dimension_numbers = #tpu.dot_dimension_numbers<[1], [0], [0], [1], [0, 0, 1, 1], [], []>} : vector<8x32xbf16>, vector<32x128xbf16>, vector<8x128xf32> -> vector<8x128xf32>
    %47 = arith.addf %18, %46 : vector<8x128xf32>
    %48 = vector.extract_strided_slice %1 {offsets = [0, 32], sizes = [8, 32], strides = [1, 1]} : vector<8x128xbf16> to vector<8x32xbf16>
    %49 = vector.extract_strided_slice %3 {offsets = [0, 32], sizes = [8, 32], strides = [1, 1]} : vector<8x128xbf16> to vector<8x32xbf16>
    %cst_27 = arith.constant dense<0.000000e+00> : vector<8x32xf32>
    %50 = tpu.matmul %48, %4, %cst_27 {dimension_numbers = #tpu.dot_dimension_numbers<[1], [0], [0], [1], [0, 0, 1, 1], [], []>} : vector<8x32xbf16>, vector<32x32xbf16>, vector<8x32xf32> -> vector<8x32xf32>
    %51 = arith.truncf %50 : vector<8x32xf32> to vector<8x32xbf16>
    %cst_28 = arith.constant dense<0.000000e+00> : vector<8x32xf32>
    %52 = tpu.matmul %49, %5, %cst_28 {dimension_numbers = #tpu.dot_dimension_numbers<[1], [0], [0], [1], [0, 0, 1, 1], [], []>} : vector<8x32xbf16>, vector<32x32xbf16>, vector<8x32xf32> -> vector<8x32xf32>
    %53 = arith.truncf %52 : vector<8x32xf32> to vector<8x32xbf16>
    %cst_29 = arith.constant dense<0.000000e+00> : vector<8x32xf32>
    %54 = tpu.matmul %49, %6, %cst_29 {dimension_numbers = #tpu.dot_dimension_numbers<[1], [0], [0], [1], [0, 0, 1, 1], [], []>} : vector<8x32xbf16>, vector<32x32xbf16>, vector<8x32xf32> -> vector<8x32xf32>
    %55 = arith.truncf %54 : vector<8x32xf32> to vector<8x32xbf16>
    %cst_30 = arith.constant dense<0.000000e+00> : vector<8x8xf32>
    %56 = tpu.matmul %51, %53, %cst_30 {dimension_numbers = #tpu.dot_dimension_numbers<[1], [1], [0], [0], [0, 0, 1, 0], [], []>} : vector<8x32xbf16>, vector<8x32xbf16>, vector<8x8xf32> -> vector<8x8xf32>
    %cst_31 = arith.constant -1.000000e+20 : f32
    %57 = vector.broadcast %cst_31 : f32 to vector<8x8xf32>
    %58 = arith.select %17, %56, %57 : vector<8x8xi1>, vector<8x8xf32>
    %cst_32 = arith.constant 0.0883883461 : f32
    %59 = vector.broadcast %cst_32 : f32 to vector<8x8xf32>
    %60 = arith.mulf %58, %59 : vector<8x8xf32>
    %cst_33 = arith.constant dense<0xFF800000> : vector<8xf32>
    %61 = vector.multi_reduction <maximumf>, %60, %cst_33 [1] : vector<8x8xf32> to vector<8xf32>
    %62 = vector.shape_cast %61 : vector<8xf32> to vector<8x1xf32>
    %63 = vector.broadcast %62 : vector<8x1xf32> to vector<8x8xf32>
    %64 = arith.subf %60, %63 : vector<8x8xf32>
    %65 = math.exp %64 : vector<8x8xf32>
    %cst_34 = arith.constant dense<0.000000e+00> : vector<8xf32>
    %66 = vector.multi_reduction <add>, %65, %cst_34 [1] : vector<8x8xf32> to vector<8xf32>
    %67 = vector.shape_cast %66 : vector<8xf32> to vector<8x1xf32>
    %68 = arith.truncf %65 : vector<8x8xf32> to vector<8x8xbf16>
    %cst_35 = arith.constant dense<0.000000e+00> : vector<8x32xf32>
    %69 = tpu.matmul %68, %55, %cst_35 {dimension_numbers = #tpu.dot_dimension_numbers<[1], [0], [0], [1], [0, 0, 1, 1], [], []>} : vector<8x8xbf16>, vector<8x32xbf16>, vector<8x32xf32> -> vector<8x32xf32>
    %70 = tpu.reciprocal %67 {approx = true} : vector<8x1xf32> -> vector<8x1xf32>
    %71 = vector.broadcast %70 : vector<8x1xf32> to vector<8x32xf32>
    %72 = arith.mulf %69, %71 : vector<8x32xf32>
    %73 = arith.truncf %72 : vector<8x32xf32> to vector<8x32xbf16>
    %74 = vector.extract_strided_slice %7 {offsets = [32, 0], sizes = [32, 128], strides = [1, 1]} : vector<128x128xbf16> to vector<32x128xbf16>
    %cst_36 = arith.constant dense<0.000000e+00> : vector<8x128xf32>
    %75 = tpu.matmul %73, %74, %cst_36 {dimension_numbers = #tpu.dot_dimension_numbers<[1], [0], [0], [1], [0, 0, 1, 1], [], []>} : vector<8x32xbf16>, vector<32x128xbf16>, vector<8x128xf32> -> vector<8x128xf32>
    %76 = arith.addf %47, %75 : vector<8x128xf32>
    %77 = vector.extract_strided_slice %1 {offsets = [0, 64], sizes = [8, 32], strides = [1, 1]} : vector<8x128xbf16> to vector<8x32xbf16>
    %78 = vector.extract_strided_slice %3 {offsets = [0, 64], sizes = [8, 32], strides = [1, 1]} : vector<8x128xbf16> to vector<8x32xbf16>
    %cst_37 = arith.constant dense<0.000000e+00> : vector<8x32xf32>
    %79 = tpu.matmul %77, %4, %cst_37 {dimension_numbers = #tpu.dot_dimension_numbers<[1], [0], [0], [1], [0, 0, 1, 1], [], []>} : vector<8x32xbf16>, vector<32x32xbf16>, vector<8x32xf32> -> vector<8x32xf32>
    %80 = arith.truncf %79 : vector<8x32xf32> to vector<8x32xbf16>
    %cst_38 = arith.constant dense<0.000000e+00> : vector<8x32xf32>
    %81 = tpu.matmul %78, %5, %cst_38 {dimension_numbers = #tpu.dot_dimension_numbers<[1], [0], [0], [1], [0, 0, 1, 1], [], []>} : vector<8x32xbf16>, vector<32x32xbf16>, vector<8x32xf32> -> vector<8x32xf32>
    %82 = arith.truncf %81 : vector<8x32xf32> to vector<8x32xbf16>
    %cst_39 = arith.constant dense<0.000000e+00> : vector<8x32xf32>
    %83 = tpu.matmul %78, %6, %cst_39 {dimension_numbers = #tpu.dot_dimension_numbers<[1], [0], [0], [1], [0, 0, 1, 1], [], []>} : vector<8x32xbf16>, vector<32x32xbf16>, vector<8x32xf32> -> vector<8x32xf32>
    %84 = arith.truncf %83 : vector<8x32xf32> to vector<8x32xbf16>
    %cst_40 = arith.constant dense<0.000000e+00> : vector<8x8xf32>
    %85 = tpu.matmul %80, %82, %cst_40 {dimension_numbers = #tpu.dot_dimension_numbers<[1], [1], [0], [0], [0, 0, 1, 0], [], []>} : vector<8x32xbf16>, vector<8x32xbf16>, vector<8x8xf32> -> vector<8x8xf32>
    %cst_41 = arith.constant -1.000000e+20 : f32
    %86 = vector.broadcast %cst_41 : f32 to vector<8x8xf32>
    %87 = arith.select %17, %85, %86 : vector<8x8xi1>, vector<8x8xf32>
    %cst_42 = arith.constant 0.0883883461 : f32
    %88 = vector.broadcast %cst_42 : f32 to vector<8x8xf32>
    %89 = arith.mulf %87, %88 : vector<8x8xf32>
    %cst_43 = arith.constant dense<0xFF800000> : vector<8xf32>
    %90 = vector.multi_reduction <maximumf>, %89, %cst_43 [1] : vector<8x8xf32> to vector<8xf32>
    %91 = vector.shape_cast %90 : vector<8xf32> to vector<8x1xf32>
    %92 = vector.broadcast %91 : vector<8x1xf32> to vector<8x8xf32>
    %93 = arith.subf %89, %92 : vector<8x8xf32>
    %94 = math.exp %93 : vector<8x8xf32>
    %cst_44 = arith.constant dense<0.000000e+00> : vector<8xf32>
    %95 = vector.multi_reduction <add>, %94, %cst_44 [1] : vector<8x8xf32> to vector<8xf32>
    %96 = vector.shape_cast %95 : vector<8xf32> to vector<8x1xf32>
    %97 = arith.truncf %94 : vector<8x8xf32> to vector<8x8xbf16>
    %cst_45 = arith.constant dense<0.000000e+00> : vector<8x32xf32>
    %98 = tpu.matmul %97, %84, %cst_45 {dimension_numbers = #tpu.dot_dimension_numbers<[1], [0], [0], [1], [0, 0, 1, 1], [], []>} : vector<8x8xbf16>, vector<8x32xbf16>, vector<8x32xf32> -> vector<8x32xf32>
    %99 = tpu.reciprocal %96 {approx = true} : vector<8x1xf32> -> vector<8x1xf32>
    %100 = vector.broadcast %99 : vector<8x1xf32> to vector<8x32xf32>
    %101 = arith.mulf %98, %100 : vector<8x32xf32>
    %102 = arith.truncf %101 : vector<8x32xf32> to vector<8x32xbf16>
    %103 = vector.extract_strided_slice %7 {offsets = [64, 0], sizes = [32, 128], strides = [1, 1]} : vector<128x128xbf16> to vector<32x128xbf16>
    %cst_46 = arith.constant dense<0.000000e+00> : vector<8x128xf32>
    %104 = tpu.matmul %102, %103, %cst_46 {dimension_numbers = #tpu.dot_dimension_numbers<[1], [0], [0], [1], [0, 0, 1, 1], [], []>} : vector<8x32xbf16>, vector<32x128xbf16>, vector<8x128xf32> -> vector<8x128xf32>
    %105 = arith.addf %76, %104 : vector<8x128xf32>
    %106 = vector.extract_strided_slice %1 {offsets = [0, 96], sizes = [8, 32], strides = [1, 1]} : vector<8x128xbf16> to vector<8x32xbf16>
    %107 = vector.extract_strided_slice %3 {offsets = [0, 96], sizes = [8, 32], strides = [1, 1]} : vector<8x128xbf16> to vector<8x32xbf16>
    %cst_47 = arith.constant dense<0.000000e+00> : vector<8x32xf32>
    %108 = tpu.matmul %106, %4, %cst_47 {dimension_numbers = #tpu.dot_dimension_numbers<[1], [0], [0], [1], [0, 0, 1, 1], [], []>} : vector<8x32xbf16>, vector<32x32xbf16>, vector<8x32xf32> -> vector<8x32xf32>
    %109 = arith.truncf %108 : vector<8x32xf32> to vector<8x32xbf16>
    %cst_48 = arith.constant dense<0.000000e+00> : vector<8x32xf32>
    %110 = tpu.matmul %107, %5, %cst_48 {dimension_numbers = #tpu.dot_dimension_numbers<[1], [0], [0], [1], [0, 0, 1, 1], [], []>} : vector<8x32xbf16>, vector<32x32xbf16>, vector<8x32xf32> -> vector<8x32xf32>
    %111 = arith.truncf %110 : vector<8x32xf32> to vector<8x32xbf16>
    %cst_49 = arith.constant dense<0.000000e+00> : vector<8x32xf32>
    %112 = tpu.matmul %107, %6, %cst_49 {dimension_numbers = #tpu.dot_dimension_numbers<[1], [0], [0], [1], [0, 0, 1, 1], [], []>} : vector<8x32xbf16>, vector<32x32xbf16>, vector<8x32xf32> -> vector<8x32xf32>
    %113 = arith.truncf %112 : vector<8x32xf32> to vector<8x32xbf16>
    %cst_50 = arith.constant dense<0.000000e+00> : vector<8x8xf32>
    %114 = tpu.matmul %109, %111, %cst_50 {dimension_numbers = #tpu.dot_dimension_numbers<[1], [1], [0], [0], [0, 0, 1, 0], [], []>} : vector<8x32xbf16>, vector<8x32xbf16>, vector<8x8xf32> -> vector<8x8xf32>
    %cst_51 = arith.constant -1.000000e+20 : f32
    %115 = vector.broadcast %cst_51 : f32 to vector<8x8xf32>
    %116 = arith.select %17, %114, %115 : vector<8x8xi1>, vector<8x8xf32>
    %cst_52 = arith.constant 0.0883883461 : f32
    %117 = vector.broadcast %cst_52 : f32 to vector<8x8xf32>
    %118 = arith.mulf %116, %117 : vector<8x8xf32>
    %cst_53 = arith.constant dense<0xFF800000> : vector<8xf32>
    %119 = vector.multi_reduction <maximumf>, %118, %cst_53 [1] : vector<8x8xf32> to vector<8xf32>
    %120 = vector.shape_cast %119 : vector<8xf32> to vector<8x1xf32>
    %121 = vector.broadcast %120 : vector<8x1xf32> to vector<8x8xf32>
    %122 = arith.subf %118, %121 : vector<8x8xf32>
    %123 = math.exp %122 : vector<8x8xf32>
    %cst_54 = arith.constant dense<0.000000e+00> : vector<8xf32>
    %124 = vector.multi_reduction <add>, %123, %cst_54 [1] : vector<8x8xf32> to vector<8xf32>
    %125 = vector.shape_cast %124 : vector<8xf32> to vector<8x1xf32>
    %126 = arith.truncf %123 : vector<8x8xf32> to vector<8x8xbf16>
    %cst_55 = arith.constant dense<0.000000e+00> : vector<8x32xf32>
    %127 = tpu.matmul %126, %113, %cst_55 {dimension_numbers = #tpu.dot_dimension_numbers<[1], [0], [0], [1], [0, 0, 1, 1], [], []>} : vector<8x8xbf16>, vector<8x32xbf16>, vector<8x32xf32> -> vector<8x32xf32>
    %128 = tpu.reciprocal %125 {approx = true} : vector<8x1xf32> -> vector<8x1xf32>
    %129 = vector.broadcast %128 : vector<8x1xf32> to vector<8x32xf32>
    %130 = arith.mulf %127, %129 : vector<8x32xf32>
    %131 = arith.truncf %130 : vector<8x32xf32> to vector<8x32xbf16>
    %132 = vector.extract_strided_slice %7 {offsets = [96, 0], sizes = [32, 128], strides = [1, 1]} : vector<128x128xbf16> to vector<32x128xbf16>
    %cst_56 = arith.constant dense<0.000000e+00> : vector<8x128xf32>
    %133 = tpu.matmul %131, %132, %cst_56 {dimension_numbers = #tpu.dot_dimension_numbers<[1], [0], [0], [1], [0, 0, 1, 1], [], []>} : vector<8x32xbf16>, vector<32x128xbf16>, vector<8x128xf32> -> vector<8x128xf32>
    %134 = arith.addf %105, %133 : vector<8x128xf32>
    %c0_57 = arith.constant 0 : index
    %c0_58 = arith.constant 0 : index
    %135 = vector.load %arg8[%c0_57, %c0_58] : memref<1x128xf32, #tpu.memory_space<vmem>>, vector<1x128xf32>
    %136 = vector.broadcast %135 : vector<1x128xf32> to vector<8x128xf32>
    %137 = arith.addf %134, %136 : vector<8x128xf32>
    %138 = arith.extf %1 : vector<8x128xbf16> to vector<8x128xf32>
    %139 = arith.addf %137, %138 : vector<8x128xf32>
    %cst_59 = arith.constant dense<0.000000e+00> : vector<8xf32>
    %140 = vector.multi_reduction <add>, %139, %cst_59 [1] : vector<8x128xf32> to vector<8xf32>
    %141 = vector.shape_cast %140 : vector<8xf32> to vector<8x1xf32>
    %cst_60 = arith.constant 1.280000e+02 : f32
    %142 = vector.broadcast %cst_60 : f32 to vector<8x1xf32>
    %143 = arith.divf %141, %142 : vector<8x1xf32>
    %144 = arith.mulf %139, %139 : vector<8x128xf32>
    %cst_61 = arith.constant dense<0.000000e+00> : vector<8xf32>
    %145 = vector.multi_reduction <add>, %144, %cst_61 [1] : vector<8x128xf32> to vector<8xf32>
    %146 = vector.shape_cast %145 : vector<8xf32> to vector<8x1xf32>
    %cst_62 = arith.constant 1.280000e+02 : f32
    %147 = vector.broadcast %cst_62 : f32 to vector<8x1xf32>
    %148 = arith.divf %146, %147 : vector<8x1xf32>
    %149 = arith.mulf %143, %143 : vector<8x1xf32>
    %150 = arith.subf %148, %149 : vector<8x1xf32>
    %151 = vector.broadcast %143 : vector<8x1xf32> to vector<8x128xf32>
    %152 = arith.subf %139, %151 : vector<8x128xf32>
    %cst_63 = arith.constant 9.99999974E-6 : f32
    %153 = vector.broadcast %cst_63 : f32 to vector<8x1xf32>
    %154 = arith.addf %150, %153 : vector<8x1xf32>
    %155 = math.rsqrt %154 : vector<8x1xf32>
    %156 = vector.broadcast %155 : vector<8x1xf32> to vector<8x128xf32>
    %157 = arith.mulf %152, %156 : vector<8x128xf32>
    %c0_64 = arith.constant 0 : index
    %c0_65 = arith.constant 0 : index
    %158 = vector.load %arg9[%c0_64, %c0_65] : memref<1x128xf32, #tpu.memory_space<vmem>>, vector<1x128xf32>
    %159 = vector.broadcast %158 : vector<1x128xf32> to vector<8x128xf32>
    %160 = arith.mulf %157, %159 : vector<8x128xf32>
    %c0_66 = arith.constant 0 : index
    %c0_67 = arith.constant 0 : index
    %161 = vector.load %arg10[%c0_66, %c0_67] : memref<1x128xf32, #tpu.memory_space<vmem>>, vector<1x128xf32>
    %162 = vector.broadcast %161 : vector<1x128xf32> to vector<8x128xf32>
    %163 = arith.addf %160, %162 : vector<8x128xf32>
    %164 = arith.truncf %163 : vector<8x128xf32> to vector<8x128xbf16>
    %c0_68 = arith.constant 0 : index
    %c0_69 = arith.constant 0 : index
    %c0_70 = arith.constant 0 : index
    %165 = vector.load %arg11[%c0_68, %c0_69, %c0_70] : memref<1x8x128xbf16, #tpu.memory_space<vmem>>, vector<1x8x128xbf16>
    %166 = vector.shape_cast %165 : vector<1x8x128xbf16> to vector<8x128xbf16>
    %167 = vector.shape_cast %164 : vector<8x128xbf16> to vector<1x8x128xbf16>
    tpu.vector_store %arg11[%c0_68, %c0_69, %c0_70], %167 {strides = array<i32>} : memref<1x8x128xbf16, #tpu.memory_space<vmem>>, vector<1x8x128xbf16>,
    return
  }
  func.func @transform_0(%arg0: i32) -> (i32, i32, i32) {
    %c0_i32 = arith.constant 0 : i32
    %c0_i32_0 = arith.constant 0 : i32
    %c0_i32_1 = arith.constant 0 : i32
    return %arg0, %c0_i32, %c0_i32_0 : i32, i32, i32
  }
  func.func @transform_1(%arg0: i32) -> (i32, i32, i32) {
    %c0_i32 = arith.constant 0 : i32
    %c0_i32_0 = arith.constant 0 : i32
    %c0_i32_1 = arith.constant 0 : i32
    return %arg0, %c0_i32, %c0_i32_0 : i32, i32, i32
  }
  func.func @transform_2(%arg0: i32) -> (i32, i32, i32) {
    %c0_i32 = arith.constant 0 : i32
    %c0_i32_0 = arith.constant 0 : i32
    %c0_i32_1 = arith.constant 0 : i32
    return %arg0, %c0_i32, %c0_i32_0 : i32, i32, i32
  }
  func.func @transform_3(%arg0: i32) -> (i32, i32) {
    %c0_i32 = arith.constant 0 : i32
    %c0_i32_0 = arith.constant 0 : i32
    %c0_i32_1 = arith.constant 0 : i32
    return %c0_i32, %c0_i32_0 : i32, i32
  }
  func.func @transform_4(%arg0: i32) -> (i32, i32) {
    %c0_i32 = arith.constant 0 : i32
    %c0_i32_0 = arith.constant 0 : i32
    %c0_i32_1 = arith.constant 0 : i32
    return %c0_i32, %c0_i32_0 : i32, i32
  }
  func.func @transform_5(%arg0: i32) -> (i32, i32) {
    %c0_i32 = arith.constant 0 : i32
    %c0_i32_0 = arith.constant 0 : i32
    %c0_i32_1 = arith.constant 0 : i32
    return %c0_i32, %c0_i32_0 : i32, i32
  }
  func.func @transform_6(%arg0: i32) -> (i32, i32) {
    %c0_i32 = arith.constant 0 : i32
    %c0_i32_0 = arith.constant 0 : i32
    %c0_i32_1 = arith.constant 0 : i32
    return %c0_i32, %c0_i32_0 : i32, i32
  }
  func.func @transform_7(%arg0: i32) -> (i32, i32) {
    %c0_i32 = arith.constant 0 : i32
    %c0_i32_0 = arith.constant 0 : i32
    %c0_i32_1 = arith.constant 0 : i32
    return %c0_i32, %c0_i32_0 : i32, i32
  }
  func.func @transform_8(%arg0: i32) -> (i32, i32) {
    %c0_i32 = arith.constant 0 : i32
    %c0_i32_0 = arith.constant 0 : i32
    %c0_i32_1 = arith.constant 0 : i32
    return %c0_i32, %c0_i32_0 : i32, i32
  }
  func.func @transform_9(%arg0: i32) -> (i32, i32) {
    %c0_i32 = arith.constant 0 : i32
    %c0_i32_0 = arith.constant 0 : i32
    %c0_i32_1 = arith.constant 0 : i32
    return %c0_i32, %c0_i32_0 : i32, i32
  }
  func.func @transform_10(%arg0: i32) -> (i32, i32, i32) {
    %c0_i32 = arith.constant 0 : i32
    %c0_i32_0 = arith.constant 0 : i32
    %c0_i32_1 = arith.constant 0 : i32
    return %arg0, %c0_i32, %c0_i32_0 : i32, i32, i32
  }
}

module attributes {stable_mosaic.version = 11 : i64} {
  func.func @out_proj_kernel(%arg0: i32, %arg1: i32, %arg2: memref<16x128xbf16, #tpu.memory_space<vmem>>, %arg3: memref<128x128xbf16, #tpu.memory_space<vmem>>, %arg4: memref<1x128xf32, #tpu.memory_space<vmem>>, %arg5: memref<16x128xf32, #tpu.memory_space<vmem>>) attributes {dimension_semantics = [#tpu.dimension_semantics<parallel>, #tpu.dimension_semantics<parallel>], iteration_bounds = array<i64: 1, 1>, scalar_prefetch = 0 : i64, scratch_operands = 0 : i64, tpu.core_type = #tpu.core_type<tc>, window_params = [{transform_indices = @transform_0, window_bounds = array<i64: 16, 128>}, {transform_indices = @transform_1, window_bounds = array<i64: 128, 128>}, {transform_indices = @transform_2, window_bounds = array<i64: 1, 128>}, {transform_indices = @transform_3, window_bounds = array<i64: 16, 128>}]} {
    %c0 = arith.constant 0 : index
    %c0_0 = arith.constant 0 : index
    %0 = vector.load %arg2[%c0, %c0_0] : memref<16x128xbf16, #tpu.memory_space<vmem>>, vector<16x128xbf16>
    %c0_1 = arith.constant 0 : index
    %c0_2 = arith.constant 0 : index
    %1 = vector.load %arg3[%c0_1, %c0_2] : memref<128x128xbf16, #tpu.memory_space<vmem>>, vector<128x128xbf16>
    %cst = arith.constant dense<0.000000e+00> : vector<16x128xf32>
    %2 = tpu.matmul %0, %1, %cst {dimension_numbers = #tpu.dot_dimension_numbers<[1], [0], [0], [1], [0, 0, 1, 1], [], []>} : vector<16x128xbf16>, vector<128x128xbf16>, vector<16x128xf32> -> vector<16x128xf32>
    %c0_3 = arith.constant 0 : index
    %c0_4 = arith.constant 0 : index
    %3 = vector.load %arg4[%c0_3, %c0_4] : memref<1x128xf32, #tpu.memory_space<vmem>>, vector<1x128xf32>
    %4 = vector.broadcast %3 : vector<1x128xf32> to vector<16x128xf32>
    %5 = arith.addf %2, %4 : vector<16x128xf32>
    %c0_5 = arith.constant 0 : index
    %c0_6 = arith.constant 0 : index
    %6 = vector.load %arg5[%c0_5, %c0_6] : memref<16x128xf32, #tpu.memory_space<vmem>>, vector<16x128xf32>
    tpu.vector_store %arg5[%c0_5, %c0_6], %5 {strides = array<i32>} : memref<16x128xf32, #tpu.memory_space<vmem>>, vector<16x128xf32>,
    return
  }
  func.func @transform_0(%arg0: i32, %arg1: i32) -> (i32, i32) {
    %c0_i32 = arith.constant 0 : i32
    %c0_i32_0 = arith.constant 0 : i32
    return %arg0, %c0_i32 : i32, i32
  }
  func.func @transform_1(%arg0: i32, %arg1: i32) -> (i32, i32) {
    %c0_i32 = arith.constant 0 : i32
    %c0_i32_0 = arith.constant 0 : i32
    return %c0_i32, %arg1 : i32, i32
  }
  func.func @transform_2(%arg0: i32, %arg1: i32) -> (i32, i32) {
    %c0_i32 = arith.constant 0 : i32
    %c0_i32_0 = arith.constant 0 : i32
    return %c0_i32, %arg1 : i32, i32
  }
  func.func @transform_3(%arg0: i32, %arg1: i32) -> (i32, i32) {
    %c0_i32 = arith.constant 0 : i32
    return %arg0, %arg1 : i32, i32
  }
}

</mosaic_0001>

<bundles_post_ra>
// kernel: transformer_fwd.13
= control target key start
LH: loop header
LB: loop body
LE: loop exit
PB: predicated region body
PF: predicated region fallthrough
CT: control target
= control target key end

     0   :  { %15 = vsyncpa [#allocation3], 0  ;;  %s1910_s0 = inlined_call_operand.vmem [shape: bf16[2,8,128], index: 0, kind: input, shape index: {}, may-alias: {0,1}]   ;;  %s1911_s1 = inlined_call_operand.vmem [shape: bf16[2,8,128], index: 1, kind: input, shape index: {}, may-alias: {0,1}]   ;;  %s1912_s2 = inlined_call_operand.vmem [shape: f32[2,1,8], index: 2, kind: input, shape index: {}]   ;;  %s1913_s3 = inlined_call_operand.vmem [shape: bf16[32,32], index: 3, kind: input, shape index: {}]   ;;  %s1914_s4 = inlined_call_operand.hbm [shape: bf16[32,32], index: 4, kind: input, shape index: {}]   ;;  %s1915_s5 = inlined_call_operand.hbm [shape: bf16[32,32], index: 5, kind: input, shape index: {}]   ;;  %s1916_s6 = inlined_call_operand.vmem [shape: bf16[128,128], index: 6, kind: input, shape index: {}]   ;;  %s1917_s7 = inlined_call_operand.hbm [shape: f32[1,128], index: 7, kind: input, shape index: {}]   ;;  %s1918_s8 = inlined_call_operand.hbm [shape: f32[1,128], index: 8, kind: input, shape index: {}]   ;;  %s1919_s9 = inlined_call_operand.hbm [shape: f32[1,128], index: 9, kind: input, shape index: {}]   ;;  %s1920_s10 = inlined_call_operand.vmem [shape: bf16[2,8,128], index: 10, kind: output, shape index: {}]  }
   0x1   :  { %16 = vsyncpa [#allocation5], 0 }
   0x2   :  { %17 = vsyncpa [#allocation8], 0  ;;  %s1686_s13 = smov 0  }
   0x3 LB: > { %s1692_s14 = sadd.s32 4294967295, %s1617_s13   ;;  %p1248_p0 = scmp.ge.s32.totalorder %s1617_s13, 1  ;;  %s1617_s13 = sphi %s1686_s13, %s23_s13  }
   0x4   : > { %p279_p1 = scmp.lt.s32.totalorder %s1617_s13, 3  ;;  %p1396_p2 = scmp.eq.s32.totalorder %s1692_s14, 0 }
   0x5   : > { %s307_s17 = sshll.u32 %s1915_s5, 4  ;;  %s337_s21 = sshll.u32 %s1918_s8, 4  ;;  %s308_s17 = int_to_ptr.hbm [resolvable:$true] %s307_s17  ;;  %s338_s21 = int_to_ptr.hbm [resolvable:$true] %s337_s21 }
   0x6   : > { %p1700_p3 = pnand %p1248_p0, %p279_p1  ;;  %s1619_s22 = smov [#allocation4]  }
   0x7   : > { %s309_s23 = sshll.u32 %s1619_s22, 4  ;;  %s1620_s25 = smov [#allocation7]   ;;  %s310_s23 = int_to_ptr.vmem [resolvable:$true] %s309_s23 }
   0x8   : > { %p1380_p4 = pneg %p1700_p3  ;;  %s339_s26 = sshll.u32 %s1620_s25, 4  ;;  %s340_s26 = int_to_ptr.vmem [resolvable:$true] %s339_s26 }
   0x9   : > { %s293_s29 = sshll.u32 %s1914_s4, 4  ;;  %s1621_s30 = smov 64   ;;  %s294_s29 = int_to_ptr.hbm [resolvable:$true] %s293_s29 }
   0xa   : > { %p1711_p5 = pnand %p1396_p2, %p1380_p4  ;;  %s1622_s11 = smov 4  }
   0xb   : > { %s1623_s12 = smov [#allocation2]   ;;  %s325_s20 = sshll.u32 %s1917_s7, 4  ;;  %s326_s20 = int_to_ptr.hbm [resolvable:$true] %s325_s20 }
   0xc   : > { %1386 = dma.hbm_to_vmem [thread:$0]  (!%p1711_p5), %s308_s17, 256, %s310_s23, [#allocation5], %s1621_s30, %s1621_s30, %s1622_s11  }
   0xd   : > { %1392 = dma.hbm_to_vmem [thread:$0]  (!%p1711_p5), %s338_s21, 16, %s340_s26, [#allocation8]  }
   0xe   : > { %s295_s15 = sshll.u32 %s1623_s12, 4  ;;  %s349_s27 = sshll.u32 %s1919_s9, 4  ;;  %s296_s15 = int_to_ptr.vmem [resolvable:$true] %s295_s15  ;;  %s350_s27 = int_to_ptr.hbm [resolvable:$true] %s349_s27 }
   0xf   : > { %1383 = dma.hbm_to_vmem [thread:$0]  (!%p1711_p5), %s294_s29, 256, %s296_s15, [#allocation3], %s1621_s30, %s1621_s30, %s1622_s11  }
  0x10   : > { %s1624_s28 = smov [#allocation6]   ;;  %s1625_s21 = smov [#allocation9]  }
  0x11   : > { %s327_s17 = sshll.u32 %s1624_s28, 4  ;;  %s351_s23 = sshll.u32 %s1625_s21, 4  ;;  %s328_s17 = int_to_ptr.vmem [resolvable:$true] %s327_s17  ;;  %s352_s23 = int_to_ptr.vmem [resolvable:$true] %s351_s23 }
  0x12   : > { %1389 = dma.hbm_to_vmem [thread:$0]  (!%p1711_p5), %s326_s20, 16, %s328_s17, [#allocation5]  }
  0x13   : > { %1395 = dma.hbm_to_vmem [thread:$0]  (!%p1711_p5), %s350_s27, 16, %s352_s23, [#allocation8]  }
  0x14   : > { %384 = sbr.rel (%p1700_p3) target bundleno = 1962 (0x7aa), region = 60 }
  0x19   : > { %1604 = dma.done.wait (%p1396_p2), [#allocation3], 256  }
  0x1a   : > { %1606 = vsyncadd (%p1396_p2), [#allocation3], 4294967040 }
  0x1b   : > { %1608 = dma.done.wait (%p1396_p2), [#allocation5], 272  }
  0x1c   : > { %1610 = vsyncadd (%p1396_p2), [#allocation5], 4294967024 }
  0x1d   : > { %1612 = dma.done.wait (%p1396_p2), [#allocation8], 32  }
  0x1e   : > { %1614 = vsyncadd (%p1396_p2), [#allocation8], 4294967264  ;;  %p448_p6 = scmp.lt.s32.totalorder %s1692_s14, 1  ;;  %v1755_v0 = vld [vmem:[%s1913_s3 + $0x8] sm:$0xff]  ;;  %v1765_v2 = vld [vmem:[%s1913_s3] sm:$0xff]  ;;  %vm511_vm0 = vcmask 261120  }
  0x1f   : > { %v1757_v1 = vld [vmem:[#allocation2 + $0x8] sm:$0xff]  ;;  %v1767_v3 = vld [vmem:[#allocation2] sm:$0xff]  ;;  %521 = vmatpush.bf16.msra.mxu0 %v1755_v0  ;;  %v1790_v8 = vld [vmem:[#allocation4 + $0x8] sm:$0xff]  ;;  %s1626_s22 = smov 96   ;;  %v1627_v24 = vmov 0   ;;  %vm605_vm3 = vcmask 64512  }
  0x20   : > { %s1926_s14 = smov (!%p448_p6, %s1692_s14), 1  ;;  %550 = vmatpush.bf16.msra.mxu1 %v1757_v1  ;;  %576 = vmatpush.bf16.msra.mxu2 %v1790_v8  ;;  %v1795_v10 = vld [vmem:[#allocation4] sm:$0xff]  ;;  %vm619_vm4 = vcmask 1043456   ;;  %v1353_v52 = vld [vmem:[%s1916_s6 + $0x8] sm:$0xff]  ;;  %v1352_v53 = vld [vmem:[%s1916_s6] sm:$0xff]  ;;  %s1629_s12 = smov 32  }
  0x21   : > { %s1760_s26 = sshll.u32 %s1926_s14, 2  ;;  %s458_s28 = scalar_lea.vmem %s1912_s2, %s1926_s14  ;;  %v1359_v27 = vld [vmem:[%s1916_s6 + $0x38] sm:$0xff] }
  0x22   : > { %s451_s15 = scalar_lea.vmem %s1910_s0, %s1760_s26  ;;  %s455_s20 = scalar_lea.vmem %s1911_s1, %s1760_s26  ;;  %v494_v22 = vld [vmem:[%s458_s28] sm:$0x1] }
  0x23   : > { %522 = vmatpush.bf16.msra.mxu0 %v1765_v2  ;;  %v1781_v4 = vld [vmem:[%s451_s15] sm:$0xf]  ;;  %vm495_vm1 = vcmp.gt.f32.partialorder %v494_v22, 0.0  ;;  %s1628_s14 = smov 64   ;;  %s462_s21 = scalar_lea.vmem %s1920_s10, %s1760_s26 }
  0x24   : > { %551 = vmatpush.bf16.msra.mxu1 %v1767_v3  ;;  %v465_v5 = vld [vmem:[%s455_s20] sm:$0xf]  ;;  %v640_v9 = vunpack.c.l.b16 %v1781_v4  ;;  %577 = vmatpush.bf16.msra.mxu2 %v1795_v10  ;;  %v496_v25 = vsel %vm495_vm1, 1, %v1627_v24 }
  0x25   : > { %v662_v6 = vunpack.c.l.b16 %v465_v5  ;;  %v497_v26 = vperm.slane %v496_v25, 0 }
  0x26   : > { %1272 = vmatmul.msk.bf16.vlgmr.msra.gmra.mxu0 %vm511_vm0, %v1781_v4  ;;  %v1797_v11 = vpack.c.b16 %v640_v9, %v640_v9 }
  0x27   : > { %1281 = vmatmul.msk.bf16.vlgmr.msra.gmra.mxu1 %vm511_vm0, %v465_v5  ;;  %v1788_v7 = vpack.c.b16 %v662_v6, %v662_v6  ;;  %1290 = vmatmul.msk.bf16.vlgmr.msra.gmra.mxu2 %vm511_vm0, %v465_v5  ;;  %vm1815_vm2 = vcmp.eq.s32.totalorder %v497_v26, 1 }
  0x28   : > { %653 = vmatpush.bf16.msrb.mxu1 %v1755_v0  ;;  %675 = vmatpush.bf16.msrb.mxu2 %v1757_v1 }
  0x29   : > { %664 = vrot.lane.b32.xlu0 %v1788_v7, %s1626_s22  ;;  %825 = vrot.lane.b32.xlu2 %v1788_v7, %s1628_s14 }
  0x2c   : > { %654 = vmatpush.bf16.msrb.mxu1 %v1765_v2  ;;  %676 = vmatpush.bf16.msrb.mxu2 %v1767_v3 }
  0x31   : > { %642 = vrot.lane.b32.xlu0 %v1797_v11, %s1626_s22  ;;  %806 = vrot.lane.b32.xlu2 %v1797_v11, %s1628_s14 }
  0x83   : > { %v826_v6 = vpop.permute.xlu2 %825 }
  0x8b   : > { %v807_v9 = vpop.permute.xlu2 %806 }
  0x9b   : > { %v665_v19 = vpop.permute.xlu0 %664 }
  0x9c   : > { %1294 = vmatmul.msk.bf16.vlgmr.msrb.gmra.mxu2 %vm511_vm0, %v665_v19 }
  0xa3   : > { %v524_v12 = vpop.f32.mrf.mxu0  ;;  %v643_v20 = vpop.permute.xlu0 %642 }
  0xa4   : > { %v553_v13 = vpop.f32.mrf.mxu1  ;;  %v528_v16 = vpack.c.bf16 %v524_v12, %v524_v12  ;;  %1293 = vmatmul.msk.bf16.vlgmr.msrb.gmra.mxu1 %vm511_vm0, %v643_v20  ;;  %v1355_v20 = vld [vmem:[%s1916_s6 + $0x18] sm:$0xff] }
  0xa5   : > { %v557_v14 = vpack.c.bf16 %v553_v13, %v553_v13  ;;  %771 = vmatpush.bf16.msra.mxu2 %v1355_v20 }
  0xa7   : > { %v588_v15 = vsel %vm511_vm0, %v557_v14, 0 }
  0xa8   : > { %597 = vmatpush.bf16.xpose.msra.mxu3 %v588_v15 }
  0xaa   : > { %v579_v21 = vpop.f32.mrf.mxu2 }
  0xab   : > { %v526_v17 = vpop.f32.mrf.mxu0  ;;  %v583_v33 = vpack.c.bf16 %v579_v21, %v579_v21  ;;  %v1354_v21 = vld [vmem:[%s1916_s6 + $0x10] sm:$0xff] }
  0xac   : > { %v555_v18 = vpop.f32.mrf.mxu1  ;;  %772 = vmatpush.bf16.msra.mxu2 %v1354_v21 }
  0xad   : > { %v621_v36 = vsel %vm619_vm4, %v583_v33, 0 }
  0xae   : > { %630 = vmatpush.bf16.msrb.mxu0 %v621_v36 }
  0xaf   : > { %1291 = vmatmul.msk.bf16.vlgmr.msra.gmra.mxu3 %vm511_vm0, %v528_v16 }
  0xb0   : > { %689 = vmatpush.bf16.msrb.mxu3 %v1790_v8  ;;  %850 = vmatpush.bf16.msrb.mxu2 %v1790_v8 }
  0xb2   : > { %v581_v23 = vpop.f32.mrf.mxu2 }
  0xb4   : > { %690 = vmatpush.bf16.msrb.mxu3 %v1795_v10  ;;  %851 = vmatpush.bf16.msrb.mxu2 %v1795_v10 }
  0xb8   : > { %799 = vmatpush.bf16.msra.mxu3 %v1353_v52 }
  0xbc   : > { %800 = vmatpush.bf16.msra.mxu3 %v1352_v53 }
  0xbf   : > { %1295 = vmatmul.msk.bf16.vlgmr.msrb.gmra.mxu3 %vm511_vm0, %v665_v19 }
 0x11f   : > { %v678_v34 = vpop.f32.mrf.mxu2 }
 0x120   : > { %v682_v37 = vpack.c.bf16 %v678_v34, %v678_v34 }
 0x121   : > { %v656_v43 = vpop.f32.mrf.mxu1 }
 0x122   : > { %v701_v39 = vsel %vm511_vm0, %v682_v37, 0  ;;  %v660_v51 = vpack.c.bf16 %v656_v43, %v656_v43 }
 0x123   : > { %710 = vmatpush.bf16.xpose.msra.mxu0 %v701_v39 }
 0x127   : > { %v680_v41 = vpop.f32.mrf.mxu2 }
 0x129   : > { %v658_v44 = vpop.f32.mrf.mxu1 }
 0x132   : > { %v599_v28 = vpop.f32.mrf.mxu3 }
 0x133   : > { %v603_v29 = vsel %vm1815_vm2, %v599_v28, -1e+20 }
 0x134   : > { %v604_v30 = vmul.f32 0.088388346, %v603_v29 }
 0x136   : > { %v606_v31 = vsel %vm605_vm3, %v604_v30, -inf }
 0x137   : > { %607 = vmax.xlane.f32.xlu1 %v606_v31 }
 0x13a   : > { %v601_v32 = vpop.f32.mrf.mxu3 }
 0x142   : > { %v692_v35 = vpop.f32.mrf.mxu3 }
 0x143   : > { %v696_v38 = vpack.c.bf16 %v692_v35, %v692_v35 }
 0x145   : > { %v732_v40 = vsel %vm619_vm4, %v696_v38, 0 }
 0x146   : > { %741 = vmatpush.bf16.msra.mxu1 %v732_v40 }
 0x14a   : > { %836 = vmatpush.bf16.msrb.mxu1 %v1757_v1  ;;  %v694_v42 = vpop.f32.mrf.mxu3 }
 0x14e   : > { %837 = vmatpush.bf16.msrb.mxu1 %v1767_v3 }
 0x1aa   : > { %v608_v45 = vpop.xlane.xlu1 %607 }
 0x1ab   : > { %v609_v46 = vsub.f32 %v604_v30, %v608_v45 }
 0x1ad   : > { %v610_v47 = vmul.f32 1.442695, %v609_v46 }
 0x1af   : > { %1429 = vpow2.f32 %v610_v47 }
 0x1b5   : > { %v1430_v48 = vpop.eup %1429 }
 0x1b6   : > { %v612_v49 = vsel %vm605_vm3, %v1430_v48, 0.0  ;;  %v615_v50 = vpack.c.bf16 %v1430_v48, %v1430_v48  ;;  %v1356_v48 = vld [vmem:[%s1916_s6 + $0x20] sm:$0xff] }
 0x1b7   : > { %613 = vadd.xlane.f32.xlu0 %v612_v49 }
 0x1b8   : > { %1292 = vmatmul.msk.bf16.vlgmr.msrb.gmra.mxu0 %vm605_vm3, %v615_v50 }
 0x1b9   : > { %817 = vmatpush.bf16.msrb.mxu0 %v1755_v0 }
 0x1bd   : > { %818 = vmatpush.bf16.msrb.mxu0 %v1765_v2 }
 0x1c8   : > { %1296 = vmatmul.msk.bf16.vlgmr.msra.gmra.mxu0 %vm511_vm0, %v660_v51 }
 0x1d8   : > { %1316 = vmatmul.msk.bf16.vlgmr.msrb.gmra.mxu0 %vm511_vm0, %v807_v9 }
 0x22a   : > { %v614_v54 = vpop.xlane.xlu0 %613 }
 0x22b   : > { %1431 = vrcp.f32 %v614_v54 }
 0x231   : > { %v1432_v55 = vpop.eup %1431 }
 0x235   : > { %v632_v56 = vpop.f32.mrf.mxu0 }
 0x236   : > { %v637_v57 = vmul.f32 %v1432_v55, %v632_v56 }
 0x238   : > { %v638_v58 = vpack.c.bf16 %v637_v57, %v637_v57 }
 0x23a   : > { %1315 = vmatmul.msk.bf16.vlgmr.msra.gmra.mxu3 %vm511_vm0, %v638_v58 }
 0x23d   : > { %v634_v59 = vpop.f32.mrf.mxu0 }
 0x245   : > { %v712_v60 = vpop.f32.mrf.mxu0 }
 0x246   : > { %v716_v61 = vsel %vm1815_vm2, %v712_v60, -1e+20 }
 0x247   : > { %v717_v62 = vmul.f32 0.088388346, %v716_v61 }
 0x249   : > { %v718_v63 = vsel %vm605_vm3, %v717_v62, -inf }
 0x24a   : > { %719 = vmax.xlane.f32.xlu1 %v718_v63 }
 0x24d   : > { %v714_v5 = vpop.f32.mrf.mxu0 }
 0x255   : > { %v820_v22 = vpop.f32.mrf.mxu0 }
 0x256   : > { %v824_v34 = vpack.c.bf16 %v820_v22, %v820_v22 }
 0x25d   : > { %v822_v24 = vpop.f32.mrf.mxu0 }
 0x2bd   : > { %v1845_v12 = vpop.f32.mrf.mxu3  ;;  %v720_v13 = vpop.xlane.xlu1 %719 }
 0x2be   : > { %v721_v14 = vsub.f32 %v717_v62, %v720_v13 }
 0x2c0   : > { %v722_v15 = vmul.f32 1.442695, %v721_v14 }
 0x2c2   : > { %1433 = vpow2.f32 %v722_v15 }
 0x2c5   : > { %v804_v16 = vpop.f32.mrf.mxu3 }
 0x2c8   : > { %v1434_v17 = vpop.eup %1433 }
 0x2c9   : > { %v727_v18 = vpack.c.bf16 %v1434_v17, %v1434_v17  ;;  %v724_v19 = vsel %vm605_vm3, %v1434_v17, 0.0 }
 0x2ca   : > { %725 = vadd.xlane.f32.xlu1 %v724_v19 }
 0x2cb   : > { %1297 = vmatmul.msk.bf16.vlgmr.msra.gmra.mxu1 %vm605_vm3, %v727_v18 }
 0x2db   : > { %1317 = vmatmul.msk.bf16.vlgmr.msrb.gmra.mxu1 %vm511_vm0, %v826_v6 }
 0x2e3   : > { %959 = vrot.lane.b32.xlu1 %v1788_v7, %s1629_s12 }
 0x2eb   : > { %940 = vrot.lane.b32.xlu1 %v1797_v11, %s1629_s12 }
 0x33d   : > { %v726_v23 = vpop.xlane.xlu1 %725 }
 0x33e   : > { %1435 = vrcp.f32 %v726_v23 }
 0x344   : > { %v1436_v25 = vpop.eup %1435 }
 0x348   : > { %v743_v26 = vpop.f32.mrf.mxu1 }
 0x349   : > { %v748_v28 = vmul.f32 %v1436_v25, %v743_v26  ;;  %v1358_v26 = vld [vmem:[%s1916_s6 + $0x30] sm:$0xff] }
 0x34b   : > { %v749_v29 = vpack.c.bf16 %v748_v28, %v748_v28 }
 0x34d   : > { %1306 = vmatmul.msk.bf16.vlgmr.msra.gmra.mxu2 %vm511_vm0, %v749_v29 }
 0x34e   : > { %951 = vmatpush.bf16.msra.mxu2 %v1755_v0 }
 0x350   : > { %v745_v30 = vpop.f32.mrf.mxu1 }
 0x352   : > { %952 = vmatpush.bf16.msra.mxu2 %v1765_v2 }
 0x355   : > { %v960_v41 = vpop.permute.xlu1 %959 }
 0x358   : > { %v839_v31 = vpop.f32.mrf.mxu1 }
 0x359   : > { %v843_v32 = vpack.c.bf16 %v839_v31, %v839_v31 }
 0x35b   : > { %v862_v33 = vsel %vm511_vm0, %v843_v32, 0 }
 0x35c   : > { %871 = vmatpush.bf16.xpose.msrb.mxu3 %v862_v33 }
 0x35d   : > { %1318 = vmatmul.msk.bf16.vlgmr.msrb.gmra.mxu2 %vm511_vm0, %v826_v6  ;;  %v941_v42 = vpop.permute.xlu1 %940 }
 0x360   : > { %v841_v35 = vpop.f32.mrf.mxu1 }
 0x363   : > { %1319 = vmatmul.msk.bf16.vlgmr.msrb.gmra.mxu3 %vm511_vm0, %v824_v34  ;;  %v1426_v34 = vld [vmem:[#allocation6] ss:$0 sm:$0xff] }
 0x364   : > { %970 = vmatpush.bf16.msra.mxu3 %v1757_v1 }
 0x368   : > { %971 = vmatpush.bf16.msra.mxu3 %v1767_v3 }
 0x36c   : > { %1066 = vmatpush.bf16.msrb.mxu3 %v1359_v27 }
 0x36d   : > { %1330 = vmatmul.msk.bf16.vlgmr.msra.gmra.mxu2 %vm511_vm0, %v941_v42 }
 0x370   : > { %1067 = vmatpush.bf16.msrb.mxu3 %v1358_v26 }
 0x373   : > { %1331 = vmatmul.msk.bf16.vlgmr.msra.gmra.mxu3 %vm511_vm0, %v960_v41 }
 0x3d0   : > { %v774_v0 = vpop.f32.mrf.mxu2 }
 0x3d1   : > { %v803_v9 = vadd.f32 %v1845_v12, %v774_v0  ;;  %v1079_v0 = vunpack.c.l.bf16 %v1781_v4 }
 0x3d8   : > { %v776_v2 = vpop.f32.mrf.mxu2 }
 0x3e0   : > { %v853_v36 = vpop.f32.mrf.mxu2 }
 0x3e1   : > { %v857_v37 = vpack.c.bf16 %v853_v36, %v853_v36 }
 0x3e3   : > { %v893_v38 = vsel %vm619_vm4, %v857_v37, 0 }
 0x3e4   : > { %902 = vmatpush.bf16.msra.mxu0 %v893_v38 }
 0x3e6   : > { %v873_v1 = vpop.f32.mrf.mxu3 }
 0x3e7   : > { %v877_v3 = vsel %vm1815_vm2, %v873_v1, -1e+20 }
 0x3e8   : > { %984 = vmatpush.bf16.msrb.mxu0 %v1790_v8  ;;  %v878_v39 = vmul.f32 0.088388346, %v877_v3  ;;  %v855_v40 = vpop.f32.mrf.mxu2  ;;  %v1630_v3 = vmov 128.0  }
 0x3ea   : > { %v879_v7 = vsel %vm605_vm3, %v878_v39, -inf }
 0x3eb   : > { %880 = vmax.xlane.f32.xlu2 %v879_v7 }
 0x3ec   : > { %985 = vmatpush.bf16.msrb.mxu0 %v1795_v10  ;;  %v1357_v10 = vld [vmem:[%s1916_s6 + $0x28] sm:$0xff] }
 0x3ed   : > { %932 = vmatpush.bf16.msra.mxu1 %v1357_v10 }
 0x3ee   : > { %v875_v11 = vpop.f32.mrf.mxu3 }
 0x3f0   : > { %v954_v53 = vpop.f32.mrf.mxu2 }
 0x3f1   : > { %933 = vmatpush.bf16.msra.mxu1 %v1356_v48  ;;  %v958_v63 = vpack.c.bf16 %v954_v53, %v954_v53 }
 0x3f6   : > { %v973_v49 = vpop.f32.mrf.mxu3 }
 0x3f7   : > { %v977_v50 = vpack.c.bf16 %v973_v49, %v973_v49 }
 0x3f8   : > { %v956_v54 = vpop.f32.mrf.mxu2 }
 0x3f9   : > { %v996_v51 = vsel %vm511_vm0, %v977_v50, 0  ;;  %v1427_v54 = vld [vmem:[#allocation7] ss:$0 sm:$0xff] }
 0x3fa   : > { %1005 = vmatpush.bf16.xpose.msrb.mxu1 %v996_v51 }
 0x3fe   : > { %v975_v52 = vpop.f32.mrf.mxu3 }
 0x45e   : > { %v881_v43 = vpop.xlane.xlu2 %880 }
 0x45f   : > { %v882_v8 = vsub.f32 %v878_v39, %v881_v43 }
 0x461   : > { %v883_v44 = vmul.f32 1.442695, %v882_v8 }
 0x463   : > { %1437 = vpow2.f32 %v883_v44 }
 0x469   : > { %v1438_v45 = vpop.eup %1437 }
 0x46a   : > { %v888_v46 = vpack.c.bf16 %v1438_v45, %v1438_v45  ;;  %v885_v47 = vsel %vm605_vm3, %v1438_v45, 0.0 }
 0x46b   : > { %886 = vadd.xlane.f32.xlu1 %v885_v47 }
 0x46c   : > { %1320 = vmatmul.msk.bf16.vlgmr.msra.gmra.mxu0 %vm605_vm3, %v888_v46 }
 0x47c   : > { %1332 = vmatmul.msk.bf16.vlgmr.msrb.gmra.mxu0 %vm511_vm0, %v960_v41 }
 0x4de   : > { %v887_v55 = vpop.xlane.xlu1 %886 }
 0x4df   : > { %1439 = vrcp.f32 %v887_v55 }
 0x4e5   : > { %v1440_v56 = vpop.eup %1439 }
 0x4e9   : > { %v904_v57 = vpop.f32.mrf.mxu0 }
 0x4ea   : > { %v909_v58 = vmul.f32 %v1440_v56, %v904_v57  ;;  %v1428_v56 = vld [vmem:[#allocation9] ss:$0 sm:$0xff] }
 0x4ec   : > { %v910_v59 = vpack.c.bf16 %v909_v58, %v909_v58 }
 0x4ee   : > { %1329 = vmatmul.msk.bf16.vlgmr.msra.gmra.mxu1 %vm511_vm0, %v910_v59 }
 0x4f1   : > { %v906_v60 = vpop.f32.mrf.mxu0 }
 0x4f9   : > { %v987_v61 = vpop.f32.mrf.mxu0 }
 0x4fa   : > { %v991_v62 = vpack.c.bf16 %v987_v61, %v987_v61 }
 0x4fc   : > { %v1027_v5 = vsel %vm619_vm4, %v991_v62, 0 }
 0x4fd   : > { %1036 = vmatpush.bf16.msrb.mxu2 %v1027_v5 }
 0x4fe   : > { %1333 = vmatmul.msk.bf16.vlgmr.msrb.gmra.mxu1 %vm511_vm0, %v958_v63 }
 0x501   : > { %v989_v6 = vpop.f32.mrf.mxu0 }
 0x56b   : > { %v935_v13 = vpop.f32.mrf.mxu1 }
 0x56c   : > { %v939_v14 = vadd.f32 %v935_v13, %v803_v9 }
 0x573   : > { %v937_v15 = vpop.f32.mrf.mxu1 }
 0x57b   : > { %v1007_v16 = vpop.f32.mrf.mxu1 }
 0x57c   : > { %v1011_v17 = vsel %vm1815_vm2, %v1007_v16, -1e+20 }
 0x57d   : > { %v1012_v18 = vmul.f32 0.088388346, %v1011_v17 }
 0x57f   : > { %v1013_v19 = vsel %vm605_vm3, %v1012_v18, -inf }
 0x580   : > { %1014 = vmax.xlane.f32.xlu2 %v1013_v19 }
 0x583   : > { %v1009_v20 = vpop.f32.mrf.mxu1 }
 0x5f3   : > { %v1015_v21 = vpop.xlane.xlu2 %1014 }
 0x5f4   : > { %v1016_v22 = vsub.f32 %v1012_v18, %v1015_v21 }
 0x5f6   : > { %v1017_v23 = vmul.f32 1.442695, %v1016_v22 }
 0x5f8   : > { %1441 = vpow2.f32 %v1017_v23 }
 0x5fe   : > { %v1442_v24 = vpop.eup %1441 }
 0x5ff   : > { %v1022_v25 = vpack.c.bf16 %v1442_v24, %v1442_v24  ;;  %v1019_v12 = vsel %vm605_vm3, %v1442_v24, 0.0 }
 0x600   : > { %1020 = vadd.xlane.f32.xlu0 %v1019_v12 }
 0x601   : > { %1334 = vmatmul.msk.bf16.vlgmr.msrb.gmra.mxu2 %vm605_vm3, %v1022_v25 }
 0x673   : > { %v1021_v28 = vpop.xlane.xlu0 %1020 }
 0x674   : > { %1443 = vrcp.f32 %v1021_v28 }
 0x675   : > { %1445 = vrcp.f32 %v1630_v3 }
 0x67a   : > { %v1444_v29 = vpop.eup %1443 }
 0x67b   : > { %v1446_v39 = vpop.eup %1445 }
 0x67c   : > { %v1084_v40 = vmul.f32 128.0, %v1446_v39  ;;  %vm1088_vm5 = vweird.f32 %v1446_v39 }
 0x67e   : > { %v1085_v7 = vsub.f32 1.0, %v1084_v40 }
 0x680   : > { %v1086_v11 = vmul.f32 %v1446_v39, %v1085_v7 }
 0x682   : > { %v1087_v41 = vadd.f32 %v1446_v39, %v1086_v11 }
 0x684   : > { %v1038_v30 = vpop.f32.mrf.mxu2  ;;  %v1089_v42 = vsel %vm1088_vm5, %v1446_v39, %v1087_v41 }
 0x685   : > { %v1043_v31 = vmul.f32 %v1444_v29, %v1038_v30 }
 0x687   : > { %v1044_v32 = vpack.c.bf16 %v1043_v31, %v1043_v31 }
 0x689   : > { %1343 = vmatmul.msk.bf16.vlgmr.msrb.gmra.mxu3 %vm511_vm0, %v1044_v32 }
 0x68c   : > { %v1040_v33 = vpop.f32.mrf.mxu2 }
 0x70c   : > { %v1069_v35 = vpop.f32.mrf.mxu3 }
 0x70d   : > { %v1073_v2 = vadd.f32 %v1069_v35, %v939_v14 }
 0x70f   : > { %v1078_v36 = vadd.f32 %v1426_v34, %v1073_v2 }
 0x711   : > { %v1080_v37 = vadd.f32 %v1079_v0, %v1078_v36 }
 0x713   : > { %1081 = vadd.xlane.f32.xlu2 %v1080_v37  ;;  %v1091_v38 = vmul.f32 %v1080_v37, %v1080_v37 }
 0x714   : > { %v1071_v1 = vpop.f32.mrf.mxu3 }
 0x715   : > { %1092 = vadd.xlane.f32.xlu0 %v1091_v38 }
 0x786   : > { %v1082_v43 = vpop.xlane.xlu2 %1081 }
 0x787   : > { %v1090_v8 = vmul.f32 %v1089_v42, %v1082_v43 }
 0x788   : > { %v1093_v44 = vpop.xlane.xlu0 %1092 }
 0x789   : > { %v1095_v4 = vmul.f32 %v1090_v8, %v1090_v8  ;;  %v1094_v45 = vmul.f32 %v1093_v44, %v1089_v42  ;;  %v1097_v53 = vsub.f32 %v1080_v37, %v1090_v8 }
 0x78b   : > { %v1096_v46 = vsub.f32 %v1094_v45, %v1095_v4 }
 0x78d   : > { %v1098_v47 = vadd.f32 1e-05, %v1096_v46 }
 0x78f   : > { %1447 = vrsqrt.f32 %v1098_v47  ;;  %vm1105_vm7 = vweird.f32 %v1098_v47 }
 0x795   : > { %v1448_v10 = vpop.eup %1447 }
 0x796   : > { %v1100_v48 = vmul.f32 %v1448_v10, %v1098_v47  ;;  %vm1106_vm6 = vweird.f32 %v1448_v10 }
 0x797   : > { %vm1107_vm8 = vmor %vm1105_vm7, %vm1106_vm6 }
 0x798   : > { %v1101_v49 = vmul.f32 %v1448_v10, %v1100_v48 }
 0x79a   : > { %v1102_v50 = vmul.f32 0.5, %v1101_v49 }
 0x79c   : > { %v1103_v51 = vsub.f32 1.5, %v1102_v50 }
 0x79e   : > { %v1104_v52 = vmul.f32 %v1448_v10, %v1103_v51 }
 0x7a0   : > { %v1108_v55 = vsel %vm1107_vm8, %v1448_v10, %v1104_v52 }
 0x7a1   : > { %v1109_v57 = vmul.f32 %v1108_v55, %v1097_v53 }
 0x7a3   : > { %v1114_v58 = vmul.f32 %v1427_v54, %v1109_v57 }
 0x7a5   : > { %v1119_v59 = vadd.f32 %v1428_v56, %v1114_v58 }
 0x7a7   : > { %v1120_v60 = vpack.c.bf16 %v1119_v59, %v1119_v59 }
 0x7a9   : > { %1121 = vst [vmem:[%s462_s21] sm:$0xf] %v1120_v60 }
 0x7aa PF: > { %s23_s13 = sadd.s32 1, %s1617_s13  }
 0x7ab   : > { %p20_p7 = scmp.ge.s32.totalorder %s23_s13, 4  }
 0x7ad   :  { %22 = sbr.rel (!%p20_p7) target bundleno = 3 (0x3), region = 117 }
 0x7b2   :  { %1141 = vsyncpa [#allocation3], 1 }
 0x7b3   :  { %1143 = vsyncpa [#allocation3 + $0x1], 1 }
 0x7b4   :  { %1144 = vsyncpa [#allocation5], 1 }
 0x7b5   :  { %1145 = vsyncpa [#allocation8], 1 }

// kernel: transformer_fwd.11
= control target key start
LH: loop header
LB: loop body
LE: loop exit
PB: predicated region body
PF: predicated region fallthrough
CT: control target
= control target key end

     0   :  { %s1327_s13 = smov 0   ;;  %s1516_s0 = inlined_call_operand.vmem [shape: bf16[2,8,128], index: 0, kind: input, shape index: {}, may-alias: {0,1}]   ;;  %s1517_s1 = inlined_call_operand.vmem [shape: bf16[2,8,128], index: 1, kind: input, shape index: {}, may-alias: {0,1}]   ;;  %s1518_s2 = inlined_call_operand.vmem [shape: f32[2,1,8], index: 2, kind: input, shape index: {}]   ;;  %s1519_s3 = inlined_call_operand.vmem [shape: bf16[32,32], index: 3, kind: input, shape index: {}]   ;;  %s1520_s4 = inlined_call_operand.vmem [shape: bf16[32,32], index: 4, kind: input, shape index: {}]   ;;  %s1521_s5 = inlined_call_operand.vmem [shape: bf16[32,32], index: 5, kind: input, shape index: {}]   ;;  %s1522_s6 = inlined_call_operand.vmem [shape: bf16[128,128], index: 6, kind: input, shape index: {}]   ;;  %s1523_s7 = inlined_call_operand.vmem [shape: f32[1,128], index: 7, kind: input, shape index: {}]   ;;  %s1524_s8 = inlined_call_operand.vmem [shape: f32[1,128], index: 8, kind: input, shape index: {}]   ;;  %s1525_s9 = inlined_call_operand.vmem [shape: f32[1,128], index: 9, kind: input, shape index: {}]   ;;  %s1526_s10 = inlined_call_operand.vmem [shape: bf16[2,8,128], index: 10, kind: output, shape index: {}]  }
   0x1 LB: > { %s1119_s14 = sadd.s32 4294967295, %s1265_s13   ;;  %p1123_p0 = scmp.ge.s32.totalorder %s1265_s13, 1  ;;  %s1265_s13 = sphi %s1327_s13, %s20_s13  }
   0x2   : > { %p328_p1 = scmp.lt.s32.totalorder %s1265_s13, 3 }
   0x4   : > { %p329_p2 = pnand %p1123_p0, %p328_p1 }
   0x5   : > { %p371_p3 = scmp.lt.s32.totalorder (!%p329_p2), %s1119_s14, 1  ;;  %s1267_s12 = smov (!%p329_p2), 96  }
   0x6   : > { %332 = sbr.rel (%p329_p2) target bundleno = 1943 (0x797), region = 60 }
   0xb   : > { %v1338_v0 = vld [vmem:[%s1519_s3 + $0x8] sm:$0xff]  ;;  %v1350_v2 = vld [vmem:[%s1519_s3] sm:$0xff]  ;;  %s1530_s14 = smov (!%p371_p3, %s1119_s14), 1  ;;  %vm434_vm0 = vcmask 261120   ;;  %v1268_v24 = vmov 0   ;;  %vm528_vm3 = vcmask 64512  }
   0xc   : > { %v1343_v1 = vld [vmem:[%s1520_s4 + $0x8] sm:$0xff]  ;;  %444 = vmatpush.bf16.msra.mxu0 %v1338_v0  ;;  %v1355_v3 = vld [vmem:[%s1520_s4] sm:$0xff]  ;;  %s1360_s23 = sshll.u32 %s1530_s14, 2  ;;  %s381_s19 = scalar_lea.vmem %s1518_s2, %s1530_s14  ;;  %vm542_vm4 = vcmask 1043456   ;;  %v1222_v27 = vld [vmem:[%s1522_s6 + $0x38] sm:$0xff] }
   0xd   : > { %473 = vmatpush.bf16.msra.mxu1 %v1343_v1  ;;  %s374_s26 = scalar_lea.vmem %s1516_s0, %s1360_s23  ;;  %s378_s29 = scalar_lea.vmem %s1517_s1, %s1360_s23  ;;  %v1384_v8 = vld [vmem:[%s1521_s5 + $0x8] sm:$0xff]  ;;  %v1392_v10 = vld [vmem:[%s1521_s5] sm:$0xff] }
   0xe   : > { %v1368_v4 = vld [vmem:[%s374_s26] sm:$0xf]  ;;  %499 = vmatpush.bf16.msra.mxu2 %v1384_v8  ;;  %s1269_s14 = smov 64   ;;  %v1216_v52 = vld [vmem:[%s1522_s6 + $0x8] sm:$0xff]  ;;  %s385_s28 = scalar_lea.vmem %s1526_s10, %s1360_s23 }
   0xf   : > { %v388_v5 = vld [vmem:[%s378_s29] sm:$0xf]  ;;  %v563_v9 = vunpack.c.l.b16 %v1368_v4  ;;  %s1270_s29 = smov 32  }
  0x10   : > { %445 = vmatpush.bf16.msra.mxu0 %v1350_v2  ;;  %v585_v6 = vunpack.c.l.b16 %v388_v5  ;;  %v417_v22 = vld [vmem:[%s381_s19] sm:$0x1] }
  0x11   : > { %474 = vmatpush.bf16.msra.mxu1 %v1355_v3  ;;  %v1394_v11 = vpack.c.b16 %v563_v9, %v563_v9  ;;  %vm418_vm1 = vcmp.gt.f32.partialorder %v417_v22, 0.0  ;;  %v1215_v53 = vld [vmem:[%s1522_s6] sm:$0xff] }
  0x12   : > { %v1379_v7 = vpack.c.b16 %v585_v6, %v585_v6  ;;  %500 = vmatpush.bf16.msra.mxu2 %v1392_v10  ;;  %v419_v25 = vsel %vm418_vm1, 1, %v1268_v24 }
  0x13   : > { %1135 = vmatmul.msk.bf16.vlgmr.msra.gmra.mxu0 %vm434_vm0, %v1368_v4  ;;  %v420_v26 = vperm.slane %v419_v25, 0 }
  0x14   : > { %1144 = vmatmul.msk.bf16.vlgmr.msra.gmra.mxu1 %vm434_vm0, %v388_v5  ;;  %587 = vrot.lane.b32.xlu0 %v1379_v7, %s1267_s12 }
  0x15   : > { %576 = vmatpush.bf16.msrb.mxu1 %v1338_v0  ;;  %1153 = vmatmul.msk.bf16.vlgmr.msra.gmra.mxu2 %vm434_vm0, %v388_v5  ;;  %vm1412_vm2 = vcmp.eq.s32.totalorder %v420_v26, 1 }
  0x16   : > { %598 = vmatpush.bf16.msrb.mxu2 %v1343_v1  ;;  %748 = vrot.lane.b32.xlu2 %v1379_v7, %s1269_s14 }
  0x19   : > { %577 = vmatpush.bf16.msrb.mxu1 %v1350_v2 }
  0x1a   : > { %599 = vmatpush.bf16.msrb.mxu2 %v1355_v3 }
  0x1c   : > { %565 = vrot.lane.b32.xlu0 %v1394_v11, %s1267_s12 }
  0x1e   : > { %729 = vrot.lane.b32.xlu2 %v1394_v11, %s1269_s14 }
  0x70   : > { %v749_v6 = vpop.permute.xlu2 %748 }
  0x78   : > { %v730_v9 = vpop.permute.xlu2 %729 }
  0x86   : > { %v588_v19 = vpop.permute.xlu0 %587 }
  0x87   : > { %1157 = vmatmul.msk.bf16.vlgmr.msrb.gmra.mxu2 %vm434_vm0, %v588_v19 }
  0x8e   : > { %v566_v20 = vpop.permute.xlu0 %565 }
  0x8f   : > { %1156 = vmatmul.msk.bf16.vlgmr.msrb.gmra.mxu1 %vm434_vm0, %v566_v20  ;;  %v1218_v20 = vld [vmem:[%s1522_s6 + $0x18] sm:$0xff] }
  0x90   : > { %v447_v12 = vpop.f32.mrf.mxu0  ;;  %694 = vmatpush.bf16.msra.mxu2 %v1218_v20 }
  0x91   : > { %v476_v13 = vpop.f32.mrf.mxu1  ;;  %v451_v16 = vpack.c.bf16 %v447_v12, %v447_v12 }
  0x92   : > { %v480_v14 = vpack.c.bf16 %v476_v13, %v476_v13 }
  0x94   : > { %v511_v15 = vsel %vm434_vm0, %v480_v14, 0 }
  0x95   : > { %520 = vmatpush.bf16.xpose.msra.mxu3 %v511_v15 }
  0x98   : > { %v449_v17 = vpop.f32.mrf.mxu0  ;;  %v502_v21 = vpop.f32.mrf.mxu2 }
  0x99   : > { %v478_v18 = vpop.f32.mrf.mxu1  ;;  %v506_v33 = vpack.c.bf16 %v502_v21, %v502_v21  ;;  %v1217_v21 = vld [vmem:[%s1522_s6 + $0x10] sm:$0xff] }
  0x9a   : > { %695 = vmatpush.bf16.msra.mxu2 %v1217_v21 }
  0x9b   : > { %v544_v36 = vsel %vm542_vm4, %v506_v33, 0 }
  0x9c   : > { %1154 = vmatmul.msk.bf16.vlgmr.msra.gmra.mxu3 %vm434_vm0, %v451_v16  ;;  %553 = vmatpush.bf16.msrb.mxu0 %v544_v36 }
  0x9d   : > { %612 = vmatpush.bf16.msrb.mxu3 %v1384_v8 }
  0x9e   : > { %773 = vmatpush.bf16.msrb.mxu2 %v1384_v8 }
  0xa0   : > { %v504_v23 = vpop.f32.mrf.mxu2 }
  0xa1   : > { %613 = vmatpush.bf16.msrb.mxu3 %v1392_v10 }
  0xa2   : > { %774 = vmatpush.bf16.msrb.mxu2 %v1392_v10 }
  0xa5   : > { %722 = vmatpush.bf16.msra.mxu3 %v1216_v52 }
  0xa9   : > { %723 = vmatpush.bf16.msra.mxu3 %v1215_v53 }
  0xac   : > { %1158 = vmatmul.msk.bf16.vlgmr.msrb.gmra.mxu3 %vm434_vm0, %v588_v19 }
 0x10a   : > { %v601_v34 = vpop.f32.mrf.mxu2 }
 0x10b   : > { %v605_v37 = vpack.c.bf16 %v601_v34, %v601_v34 }
 0x10c   : > { %v579_v43 = vpop.f32.mrf.mxu1 }
 0x10d   : > { %v624_v39 = vsel %vm434_vm0, %v605_v37, 0  ;;  %v583_v51 = vpack.c.bf16 %v579_v43, %v579_v43 }
 0x10e   : > { %633 = vmatpush.bf16.xpose.msra.mxu0 %v624_v39 }
 0x112   : > { %v603_v41 = vpop.f32.mrf.mxu2 }
 0x114   : > { %v581_v44 = vpop.f32.mrf.mxu1 }
 0x11f   : > { %v522_v28 = vpop.f32.mrf.mxu3 }
 0x120   : > { %v526_v29 = vsel %vm1412_vm2, %v522_v28, -1e+20 }
 0x121   : > { %v527_v30 = vmul.f32 0.088388346, %v526_v29 }
 0x123   : > { %v529_v31 = vsel %vm528_vm3, %v527_v30, -inf }
 0x124   : > { %530 = vmax.xlane.f32.xlu1 %v529_v31 }
 0x127   : > { %v524_v32 = vpop.f32.mrf.mxu3 }
 0x12f   : > { %v615_v35 = vpop.f32.mrf.mxu3 }
 0x130   : > { %v619_v38 = vpack.c.bf16 %v615_v35, %v615_v35 }
 0x132   : > { %v655_v40 = vsel %vm542_vm4, %v619_v38, 0 }
 0x133   : > { %664 = vmatpush.bf16.msra.mxu1 %v655_v40 }
 0x137   : > { %759 = vmatpush.bf16.msrb.mxu1 %v1343_v1  ;;  %v617_v42 = vpop.f32.mrf.mxu3 }
 0x13b   : > { %760 = vmatpush.bf16.msrb.mxu1 %v1355_v3 }
 0x197   : > { %v531_v45 = vpop.xlane.xlu1 %530 }
 0x198   : > { %v532_v46 = vsub.f32 %v527_v30, %v531_v45 }
 0x19a   : > { %v533_v47 = vmul.f32 1.442695, %v532_v46 }
 0x19c   : > { %1239 = vpow2.f32 %v533_v47 }
 0x1a2   : > { %v1240_v48 = vpop.eup %1239 }
 0x1a3   : > { %v535_v49 = vsel %vm528_vm3, %v1240_v48, 0.0  ;;  %v538_v50 = vpack.c.bf16 %v1240_v48, %v1240_v48  ;;  %v1219_v48 = vld [vmem:[%s1522_s6 + $0x20] sm:$0xff] }
 0x1a4   : > { %536 = vadd.xlane.f32.xlu0 %v535_v49 }
 0x1a5   : > { %1155 = vmatmul.msk.bf16.vlgmr.msrb.gmra.mxu0 %vm528_vm3, %v538_v50 }
 0x1a6   : > { %740 = vmatpush.bf16.msrb.mxu0 %v1338_v0 }
 0x1aa   : > { %741 = vmatpush.bf16.msrb.mxu0 %v1350_v2 }
 0x1b5   : > { %1159 = vmatmul.msk.bf16.vlgmr.msra.gmra.mxu0 %vm434_vm0, %v583_v51 }
 0x1c5   : > { %1179 = vmatmul.msk.bf16.vlgmr.msrb.gmra.mxu0 %vm434_vm0, %v730_v9 }
 0x217   : > { %v537_v54 = vpop.xlane.xlu0 %536 }
 0x218   : > { %1241 = vrcp.f32 %v537_v54 }
 0x21e   : > { %v1242_v55 = vpop.eup %1241 }
 0x222   : > { %v555_v56 = vpop.f32.mrf.mxu0 }
 0x223   : > { %v560_v57 = vmul.f32 %v1242_v55, %v555_v56 }
 0x225   : > { %v561_v58 = vpack.c.bf16 %v560_v57, %v560_v57 }
 0x227   : > { %1178 = vmatmul.msk.bf16.vlgmr.msra.gmra.mxu3 %vm434_vm0, %v561_v58 }
 0x22a   : > { %v557_v59 = vpop.f32.mrf.mxu0 }
 0x232   : > { %v635_v60 = vpop.f32.mrf.mxu0 }
 0x233   : > { %v639_v61 = vsel %vm1412_vm2, %v635_v60, -1e+20 }
 0x234   : > { %v640_v62 = vmul.f32 0.088388346, %v639_v61 }
 0x236   : > { %v641_v63 = vsel %vm528_vm3, %v640_v62, -inf }
 0x237   : > { %642 = vmax.xlane.f32.xlu1 %v641_v63 }
 0x23a   : > { %v637_v5 = vpop.f32.mrf.mxu0 }
 0x242   : > { %v743_v22 = vpop.f32.mrf.mxu0 }
 0x243   : > { %v747_v34 = vpack.c.bf16 %v743_v22, %v743_v22 }
 0x24a   : > { %v745_v24 = vpop.f32.mrf.mxu0 }
 0x2aa   : > { %v1442_v12 = vpop.f32.mrf.mxu3  ;;  %v643_v13 = vpop.xlane.xlu1 %642 }
 0x2ab   : > { %v644_v14 = vsub.f32 %v640_v62, %v643_v13 }
 0x2ad   : > { %v645_v15 = vmul.f32 1.442695, %v644_v14 }
 0x2af   : > { %1243 = vpow2.f32 %v645_v15 }
 0x2b2   : > { %v727_v16 = vpop.f32.mrf.mxu3 }
 0x2b5   : > { %v1244_v17 = vpop.eup %1243 }
 0x2b6   : > { %v650_v18 = vpack.c.bf16 %v1244_v17, %v1244_v17  ;;  %v647_v19 = vsel %vm528_vm3, %v1244_v17, 0.0 }
 0x2b7   : > { %648 = vadd.xlane.f32.xlu1 %v647_v19 }
 0x2b8   : > { %1160 = vmatmul.msk.bf16.vlgmr.msra.gmra.mxu1 %vm528_vm3, %v650_v18 }
 0x2c8   : > { %1180 = vmatmul.msk.bf16.vlgmr.msrb.gmra.mxu1 %vm434_vm0, %v749_v6 }
 0x2d0   : > { %882 = vrot.lane.b32.xlu1 %v1379_v7, %s1270_s29 }
 0x2d8   : > { %863 = vrot.lane.b32.xlu1 %v1394_v11, %s1270_s29 }
 0x32a   : > { %v649_v23 = vpop.xlane.xlu1 %648 }
 0x32b   : > { %1245 = vrcp.f32 %v649_v23 }
 0x331   : > { %v1246_v25 = vpop.eup %1245 }
 0x335   : > { %v666_v26 = vpop.f32.mrf.mxu1 }
 0x336   : > { %v671_v28 = vmul.f32 %v1246_v25, %v666_v26  ;;  %v1221_v26 = vld [vmem:[%s1522_s6 + $0x30] sm:$0xff] }
 0x338   : > { %v672_v29 = vpack.c.bf16 %v671_v28, %v671_v28 }
 0x33a   : > { %1169 = vmatmul.msk.bf16.vlgmr.msra.gmra.mxu2 %vm434_vm0, %v672_v29 }
 0x33b   : > { %874 = vmatpush.bf16.msra.mxu2 %v1338_v0 }
 0x33d   : > { %v668_v30 = vpop.f32.mrf.mxu1 }
 0x33f   : > { %875 = vmatpush.bf16.msra.mxu2 %v1350_v2 }
 0x342   : > { %v883_v41 = vpop.permute.xlu1 %882 }
 0x345   : > { %v762_v31 = vpop.f32.mrf.mxu1 }
 0x346   : > { %v766_v32 = vpack.c.bf16 %v762_v31, %v762_v31 }
 0x348   : > { %v785_v33 = vsel %vm434_vm0, %v766_v32, 0 }
 0x349   : > { %794 = vmatpush.bf16.xpose.msrb.mxu3 %v785_v33 }
 0x34a   : > { %1181 = vmatmul.msk.bf16.vlgmr.msrb.gmra.mxu2 %vm434_vm0, %v749_v6  ;;  %v864_v42 = vpop.permute.xlu1 %863 }
 0x34d   : > { %v764_v35 = vpop.f32.mrf.mxu1 }
 0x350   : > { %1182 = vmatmul.msk.bf16.vlgmr.msrb.gmra.mxu3 %vm434_vm0, %v747_v34  ;;  %v1236_v34 = vld [vmem:[%s1523_s7] ss:$0 sm:$0xff] }
 0x351   : > { %893 = vmatpush.bf16.msra.mxu3 %v1343_v1 }
 0x355   : > { %894 = vmatpush.bf16.msra.mxu3 %v1355_v3 }
 0x359   : > { %989 = vmatpush.bf16.msrb.mxu3 %v1222_v27 }
 0x35a   : > { %1193 = vmatmul.msk.bf16.vlgmr.msra.gmra.mxu2 %vm434_vm0, %v864_v42 }
 0x35d   : > { %990 = vmatpush.bf16.msrb.mxu3 %v1221_v26 }
 0x360   : > { %1194 = vmatmul.msk.bf16.vlgmr.msra.gmra.mxu3 %vm434_vm0, %v883_v41 }
 0x3bd   : > { %v697_v0 = vpop.f32.mrf.mxu2 }
 0x3be   : > { %v726_v9 = vadd.f32 %v1442_v12, %v697_v0  ;;  %v1002_v0 = vunpack.c.l.bf16 %v1368_v4 }
 0x3c5   : > { %v699_v2 = vpop.f32.mrf.mxu2 }
 0x3cd   : > { %v776_v36 = vpop.f32.mrf.mxu2 }
 0x3ce   : > { %v780_v37 = vpack.c.bf16 %v776_v36, %v776_v36 }
 0x3d0   : > { %v816_v38 = vsel %vm542_vm4, %v780_v37, 0 }
 0x3d1   : > { %825 = vmatpush.bf16.msra.mxu0 %v816_v38 }
 0x3d3   : > { %v796_v1 = vpop.f32.mrf.mxu3 }
 0x3d4   : > { %v800_v3 = vsel %vm1412_vm2, %v796_v1, -1e+20 }
 0x3d5   : > { %907 = vmatpush.bf16.msrb.mxu0 %v1384_v8  ;;  %v801_v39 = vmul.f32 0.088388346, %v800_v3  ;;  %v778_v40 = vpop.f32.mrf.mxu2  ;;  %v1271_v3 = vmov 128.0  }
 0x3d7   : > { %v802_v7 = vsel %vm528_vm3, %v801_v39, -inf }
 0x3d8   : > { %803 = vmax.xlane.f32.xlu2 %v802_v7 }
 0x3d9   : > { %908 = vmatpush.bf16.msrb.mxu0 %v1392_v10  ;;  %v1220_v10 = vld [vmem:[%s1522_s6 + $0x28] sm:$0xff] }
 0x3da   : > { %855 = vmatpush.bf16.msra.mxu1 %v1220_v10 }
 0x3db   : > { %v798_v11 = vpop.f32.mrf.mxu3 }
 0x3dd   : > { %v877_v53 = vpop.f32.mrf.mxu2 }
 0x3de   : > { %856 = vmatpush.bf16.msra.mxu1 %v1219_v48  ;;  %v881_v63 = vpack.c.bf16 %v877_v53, %v877_v53 }
 0x3e3   : > { %v896_v49 = vpop.f32.mrf.mxu3 }
 0x3e4   : > { %v900_v50 = vpack.c.bf16 %v896_v49, %v896_v49 }
 0x3e5   : > { %v879_v54 = vpop.f32.mrf.mxu2 }
 0x3e6   : > { %v919_v51 = vsel %vm434_vm0, %v900_v50, 0  ;;  %v1237_v54 = vld [vmem:[%s1524_s8] ss:$0 sm:$0xff] }
 0x3e7   : > { %928 = vmatpush.bf16.xpose.msrb.mxu1 %v919_v51 }
 0x3eb   : > { %v898_v52 = vpop.f32.mrf.mxu3 }
 0x44b   : > { %v804_v43 = vpop.xlane.xlu2 %803 }
 0x44c   : > { %v805_v8 = vsub.f32 %v801_v39, %v804_v43 }
 0x44e   : > { %v806_v44 = vmul.f32 1.442695, %v805_v8 }
 0x450   : > { %1247 = vpow2.f32 %v806_v44 }
 0x456   : > { %v1248_v45 = vpop.eup %1247 }
 0x457   : > { %v811_v46 = vpack.c.bf16 %v1248_v45, %v1248_v45  ;;  %v808_v47 = vsel %vm528_vm3, %v1248_v45, 0.0 }
 0x458   : > { %809 = vadd.xlane.f32.xlu1 %v808_v47 }
 0x459   : > { %1183 = vmatmul.msk.bf16.vlgmr.msra.gmra.mxu0 %vm528_vm3, %v811_v46 }
 0x469   : > { %1195 = vmatmul.msk.bf16.vlgmr.msrb.gmra.mxu0 %vm434_vm0, %v883_v41 }
 0x4cb   : > { %v810_v55 = vpop.xlane.xlu1 %809 }
 0x4cc   : > { %1249 = vrcp.f32 %v810_v55 }
 0x4d2   : > { %v1250_v56 = vpop.eup %1249 }
 0x4d6   : > { %v827_v57 = vpop.f32.mrf.mxu0 }
 0x4d7   : > { %v832_v58 = vmul.f32 %v1250_v56, %v827_v57  ;;  %v1238_v56 = vld [vmem:[%s1525_s9] ss:$0 sm:$0xff] }
 0x4d9   : > { %v833_v59 = vpack.c.bf16 %v832_v58, %v832_v58 }
 0x4db   : > { %1192 = vmatmul.msk.bf16.vlgmr.msra.gmra.mxu1 %vm434_vm0, %v833_v59 }
 0x4de   : > { %v829_v60 = vpop.f32.mrf.mxu0 }
 0x4e6   : > { %v910_v61 = vpop.f32.mrf.mxu0 }
 0x4e7   : > { %v914_v62 = vpack.c.bf16 %v910_v61, %v910_v61 }
 0x4e9   : > { %v950_v5 = vsel %vm542_vm4, %v914_v62, 0 }
 0x4ea   : > { %959 = vmatpush.bf16.msrb.mxu2 %v950_v5 }
 0x4eb   : > { %1196 = vmatmul.msk.bf16.vlgmr.msrb.gmra.mxu1 %vm434_vm0, %v881_v63 }
 0x4ee   : > { %v912_v6 = vpop.f32.mrf.mxu0 }
 0x558   : > { %v858_v13 = vpop.f32.mrf.mxu1 }
 0x559   : > { %v862_v14 = vadd.f32 %v858_v13, %v726_v9 }
 0x560   : > { %v860_v15 = vpop.f32.mrf.mxu1 }
 0x568   : > { %v930_v16 = vpop.f32.mrf.mxu1 }
 0x569   : > { %v934_v17 = vsel %vm1412_vm2, %v930_v16, -1e+20 }
 0x56a   : > { %v935_v18 = vmul.f32 0.088388346, %v934_v17 }
 0x56c   : > { %v936_v19 = vsel %vm528_vm3, %v935_v18, -inf }
 0x56d   : > { %937 = vmax.xlane.f32.xlu2 %v936_v19 }
 0x570   : > { %v932_v20 = vpop.f32.mrf.mxu1 }
 0x5e0   : > { %v938_v21 = vpop.xlane.xlu2 %937 }
 0x5e1   : > { %v939_v22 = vsub.f32 %v935_v18, %v938_v21 }
 0x5e3   : > { %v940_v23 = vmul.f32 1.442695, %v939_v22 }
 0x5e5   : > { %1251 = vpow2.f32 %v940_v23 }
 0x5eb   : > { %v1252_v24 = vpop.eup %1251 }
 0x5ec   : > { %v945_v25 = vpack.c.bf16 %v1252_v24, %v1252_v24  ;;  %v942_v12 = vsel %vm528_vm3, %v1252_v24, 0.0 }
 0x5ed   : > { %943 = vadd.xlane.f32.xlu0 %v942_v12 }
 0x5ee   : > { %1197 = vmatmul.msk.bf16.vlgmr.msrb.gmra.mxu2 %vm528_vm3, %v945_v25 }
 0x660   : > { %v944_v28 = vpop.xlane.xlu0 %943 }
 0x661   : > { %1253 = vrcp.f32 %v944_v28 }
 0x662   : > { %1255 = vrcp.f32 %v1271_v3 }
 0x667   : > { %v1254_v29 = vpop.eup %1253 }
 0x668   : > { %v1256_v39 = vpop.eup %1255 }
 0x669   : > { %v1007_v40 = vmul.f32 128.0, %v1256_v39  ;;  %vm1011_vm5 = vweird.f32 %v1256_v39 }
 0x66b   : > { %v1008_v7 = vsub.f32 1.0, %v1007_v40 }
 0x66d   : > { %v1009_v11 = vmul.f32 %v1256_v39, %v1008_v7 }
 0x66f   : > { %v1010_v41 = vadd.f32 %v1256_v39, %v1009_v11 }
 0x671   : > { %v961_v30 = vpop.f32.mrf.mxu2  ;;  %v1012_v42 = vsel %vm1011_vm5, %v1256_v39, %v1010_v41 }
 0x672   : > { %v966_v31 = vmul.f32 %v1254_v29, %v961_v30 }
 0x674   : > { %v967_v32 = vpack.c.bf16 %v966_v31, %v966_v31 }
 0x676   : > { %1206 = vmatmul.msk.bf16.vlgmr.msrb.gmra.mxu3 %vm434_vm0, %v967_v32 }
 0x679   : > { %v963_v33 = vpop.f32.mrf.mxu2 }
 0x6f9   : > { %v992_v35 = vpop.f32.mrf.mxu3 }
 0x6fa   : > { %v996_v2 = vadd.f32 %v992_v35, %v862_v14 }
 0x6fc   : > { %v1001_v36 = vadd.f32 %v1236_v34, %v996_v2 }
 0x6fe   : > { %v1003_v37 = vadd.f32 %v1002_v0, %v1001_v36 }
 0x700   : > { %1004 = vadd.xlane.f32.xlu2 %v1003_v37  ;;  %v1014_v38 = vmul.f32 %v1003_v37, %v1003_v37 }
 0x701   : > { %v994_v1 = vpop.f32.mrf.mxu3 }
 0x702   : > { %1015 = vadd.xlane.f32.xlu0 %v1014_v38 }
 0x773   : > { %v1005_v43 = vpop.xlane.xlu2 %1004 }
 0x774   : > { %v1013_v8 = vmul.f32 %v1012_v42, %v1005_v43 }
 0x775   : > { %v1016_v44 = vpop.xlane.xlu0 %1015 }
 0x776   : > { %v1018_v4 = vmul.f32 %v1013_v8, %v1013_v8  ;;  %v1017_v45 = vmul.f32 %v1016_v44, %v1012_v42  ;;  %v1020_v53 = vsub.f32 %v1003_v37, %v1013_v8 }
 0x778   : > { %v1019_v46 = vsub.f32 %v1017_v45, %v1018_v4 }
 0x77a   : > { %v1021_v47 = vadd.f32 1e-05, %v1019_v46 }
 0x77c   : > { %1257 = vrsqrt.f32 %v1021_v47  ;;  %vm1028_vm7 = vweird.f32 %v1021_v47 }
 0x782   : > { %v1258_v10 = vpop.eup %1257 }
 0x783   : > { %v1023_v48 = vmul.f32 %v1258_v10, %v1021_v47  ;;  %vm1029_vm6 = vweird.f32 %v1258_v10 }
 0x784   : > { %vm1030_vm8 = vmor %vm1028_vm7, %vm1029_vm6 }
 0x785   : > { %v1024_v49 = vmul.f32 %v1258_v10, %v1023_v48 }
 0x787   : > { %v1025_v50 = vmul.f32 0.5, %v1024_v49 }
 0x789   : > { %v1026_v51 = vsub.f32 1.5, %v1025_v50 }
 0x78b   : > { %v1027_v52 = vmul.f32 %v1258_v10, %v1026_v51 }
 0x78d   : > { %v1031_v55 = vsel %vm1030_vm8, %v1258_v10, %v1027_v52 }
 0x78e   : > { %v1032_v57 = vmul.f32 %v1031_v55, %v1020_v53 }
 0x790   : > { %v1037_v58 = vmul.f32 %v1237_v54, %v1032_v57 }
 0x792   : > { %v1042_v59 = vadd.f32 %v1238_v56, %v1037_v58 }
 0x794   : > { %v1043_v60 = vpack.c.bf16 %v1042_v59, %v1042_v59 }
 0x796   : > { %1044 = vst [vmem:[%s385_s28] sm:$0xf] %v1043_v60 }
 0x797 PF: > { %s20_s13 = sadd.s32 1, %s1265_s13  }
 0x798   : > { %p17_p4 = scmp.ge.s32.totalorder %s20_s13, 4  }
 0x79a   :  { %19 = sbr.rel (!%p17_p4) target bundleno = 1 (0x1), region = 96 }

// kernel: transformer_fwd.12
= control target key start
LH: loop header
LB: loop body
LE: loop exit
PB: predicated region body
PF: predicated region fallthrough
CT: control target
= control target key end

     0   :  { %12 = vsyncpa [#allocation3], 0  ;;  %s1201_s0 = inlined_call_operand.vmem [shape: bf16[16,128], index: 0, kind: input, shape index: {}]   ;;  %s1202_s1 = inlined_call_operand.hbm [shape: bf16[128,512], index: 1, kind: input, shape index: {}]   ;;  %s1203_s2 = inlined_call_operand.vmem [shape: f32[1,512], index: 2, kind: input, shape index: {}]   ;;  %s1204_s3 = inlined_call_operand.hbm [shape: bf16[512,128], index: 3, kind: input, shape index: {}]   ;;  %s1205_s4 = inlined_call_operand.vmem [shape: f32[1,128], index: 4, kind: input, shape index: {}]   ;;  %s1206_s5 = inlined_call_operand.vmem [shape: f32[1,128], index: 5, kind: input, shape index: {}]   ;;  %s1207_s6 = inlined_call_operand.vmem [shape: f32[1,128], index: 6, kind: input, shape index: {}]   ;;  %s1208_s7 = inlined_call_operand.vmem [shape: bf16[16,128], index: 7, kind: output, shape index: {}]  }
   0x1   :  { %s20_s26 = sshll.u32 %s1202_s1, 4  ;;  %s21_s26 = int_to_ptr.hbm [resolvable:$true] %s20_s26 }
   0x2   :  { %13 = vsyncpa [#allocation5], 0  ;;  %s1127_s27 = smov [#allocation2]   ;;  %s35_s8 = sshll.u32 %s1204_s3, 4  ;;  %s36_s8 = int_to_ptr.hbm [resolvable:$true] %s35_s8 }
   0x3   :  { %s22_s28 = sshll.u32 %s1127_s27, 4  ;;  %s1128_s9 = smov 256   ;;  %s23_s28 = int_to_ptr.vmem [resolvable:$true] %s22_s28 }
   0x4   :  { %s1129_s10 = smov 16   ;;  %s1130_s11 = smov [#allocation4]  }
   0x5   :  { %28 = dma.hbm_to_vmem [thread:$0]  %s21_s26, 4096, %s23_s28, [#allocation3], %s1128_s9, %s1128_s9, %s1129_s10  }
   0x6   :  { %s37_s12 = sshll.u32 %s1130_s11, 4  ;;  %s1131_s13 = smov 64   ;;  %s38_s12 = int_to_ptr.vmem [resolvable:$true] %s37_s12 }
   0x7   :  { %s1132_s14 = smov 4  }
   0x8   :  { %43 = dma.hbm_to_vmem [thread:$0]  %s36_s8, 4096, %s38_s12, [#allocation5], %s1131_s13, %s1131_s13, %s1132_s14  }
   0x9   :  { %1123 = dma.done.wait [#allocation3], 4096  }
   0xa   :  { %1124 = vsyncadd [#allocation3], 4294963200 }
   0xb   :  { %1125 = dma.done.wait [#allocation5], 4096  }
   0xc   :  { %1126 = vsyncadd [#allocation5], 4294963200  ;;  %v847_v0 = vld [vmem:[#allocation2 + $0xe0] sm:$0xf]  ;;  %v1020_v1 = vld [vmem:[#allocation2 + $0xec] sm:$0xf0] }
   0xd   :  { %v1018_v2 = vld [vmem:[#allocation2 + $0xe4] sm:$0xf]  ;;  %v848_v3 = vor.u32 %v1020_v1, %v847_v0  ;;  %v849_v4 = vld [vmem:[#allocation2 + $0xf0] sm:$0xf0]  ;;  %v855_v5 = vld [vmem:[#allocation2 + $0xe8] sm:$0xf] }
   0xe   :  { %v1021_v6 = vld [vmem:[#allocation2 + $0xf4] sm:$0xf0]  ;;  %v852_v7 = vor.u32 %v1018_v2, %v849_v4  ;;  %v1019_v9 = vld [vmem:[#allocation2 + $0xec] sm:$0xf]  ;;  %v857_v10 = vld [vmem:[#allocation2 + $0xf8] sm:$0xf0] }
   0xf   :  { %v856_v8 = vor.u32 %v1021_v6, %v855_v5  ;;  %v831_v11 = vld [vmem:[#allocation2 + $0xc0] sm:$0xf]  ;;  %268 = vmatpush.bf16.msra.mxu0 %v848_v3  ;;  %v860_v12 = vor.u32 %v1019_v9, %v857_v10  ;;  %v1016_v13 = vld [vmem:[#allocation2 + $0xcc] sm:$0xf0]  ;;  %v1014_v14 = vld [vmem:[#allocation2 + $0xc4] sm:$0xf] }
  0x10   :  { %v833_v15 = vld [vmem:[#allocation2 + $0xd0] sm:$0xf0]  ;;  %282 = vmatpush.bf16.msra.mxu1 %v852_v7  ;;  %v832_v16 = vor.u32 %v1016_v13, %v831_v11  ;;  %v839_v18 = vld [vmem:[#allocation2 + $0xc8] sm:$0xf]  ;;  %v1017_v19 = vld [vmem:[#allocation2 + $0xd4] sm:$0xf0] }
  0x11   :  { %296 = vmatpush.bf16.msra.mxu2 %v856_v8  ;;  %v836_v17 = vor.u32 %v1014_v14, %v833_v15  ;;  %v1015_v20 = vld [vmem:[#allocation2 + $0xcc] sm:$0xf]  ;;  %310 = vmatpush.bf16.msra.mxu3 %v860_v12  ;;  %v840_v21 = vor.u32 %v1017_v19, %v839_v18  ;;  %v841_v22 = vld [vmem:[#allocation2 + $0xd8] sm:$0xf0]  ;;  %v815_v23 = vld [vmem:[#allocation2 + $0xa0] sm:$0xf] }
  0x12   :  { %v1012_v24 = vld [vmem:[#allocation2 + $0xac] sm:$0xf0]  ;;  %v844_v25 = vor.u32 %v1015_v20, %v841_v22  ;;  %v1010_v26 = vld [vmem:[#allocation2 + $0xa4] sm:$0xf]  ;;  %v817_v27 = vld [vmem:[#allocation2 + $0xb0] sm:$0xf0] }
  0x13   :  { %v823_v28 = vld [vmem:[#allocation2 + $0xa8] sm:$0xf]  ;;  %269 = vmatpush.bf16.msra.mxu0 %v832_v16  ;;  %v816_v29 = vor.u32 %v1012_v24, %v815_v23  ;;  %v1013_v30 = vld [vmem:[#allocation2 + $0xb4] sm:$0xf0]  ;;  %v1011_v31 = vld [vmem:[#allocation2 + $0xac] sm:$0xf]  ;;  %v820_v33 = vor.u32 %v1010_v26, %v817_v27 }
  0x14   :  { %v825_v32 = vld [vmem:[#allocation2 + $0xb8] sm:$0xf0]  ;;  %283 = vmatpush.bf16.msra.mxu1 %v836_v17  ;;  %v824_v34 = vor.u32 %v1013_v30, %v823_v28  ;;  %v799_v35 = vld [vmem:[#allocation2 + $0x80] sm:$0xf]  ;;  %v1008_v36 = vld [vmem:[#allocation2 + $0x8c] sm:$0xf0] }
  0x15   :  { %297 = vmatpush.bf16.msra.mxu2 %v840_v21  ;;  %v1006_v37 = vld [vmem:[#allocation2 + $0x84] sm:$0xf]  ;;  %311 = vmatpush.bf16.msra.mxu3 %v844_v25  ;;  %v828_v38 = vor.u32 %v1011_v31, %v825_v32  ;;  %v801_v39 = vld [vmem:[#allocation2 + $0x90] sm:$0xf0]  ;;  %v807_v40 = vld [vmem:[#allocation2 + $0x88] sm:$0xf]  ;;  %v800_v44 = vor.u32 %v1008_v36, %v799_v35 }
  0x16   :  { %v1009_v41 = vld [vmem:[#allocation2 + $0x94] sm:$0xf0]  ;;  %v1007_v42 = vld [vmem:[#allocation2 + $0x8c] sm:$0xf]  ;;  %v809_v43 = vld [vmem:[#allocation2 + $0x98] sm:$0xf0]  ;;  %v804_v45 = vor.u32 %v1006_v37, %v801_v39 }
  0x17   :  { %270 = vmatpush.bf16.msra.mxu0 %v816_v29  ;;  %v808_v46 = vor.u32 %v1009_v41, %v807_v40  ;;  %v783_v47 = vld [vmem:[#allocation2 + $0x60] sm:$0xf]  ;;  %v1004_v48 = vld [vmem:[#allocation2 + $0x6c] sm:$0xf0]  ;;  %v1002_v49 = vld [vmem:[#allocation2 + $0x64] sm:$0xf]  ;;  %v812_v50 = vor.u32 %v1007_v42, %v809_v43 }
  0x18   :  { %284 = vmatpush.bf16.msra.mxu1 %v820_v33  ;;  %v785_v51 = vld [vmem:[#allocation2 + $0x70] sm:$0xf0]  ;;  %v791_v52 = vld [vmem:[#allocation2 + $0x68] sm:$0xf]  ;;  %v1005_v53 = vld [vmem:[#allocation2 + $0x74] sm:$0xf0]  ;;  %v784_v56 = vor.u32 %v1004_v48, %v783_v47 }
  0x19   :  { %298 = vmatpush.bf16.msra.mxu2 %v824_v34  ;;  %312 = vmatpush.bf16.msra.mxu3 %v828_v38  ;;  %v1003_v54 = vld [vmem:[#allocation2 + $0x6c] sm:$0xf]  ;;  %v793_v55 = vld [vmem:[#allocation2 + $0x78] sm:$0xf0]  ;;  %v788_v57 = vor.u32 %v1002_v49, %v785_v51  ;;  %v792_v58 = vor.u32 %v1005_v53, %v791_v52  ;;  %v767_v59 = vld [vmem:[#allocation2 + $0x40] sm:$0xf] }
  0x1a   :  { %v1000_v60 = vld [vmem:[#allocation2 + $0x4c] sm:$0xf0]  ;;  %v998_v61 = vld [vmem:[#allocation2 + $0x44] sm:$0xf]  ;;  %v796_v62 = vor.u32 %v1003_v54, %v793_v55  ;;  %v769_v63 = vld [vmem:[#allocation2 + $0x50] sm:$0xf0] }
  0x1b   :  { %271 = vmatpush.bf16.msra.mxu0 %v800_v44  ;;  %v775_v0 = vld [vmem:[#allocation2 + $0x48] sm:$0xf]  ;;  %v1001_v1 = vld [vmem:[#allocation2 + $0x54] sm:$0xf0]  ;;  %v999_v2 = vld [vmem:[#allocation2 + $0x4c] sm:$0xf]  ;;  %v768_v4 = vor.u32 %v1000_v60, %v767_v59  ;;  %v772_v5 = vor.u32 %v998_v61, %v769_v63 }
  0x1c   :  { %285 = vmatpush.bf16.msra.mxu1 %v804_v45  ;;  %v777_v3 = vld [vmem:[#allocation2 + $0x58] sm:$0xf0]  ;;  %v776_v6 = vor.u32 %v1001_v1, %v775_v0  ;;  %v751_v7 = vld [vmem:[#allocation2 + $0x20] sm:$0xf]  ;;  %v996_v8 = vld [vmem:[#allocation2 + $0x2c] sm:$0xf0] }
  0x1d   :  { %299 = vmatpush.bf16.msra.mxu2 %v808_v46  ;;  %313 = vmatpush.bf16.msra.mxu3 %v812_v50  ;;  %v994_v9 = vld [vmem:[#allocation2 + $0x24] sm:$0xf]  ;;  %v780_v10 = vor.u32 %v999_v2, %v777_v3  ;;  %v753_v11 = vld [vmem:[#allocation2 + $0x30] sm:$0xf0]  ;;  %v759_v12 = vld [vmem:[#allocation2 + $0x28] sm:$0xf]  ;;  %v752_v16 = vor.u32 %v996_v8, %v751_v7 }
  0x1e   :  { %v997_v13 = vld [vmem:[#allocation2 + $0x34] sm:$0xf0]  ;;  %v995_v14 = vld [vmem:[#allocation2 + $0x2c] sm:$0xf]  ;;  %v761_v15 = vld [vmem:[#allocation2 + $0x38] sm:$0xf0]  ;;  %v756_v17 = vor.u32 %v994_v9, %v753_v11 }
  0x1f   :  { %272 = vmatpush.bf16.msra.mxu0 %v784_v56  ;;  %v760_v18 = vor.u32 %v997_v13, %v759_v12  ;;  %v735_v19 = vld [vmem:[#allocation2] sm:$0xf]  ;;  %v992_v20 = vld [vmem:[#allocation2 + $0xc] sm:$0xf0]  ;;  %v990_v21 = vld [vmem:[#allocation2 + $0x4] sm:$0xf]  ;;  %v764_v22 = vor.u32 %v995_v14, %v761_v15 }
  0x20   :  { %286 = vmatpush.bf16.msra.mxu1 %v788_v57  ;;  %v737_v23 = vld [vmem:[#allocation2 + $0x10] sm:$0xf0]  ;;  %v743_v24 = vld [vmem:[#allocation2 + $0x8] sm:$0xf]  ;;  %v993_v25 = vld [vmem:[#allocation2 + $0x14] sm:$0xf0]  ;;  %v736_v28 = vor.u32 %v992_v20, %v735_v19 }
  0x21   :  { %300 = vmatpush.bf16.msra.mxu2 %v792_v58  ;;  %314 = vmatpush.bf16.msra.mxu3 %v796_v62  ;;  %v991_v26 = vld [vmem:[#allocation2 + $0xc] sm:$0xf]  ;;  %v745_v27 = vld [vmem:[#allocation2 + $0x18] sm:$0xf0]  ;;  %v740_v29 = vor.u32 %v990_v21, %v737_v23  ;;  %v744_v30 = vor.u32 %v993_v25, %v743_v24  ;;  %v989_v33 = vld [vmem:[%s1201_s0] sm:$0xff] }
  0x22   :  { %v748_v31 = vor.u32 %v991_v26, %v745_v27  ;;  %v1029_v32 = vld [vmem:[#allocation4 + $0x38] sm:$0xff]  ;;  %v1028_v36 = vld [vmem:[#allocation4 + $0x30] sm:$0xff]  ;;  %v1027_v40 = vld [vmem:[#allocation4 + $0x28] sm:$0xff] }
  0x23   :  { %273 = vmatpush.bf16.msra.mxu0 %v768_v4  ;;  %v1037_v34 = vld [vmem:[#allocation4 + $0x78] sm:$0xff]  ;;  %v1036_v38 = vld [vmem:[#allocation4 + $0x70] sm:$0xff]  ;;  %v1035_v42 = vld [vmem:[#allocation4 + $0x68] sm:$0xff] }
  0x24   :  { %287 = vmatpush.bf16.msra.mxu1 %v772_v5  ;;  %v1045_v35 = vld [vmem:[#allocation4 + $0xb8] sm:$0xff]  ;;  %v1044_v39 = vld [vmem:[#allocation4 + $0xb0] sm:$0xff]  ;;  %v1043_v43 = vld [vmem:[#allocation4 + $0xa8] sm:$0xff] }
  0x25   :  { %301 = vmatpush.bf16.msra.mxu2 %v776_v6  ;;  %315 = vmatpush.bf16.msra.mxu3 %v780_v10  ;;  %v1053_v37 = vld [vmem:[#allocation4 + $0xf8] sm:$0xff]  ;;  %v1052_v41 = vld [vmem:[#allocation4 + $0xf0] sm:$0xff]  ;;  %v1026_v44 = vld [vmem:[#allocation4 + $0x20] sm:$0xff] }
  0x26   :  { %v1051_v45 = vld [vmem:[#allocation4 + $0xe8] sm:$0xff]  ;;  %v1034_v46 = vld [vmem:[#allocation4 + $0x60] sm:$0xff]  ;;  %v1025_v47 = vld [vmem:[#allocation4 + $0x18] sm:$0xff] }
  0x27   :  { %274 = vmatpush.bf16.msra.mxu0 %v752_v16  ;;  %v1033_v48 = vld [vmem:[#allocation4 + $0x58] sm:$0xff]  ;;  %v1042_v49 = vld [vmem:[#allocation4 + $0xa0] sm:$0xff]  ;;  %v1024_v51 = vld [vmem:[#allocation4 + $0x10] sm:$0xff] }
  0x28   :  { %288 = vmatpush.bf16.msra.mxu1 %v756_v17  ;;  %v1050_v50 = vld [vmem:[#allocation4 + $0xe0] sm:$0xff]  ;;  %v1032_v52 = vld [vmem:[#allocation4 + $0x50] sm:$0xff]  ;;  %v1041_v53 = vld [vmem:[#allocation4 + $0x98] sm:$0xff] }
  0x29   :  { %302 = vmatpush.bf16.msra.mxu2 %v760_v18  ;;  %316 = vmatpush.bf16.msra.mxu3 %v764_v22  ;;  %v1049_v54 = vld [vmem:[#allocation4 + $0xd8] sm:$0xff]  ;;  %v1023_v55 = vld [vmem:[#allocation4 + $0x8] sm:$0xff]  ;;  %v1040_v57 = vld [vmem:[#allocation4 + $0x90] sm:$0xff] }
  0x2a   :  { %v1031_v56 = vld [vmem:[#allocation4 + $0x48] sm:$0xff]  ;;  %v1048_v58 = vld [vmem:[#allocation4 + $0xd0] sm:$0xff]  ;;  %v1022_v59 = vld [vmem:[#allocation4] sm:$0xff] }
  0x2b   :  { %275 = vmatpush.bf16.msra.mxu0 %v736_v28  ;;  %v1030_v60 = vld [vmem:[#allocation4 + $0x40] sm:$0xff]  ;;  %v1039_v61 = vld [vmem:[#allocation4 + $0x88] sm:$0xff] }
  0x2c   :  { %289 = vmatpush.bf16.msra.mxu1 %v740_v29  ;;  %v1047_v62 = vld [vmem:[#allocation4 + $0xc8] sm:$0xff]  ;;  %v1038_v63 = vld [vmem:[#allocation4 + $0x80] sm:$0xff] }
  0x2d   :  { %303 = vmatpush.bf16.msra.mxu2 %v744_v30  ;;  %317 = vmatpush.bf16.msra.mxu3 %v748_v31  ;;  %v1046_v0 = vld [vmem:[#allocation4 + $0xc0] sm:$0xff] }
  0x2e   :  { %276 = vmatmul.bf16.vlgmr.msra.gmra.mxu0 %v989_v33  ;;  %v92_v1 = vld [vmem:[%s1203_s2] sm:$0xf] }
  0x2f   :  { %596 = vmatpush.bf16.msrb.mxu0 %v1029_v32  ;;  %290 = vmatmul.bf16.vlgmr.msra.gmra.mxu1 %v989_v33  ;;  %v94_v3 = vperm.slane %v92_v1, 0  ;;  %v95_v5 = vperm.slane %v92_v1, 1  ;;  %v96_v15 = vperm.slane %v92_v1, 2  ;;  %v97_v17 = vperm.slane %v92_v1, 3 }
  0x30   :  { %610 = vmatpush.bf16.msrb.mxu1 %v1037_v34  ;;  %304 = vmatmul.bf16.vlgmr.msra.gmra.mxu2 %v989_v33 }
  0x31   :  { %318 = vmatmul.bf16.vlgmr.msra.gmra.mxu3 %v989_v33  ;;  %624 = vmatpush.bf16.msrb.mxu2 %v1045_v35  ;;  %v1066_v35 = vld [vmem:[%s1205_s4] ss:$0 sm:$0xff] }
  0x32   :  { %638 = vmatpush.bf16.msrb.mxu3 %v1053_v37 }
  0x33   :  { %597 = vmatpush.bf16.msrb.mxu0 %v1028_v36 }
  0x34   :  { %611 = vmatpush.bf16.msrb.mxu1 %v1036_v38  ;;  %v58_v38 = vld [vmem:[%s1201_s0] sm:$0xff]  }
  0x35   :  { %625 = vmatpush.bf16.msrb.mxu2 %v1044_v39 }
  0x36   :  { %639 = vmatpush.bf16.msrb.mxu3 %v1052_v41 }
  0x37   :  { %598 = vmatpush.bf16.msrb.mxu0 %v1027_v40 }
  0x38   :  { %612 = vmatpush.bf16.msrb.mxu1 %v1035_v42 }
  0x39   :  { %626 = vmatpush.bf16.msrb.mxu2 %v1043_v43 }
  0x3a   :  { %640 = vmatpush.bf16.msrb.mxu3 %v1051_v45 }
  0x3b   :  { %599 = vmatpush.bf16.msrb.mxu0 %v1026_v44  ;;  %v652_v44 = vunpack.c.l.bf16 %v58_v38 }
  0x3c   :  { %613 = vmatpush.bf16.msrb.mxu1 %v1034_v46 }
  0x3d   :  { %627 = vmatpush.bf16.msrb.mxu2 %v1042_v49 }
  0x3e   :  { %641 = vmatpush.bf16.msrb.mxu3 %v1050_v50 }
  0x3f   :  { %600 = vmatpush.bf16.msrb.mxu0 %v1025_v47 }
  0x40   :  { %614 = vmatpush.bf16.msrb.mxu1 %v1033_v48 }
  0x41   :  { %628 = vmatpush.bf16.msrb.mxu2 %v1041_v53  ;;  %v653_v53 = vunpack.c.h.bf16 %v58_v38 }
  0x42   :  { %642 = vmatpush.bf16.msrb.mxu3 %v1049_v54 }
  0x43   :  { %601 = vmatpush.bf16.msrb.mxu0 %v1024_v51 }
  0x44   :  { %615 = vmatpush.bf16.msrb.mxu1 %v1032_v52 }
  0x45   :  { %629 = vmatpush.bf16.msrb.mxu2 %v1040_v57 }
  0x46   :  { %643 = vmatpush.bf16.msrb.mxu3 %v1048_v58  ;;  %v1133_v58 = vmov 128.0  }
  0x47   :  { %602 = vmatpush.bf16.msrb.mxu0 %v1023_v55  ;;  %1069 = vrcp.f32 %v1133_v58 }
  0x48   :  { %616 = vmatpush.bf16.msrb.mxu1 %v1031_v56 }
  0x49   :  { %630 = vmatpush.bf16.msrb.mxu2 %v1039_v61 }
  0x4a   :  { %644 = vmatpush.bf16.msrb.mxu3 %v1047_v62 }
  0x4b   :  { %603 = vmatpush.bf16.msrb.mxu0 %v1022_v59 }
  0x4c   :  { %617 = vmatpush.bf16.msrb.mxu1 %v1030_v60 }
  0x4d   :  { %631 = vmatpush.bf16.msrb.mxu2 %v1038_v63  ;;  %v1070_v59 = vpop.eup %1069 }
  0x4e   :  { %645 = vmatpush.bf16.msrb.mxu3 %v1046_v0  ;;  %v661_v60 = vmul.f32 128.0, %v1070_v59  ;;  %vm665_vm0 = vweird.f32 %v1070_v59 }
  0x50   :  { %v662_v61 = vsub.f32 1.0, %v661_v60 }
  0x52   :  { %v663_v62 = vmul.f32 %v1070_v59, %v662_v61 }
  0x54   :  { %v664_v63 = vadd.f32 %v1070_v59, %v663_v62 }
  0x56   :  { %v666_v0 = vsel %vm665_vm0, %v1070_v59, %v664_v63 }
  0xab   :  { %v277_v2 = vpop.f32.mrf.mxu0 }
  0xac   :  { %v291_v4 = vpop.f32.mrf.mxu1  ;;  %v278_v6 = vadd.f32 %v277_v2, %v94_v3 }
  0xad   :  { %v292_v7 = vadd.f32 %v291_v4, %v95_v5 }
  0xae   :  { %v324_v11 = vmax.f32 %v278_v6, 0.0 }
  0xaf   :  { %v325_v14 = vmax.f32 %v292_v7, 0.0 }
  0xb3   :  { %v305_v8 = vpop.f32.mrf.mxu2  ;;  %v279_v10 = vpop.f32.mrf.mxu0 }
  0xb4   :  { %v319_v9 = vpop.f32.mrf.mxu3  ;;  %v280_v12 = vadd.f32 %v279_v10, %v94_v3  ;;  %v293_v13 = vpop.f32.mrf.mxu1  ;;  %v306_v21 = vadd.f32 %v305_v8, %v96_v15 }
  0xb5   :  { %v294_v16 = vadd.f32 %v293_v13, %v95_v5  ;;  %v320_v23 = vadd.f32 %v319_v9, %v97_v17 }
  0xb6   :  { %v328_v18 = vmax.f32 %v280_v12, 0.0  ;;  %v326_v28 = vmax.f32 %v306_v21, 0.0 }
  0xb7   :  { %v329_v19 = vmax.f32 %v294_v16, 0.0  ;;  %v327_v30 = vmax.f32 %v320_v23, 0.0 }
  0xb8   :  { %v332_v20 = vpack.c.bf16 %v328_v18, %v324_v11 }
  0xb9   :  { %v333_v22 = vpack.c.bf16 %v329_v19, %v325_v14 }
  0xba   :  { %604 = vmatmul.bf16.vlgmr.msrb.gmra.mxu0 %v332_v20 }
  0xbb   :  { %v307_v24 = vpop.f32.mrf.mxu2  ;;  %618 = vmatmul.bf16.vlgmr.msrb.gmra.mxu1 %v333_v22 }
  0xbc   :  { %v308_v25 = vadd.f32 %v307_v24, %v96_v15  ;;  %v321_v26 = vpop.f32.mrf.mxu3 }
  0xbd   :  { %v322_v27 = vadd.f32 %v321_v26, %v97_v17 }
  0xbe   :  { %v330_v29 = vmax.f32 %v308_v25, 0.0 }
  0xbf   :  { %v331_v31 = vmax.f32 %v322_v27, 0.0 }
  0xc0   :  { %v334_v32 = vpack.c.bf16 %v330_v29, %v326_v28  ;;  %v1067_v28 = vld [vmem:[%s1206_s5] ss:$0 sm:$0xff] }
  0xc1   :  { %v335_v33 = vpack.c.bf16 %v331_v31, %v327_v30 }
  0xc2   :  { %632 = vmatmul.bf16.vlgmr.msrb.gmra.mxu2 %v334_v32 }
  0xc3   :  { %646 = vmatmul.bf16.vlgmr.msrb.gmra.mxu3 %v335_v33  ;;  %v1068_v33 = vld [vmem:[%s1207_s6] ss:$0 sm:$0xff] }
 0x137   :  { %v605_v34 = vpop.f32.mrf.mxu0 }
 0x138   :  { %v606_v36 = vadd.f32 %v1066_v35, %v605_v34  ;;  %v619_v37 = vpop.f32.mrf.mxu1 }
 0x13a   :  { %v620_v39 = vadd.f32 %v619_v37, %v606_v36 }
 0x13f   :  { %v607_v40 = vpop.f32.mrf.mxu0 }
 0x140   :  { %v608_v45 = vadd.f32 %v1066_v35, %v607_v40  ;;  %v621_v48 = vpop.f32.mrf.mxu1 }
 0x142   :  { %v622_v49 = vadd.f32 %v621_v48, %v608_v45 }
 0x145   :  { %v633_v41 = vpop.f32.mrf.mxu2 }
 0x146   :  { %v634_v42 = vadd.f32 %v633_v41, %v620_v39  ;;  %v647_v43 = vpop.f32.mrf.mxu3 }
 0x148   :  { %v648_v46 = vadd.f32 %v647_v43, %v634_v42 }
 0x14a   :  { %v654_v47 = vadd.f32 %v652_v44, %v648_v46 }
 0x14c   :  { %656 = vadd.xlane.f32.xlu0 %v654_v47  ;;  %v669_v50 = vmul.f32 %v654_v47, %v654_v47 }
 0x14d   :  { %v635_v51 = vpop.f32.mrf.mxu2 }
 0x14e   :  { %v636_v52 = vadd.f32 %v635_v51, %v622_v49  ;;  %671 = vadd.xlane.f32.xlu1 %v669_v50  ;;  %v649_v54 = vpop.f32.mrf.mxu3 }
 0x150   :  { %v650_v55 = vadd.f32 %v649_v54, %v636_v52 }
 0x152   :  { %v655_v56 = vadd.f32 %v653_v53, %v650_v55 }
 0x154   :  { %658 = vadd.xlane.f32.xlu0 %v655_v56  ;;  %v670_v57 = vmul.f32 %v655_v56, %v655_v56 }
 0x156   :  { %673 = vadd.xlane.f32.xlu1 %v670_v57 }
 0x1bf   :  { %v657_v1 = vpop.xlane.xlu0 %656 }
 0x1c0   :  { %v667_v2 = vmul.f32 %v666_v0, %v657_v1 }
 0x1c1   :  { %v672_v3 = vpop.xlane.xlu1 %671 }
 0x1c2   :  { %v677_v4 = vmul.f32 %v667_v2, %v667_v2  ;;  %v675_v5 = vmul.f32 %v672_v3, %v666_v0  ;;  %v681_v26 = vsub.f32 %v654_v47, %v667_v2 }
 0x1c4   :  { %v679_v6 = vsub.f32 %v675_v5, %v677_v4 }
 0x1c6   :  { %v683_v7 = vadd.f32 1e-05, %v679_v6 }
 0x1c7   :  { %v659_v8 = vpop.xlane.xlu0 %658 }
 0x1c8   :  { %1071 = vrsqrt.f32 %v683_v7  ;;  %v668_v9 = vmul.f32 %v666_v0, %v659_v8  ;;  %vm691_vm2 = vweird.f32 %v683_v7 }
 0x1c9   :  { %v674_v10 = vpop.xlane.xlu1 %673 }
 0x1ca   :  { %v678_v11 = vmul.f32 %v668_v9, %v668_v9  ;;  %v676_v12 = vmul.f32 %v674_v10, %v666_v0  ;;  %v682_v31 = vsub.f32 %v655_v56, %v668_v9 }
 0x1cc   :  { %v680_v13 = vsub.f32 %v676_v12, %v678_v11 }
 0x1ce   :  { %v1072_v14 = vpop.eup %1071  ;;  %v684_v15 = vadd.f32 1e-05, %v680_v13 }
 0x1cf   :  { %v686_v16 = vmul.f32 %v1072_v14, %v683_v7  ;;  %vm692_vm1 = vweird.f32 %v1072_v14 }
 0x1d0   :  { %1073 = vrsqrt.f32 %v684_v15  ;;  %vm693_vm3 = vmor %vm691_vm2, %vm692_vm1  ;;  %vm701_vm5 = vweird.f32 %v684_v15 }
 0x1d1   :  { %v687_v17 = vmul.f32 %v1072_v14, %v686_v16 }
 0x1d3   :  { %v688_v18 = vmul.f32 0.5, %v687_v17 }
 0x1d5   :  { %v689_v19 = vsub.f32 1.5, %v688_v18 }
 0x1d6   :  { %v1074_v20 = vpop.eup %1073 }
 0x1d7   :  { %v690_v21 = vmul.f32 %v1072_v14, %v689_v19  ;;  %v696_v22 = vmul.f32 %v1074_v20, %v684_v15  ;;  %vm702_vm4 = vweird.f32 %v1074_v20 }
 0x1d8   :  { %vm703_vm6 = vmor %vm701_vm5, %vm702_vm4 }
 0x1d9   :  { %v697_v23 = vmul.f32 %v1074_v20, %v696_v22  ;;  %v694_v24 = vsel %vm693_vm3, %v1072_v14, %v690_v21 }
 0x1da   :  { %v705_v29 = vmul.f32 %v694_v24, %v681_v26 }
 0x1db   :  { %v698_v25 = vmul.f32 0.5, %v697_v23 }
 0x1dc   :  { %v711_v34 = vmul.f32 %v1067_v28, %v705_v29 }
 0x1dd   :  { %v699_v27 = vsub.f32 1.5, %v698_v25 }
 0x1de   :  { %v717_v37 = vadd.f32 %v1068_v33, %v711_v34 }
 0x1df   :  { %v700_v30 = vmul.f32 %v1074_v20, %v699_v27 }
 0x1e1   :  { %v704_v32 = vsel %vm703_vm6, %v1074_v20, %v700_v30 }
 0x1e2   :  { %v706_v35 = vmul.f32 %v704_v32, %v682_v31 }
 0x1e4   :  { %v712_v36 = vmul.f32 %v1067_v28, %v706_v35 }
 0x1e6   :  { %v718_v38 = vadd.f32 %v1068_v33, %v712_v36 }
 0x1e8   :  { %v1057_v39 = vpack.c.bf16 %v718_v38, %v717_v37 }
 0x1ea   :  { %1058 = vst [vmem:[%s1208_s7] sm:$0xff] %v1057_v39  }
 0x1eb   :  { %727 = vsyncpa [#allocation3], 1 }
 0x1ec   :  { %728 = vsyncpa [#allocation5], 1 }

// kernel: transformer_fwd.14
= control target key start
LH: loop header
LB: loop body
LE: loop exit
PB: predicated region body
PF: predicated region fallthrough
CT: control target
= control target key end

     0   :  { %12 = vsyncpa [#allocation3], 0  ;;  %s1283_s0 = inlined_call_operand.vmem [shape: bf16[16,128], index: 0, kind: input, shape index: {}]   ;;  %s1284_s1 = inlined_call_operand.hbm [shape: bf16[128,512], index: 1, kind: input, shape index: {}]   ;;  %s1285_s2 = inlined_call_operand.vmem [shape: f32[1,512], index: 2, kind: input, shape index: {}]   ;;  %s1286_s3 = inlined_call_operand.hbm [shape: bf16[512,128], index: 3, kind: input, shape index: {}]   ;;  %s1287_s4 = inlined_call_operand.vmem [shape: f32[1,128], index: 4, kind: input, shape index: {}]   ;;  %s1288_s5 = inlined_call_operand.hbm [shape: f32[1,128], index: 5, kind: input, shape index: {}]   ;;  %s1289_s6 = inlined_call_operand.hbm [shape: f32[1,128], index: 6, kind: input, shape index: {}]   ;;  %s1290_s7 = inlined_call_operand.vmem [shape: bf16[16,128], index: 7, kind: output, shape index: {}]  }
   0x1   :  { %13 = vsyncpa [#allocation5], 0  ;;  %s36_s26 = sshll.u32 %s1286_s3, 4  ;;  %s37_s26 = int_to_ptr.hbm [resolvable:$true] %s36_s26 }
   0x2   :  { %14 = vsyncpa [#allocation8], 0  ;;  %s1207_s27 = smov [#allocation4]   ;;  %s21_s8 = sshll.u32 %s1284_s1, 4  ;;  %s22_s8 = int_to_ptr.hbm [resolvable:$true] %s21_s8 }
   0x3   :  { %s38_s28 = sshll.u32 %s1207_s27, 4  ;;  %s1208_s9 = smov 64   ;;  %s39_s28 = int_to_ptr.vmem [resolvable:$true] %s38_s28 }
   0x4   :  { %s1209_s10 = smov 4   ;;  %s1210_s11 = smov [#allocation2]  }
   0x5   :  { %44 = dma.hbm_to_vmem [thread:$0]  %s37_s26, 4096, %s39_s28, [#allocation5], %s1208_s9, %s1208_s9, %s1209_s10  }
   0x6   :  { %s23_s12 = sshll.u32 %s1210_s11, 4  ;;  %s1211_s13 = smov 256   ;;  %s24_s12 = int_to_ptr.vmem [resolvable:$true] %s23_s12 }
   0x7   :  { %s1212_s14 = smov 16   ;;  %s52_s16 = sshll.u32 %s1288_s5, 4  ;;  %s53_s16 = int_to_ptr.hbm [resolvable:$true] %s52_s16 }
   0x8   :  { %29 = dma.hbm_to_vmem [thread:$0]  %s22_s8, 4096, %s24_s12, [#allocation3], %s1211_s13, %s1211_s13, %s1212_s14  }
   0x9   :  { %s1213_s17 = smov [#allocation6]   ;;  %s63_s20 = sshll.u32 %s1289_s6, 4  ;;  %s64_s20 = int_to_ptr.hbm [resolvable:$true] %s63_s20 }
   0xa   :  { %s54_s18 = sshll.u32 %s1213_s17, 4  ;;  %s1214_s21 = smov [#allocation7]   ;;  %s55_s18 = int_to_ptr.vmem [resolvable:$true] %s54_s18 }
   0xb   :  { %57 = dma.hbm_to_vmem [thread:$0]  %s53_s16, 16, %s55_s18, [#allocation5]  }
   0xc   :  { %s65_s22 = sshll.u32 %s1214_s21, 4  ;;  %s66_s22 = int_to_ptr.vmem [resolvable:$true] %s65_s22 }
   0xd   :  { %68 = dma.hbm_to_vmem [thread:$0]  %s64_s20, 16, %s66_s22, [#allocation8]  }
   0xe   :  { %1201 = dma.done.wait [#allocation3], 4096  }
   0xf   :  { %1202 = vsyncadd [#allocation3], 4294963200 }
  0x10   :  { %1203 = dma.done.wait [#allocation5], 4112  }
  0x11   :  { %1204 = vsyncadd [#allocation5], 4294963184 }
  0x12   :  { %1205 = dma.done.wait [#allocation8], 16  }
  0x13   :  { %1206 = vsyncadd [#allocation8], 4294967280  ;;  %v875_v0 = vld [vmem:[#allocation2 + $0xe0] sm:$0xf]  ;;  %v1048_v1 = vld [vmem:[#allocation2 + $0xec] sm:$0xf0] }
  0x14   :  { %v1046_v2 = vld [vmem:[#allocation2 + $0xe4] sm:$0xf]  ;;  %v876_v3 = vor.u32 %v1048_v1, %v875_v0  ;;  %v877_v4 = vld [vmem:[#allocation2 + $0xf0] sm:$0xf0]  ;;  %v883_v5 = vld [vmem:[#allocation2 + $0xe8] sm:$0xf] }
  0x15   :  { %v1049_v6 = vld [vmem:[#allocation2 + $0xf4] sm:$0xf0]  ;;  %v880_v7 = vor.u32 %v1046_v2, %v877_v4  ;;  %v1047_v9 = vld [vmem:[#allocation2 + $0xec] sm:$0xf]  ;;  %v885_v10 = vld [vmem:[#allocation2 + $0xf8] sm:$0xf0] }
  0x16   :  { %v884_v8 = vor.u32 %v1049_v6, %v883_v5  ;;  %v859_v11 = vld [vmem:[#allocation2 + $0xc0] sm:$0xf]  ;;  %295 = vmatpush.bf16.msra.mxu0 %v876_v3  ;;  %v888_v12 = vor.u32 %v1047_v9, %v885_v10  ;;  %v1044_v13 = vld [vmem:[#allocation2 + $0xcc] sm:$0xf0]  ;;  %v1042_v14 = vld [vmem:[#allocation2 + $0xc4] sm:$0xf] }
  0x17   :  { %v861_v15 = vld [vmem:[#allocation2 + $0xd0] sm:$0xf0]  ;;  %309 = vmatpush.bf16.msra.mxu1 %v880_v7  ;;  %v860_v16 = vor.u32 %v1044_v13, %v859_v11  ;;  %v867_v18 = vld [vmem:[#allocation2 + $0xc8] sm:$0xf]  ;;  %v1045_v19 = vld [vmem:[#allocation2 + $0xd4] sm:$0xf0] }
  0x18   :  { %323 = vmatpush.bf16.msra.mxu2 %v884_v8  ;;  %v864_v17 = vor.u32 %v1042_v14, %v861_v15  ;;  %v1043_v20 = vld [vmem:[#allocation2 + $0xcc] sm:$0xf]  ;;  %337 = vmatpush.bf16.msra.mxu3 %v888_v12  ;;  %v868_v21 = vor.u32 %v1045_v19, %v867_v18  ;;  %v869_v22 = vld [vmem:[#allocation2 + $0xd8] sm:$0xf0]  ;;  %v843_v23 = vld [vmem:[#allocation2 + $0xa0] sm:$0xf] }
  0x19   :  { %v1040_v24 = vld [vmem:[#allocation2 + $0xac] sm:$0xf0]  ;;  %v872_v25 = vor.u32 %v1043_v20, %v869_v22  ;;  %v1038_v26 = vld [vmem:[#allocation2 + $0xa4] sm:$0xf]  ;;  %v845_v27 = vld [vmem:[#allocation2 + $0xb0] sm:$0xf0] }
  0x1a   :  { %v851_v28 = vld [vmem:[#allocation2 + $0xa8] sm:$0xf]  ;;  %296 = vmatpush.bf16.msra.mxu0 %v860_v16  ;;  %v844_v29 = vor.u32 %v1040_v24, %v843_v23  ;;  %v1041_v30 = vld [vmem:[#allocation2 + $0xb4] sm:$0xf0]  ;;  %v1039_v31 = vld [vmem:[#allocation2 + $0xac] sm:$0xf]  ;;  %v848_v33 = vor.u32 %v1038_v26, %v845_v27 }
  0x1b   :  { %v853_v32 = vld [vmem:[#allocation2 + $0xb8] sm:$0xf0]  ;;  %310 = vmatpush.bf16.msra.mxu1 %v864_v17  ;;  %v852_v34 = vor.u32 %v1041_v30, %v851_v28  ;;  %v827_v35 = vld [vmem:[#allocation2 + $0x80] sm:$0xf]  ;;  %v1036_v36 = vld [vmem:[#allocation2 + $0x8c] sm:$0xf0] }
  0x1c   :  { %324 = vmatpush.bf16.msra.mxu2 %v868_v21  ;;  %v1034_v37 = vld [vmem:[#allocation2 + $0x84] sm:$0xf]  ;;  %338 = vmatpush.bf16.msra.mxu3 %v872_v25  ;;  %v856_v38 = vor.u32 %v1039_v31, %v853_v32  ;;  %v829_v39 = vld [vmem:[#allocation2 + $0x90] sm:$0xf0]  ;;  %v835_v40 = vld [vmem:[#allocation2 + $0x88] sm:$0xf]  ;;  %v828_v44 = vor.u32 %v1036_v36, %v827_v35 }
  0x1d   :  { %v1037_v41 = vld [vmem:[#allocation2 + $0x94] sm:$0xf0]  ;;  %v1035_v42 = vld [vmem:[#allocation2 + $0x8c] sm:$0xf]  ;;  %v837_v43 = vld [vmem:[#allocation2 + $0x98] sm:$0xf0]  ;;  %v832_v45 = vor.u32 %v1034_v37, %v829_v39 }
  0x1e   :  { %297 = vmatpush.bf16.msra.mxu0 %v844_v29  ;;  %v836_v46 = vor.u32 %v1037_v41, %v835_v40  ;;  %v811_v47 = vld [vmem:[#allocation2 + $0x60] sm:$0xf]  ;;  %v1032_v48 = vld [vmem:[#allocation2 + $0x6c] sm:$0xf0]  ;;  %v1030_v49 = vld [vmem:[#allocation2 + $0x64] sm:$0xf]  ;;  %v840_v50 = vor.u32 %v1035_v42, %v837_v43 }
  0x1f   :  { %311 = vmatpush.bf16.msra.mxu1 %v848_v33  ;;  %v813_v51 = vld [vmem:[#allocation2 + $0x70] sm:$0xf0]  ;;  %v819_v52 = vld [vmem:[#allocation2 + $0x68] sm:$0xf]  ;;  %v1033_v53 = vld [vmem:[#allocation2 + $0x74] sm:$0xf0]  ;;  %v812_v56 = vor.u32 %v1032_v48, %v811_v47 }
  0x20   :  { %325 = vmatpush.bf16.msra.mxu2 %v852_v34  ;;  %339 = vmatpush.bf16.msra.mxu3 %v856_v38  ;;  %v1031_v54 = vld [vmem:[#allocation2 + $0x6c] sm:$0xf]  ;;  %v821_v55 = vld [vmem:[#allocation2 + $0x78] sm:$0xf0]  ;;  %v816_v57 = vor.u32 %v1030_v49, %v813_v51  ;;  %v820_v58 = vor.u32 %v1033_v53, %v819_v52  ;;  %v795_v59 = vld [vmem:[#allocation2 + $0x40] sm:$0xf] }
  0x21   :  { %v1028_v60 = vld [vmem:[#allocation2 + $0x4c] sm:$0xf0]  ;;  %v1026_v61 = vld [vmem:[#allocation2 + $0x44] sm:$0xf]  ;;  %v824_v62 = vor.u32 %v1031_v54, %v821_v55  ;;  %v797_v63 = vld [vmem:[#allocation2 + $0x50] sm:$0xf0] }
  0x22   :  { %298 = vmatpush.bf16.msra.mxu0 %v828_v44  ;;  %v803_v0 = vld [vmem:[#allocation2 + $0x48] sm:$0xf]  ;;  %v1029_v1 = vld [vmem:[#allocation2 + $0x54] sm:$0xf0]  ;;  %v1027_v2 = vld [vmem:[#allocation2 + $0x4c] sm:$0xf]  ;;  %v796_v4 = vor.u32 %v1028_v60, %v795_v59  ;;  %v800_v5 = vor.u32 %v1026_v61, %v797_v63 }
  0x23   :  { %312 = vmatpush.bf16.msra.mxu1 %v832_v45  ;;  %v805_v3 = vld [vmem:[#allocation2 + $0x58] sm:$0xf0]  ;;  %v804_v6 = vor.u32 %v1029_v1, %v803_v0  ;;  %v779_v7 = vld [vmem:[#allocation2 + $0x20] sm:$0xf]  ;;  %v1024_v8 = vld [vmem:[#allocation2 + $0x2c] sm:$0xf0] }
  0x24   :  { %326 = vmatpush.bf16.msra.mxu2 %v836_v46  ;;  %340 = vmatpush.bf16.msra.mxu3 %v840_v50  ;;  %v1022_v9 = vld [vmem:[#allocation2 + $0x24] sm:$0xf]  ;;  %v808_v10 = vor.u32 %v1027_v2, %v805_v3  ;;  %v781_v11 = vld [vmem:[#allocation2 + $0x30] sm:$0xf0]  ;;  %v787_v12 = vld [vmem:[#allocation2 + $0x28] sm:$0xf]  ;;  %v780_v16 = vor.u32 %v1024_v8, %v779_v7 }
  0x25   :  { %v1025_v13 = vld [vmem:[#allocation2 + $0x34] sm:$0xf0]  ;;  %v1023_v14 = vld [vmem:[#allocation2 + $0x2c] sm:$0xf]  ;;  %v789_v15 = vld [vmem:[#allocation2 + $0x38] sm:$0xf0]  ;;  %v784_v17 = vor.u32 %v1022_v9, %v781_v11 }
  0x26   :  { %299 = vmatpush.bf16.msra.mxu0 %v812_v56  ;;  %v788_v18 = vor.u32 %v1025_v13, %v787_v12  ;;  %v763_v19 = vld [vmem:[#allocation2] sm:$0xf]  ;;  %v1020_v20 = vld [vmem:[#allocation2 + $0xc] sm:$0xf0]  ;;  %v1018_v21 = vld [vmem:[#allocation2 + $0x4] sm:$0xf]  ;;  %v792_v22 = vor.u32 %v1023_v14, %v789_v15 }
  0x27   :  { %313 = vmatpush.bf16.msra.mxu1 %v816_v57  ;;  %v765_v23 = vld [vmem:[#allocation2 + $0x10] sm:$0xf0]  ;;  %v771_v24 = vld [vmem:[#allocation2 + $0x8] sm:$0xf]  ;;  %v1021_v25 = vld [vmem:[#allocation2 + $0x14] sm:$0xf0]  ;;  %v764_v28 = vor.u32 %v1020_v20, %v763_v19 }
  0x28   :  { %327 = vmatpush.bf16.msra.mxu2 %v820_v58  ;;  %341 = vmatpush.bf16.msra.mxu3 %v824_v62  ;;  %v1019_v26 = vld [vmem:[#allocation2 + $0xc] sm:$0xf]  ;;  %v773_v27 = vld [vmem:[#allocation2 + $0x18] sm:$0xf0]  ;;  %v768_v29 = vor.u32 %v1018_v21, %v765_v23  ;;  %v772_v30 = vor.u32 %v1021_v25, %v771_v24  ;;  %v1017_v33 = vld [vmem:[%s1283_s0] sm:$0xff] }
  0x29   :  { %v776_v31 = vor.u32 %v1019_v26, %v773_v27  ;;  %v1057_v32 = vld [vmem:[#allocation4 + $0x38] sm:$0xff]  ;;  %v1056_v36 = vld [vmem:[#allocation4 + $0x30] sm:$0xff]  ;;  %v1055_v40 = vld [vmem:[#allocation4 + $0x28] sm:$0xff] }
  0x2a   :  { %300 = vmatpush.bf16.msra.mxu0 %v796_v4  ;;  %v1065_v34 = vld [vmem:[#allocation4 + $0x78] sm:$0xff]  ;;  %v1064_v38 = vld [vmem:[#allocation4 + $0x70] sm:$0xff]  ;;  %v1063_v42 = vld [vmem:[#allocation4 + $0x68] sm:$0xff] }
  0x2b   :  { %314 = vmatpush.bf16.msra.mxu1 %v800_v5  ;;  %v1073_v35 = vld [vmem:[#allocation4 + $0xb8] sm:$0xff]  ;;  %v1072_v39 = vld [vmem:[#allocation4 + $0xb0] sm:$0xff]  ;;  %v1071_v43 = vld [vmem:[#allocation4 + $0xa8] sm:$0xff] }
  0x2c   :  { %328 = vmatpush.bf16.msra.mxu2 %v804_v6  ;;  %342 = vmatpush.bf16.msra.mxu3 %v808_v10  ;;  %v1081_v37 = vld [vmem:[#allocation4 + $0xf8] sm:$0xff]  ;;  %v1080_v41 = vld [vmem:[#allocation4 + $0xf0] sm:$0xff]  ;;  %v1054_v44 = vld [vmem:[#allocation4 + $0x20] sm:$0xff] }
  0x2d   :  { %v1079_v45 = vld [vmem:[#allocation4 + $0xe8] sm:$0xff]  ;;  %v1062_v46 = vld [vmem:[#allocation4 + $0x60] sm:$0xff]  ;;  %v1053_v47 = vld [vmem:[#allocation4 + $0x18] sm:$0xff] }
  0x2e   :  { %301 = vmatpush.bf16.msra.mxu0 %v780_v16  ;;  %v1061_v48 = vld [vmem:[#allocation4 + $0x58] sm:$0xff]  ;;  %v1070_v49 = vld [vmem:[#allocation4 + $0xa0] sm:$0xff]  ;;  %v1052_v51 = vld [vmem:[#allocation4 + $0x10] sm:$0xff] }
  0x2f   :  { %315 = vmatpush.bf16.msra.mxu1 %v784_v17  ;;  %v1078_v50 = vld [vmem:[#allocation4 + $0xe0] sm:$0xff]  ;;  %v1060_v52 = vld [vmem:[#allocation4 + $0x50] sm:$0xff]  ;;  %v1069_v53 = vld [vmem:[#allocation4 + $0x98] sm:$0xff] }
  0x30   :  { %329 = vmatpush.bf16.msra.mxu2 %v788_v18  ;;  %343 = vmatpush.bf16.msra.mxu3 %v792_v22  ;;  %v1077_v54 = vld [vmem:[#allocation4 + $0xd8] sm:$0xff]  ;;  %v1051_v55 = vld [vmem:[#allocation4 + $0x8] sm:$0xff]  ;;  %v1068_v57 = vld [vmem:[#allocation4 + $0x90] sm:$0xff] }
  0x31   :  { %v1059_v56 = vld [vmem:[#allocation4 + $0x48] sm:$0xff]  ;;  %v1076_v58 = vld [vmem:[#allocation4 + $0xd0] sm:$0xff]  ;;  %v1050_v59 = vld [vmem:[#allocation4] sm:$0xff] }
  0x32   :  { %302 = vmatpush.bf16.msra.mxu0 %v764_v28  ;;  %v1058_v60 = vld [vmem:[#allocation4 + $0x40] sm:$0xff]  ;;  %v1067_v61 = vld [vmem:[#allocation4 + $0x88] sm:$0xff] }
  0x33   :  { %316 = vmatpush.bf16.msra.mxu1 %v768_v29  ;;  %v1075_v62 = vld [vmem:[#allocation4 + $0xc8] sm:$0xff]  ;;  %v1066_v63 = vld [vmem:[#allocation4 + $0x80] sm:$0xff] }
  0x34   :  { %330 = vmatpush.bf16.msra.mxu2 %v772_v30  ;;  %344 = vmatpush.bf16.msra.mxu3 %v776_v31  ;;  %v1074_v0 = vld [vmem:[#allocation4 + $0xc0] sm:$0xff] }
  0x35   :  { %303 = vmatmul.bf16.vlgmr.msra.gmra.mxu0 %v1017_v33  ;;  %v119_v1 = vld [vmem:[%s1285_s2] sm:$0xf] }
  0x36   :  { %623 = vmatpush.bf16.msrb.mxu0 %v1057_v32  ;;  %317 = vmatmul.bf16.vlgmr.msra.gmra.mxu1 %v1017_v33  ;;  %v121_v3 = vperm.slane %v119_v1, 0  ;;  %v122_v5 = vperm.slane %v119_v1, 1  ;;  %v123_v15 = vperm.slane %v119_v1, 2  ;;  %v124_v17 = vperm.slane %v119_v1, 3 }
  0x37   :  { %637 = vmatpush.bf16.msrb.mxu1 %v1065_v34  ;;  %331 = vmatmul.bf16.vlgmr.msra.gmra.mxu2 %v1017_v33 }
  0x38   :  { %345 = vmatmul.bf16.vlgmr.msra.gmra.mxu3 %v1017_v33  ;;  %651 = vmatpush.bf16.msrb.mxu2 %v1073_v35  ;;  %v1096_v35 = vld [vmem:[%s1287_s4] ss:$0 sm:$0xff] }
  0x39   :  { %665 = vmatpush.bf16.msrb.mxu3 %v1081_v37 }
  0x3a   :  { %624 = vmatpush.bf16.msrb.mxu0 %v1056_v36 }
  0x3b   :  { %638 = vmatpush.bf16.msrb.mxu1 %v1064_v38  ;;  %v85_v38 = vld [vmem:[%s1283_s0] sm:$0xff]  }
  0x3c   :  { %652 = vmatpush.bf16.msrb.mxu2 %v1072_v39 }
  0x3d   :  { %666 = vmatpush.bf16.msrb.mxu3 %v1080_v41 }
  0x3e   :  { %625 = vmatpush.bf16.msrb.mxu0 %v1055_v40 }
  0x3f   :  { %639 = vmatpush.bf16.msrb.mxu1 %v1063_v42 }
  0x40   :  { %653 = vmatpush.bf16.msrb.mxu2 %v1071_v43 }
  0x41   :  { %667 = vmatpush.bf16.msrb.mxu3 %v1079_v45 }
  0x42   :  { %626 = vmatpush.bf16.msrb.mxu0 %v1054_v44  ;;  %v679_v44 = vunpack.c.l.bf16 %v85_v38 }
  0x43   :  { %640 = vmatpush.bf16.msrb.mxu1 %v1062_v46 }
  0x44   :  { %654 = vmatpush.bf16.msrb.mxu2 %v1070_v49 }
  0x45   :  { %668 = vmatpush.bf16.msrb.mxu3 %v1078_v50 }
  0x46   :  { %627 = vmatpush.bf16.msrb.mxu0 %v1053_v47 }
  0x47   :  { %641 = vmatpush.bf16.msrb.mxu1 %v1061_v48 }
  0x48   :  { %655 = vmatpush.bf16.msrb.mxu2 %v1069_v53  ;;  %v680_v53 = vunpack.c.h.bf16 %v85_v38 }
  0x49   :  { %669 = vmatpush.bf16.msrb.mxu3 %v1077_v54 }
  0x4a   :  { %628 = vmatpush.bf16.msrb.mxu0 %v1052_v51 }
  0x4b   :  { %642 = vmatpush.bf16.msrb.mxu1 %v1060_v52 }
  0x4c   :  { %656 = vmatpush.bf16.msrb.mxu2 %v1068_v57 }
  0x4d   :  { %670 = vmatpush.bf16.msrb.mxu3 %v1076_v58  ;;  %v1215_v58 = vmov 128.0  }
  0x4e   :  { %629 = vmatpush.bf16.msrb.mxu0 %v1051_v55  ;;  %1099 = vrcp.f32 %v1215_v58 }
  0x4f   :  { %643 = vmatpush.bf16.msrb.mxu1 %v1059_v56 }
  0x50   :  { %657 = vmatpush.bf16.msrb.mxu2 %v1067_v61 }
  0x51   :  { %671 = vmatpush.bf16.msrb.mxu3 %v1075_v62 }
  0x52   :  { %630 = vmatpush.bf16.msrb.mxu0 %v1050_v59 }
  0x53   :  { %644 = vmatpush.bf16.msrb.mxu1 %v1058_v60 }
  0x54   :  { %658 = vmatpush.bf16.msrb.mxu2 %v1066_v63  ;;  %v1100_v59 = vpop.eup %1099 }
  0x55   :  { %672 = vmatpush.bf16.msrb.mxu3 %v1074_v0  ;;  %v688_v60 = vmul.f32 128.0, %v1100_v59  ;;  %vm692_vm0 = vweird.f32 %v1100_v59 }
  0x57   :  { %v689_v61 = vsub.f32 1.0, %v688_v60 }
  0x59   :  { %v690_v62 = vmul.f32 %v1100_v59, %v689_v61 }
  0x5b   :  { %v691_v63 = vadd.f32 %v1100_v59, %v690_v62 }
  0x5d   :  { %v693_v0 = vsel %vm692_vm0, %v1100_v59, %v691_v63 }
  0xb2   :  { %v304_v2 = vpop.f32.mrf.mxu0 }
  0xb3   :  { %v318_v4 = vpop.f32.mrf.mxu1  ;;  %v305_v6 = vadd.f32 %v304_v2, %v121_v3 }
  0xb4   :  { %v319_v7 = vadd.f32 %v318_v4, %v122_v5 }
  0xb5   :  { %v351_v11 = vmax.f32 %v305_v6, 0.0 }
  0xb6   :  { %v352_v14 = vmax.f32 %v319_v7, 0.0 }
  0xba   :  { %v332_v8 = vpop.f32.mrf.mxu2  ;;  %v306_v10 = vpop.f32.mrf.mxu0 }
  0xbb   :  { %v346_v9 = vpop.f32.mrf.mxu3  ;;  %v307_v12 = vadd.f32 %v306_v10, %v121_v3  ;;  %v320_v13 = vpop.f32.mrf.mxu1  ;;  %v333_v21 = vadd.f32 %v332_v8, %v123_v15 }
  0xbc   :  { %v321_v16 = vadd.f32 %v320_v13, %v122_v5  ;;  %v347_v23 = vadd.f32 %v346_v9, %v124_v17 }
  0xbd   :  { %v355_v18 = vmax.f32 %v307_v12, 0.0  ;;  %v353_v28 = vmax.f32 %v333_v21, 0.0 }
  0xbe   :  { %v356_v19 = vmax.f32 %v321_v16, 0.0  ;;  %v354_v30 = vmax.f32 %v347_v23, 0.0 }
  0xbf   :  { %v359_v20 = vpack.c.bf16 %v355_v18, %v351_v11 }
  0xc0   :  { %v360_v22 = vpack.c.bf16 %v356_v19, %v352_v14 }
  0xc1   :  { %631 = vmatmul.bf16.vlgmr.msrb.gmra.mxu0 %v359_v20 }
  0xc2   :  { %v334_v24 = vpop.f32.mrf.mxu2  ;;  %645 = vmatmul.bf16.vlgmr.msrb.gmra.mxu1 %v360_v22 }
  0xc3   :  { %v335_v25 = vadd.f32 %v334_v24, %v123_v15  ;;  %v348_v26 = vpop.f32.mrf.mxu3 }
  0xc4   :  { %v349_v27 = vadd.f32 %v348_v26, %v124_v17 }
  0xc5   :  { %v357_v29 = vmax.f32 %v335_v25, 0.0 }
  0xc6   :  { %v358_v31 = vmax.f32 %v349_v27, 0.0 }
  0xc7   :  { %v361_v32 = vpack.c.bf16 %v357_v29, %v353_v28  ;;  %v1097_v28 = vld [vmem:[#allocation6] ss:$0 sm:$0xff] }
  0xc8   :  { %v362_v33 = vpack.c.bf16 %v358_v31, %v354_v30 }
  0xc9   :  { %659 = vmatmul.bf16.vlgmr.msrb.gmra.mxu2 %v361_v32 }
  0xca   :  { %673 = vmatmul.bf16.vlgmr.msrb.gmra.mxu3 %v362_v33  ;;  %v1098_v33 = vld [vmem:[#allocation7] ss:$0 sm:$0xff] }
 0x13e   :  { %v632_v34 = vpop.f32.mrf.mxu0 }
 0x13f   :  { %v633_v36 = vadd.f32 %v1096_v35, %v632_v34  ;;  %v646_v37 = vpop.f32.mrf.mxu1 }
 0x141   :  { %v647_v39 = vadd.f32 %v646_v37, %v633_v36 }
 0x146   :  { %v634_v40 = vpop.f32.mrf.mxu0 }
 0x147   :  { %v635_v45 = vadd.f32 %v1096_v35, %v634_v40  ;;  %v648_v48 = vpop.f32.mrf.mxu1 }
 0x149   :  { %v649_v49 = vadd.f32 %v648_v48, %v635_v45 }
 0x14c   :  { %v660_v41 = vpop.f32.mrf.mxu2 }
 0x14d   :  { %v661_v42 = vadd.f32 %v660_v41, %v647_v39  ;;  %v674_v43 = vpop.f32.mrf.mxu3 }
 0x14f   :  { %v675_v46 = vadd.f32 %v674_v43, %v661_v42 }
 0x151   :  { %v681_v47 = vadd.f32 %v679_v44, %v675_v46 }
 0x153   :  { %683 = vadd.xlane.f32.xlu0 %v681_v47  ;;  %v696_v50 = vmul.f32 %v681_v47, %v681_v47 }
 0x154   :  { %v662_v51 = vpop.f32.mrf.mxu2 }
 0x155   :  { %v663_v52 = vadd.f32 %v662_v51, %v649_v49  ;;  %698 = vadd.xlane.f32.xlu1 %v696_v50  ;;  %v676_v54 = vpop.f32.mrf.mxu3 }
 0x157   :  { %v677_v55 = vadd.f32 %v676_v54, %v663_v52 }
 0x159   :  { %v682_v56 = vadd.f32 %v680_v53, %v677_v55 }
 0x15b   :  { %685 = vadd.xlane.f32.xlu0 %v682_v56  ;;  %v697_v57 = vmul.f32 %v682_v56, %v682_v56 }
 0x15d   :  { %700 = vadd.xlane.f32.xlu1 %v697_v57 }
 0x1c6   :  { %v684_v1 = vpop.xlane.xlu0 %683 }
 0x1c7   :  { %v694_v2 = vmul.f32 %v693_v0, %v684_v1 }
 0x1c8   :  { %v699_v3 = vpop.xlane.xlu1 %698 }
 0x1c9   :  { %v704_v4 = vmul.f32 %v694_v2, %v694_v2  ;;  %v702_v5 = vmul.f32 %v699_v3, %v693_v0  ;;  %v708_v26 = vsub.f32 %v681_v47, %v694_v2 }
 0x1cb   :  { %v706_v6 = vsub.f32 %v702_v5, %v704_v4 }
 0x1cd   :  { %v710_v7 = vadd.f32 1e-05, %v706_v6 }
 0x1ce   :  { %v686_v8 = vpop.xlane.xlu0 %685 }
 0x1cf   :  { %1101 = vrsqrt.f32 %v710_v7  ;;  %v695_v9 = vmul.f32 %v693_v0, %v686_v8  ;;  %vm718_vm2 = vweird.f32 %v710_v7 }
 0x1d0   :  { %v701_v10 = vpop.xlane.xlu1 %700 }
 0x1d1   :  { %v705_v11 = vmul.f32 %v695_v9, %v695_v9  ;;  %v703_v12 = vmul.f32 %v701_v10, %v693_v0  ;;  %v709_v31 = vsub.f32 %v682_v56, %v695_v9 }
 0x1d3   :  { %v707_v13 = vsub.f32 %v703_v12, %v705_v11 }
 0x1d5   :  { %v1102_v14 = vpop.eup %1101  ;;  %v711_v15 = vadd.f32 1e-05, %v707_v13 }
 0x1d6   :  { %v713_v16 = vmul.f32 %v1102_v14, %v710_v7  ;;  %vm719_vm1 = vweird.f32 %v1102_v14 }
 0x1d7   :  { %1103 = vrsqrt.f32 %v711_v15  ;;  %vm720_vm3 = vmor %vm718_vm2, %vm719_vm1  ;;  %vm728_vm5 = vweird.f32 %v711_v15 }
 0x1d8   :  { %v714_v17 = vmul.f32 %v1102_v14, %v713_v16 }
 0x1da   :  { %v715_v18 = vmul.f32 0.5, %v714_v17 }
 0x1dc   :  { %v716_v19 = vsub.f32 1.5, %v715_v18 }
 0x1dd   :  { %v1104_v20 = vpop.eup %1103 }
 0x1de   :  { %v717_v21 = vmul.f32 %v1102_v14, %v716_v19  ;;  %v723_v22 = vmul.f32 %v1104_v20, %v711_v15  ;;  %vm729_vm4 = vweird.f32 %v1104_v20 }
 0x1df   :  { %vm730_vm6 = vmor %vm728_vm5, %vm729_vm4 }
 0x1e0   :  { %v724_v23 = vmul.f32 %v1104_v20, %v723_v22  ;;  %v721_v24 = vsel %vm720_vm3, %v1102_v14, %v717_v21 }
 0x1e1   :  { %v732_v29 = vmul.f32 %v721_v24, %v708_v26 }
 0x1e2   :  { %v725_v25 = vmul.f32 0.5, %v724_v23 }
 0x1e3   :  { %v738_v34 = vmul.f32 %v1097_v28, %v732_v29 }
 0x1e4   :  { %v726_v27 = vsub.f32 1.5, %v725_v25 }
 0x1e5   :  { %v744_v37 = vadd.f32 %v1098_v33, %v738_v34 }
 0x1e6   :  { %v727_v30 = vmul.f32 %v1104_v20, %v726_v27 }
 0x1e8   :  { %v731_v32 = vsel %vm730_vm6, %v1104_v20, %v727_v30 }
 0x1e9   :  { %v733_v35 = vmul.f32 %v731_v32, %v709_v31 }
 0x1eb   :  { %v739_v36 = vmul.f32 %v1097_v28, %v733_v35 }
 0x1ed   :  { %v745_v38 = vadd.f32 %v1098_v33, %v739_v36 }
 0x1ef   :  { %v1085_v39 = vpack.c.bf16 %v745_v38, %v744_v37 }
 0x1f1   :  { %1086 = vst [vmem:[%s1290_s7] sm:$0xff] %v1085_v39  }
 0x1f2   :  { %754 = vsyncpa [#allocation3], 1 }
 0x1f3   :  { %755 = vsyncpa [#allocation5], 1 }
 0x1f4   :  { %756 = vsyncpa [#allocation8], 1 }

// kernel: transformer_fwd.17
= control target key start
LH: loop header
LB: loop body
LE: loop exit
PB: predicated region body
PF: predicated region fallthrough
CT: control target
= control target key end

     0   :  { %12 = vsyncpa [#allocation3], 0  ;;  %s1322_s0 = inlined_call_operand.vmem [shape: bf16[16,128], index: 0, kind: input, shape index: {}]   ;;  %s1323_s1 = inlined_call_operand.hbm [shape: bf16[128,512], index: 1, kind: input, shape index: {}]   ;;  %s1324_s2 = inlined_call_operand.vmem [shape: f32[1,512], index: 2, kind: input, shape index: {}]   ;;  %s1325_s3 = inlined_call_operand.hbm [shape: bf16[512,128], index: 3, kind: input, shape index: {}]   ;;  %s1326_s4 = inlined_call_operand.hbm [shape: f32[1,128], index: 4, kind: input, shape index: {}]   ;;  %s1327_s5 = inlined_call_operand.hbm [shape: f32[1,128], index: 5, kind: input, shape index: {}]   ;;  %s1328_s6 = inlined_call_operand.hbm [shape: f32[1,128], index: 6, kind: input, shape index: {}]   ;;  %s1329_s7 = inlined_call_operand.vmem [shape: bf16[16,128], index: 7, kind: output, shape index: {}]  }
   0x1   :  { %13 = vsyncpa [#allocation5], 0  ;;  %s36_s26 = sshll.u32 %s1325_s3, 4  ;;  %s37_s26 = int_to_ptr.hbm [resolvable:$true] %s36_s26 }
   0x2   :  { %14 = vsyncpa [#allocation8], 0  ;;  %s1245_s27 = smov [#allocation4]   ;;  %s61_s8 = sshll.u32 %s1327_s5, 4  ;;  %s62_s8 = int_to_ptr.hbm [resolvable:$true] %s61_s8 }
   0x3   :  { %s38_s28 = sshll.u32 %s1245_s27, 4  ;;  %s1246_s9 = smov 64   ;;  %s39_s28 = int_to_ptr.vmem [resolvable:$true] %s38_s28 }
   0x4   :  { %s1247_s10 = smov 4   ;;  %s1248_s11 = smov [#allocation7]  }
   0x5   :  { %44 = dma.hbm_to_vmem [thread:$0]  %s37_s26, 4096, %s39_s28, [#allocation5], %s1246_s9, %s1246_s9, %s1247_s10  }
   0x6   :  { %s63_s12 = sshll.u32 %s1248_s11, 4  ;;  %s21_s15 = sshll.u32 %s1323_s1, 4  ;;  %s64_s12 = int_to_ptr.vmem [resolvable:$true] %s63_s12  ;;  %s22_s15 = int_to_ptr.hbm [resolvable:$true] %s21_s15 }
   0x7   :  { %66 = dma.hbm_to_vmem [thread:$0]  %s62_s8, 16, %s64_s12, [#allocation8]  }
   0x8   :  { %s1249_s3 = smov [#allocation2]   ;;  %s50_s5 = sshll.u32 %s1326_s4, 4  ;;  %s51_s5 = int_to_ptr.hbm [resolvable:$true] %s50_s5 }
   0x9   :  { %s23_s16 = sshll.u32 %s1249_s3, 4  ;;  %s1250_s19 = smov 256   ;;  %s24_s16 = int_to_ptr.vmem [resolvable:$true] %s23_s16 }
   0xa   :  { %s1251_s20 = smov 16   ;;  %s1252_s21 = smov [#allocation6]  }
   0xb   :  { %29 = dma.hbm_to_vmem [thread:$0]  %s22_s15, 4096, %s24_s16, [#allocation3], %s1250_s19, %s1250_s19, %s1251_s20  }
   0xc   :  { %s52_s22 = sshll.u32 %s1252_s21, 4  ;;  %s72_s1 = sshll.u32 %s1328_s6, 4  ;;  %s53_s22 = int_to_ptr.vmem [resolvable:$true] %s52_s22  ;;  %s73_s1 = int_to_ptr.hbm [resolvable:$true] %s72_s1 }
   0xd   :  { %55 = dma.hbm_to_vmem [thread:$0]  %s51_s5, 16, %s53_s22, [#allocation5]  }
   0xe   :  { %s1253_s25 = smov [#allocation9]  }
   0xf   :  { %s74_s26 = sshll.u32 %s1253_s25, 4  ;;  %s75_s26 = int_to_ptr.vmem [resolvable:$true] %s74_s26 }
  0x10   :  { %77 = dma.hbm_to_vmem [thread:$0]  %s73_s1, 16, %s75_s26, [#allocation8]  }
  0x11   :  { %1239 = dma.done.wait [#allocation3], 4096  }
  0x12   :  { %1240 = vsyncadd [#allocation3], 4294963200 }
  0x13   :  { %1241 = dma.done.wait [#allocation5], 4112  }
  0x14   :  { %1242 = vsyncadd [#allocation5], 4294963184 }
  0x15   :  { %1243 = dma.done.wait [#allocation8], 32  }
  0x16   :  { %1244 = vsyncadd [#allocation8], 4294967264  ;;  %v888_v0 = vld [vmem:[#allocation2 + $0xe0] sm:$0xf]  ;;  %v1061_v1 = vld [vmem:[#allocation2 + $0xec] sm:$0xf0] }
  0x17   :  { %v1059_v2 = vld [vmem:[#allocation2 + $0xe4] sm:$0xf]  ;;  %v889_v3 = vor.u32 %v1061_v1, %v888_v0  ;;  %v890_v4 = vld [vmem:[#allocation2 + $0xf0] sm:$0xf0]  ;;  %v896_v5 = vld [vmem:[#allocation2 + $0xe8] sm:$0xf] }
  0x18   :  { %v1062_v6 = vld [vmem:[#allocation2 + $0xf4] sm:$0xf0]  ;;  %v893_v7 = vor.u32 %v1059_v2, %v890_v4  ;;  %v1060_v9 = vld [vmem:[#allocation2 + $0xec] sm:$0xf]  ;;  %v898_v10 = vld [vmem:[#allocation2 + $0xf8] sm:$0xf0] }
  0x19   :  { %v897_v8 = vor.u32 %v1062_v6, %v896_v5  ;;  %v872_v11 = vld [vmem:[#allocation2 + $0xc0] sm:$0xf]  ;;  %308 = vmatpush.bf16.msra.mxu0 %v889_v3  ;;  %v901_v12 = vor.u32 %v1060_v9, %v898_v10  ;;  %v1057_v13 = vld [vmem:[#allocation2 + $0xcc] sm:$0xf0]  ;;  %v1055_v14 = vld [vmem:[#allocation2 + $0xc4] sm:$0xf] }
  0x1a   :  { %v874_v15 = vld [vmem:[#allocation2 + $0xd0] sm:$0xf0]  ;;  %322 = vmatpush.bf16.msra.mxu1 %v893_v7  ;;  %v873_v16 = vor.u32 %v1057_v13, %v872_v11  ;;  %v880_v18 = vld [vmem:[#allocation2 + $0xc8] sm:$0xf]  ;;  %v1058_v19 = vld [vmem:[#allocation2 + $0xd4] sm:$0xf0] }
  0x1b   :  { %336 = vmatpush.bf16.msra.mxu2 %v897_v8  ;;  %v877_v17 = vor.u32 %v1055_v14, %v874_v15  ;;  %v1056_v20 = vld [vmem:[#allocation2 + $0xcc] sm:$0xf]  ;;  %350 = vmatpush.bf16.msra.mxu3 %v901_v12  ;;  %v881_v21 = vor.u32 %v1058_v19, %v880_v18  ;;  %v882_v22 = vld [vmem:[#allocation2 + $0xd8] sm:$0xf0]  ;;  %v856_v23 = vld [vmem:[#allocation2 + $0xa0] sm:$0xf] }
  0x1c   :  { %v1053_v24 = vld [vmem:[#allocation2 + $0xac] sm:$0xf0]  ;;  %v885_v25 = vor.u32 %v1056_v20, %v882_v22  ;;  %v1051_v26 = vld [vmem:[#allocation2 + $0xa4] sm:$0xf]  ;;  %v858_v27 = vld [vmem:[#allocation2 + $0xb0] sm:$0xf0] }
  0x1d   :  { %v864_v28 = vld [vmem:[#allocation2 + $0xa8] sm:$0xf]  ;;  %309 = vmatpush.bf16.msra.mxu0 %v873_v16  ;;  %v857_v29 = vor.u32 %v1053_v24, %v856_v23  ;;  %v1054_v30 = vld [vmem:[#allocation2 + $0xb4] sm:$0xf0]  ;;  %v1052_v31 = vld [vmem:[#allocation2 + $0xac] sm:$0xf]  ;;  %v861_v33 = vor.u32 %v1051_v26, %v858_v27 }
  0x1e   :  { %v866_v32 = vld [vmem:[#allocation2 + $0xb8] sm:$0xf0]  ;;  %323 = vmatpush.bf16.msra.mxu1 %v877_v17  ;;  %v865_v34 = vor.u32 %v1054_v30, %v864_v28  ;;  %v840_v35 = vld [vmem:[#allocation2 + $0x80] sm:$0xf]  ;;  %v1049_v36 = vld [vmem:[#allocation2 + $0x8c] sm:$0xf0] }
  0x1f   :  { %337 = vmatpush.bf16.msra.mxu2 %v881_v21  ;;  %v1047_v37 = vld [vmem:[#allocation2 + $0x84] sm:$0xf]  ;;  %351 = vmatpush.bf16.msra.mxu3 %v885_v25  ;;  %v869_v38 = vor.u32 %v1052_v31, %v866_v32  ;;  %v842_v39 = vld [vmem:[#allocation2 + $0x90] sm:$0xf0]  ;;  %v848_v40 = vld [vmem:[#allocation2 + $0x88] sm:$0xf]  ;;  %v841_v44 = vor.u32 %v1049_v36, %v840_v35 }
  0x20   :  { %v1050_v41 = vld [vmem:[#allocation2 + $0x94] sm:$0xf0]  ;;  %v1048_v42 = vld [vmem:[#allocation2 + $0x8c] sm:$0xf]  ;;  %v850_v43 = vld [vmem:[#allocation2 + $0x98] sm:$0xf0]  ;;  %v845_v45 = vor.u32 %v1047_v37, %v842_v39 }
  0x21   :  { %310 = vmatpush.bf16.msra.mxu0 %v857_v29  ;;  %v849_v46 = vor.u32 %v1050_v41, %v848_v40  ;;  %v824_v47 = vld [vmem:[#allocation2 + $0x60] sm:$0xf]  ;;  %v1045_v48 = vld [vmem:[#allocation2 + $0x6c] sm:$0xf0]  ;;  %v1043_v49 = vld [vmem:[#allocation2 + $0x64] sm:$0xf]  ;;  %v853_v50 = vor.u32 %v1048_v42, %v850_v43 }
  0x22   :  { %324 = vmatpush.bf16.msra.mxu1 %v861_v33  ;;  %v826_v51 = vld [vmem:[#allocation2 + $0x70] sm:$0xf0]  ;;  %v832_v52 = vld [vmem:[#allocation2 + $0x68] sm:$0xf]  ;;  %v1046_v53 = vld [vmem:[#allocation2 + $0x74] sm:$0xf0]  ;;  %v825_v56 = vor.u32 %v1045_v48, %v824_v47 }
  0x23   :  { %338 = vmatpush.bf16.msra.mxu2 %v865_v34  ;;  %352 = vmatpush.bf16.msra.mxu3 %v869_v38  ;;  %v1044_v54 = vld [vmem:[#allocation2 + $0x6c] sm:$0xf]  ;;  %v834_v55 = vld [vmem:[#allocation2 + $0x78] sm:$0xf0]  ;;  %v829_v57 = vor.u32 %v1043_v49, %v826_v51  ;;  %v833_v58 = vor.u32 %v1046_v53, %v832_v52  ;;  %v808_v59 = vld [vmem:[#allocation2 + $0x40] sm:$0xf] }
  0x24   :  { %v1041_v60 = vld [vmem:[#allocation2 + $0x4c] sm:$0xf0]  ;;  %v1039_v61 = vld [vmem:[#allocation2 + $0x44] sm:$0xf]  ;;  %v837_v62 = vor.u32 %v1044_v54, %v834_v55  ;;  %v810_v63 = vld [vmem:[#allocation2 + $0x50] sm:$0xf0] }
  0x25   :  { %311 = vmatpush.bf16.msra.mxu0 %v841_v44  ;;  %v816_v0 = vld [vmem:[#allocation2 + $0x48] sm:$0xf]  ;;  %v1042_v1 = vld [vmem:[#allocation2 + $0x54] sm:$0xf0]  ;;  %v1040_v2 = vld [vmem:[#allocation2 + $0x4c] sm:$0xf]  ;;  %v809_v4 = vor.u32 %v1041_v60, %v808_v59  ;;  %v813_v5 = vor.u32 %v1039_v61, %v810_v63 }
  0x26   :  { %325 = vmatpush.bf16.msra.mxu1 %v845_v45  ;;  %v818_v3 = vld [vmem:[#allocation2 + $0x58] sm:$0xf0]  ;;  %v817_v6 = vor.u32 %v1042_v1, %v816_v0  ;;  %v792_v7 = vld [vmem:[#allocation2 + $0x20] sm:$0xf]  ;;  %v1037_v8 = vld [vmem:[#allocation2 + $0x2c] sm:$0xf0] }
  0x27   :  { %339 = vmatpush.bf16.msra.mxu2 %v849_v46  ;;  %353 = vmatpush.bf16.msra.mxu3 %v853_v50  ;;  %v1035_v9 = vld [vmem:[#allocation2 + $0x24] sm:$0xf]  ;;  %v821_v10 = vor.u32 %v1040_v2, %v818_v3  ;;  %v794_v11 = vld [vmem:[#allocation2 + $0x30] sm:$0xf0]  ;;  %v800_v12 = vld [vmem:[#allocation2 + $0x28] sm:$0xf]  ;;  %v793_v16 = vor.u32 %v1037_v8, %v792_v7 }
  0x28   :  { %v1038_v13 = vld [vmem:[#allocation2 + $0x34] sm:$0xf0]  ;;  %v1036_v14 = vld [vmem:[#allocation2 + $0x2c] sm:$0xf]  ;;  %v802_v15 = vld [vmem:[#allocation2 + $0x38] sm:$0xf0]  ;;  %v797_v17 = vor.u32 %v1035_v9, %v794_v11 }
  0x29   :  { %312 = vmatpush.bf16.msra.mxu0 %v825_v56  ;;  %v801_v18 = vor.u32 %v1038_v13, %v800_v12  ;;  %v776_v19 = vld [vmem:[#allocation2] sm:$0xf]  ;;  %v1033_v20 = vld [vmem:[#allocation2 + $0xc] sm:$0xf0]  ;;  %v1031_v21 = vld [vmem:[#allocation2 + $0x4] sm:$0xf]  ;;  %v805_v22 = vor.u32 %v1036_v14, %v802_v15 }
  0x2a   :  { %326 = vmatpush.bf16.msra.mxu1 %v829_v57  ;;  %v778_v23 = vld [vmem:[#allocation2 + $0x10] sm:$0xf0]  ;;  %v784_v24 = vld [vmem:[#allocation2 + $0x8] sm:$0xf]  ;;  %v1034_v25 = vld [vmem:[#allocation2 + $0x14] sm:$0xf0]  ;;  %v777_v28 = vor.u32 %v1033_v20, %v776_v19 }
  0x2b   :  { %340 = vmatpush.bf16.msra.mxu2 %v833_v58  ;;  %354 = vmatpush.bf16.msra.mxu3 %v837_v62  ;;  %v1032_v26 = vld [vmem:[#allocation2 + $0xc] sm:$0xf]  ;;  %v786_v27 = vld [vmem:[#allocation2 + $0x18] sm:$0xf0]  ;;  %v781_v29 = vor.u32 %v1031_v21, %v778_v23  ;;  %v785_v30 = vor.u32 %v1034_v25, %v784_v24  ;;  %v1030_v33 = vld [vmem:[%s1322_s0] sm:$0xff] }
  0x2c   :  { %v789_v31 = vor.u32 %v1032_v26, %v786_v27  ;;  %v1070_v32 = vld [vmem:[#allocation4 + $0x38] sm:$0xff]  ;;  %v1069_v36 = vld [vmem:[#allocation4 + $0x30] sm:$0xff]  ;;  %v1068_v40 = vld [vmem:[#allocation4 + $0x28] sm:$0xff] }
  0x2d   :  { %313 = vmatpush.bf16.msra.mxu0 %v809_v4  ;;  %v1078_v34 = vld [vmem:[#allocation4 + $0x78] sm:$0xff]  ;;  %v1077_v38 = vld [vmem:[#allocation4 + $0x70] sm:$0xff]  ;;  %v1076_v42 = vld [vmem:[#allocation4 + $0x68] sm:$0xff] }
  0x2e   :  { %327 = vmatpush.bf16.msra.mxu1 %v813_v5  ;;  %v1086_v35 = vld [vmem:[#allocation4 + $0xb8] sm:$0xff]  ;;  %v1085_v39 = vld [vmem:[#allocation4 + $0xb0] sm:$0xff]  ;;  %v1084_v43 = vld [vmem:[#allocation4 + $0xa8] sm:$0xff] }
  0x2f   :  { %341 = vmatpush.bf16.msra.mxu2 %v817_v6  ;;  %355 = vmatpush.bf16.msra.mxu3 %v821_v10  ;;  %v1094_v37 = vld [vmem:[#allocation4 + $0xf8] sm:$0xff]  ;;  %v1093_v41 = vld [vmem:[#allocation4 + $0xf0] sm:$0xff]  ;;  %v1067_v44 = vld [vmem:[#allocation4 + $0x20] sm:$0xff] }
  0x30   :  { %v1092_v45 = vld [vmem:[#allocation4 + $0xe8] sm:$0xff]  ;;  %v1075_v46 = vld [vmem:[#allocation4 + $0x60] sm:$0xff]  ;;  %v1066_v47 = vld [vmem:[#allocation4 + $0x18] sm:$0xff] }
  0x31   :  { %314 = vmatpush.bf16.msra.mxu0 %v793_v16  ;;  %v1074_v48 = vld [vmem:[#allocation4 + $0x58] sm:$0xff]  ;;  %v1083_v49 = vld [vmem:[#allocation4 + $0xa0] sm:$0xff]  ;;  %v1065_v51 = vld [vmem:[#allocation4 + $0x10] sm:$0xff] }
  0x32   :  { %328 = vmatpush.bf16.msra.mxu1 %v797_v17  ;;  %v1091_v50 = vld [vmem:[#allocation4 + $0xe0] sm:$0xff]  ;;  %v1073_v52 = vld [vmem:[#allocation4 + $0x50] sm:$0xff]  ;;  %v1082_v53 = vld [vmem:[#allocation4 + $0x98] sm:$0xff] }
  0x33   :  { %342 = vmatpush.bf16.msra.mxu2 %v801_v18  ;;  %356 = vmatpush.bf16.msra.mxu3 %v805_v22  ;;  %v1090_v54 = vld [vmem:[#allocation4 + $0xd8] sm:$0xff]  ;;  %v1064_v55 = vld [vmem:[#allocation4 + $0x8] sm:$0xff]  ;;  %v1081_v57 = vld [vmem:[#allocation4 + $0x90] sm:$0xff] }
  0x34   :  { %v1072_v56 = vld [vmem:[#allocation4 + $0x48] sm:$0xff]  ;;  %v1089_v58 = vld [vmem:[#allocation4 + $0xd0] sm:$0xff]  ;;  %v1063_v59 = vld [vmem:[#allocation4] sm:$0xff] }
  0x35   :  { %315 = vmatpush.bf16.msra.mxu0 %v777_v28  ;;  %v1071_v60 = vld [vmem:[#allocation4 + $0x40] sm:$0xff]  ;;  %v1080_v61 = vld [vmem:[#allocation4 + $0x88] sm:$0xff] }
  0x36   :  { %329 = vmatpush.bf16.msra.mxu1 %v781_v29  ;;  %v1088_v62 = vld [vmem:[#allocation4 + $0xc8] sm:$0xff]  ;;  %v1079_v63 = vld [vmem:[#allocation4 + $0x80] sm:$0xff] }
  0x37   :  { %343 = vmatpush.bf16.msra.mxu2 %v785_v30  ;;  %357 = vmatpush.bf16.msra.mxu3 %v789_v31  ;;  %v1087_v0 = vld [vmem:[#allocation4 + $0xc0] sm:$0xff] }
  0x38   :  { %316 = vmatmul.bf16.vlgmr.msra.gmra.mxu0 %v1030_v33  ;;  %v132_v1 = vld [vmem:[%s1324_s2] sm:$0xf] }
  0x39   :  { %636 = vmatpush.bf16.msrb.mxu0 %v1070_v32  ;;  %330 = vmatmul.bf16.vlgmr.msra.gmra.mxu1 %v1030_v33  ;;  %v134_v3 = vperm.slane %v132_v1, 0  ;;  %v135_v5 = vperm.slane %v132_v1, 1  ;;  %v136_v15 = vperm.slane %v132_v1, 2  ;;  %v137_v17 = vperm.slane %v132_v1, 3 }
  0x3a   :  { %650 = vmatpush.bf16.msrb.mxu1 %v1078_v34  ;;  %344 = vmatmul.bf16.vlgmr.msra.gmra.mxu2 %v1030_v33 }
  0x3b   :  { %358 = vmatmul.bf16.vlgmr.msra.gmra.mxu3 %v1030_v33  ;;  %664 = vmatpush.bf16.msrb.mxu2 %v1086_v35  ;;  %v1110_v35 = vld [vmem:[#allocation6] ss:$0 sm:$0xff] }
  0x3c   :  { %678 = vmatpush.bf16.msrb.mxu3 %v1094_v37 }
  0x3d   :  { %637 = vmatpush.bf16.msrb.mxu0 %v1069_v36 }
  0x3e   :  { %651 = vmatpush.bf16.msrb.mxu1 %v1077_v38  ;;  %v98_v38 = vld [vmem:[%s1322_s0] sm:$0xff]  }
  0x3f   :  { %665 = vmatpush.bf16.msrb.mxu2 %v1085_v39 }
  0x40   :  { %679 = vmatpush.bf16.msrb.mxu3 %v1093_v41 }
  0x41   :  { %638 = vmatpush.bf16.msrb.mxu0 %v1068_v40 }
  0x42   :  { %652 = vmatpush.bf16.msrb.mxu1 %v1076_v42 }
  0x43   :  { %666 = vmatpush.bf16.msrb.mxu2 %v1084_v43 }
  0x44   :  { %680 = vmatpush.bf16.msrb.mxu3 %v1092_v45 }
  0x45   :  { %639 = vmatpush.bf16.msrb.mxu0 %v1067_v44  ;;  %v692_v44 = vunpack.c.l.bf16 %v98_v38 }
  0x46   :  { %653 = vmatpush.bf16.msrb.mxu1 %v1075_v46 }
  0x47   :  { %667 = vmatpush.bf16.msrb.mxu2 %v1083_v49 }
  0x48   :  { %681 = vmatpush.bf16.msrb.mxu3 %v1091_v50 }
  0x49   :  { %640 = vmatpush.bf16.msrb.mxu0 %v1066_v47 }
  0x4a   :  { %654 = vmatpush.bf16.msrb.mxu1 %v1074_v48 }
  0x4b   :  { %668 = vmatpush.bf16.msrb.mxu2 %v1082_v53  ;;  %v693_v53 = vunpack.c.h.bf16 %v98_v38 }
  0x4c   :  { %682 = vmatpush.bf16.msrb.mxu3 %v1090_v54 }
  0x4d   :  { %641 = vmatpush.bf16.msrb.mxu0 %v1065_v51 }
  0x4e   :  { %655 = vmatpush.bf16.msrb.mxu1 %v1073_v52 }
  0x4f   :  { %669 = vmatpush.bf16.msrb.mxu2 %v1081_v57 }
  0x50   :  { %683 = vmatpush.bf16.msrb.mxu3 %v1089_v58  ;;  %v1254_v58 = vmov 128.0  }
  0x51   :  { %642 = vmatpush.bf16.msrb.mxu0 %v1064_v55  ;;  %1113 = vrcp.f32 %v1254_v58 }
  0x52   :  { %656 = vmatpush.bf16.msrb.mxu1 %v1072_v56 }
  0x53   :  { %670 = vmatpush.bf16.msrb.mxu2 %v1080_v61 }
  0x54   :  { %684 = vmatpush.bf16.msrb.mxu3 %v1088_v62 }
  0x55   :  { %643 = vmatpush.bf16.msrb.mxu0 %v1063_v59 }
  0x56   :  { %657 = vmatpush.bf16.msrb.mxu1 %v1071_v60 }
  0x57   :  { %671 = vmatpush.bf16.msrb.mxu2 %v1079_v63  ;;  %v1114_v59 = vpop.eup %1113 }
  0x58   :  { %685 = vmatpush.bf16.msrb.mxu3 %v1087_v0  ;;  %v701_v60 = vmul.f32 128.0, %v1114_v59  ;;  %vm705_vm0 = vweird.f32 %v1114_v59 }
  0x5a   :  { %v702_v61 = vsub.f32 1.0, %v701_v60 }
  0x5c   :  { %v703_v62 = vmul.f32 %v1114_v59, %v702_v61 }
  0x5e   :  { %v704_v63 = vadd.f32 %v1114_v59, %v703_v62 }
  0x60   :  { %v706_v0 = vsel %vm705_vm0, %v1114_v59, %v704_v63 }
  0xb5   :  { %v317_v2 = vpop.f32.mrf.mxu0 }
  0xb6   :  { %v331_v4 = vpop.f32.mrf.mxu1  ;;  %v318_v6 = vadd.f32 %v317_v2, %v134_v3 }
  0xb7   :  { %v332_v7 = vadd.f32 %v331_v4, %v135_v5 }
  0xb8   :  { %v364_v11 = vmax.f32 %v318_v6, 0.0 }
  0xb9   :  { %v365_v14 = vmax.f32 %v332_v7, 0.0 }
  0xbd   :  { %v345_v8 = vpop.f32.mrf.mxu2  ;;  %v319_v10 = vpop.f32.mrf.mxu0 }
  0xbe   :  { %v359_v9 = vpop.f32.mrf.mxu3  ;;  %v320_v12 = vadd.f32 %v319_v10, %v134_v3  ;;  %v333_v13 = vpop.f32.mrf.mxu1  ;;  %v346_v21 = vadd.f32 %v345_v8, %v136_v15 }
  0xbf   :  { %v334_v16 = vadd.f32 %v333_v13, %v135_v5  ;;  %v360_v23 = vadd.f32 %v359_v9, %v137_v17 }
  0xc0   :  { %v368_v18 = vmax.f32 %v320_v12, 0.0  ;;  %v366_v28 = vmax.f32 %v346_v21, 0.0 }
  0xc1   :  { %v369_v19 = vmax.f32 %v334_v16, 0.0  ;;  %v367_v30 = vmax.f32 %v360_v23, 0.0 }
  0xc2   :  { %v372_v20 = vpack.c.bf16 %v368_v18, %v364_v11 }
  0xc3   :  { %v373_v22 = vpack.c.bf16 %v369_v19, %v365_v14 }
  0xc4   :  { %644 = vmatmul.bf16.vlgmr.msrb.gmra.mxu0 %v372_v20 }
  0xc5   :  { %v347_v24 = vpop.f32.mrf.mxu2  ;;  %658 = vmatmul.bf16.vlgmr.msrb.gmra.mxu1 %v373_v22 }
  0xc6   :  { %v348_v25 = vadd.f32 %v347_v24, %v136_v15  ;;  %v361_v26 = vpop.f32.mrf.mxu3 }
  0xc7   :  { %v362_v27 = vadd.f32 %v361_v26, %v137_v17 }
  0xc8   :  { %v370_v29 = vmax.f32 %v348_v25, 0.0 }
  0xc9   :  { %v371_v31 = vmax.f32 %v362_v27, 0.0 }
  0xca   :  { %v374_v32 = vpack.c.bf16 %v370_v29, %v366_v28  ;;  %v1111_v28 = vld [vmem:[#allocation7] ss:$0 sm:$0xff] }
  0xcb   :  { %v375_v33 = vpack.c.bf16 %v371_v31, %v367_v30 }
  0xcc   :  { %672 = vmatmul.bf16.vlgmr.msrb.gmra.mxu2 %v374_v32 }
  0xcd   :  { %686 = vmatmul.bf16.vlgmr.msrb.gmra.mxu3 %v375_v33  ;;  %v1112_v33 = vld [vmem:[#allocation9] ss:$0 sm:$0xff] }
 0x141   :  { %v645_v34 = vpop.f32.mrf.mxu0 }
 0x142   :  { %v646_v36 = vadd.f32 %v1110_v35, %v645_v34  ;;  %v659_v37 = vpop.f32.mrf.mxu1 }
 0x144   :  { %v660_v39 = vadd.f32 %v659_v37, %v646_v36 }
 0x149   :  { %v647_v40 = vpop.f32.mrf.mxu0 }
 0x14a   :  { %v648_v45 = vadd.f32 %v1110_v35, %v647_v40  ;;  %v661_v48 = vpop.f32.mrf.mxu1 }
 0x14c   :  { %v662_v49 = vadd.f32 %v661_v48, %v648_v45 }
 0x14f   :  { %v673_v41 = vpop.f32.mrf.mxu2 }
 0x150   :  { %v674_v42 = vadd.f32 %v673_v41, %v660_v39  ;;  %v687_v43 = vpop.f32.mrf.mxu3 }
 0x152   :  { %v688_v46 = vadd.f32 %v687_v43, %v674_v42 }
 0x154   :  { %v694_v47 = vadd.f32 %v692_v44, %v688_v46 }
 0x156   :  { %696 = vadd.xlane.f32.xlu0 %v694_v47  ;;  %v709_v50 = vmul.f32 %v694_v47, %v694_v47 }
 0x157   :  { %v675_v51 = vpop.f32.mrf.mxu2 }
 0x158   :  { %v676_v52 = vadd.f32 %v675_v51, %v662_v49  ;;  %711 = vadd.xlane.f32.xlu1 %v709_v50  ;;  %v689_v54 = vpop.f32.mrf.mxu3 }
 0x15a   :  { %v690_v55 = vadd.f32 %v689_v54, %v676_v52 }
 0x15c   :  { %v695_v56 = vadd.f32 %v693_v53, %v690_v55 }
 0x15e   :  { %698 = vadd.xlane.f32.xlu0 %v695_v56  ;;  %v710_v57 = vmul.f32 %v695_v56, %v695_v56 }
 0x160   :  { %713 = vadd.xlane.f32.xlu1 %v710_v57 }
 0x1c9   :  { %v697_v1 = vpop.xlane.xlu0 %696 }
 0x1ca   :  { %v707_v2 = vmul.f32 %v706_v0, %v697_v1 }
 0x1cb   :  { %v712_v3 = vpop.xlane.xlu1 %711 }
 0x1cc   :  { %v717_v4 = vmul.f32 %v707_v2, %v707_v2  ;;  %v715_v5 = vmul.f32 %v712_v3, %v706_v0  ;;  %v721_v26 = vsub.f32 %v694_v47, %v707_v2 }
 0x1ce   :  { %v719_v6 = vsub.f32 %v715_v5, %v717_v4 }
 0x1d0   :  { %v723_v7 = vadd.f32 1e-05, %v719_v6 }
 0x1d1   :  { %v699_v8 = vpop.xlane.xlu0 %698 }
 0x1d2   :  { %1115 = vrsqrt.f32 %v723_v7  ;;  %v708_v9 = vmul.f32 %v706_v0, %v699_v8  ;;  %vm731_vm2 = vweird.f32 %v723_v7 }
 0x1d3   :  { %v714_v10 = vpop.xlane.xlu1 %713 }
 0x1d4   :  { %v718_v11 = vmul.f32 %v708_v9, %v708_v9  ;;  %v716_v12 = vmul.f32 %v714_v10, %v706_v0  ;;  %v722_v31 = vsub.f32 %v695_v56, %v708_v9 }
 0x1d6   :  { %v720_v13 = vsub.f32 %v716_v12, %v718_v11 }
 0x1d8   :  { %v1116_v14 = vpop.eup %1115  ;;  %v724_v15 = vadd.f32 1e-05, %v720_v13 }
 0x1d9   :  { %v726_v16 = vmul.f32 %v1116_v14, %v723_v7  ;;  %vm732_vm1 = vweird.f32 %v1116_v14 }
 0x1da   :  { %1117 = vrsqrt.f32 %v724_v15  ;;  %vm733_vm3 = vmor %vm731_vm2, %vm732_vm1  ;;  %vm741_vm5 = vweird.f32 %v724_v15 }
 0x1db   :  { %v727_v17 = vmul.f32 %v1116_v14, %v726_v16 }
 0x1dd   :  { %v728_v18 = vmul.f32 0.5, %v727_v17 }
 0x1df   :  { %v729_v19 = vsub.f32 1.5, %v728_v18 }
 0x1e0   :  { %v1118_v20 = vpop.eup %1117 }
 0x1e1   :  { %v730_v21 = vmul.f32 %v1116_v14, %v729_v19  ;;  %v736_v22 = vmul.f32 %v1118_v20, %v724_v15  ;;  %vm742_vm4 = vweird.f32 %v1118_v20 }
 0x1e2   :  { %vm743_vm6 = vmor %vm741_vm5, %vm742_vm4 }
 0x1e3   :  { %v737_v23 = vmul.f32 %v1118_v20, %v736_v22  ;;  %v734_v24 = vsel %vm733_vm3, %v1116_v14, %v730_v21 }
 0x1e4   :  { %v745_v29 = vmul.f32 %v734_v24, %v721_v26 }
 0x1e5   :  { %v738_v25 = vmul.f32 0.5, %v737_v23 }
 0x1e6   :  { %v751_v34 = vmul.f32 %v1111_v28, %v745_v29 }
 0x1e7   :  { %v739_v27 = vsub.f32 1.5, %v738_v25 }
 0x1e8   :  { %v757_v37 = vadd.f32 %v1112_v33, %v751_v34 }
 0x1e9   :  { %v740_v30 = vmul.f32 %v1118_v20, %v739_v27 }
 0x1eb   :  { %v744_v32 = vsel %vm743_vm6, %v1118_v20, %v740_v30 }
 0x1ec   :  { %v746_v35 = vmul.f32 %v744_v32, %v722_v31 }
 0x1ee   :  { %v752_v36 = vmul.f32 %v1111_v28, %v746_v35 }
 0x1f0   :  { %v758_v38 = vadd.f32 %v1112_v33, %v752_v36 }
 0x1f2   :  { %v1098_v39 = vpack.c.bf16 %v758_v38, %v757_v37 }
 0x1f4   :  { %1099 = vst [vmem:[%s1329_s7] sm:$0xff] %v1098_v39  }
 0x1f5   :  { %767 = vsyncpa [#allocation3], 1 }
 0x1f6   :  { %768 = vsyncpa [#allocation5], 1 }
 0x1f7   :  { %769 = vsyncpa [#allocation8], 1 }

// kernel: transformer_fwd.15
= control target key start
LH: loop header
LB: loop body
LE: loop exit
PB: predicated region body
PF: predicated region fallthrough
CT: control target
= control target key end

     0   :  { %15 = vsyncpa [#allocation3], 0  ;;  %s1759_s0 = inlined_call_operand.vmem [shape: bf16[2,8,128], index: 0, kind: input, shape index: {}, may-alias: {0,1}]   ;;  %s1760_s1 = inlined_call_operand.vmem [shape: bf16[2,8,128], index: 1, kind: input, shape index: {}, may-alias: {0,1}]   ;;  %s1761_s2 = inlined_call_operand.vmem [shape: f32[2,1,8], index: 2, kind: input, shape index: {}]   ;;  %s1762_s3 = inlined_call_operand.hbm [shape: bf16[32,32], index: 3, kind: input, shape index: {}]   ;;  %s1763_s4 = inlined_call_operand.hbm [shape: bf16[32,32], index: 4, kind: input, shape index: {}]   ;;  %s1764_s5 = inlined_call_operand.hbm [shape: bf16[32,32], index: 5, kind: input, shape index: {}]   ;;  %s1765_s6 = inlined_call_operand.vmem [shape: bf16[128,128], index: 6, kind: input, shape index: {}]   ;;  %s1766_s7 = inlined_call_operand.vmem [shape: f32[1,128], index: 7, kind: input, shape index: {}]   ;;  %s1767_s8 = inlined_call_operand.vmem [shape: f32[1,128], index: 8, kind: input, shape index: {}]   ;;  %s1768_s9 = inlined_call_operand.vmem [shape: f32[1,128], index: 9, kind: input, shape index: {}]   ;;  %s1769_s10 = inlined_call_operand.vmem [shape: bf16[2,8,128], index: 10, kind: output, shape index: {}]  }
   0x1   :  { %16 = vsyncpa [#allocation5], 0  ;;  %s1556_s13 = smov 0  }
   0x2 LB: > { %s1562_s14 = sadd.s32 4294967295, %s1489_s13   ;;  %p1208_p0 = scmp.ge.s32.totalorder %s1489_s13, 1  ;;  %s1489_s13 = sphi %s1556_s13, %s22_s13  }
   0x3   : > { %p278_p1 = scmp.lt.s32.totalorder %s1489_s13, 3  ;;  %p1338_p2 = scmp.eq.s32.totalorder %s1562_s14, 0 }
   0x4   : > { %s303_s17 = sshll.u32 %s1763_s4, 4  ;;  %s289_s21 = sshll.u32 %s1762_s3, 4  ;;  %s304_s17 = int_to_ptr.hbm [resolvable:$true] %s303_s17  ;;  %s290_s21 = int_to_ptr.hbm [resolvable:$true] %s289_s21 }
   0x5   : > { %p1570_p3 = pnand %p1208_p0, %p278_p1  ;;  %s1491_s22 = smov [#allocation4]  }
   0x6   : > { %s305_s23 = sshll.u32 %s1491_s22, 4  ;;  %s1492_s24 = smov [#allocation2]   ;;  %s306_s23 = int_to_ptr.vmem [resolvable:$true] %s305_s23 }
   0x7   : > { %p1328_p4 = pneg %p1570_p3  ;;  %s291_s25 = sshll.u32 %s1492_s24, 4  ;;  %s292_s25 = int_to_ptr.vmem [resolvable:$true] %s291_s25 }
   0x8   : > { %s317_s28 = sshll.u32 %s1764_s5, 4  ;;  %s1493_s29 = smov 64   ;;  %s318_s28 = int_to_ptr.hbm [resolvable:$true] %s317_s28 }
   0x9   : > { %p1329_p5 = pnand %p1338_p2, %p1328_p4  ;;  %s1494_s30 = smov 4  }
   0xa   : > { %s1495_s11 = smov [#allocation6]   ;;  %367 = sbr.rel (%p1570_p3) target bundleno = 1949 (0x79d), region = 60 }
   0xb   : > { %1334 = dma.hbm_to_vmem [thread:$0]  (!%p1329_p5), %s304_s17, 256, %s306_s23, [#allocation5], %s1493_s29, %s1493_s29, %s1494_s30  }
   0xc   : > { %1331 = dma.hbm_to_vmem [thread:$0]  (!%p1329_p5), %s290_s21, 256, %s292_s25, [#allocation3], %s1493_s29, %s1493_s29, %s1494_s30  }
   0xd   : > { %s319_s12 = sshll.u32 %s1495_s11, 4  ;;  %s320_s12 = int_to_ptr.vmem [resolvable:$true] %s319_s12 }
   0xe   : > { %1337 = dma.hbm_to_vmem [thread:$0]  (!%p1329_p5), %s318_s28, 256, %s320_s12, [#allocation5], %s1493_s29, %s1493_s29, %s1494_s30  }
   0xf   : > { %1480 = dma.done.wait (%p1338_p2), [#allocation3], 256  }
  0x10   : > { %1482 = vsyncadd (%p1338_p2), [#allocation3], 4294967040 }
  0x11   : > { %1484 = dma.done.wait (%p1338_p2), [#allocation5], 512  }
  0x12   : > { %1486 = vsyncadd (%p1338_p2), [#allocation5], 4294966784  ;;  %p421_p6 = scmp.lt.s32.totalorder %s1562_s14, 1  ;;  %v1598_v0 = vld [vmem:[#allocation2 + $0x8] sm:$0xff]  ;;  %v1600_v1 = vld [vmem:[#allocation4 + $0x8] sm:$0xff]  ;;  %vm490_vm0 = vcmask 261120   ;;  %v472_v24 = vlaneseq }
  0x13   : > { %v1605_v2 = vld [vmem:[#allocation2] sm:$0xff]  ;;  %v1607_v3 = vld [vmem:[#allocation4] sm:$0xff]  ;;  %500 = vmatpush.bf16.msra.mxu0 %v1598_v0  ;;  %529 = vmatpush.bf16.msra.mxu1 %v1600_v1  ;;  %v1630_v8 = vld [vmem:[#allocation6 + $0x8] sm:$0xff]  ;;  %s1496_s22 = smov 96   ;;  %v1497_v25 = vmov 0   ;;  %vm584_vm5 = vcmask 64512  }
  0x14   : > { %s1774_s14 = smov (!%p421_p6, %s1562_s14), 1  ;;  %555 = vmatpush.bf16.msra.mxu2 %v1630_v8  ;;  %v1635_v10 = vld [vmem:[#allocation6] sm:$0xff]  ;;  %v473_v28 = vshrl.u32 %v472_v24, 7  ;;  %v475_v29 = vand.u32 127, %v472_v24  ;;  %vm598_vm6 = vcmask 1043456   ;;  %v1309_v55 = vld [vmem:[%s1765_s6 + $0x8] sm:$0xff] }
  0x15   : > { %s1603_s15 = sshll.u32 %s1774_s14, 2  ;;  %s431_s25 = scalar_lea.vmem %s1761_s2, %s1774_s14  ;;  %v1308_v56 = vld [vmem:[%s1765_s6] sm:$0xff]  ;;  %v1310_v24 = vld [vmem:[%s1765_s6 + $0x10] sm:$0xff]  ;;  %v1315_v30 = vld [vmem:[%s1765_s6 + $0x38] sm:$0xff] }
  0x16   : > { %s424_s18 = scalar_lea.vmem %s1759_s0, %s1603_s15  ;;  %s428_s21 = scalar_lea.vmem %s1760_s1, %s1603_s15  ;;  %v467_v22 = vld [vmem:[%s431_s25] sm:$0x1]  ;;  %vm476_vm3 = vcmp.ge.s32.totalorder %v473_v28, %v475_v29 }
  0x17   : > { %501 = vmatpush.bf16.msra.mxu0 %v1605_v2  ;;  %530 = vmatpush.bf16.msra.mxu1 %v1607_v3  ;;  %v1621_v4 = vld [vmem:[%s424_s18] sm:$0xf]  ;;  %vm468_vm1 = vcmp.gt.f32.partialorder %v467_v22, 0.0  ;;  %s1498_s14 = smov 64   ;;  %s1499_s17 = smov 32  }
  0x18   : > { %v438_v5 = vld [vmem:[%s428_s21] sm:$0xf]  ;;  %v619_v9 = vunpack.c.l.b16 %v1621_v4  ;;  %556 = vmatpush.bf16.msra.mxu2 %v1635_v10  ;;  %v469_v26 = vsel %vm468_vm1, 1, %v1497_v25  ;;  %s435_s16 = scalar_lea.vmem %s1769_s10, %s1603_s15 }
  0x19   : > { %v641_v6 = vunpack.c.l.b16 %v438_v5  ;;  %v470_v27 = vperm.slane %v469_v26, 0 }
  0x1a   : > { %1228 = vmatmul.msk.bf16.vlgmr.msra.gmra.mxu0 %vm490_vm0, %v1621_v4  ;;  %1237 = vmatmul.msk.bf16.vlgmr.msra.gmra.mxu1 %vm490_vm0, %v438_v5  ;;  %v1637_v11 = vpack.c.b16 %v619_v9, %v619_v9 }
  0x1b   : > { %632 = vmatpush.bf16.msrb.mxu1 %v1598_v0  ;;  %v1628_v7 = vpack.c.b16 %v641_v6, %v641_v6  ;;  %1246 = vmatmul.msk.bf16.vlgmr.msra.gmra.mxu2 %vm490_vm0, %v438_v5  ;;  %vm471_vm2 = vcmp.eq.s32.totalorder %v470_v27, 1 }
  0x1c   : > { %654 = vmatpush.bf16.msrb.mxu2 %v1600_v1  ;;  %vm1655_vm4 = vmand %vm471_vm2, %vm476_vm3 }
  0x1d   : > { %643 = vrot.lane.b32.xlu0 %v1628_v7, %s1496_s22  ;;  %804 = vrot.lane.b32.xlu2 %v1628_v7, %s1498_s14 }
  0x1f   : > { %633 = vmatpush.bf16.msrb.mxu1 %v1605_v2 }
  0x20   : > { %655 = vmatpush.bf16.msrb.mxu2 %v1607_v3 }
  0x25   : > { %621 = vrot.lane.b32.xlu0 %v1637_v11, %s1496_s22  ;;  %785 = vrot.lane.b32.xlu2 %v1637_v11, %s1498_s14 }
  0x8f   : > { %v644_v19 = vpop.permute.xlu0 %643 }
  0x90   : > { %1250 = vmatmul.msk.bf16.vlgmr.msrb.gmra.mxu2 %vm490_vm0, %v644_v19 }
  0x97   : > { %v503_v12 = vpop.f32.mrf.mxu0  ;;  %v532_v13 = vpop.f32.mrf.mxu1 }
  0x98   : > { %v536_v14 = vpack.c.bf16 %v532_v13, %v532_v13  ;;  %v507_v16 = vpack.c.bf16 %v503_v12, %v503_v12  ;;  %v622_v20 = vpop.permute.xlu0 %621  ;;  %v805_v13 = vpop.permute.xlu2 %804 }
  0x99   : > { %1249 = vmatmul.msk.bf16.vlgmr.msrb.gmra.mxu1 %vm490_vm0, %v622_v20 }
  0x9a   : > { %v567_v15 = vsel %vm490_vm0, %v536_v14, 0 }
  0x9b   : > { %576 = vmatpush.bf16.xpose.msra.mxu3 %v567_v15 }
  0x9e   : > { %v558_v21 = vpop.f32.mrf.mxu2 }
  0x9f   : > { %v505_v17 = vpop.f32.mrf.mxu0  ;;  %v534_v18 = vpop.f32.mrf.mxu1  ;;  %v562_v36 = vpack.c.bf16 %v558_v21, %v558_v21 }
  0xa0   : > { %v786_v14 = vpop.permute.xlu2 %785 }
  0xa1   : > { %v600_v39 = vsel %vm598_vm6, %v562_v36, 0 }
  0xa2   : > { %1247 = vmatmul.msk.bf16.vlgmr.msra.gmra.mxu3 %vm490_vm0, %v507_v16  ;;  %609 = vmatpush.bf16.msrb.mxu0 %v600_v39 }
  0xa3   : > { %668 = vmatpush.bf16.msrb.mxu3 %v1630_v8 }
  0xa6   : > { %v560_v23 = vpop.f32.mrf.mxu2 }
  0xa7   : > { %669 = vmatpush.bf16.msrb.mxu3 %v1635_v10  ;;  %v1311_v23 = vld [vmem:[%s1765_s6 + $0x18] sm:$0xff] }
  0xa8   : > { %750 = vmatpush.bf16.msra.mxu2 %v1311_v23 }
  0xab   : > { %778 = vmatpush.bf16.msra.mxu3 %v1309_v55 }
  0xac   : > { %751 = vmatpush.bf16.msra.mxu2 %v1310_v24 }
  0xaf   : > { %779 = vmatpush.bf16.msra.mxu3 %v1308_v56 }
  0xb0   : > { %829 = vmatpush.bf16.msrb.mxu2 %v1630_v8 }
  0xb2   : > { %1251 = vmatmul.msk.bf16.vlgmr.msrb.gmra.mxu3 %vm490_vm0, %v644_v19 }
  0xb4   : > { %830 = vmatpush.bf16.msrb.mxu2 %v1635_v10 }
 0x113   : > { %v657_v37 = vpop.f32.mrf.mxu2 }
 0x114   : > { %v661_v40 = vpack.c.bf16 %v657_v37, %v657_v37 }
 0x116   : > { %v680_v42 = vsel %vm490_vm0, %v661_v40, 0  ;;  %v635_v46 = vpop.f32.mrf.mxu1 }
 0x117   : > { %689 = vmatpush.bf16.xpose.msra.mxu0 %v680_v42  ;;  %v639_v54 = vpack.c.bf16 %v635_v46, %v635_v46 }
 0x11b   : > { %v659_v44 = vpop.f32.mrf.mxu2 }
 0x11e   : > { %v637_v47 = vpop.f32.mrf.mxu1 }
 0x125   : > { %v578_v31 = vpop.f32.mrf.mxu3 }
 0x126   : > { %v582_v32 = vsel %vm1655_vm4, %v578_v31, -1e+20 }
 0x127   : > { %v583_v33 = vmul.f32 0.088388346, %v582_v32 }
 0x129   : > { %v585_v34 = vsel %vm584_vm5, %v583_v33, -inf }
 0x12a   : > { %586 = vmax.xlane.f32.xlu1 %v585_v34 }
 0x12d   : > { %v580_v35 = vpop.f32.mrf.mxu3 }
 0x135   : > { %v671_v38 = vpop.f32.mrf.mxu3 }
 0x136   : > { %v675_v41 = vpack.c.bf16 %v671_v38, %v671_v38 }
 0x138   : > { %v711_v43 = vsel %vm598_vm6, %v675_v41, 0 }
 0x139   : > { %720 = vmatpush.bf16.msra.mxu1 %v711_v43 }
 0x13d   : > { %815 = vmatpush.bf16.msrb.mxu1 %v1600_v1  ;;  %v673_v45 = vpop.f32.mrf.mxu3 }
 0x141   : > { %816 = vmatpush.bf16.msrb.mxu1 %v1607_v3 }
 0x19d   : > { %v587_v48 = vpop.xlane.xlu1 %586 }
 0x19e   : > { %v588_v49 = vsub.f32 %v583_v33, %v587_v48 }
 0x1a0   : > { %v589_v50 = vmul.f32 1.442695, %v588_v49 }
 0x1a2   : > { %1365 = vpow2.f32 %v589_v50 }
 0x1a8   : > { %v1366_v51 = vpop.eup %1365 }
 0x1a9   : > { %v591_v52 = vsel %vm584_vm5, %v1366_v51, 0.0  ;;  %v594_v53 = vpack.c.bf16 %v1366_v51, %v1366_v51  ;;  %v1312_v51 = vld [vmem:[%s1765_s6 + $0x20] sm:$0xff] }
 0x1aa   : > { %592 = vadd.xlane.f32.xlu0 %v591_v52 }
 0x1ab   : > { %1248 = vmatmul.msk.bf16.vlgmr.msrb.gmra.mxu0 %vm584_vm5, %v594_v53 }
 0x1ac   : > { %796 = vmatpush.bf16.msrb.mxu0 %v1598_v0 }
 0x1b0   : > { %797 = vmatpush.bf16.msrb.mxu0 %v1605_v2 }
 0x1bb   : > { %1252 = vmatmul.msk.bf16.vlgmr.msra.gmra.mxu0 %vm490_vm0, %v639_v54 }
 0x1cb   : > { %1272 = vmatmul.msk.bf16.vlgmr.msrb.gmra.mxu0 %vm490_vm0, %v786_v14 }
 0x21d   : > { %v593_v57 = vpop.xlane.xlu0 %592 }
 0x21e   : > { %1367 = vrcp.f32 %v593_v57 }
 0x224   : > { %v1368_v58 = vpop.eup %1367 }
 0x228   : > { %v611_v59 = vpop.f32.mrf.mxu0 }
 0x229   : > { %v616_v60 = vmul.f32 %v1368_v58, %v611_v59 }
 0x22b   : > { %v617_v61 = vpack.c.bf16 %v616_v60, %v616_v60 }
 0x22d   : > { %1271 = vmatmul.msk.bf16.vlgmr.msra.gmra.mxu3 %vm490_vm0, %v617_v61 }
 0x230   : > { %v613_v62 = vpop.f32.mrf.mxu0 }
 0x238   : > { %v691_v63 = vpop.f32.mrf.mxu0 }
 0x239   : > { %v695_v5 = vsel %vm1655_vm4, %v691_v63, -1e+20 }
 0x23a   : > { %v696_v6 = vmul.f32 0.088388346, %v695_v5 }
 0x23c   : > { %v697_v9 = vsel %vm584_vm5, %v696_v6, -inf }
 0x23d   : > { %698 = vmax.xlane.f32.xlu1 %v697_v9 }
 0x240   : > { %v693_v12 = vpop.f32.mrf.mxu0 }
 0x248   : > { %v799_v25 = vpop.f32.mrf.mxu0 }
 0x249   : > { %v803_v37 = vpack.c.bf16 %v799_v25, %v799_v25 }
 0x250   : > { %v801_v27 = vpop.f32.mrf.mxu0 }
 0x2b0   : > { %v1685_v15 = vpop.f32.mrf.mxu3  ;;  %v699_v16 = vpop.xlane.xlu1 %698 }
 0x2b1   : > { %v700_v17 = vsub.f32 %v696_v6, %v699_v16 }
 0x2b3   : > { %v701_v18 = vmul.f32 1.442695, %v700_v17 }
 0x2b5   : > { %1369 = vpow2.f32 %v701_v18 }
 0x2b8   : > { %v783_v19 = vpop.f32.mrf.mxu3 }
 0x2bb   : > { %v1370_v20 = vpop.eup %1369 }
 0x2bc   : > { %v706_v21 = vpack.c.bf16 %v1370_v20, %v1370_v20  ;;  %v703_v22 = vsel %vm584_vm5, %v1370_v20, 0.0 }
 0x2bd   : > { %704 = vadd.xlane.f32.xlu1 %v703_v22 }
 0x2be   : > { %1253 = vmatmul.msk.bf16.vlgmr.msra.gmra.mxu1 %vm584_vm5, %v706_v21 }
 0x2ce   : > { %1273 = vmatmul.msk.bf16.vlgmr.msrb.gmra.mxu1 %vm490_vm0, %v805_v13 }
 0x2d6   : > { %938 = vrot.lane.b32.xlu1 %v1628_v7, %s1499_s17 }
 0x2de   : > { %919 = vrot.lane.b32.xlu1 %v1637_v11, %s1499_s17 }
 0x330   : > { %v705_v26 = vpop.xlane.xlu1 %704 }
 0x331   : > { %1371 = vrcp.f32 %v705_v26 }
 0x337   : > { %v1372_v28 = vpop.eup %1371 }
 0x33b   : > { %v722_v29 = vpop.f32.mrf.mxu1 }
 0x33c   : > { %v727_v31 = vmul.f32 %v1372_v28, %v722_v29  ;;  %v1314_v29 = vld [vmem:[%s1765_s6 + $0x30] sm:$0xff] }
 0x33e   : > { %v728_v32 = vpack.c.bf16 %v727_v31, %v727_v31 }
 0x340   : > { %1262 = vmatmul.msk.bf16.vlgmr.msra.gmra.mxu2 %vm490_vm0, %v728_v32 }
 0x341   : > { %930 = vmatpush.bf16.msra.mxu2 %v1598_v0 }
 0x343   : > { %v724_v33 = vpop.f32.mrf.mxu1 }
 0x345   : > { %931 = vmatpush.bf16.msra.mxu2 %v1605_v2 }
 0x348   : > { %v939_v44 = vpop.permute.xlu1 %938 }
 0x34b   : > { %v818_v34 = vpop.f32.mrf.mxu1 }
 0x34c   : > { %v822_v35 = vpack.c.bf16 %v818_v34, %v818_v34 }
 0x34e   : > { %v841_v36 = vsel %vm490_vm0, %v822_v35, 0 }
 0x34f   : > { %850 = vmatpush.bf16.xpose.msrb.mxu3 %v841_v36 }
 0x350   : > { %1274 = vmatmul.msk.bf16.vlgmr.msrb.gmra.mxu2 %vm490_vm0, %v805_v13  ;;  %v920_v45 = vpop.permute.xlu1 %919 }
 0x353   : > { %v820_v38 = vpop.f32.mrf.mxu1 }
 0x356   : > { %1275 = vmatmul.msk.bf16.vlgmr.msrb.gmra.mxu3 %vm490_vm0, %v803_v37  ;;  %v1362_v37 = vld [vmem:[%s1766_s7] ss:$0 sm:$0xff] }
 0x357   : > { %949 = vmatpush.bf16.msra.mxu3 %v1600_v1 }
 0x35b   : > { %950 = vmatpush.bf16.msra.mxu3 %v1607_v3 }
 0x35f   : > { %1045 = vmatpush.bf16.msrb.mxu3 %v1315_v30 }
 0x360   : > { %1286 = vmatmul.msk.bf16.vlgmr.msra.gmra.mxu2 %vm490_vm0, %v920_v45 }
 0x363   : > { %1046 = vmatpush.bf16.msrb.mxu3 %v1314_v29 }
 0x366   : > { %1287 = vmatmul.msk.bf16.vlgmr.msra.gmra.mxu3 %vm490_vm0, %v939_v44 }
 0x3c3   : > { %v753_v0 = vpop.f32.mrf.mxu2 }
 0x3c4   : > { %v782_v14 = vadd.f32 %v1685_v15, %v753_v0  ;;  %v1058_v0 = vunpack.c.l.bf16 %v1621_v4 }
 0x3cb   : > { %v755_v2 = vpop.f32.mrf.mxu2 }
 0x3d3   : > { %v832_v39 = vpop.f32.mrf.mxu2 }
 0x3d4   : > { %v836_v40 = vpack.c.bf16 %v832_v39, %v832_v39 }
 0x3d6   : > { %v872_v41 = vsel %vm598_vm6, %v836_v40, 0 }
 0x3d7   : > { %881 = vmatpush.bf16.msra.mxu0 %v872_v41 }
 0x3d9   : > { %v852_v1 = vpop.f32.mrf.mxu3 }
 0x3da   : > { %v856_v3 = vsel %vm1655_vm4, %v852_v1, -1e+20 }
 0x3db   : > { %963 = vmatpush.bf16.msrb.mxu0 %v1630_v8  ;;  %v857_v42 = vmul.f32 0.088388346, %v856_v3  ;;  %v834_v43 = vpop.f32.mrf.mxu2  ;;  %v1500_v3 = vmov 128.0  }
 0x3dd   : > { %v858_v7 = vsel %vm584_vm5, %v857_v42, -inf }
 0x3de   : > { %859 = vmax.xlane.f32.xlu2 %v858_v7 }
 0x3df   : > { %964 = vmatpush.bf16.msrb.mxu0 %v1635_v10  ;;  %v1313_v10 = vld [vmem:[%s1765_s6 + $0x28] sm:$0xff] }
 0x3e0   : > { %911 = vmatpush.bf16.msra.mxu1 %v1313_v10 }
 0x3e1   : > { %v854_v11 = vpop.f32.mrf.mxu3 }
 0x3e3   : > { %v933_v56 = vpop.f32.mrf.mxu2 }
 0x3e4   : > { %912 = vmatpush.bf16.msra.mxu1 %v1312_v51  ;;  %v937_v9 = vpack.c.bf16 %v933_v56, %v933_v56 }
 0x3e9   : > { %v952_v52 = vpop.f32.mrf.mxu3 }
 0x3ea   : > { %v956_v53 = vpack.c.bf16 %v952_v52, %v952_v52 }
 0x3eb   : > { %v935_v57 = vpop.f32.mrf.mxu2 }
 0x3ec   : > { %v975_v54 = vsel %vm490_vm0, %v956_v53, 0  ;;  %v1363_v57 = vld [vmem:[%s1767_s8] ss:$0 sm:$0xff] }
 0x3ed   : > { %984 = vmatpush.bf16.xpose.msrb.mxu1 %v975_v54 }
 0x3f1   : > { %v954_v55 = vpop.f32.mrf.mxu3 }
 0x451   : > { %v860_v46 = vpop.xlane.xlu2 %859 }
 0x452   : > { %v861_v8 = vsub.f32 %v857_v42, %v860_v46 }
 0x454   : > { %v862_v47 = vmul.f32 1.442695, %v861_v8 }
 0x456   : > { %1373 = vpow2.f32 %v862_v47 }
 0x45c   : > { %v1374_v48 = vpop.eup %1373 }
 0x45d   : > { %v867_v49 = vpack.c.bf16 %v1374_v48, %v1374_v48  ;;  %v864_v50 = vsel %vm584_vm5, %v1374_v48, 0.0 }
 0x45e   : > { %865 = vadd.xlane.f32.xlu1 %v864_v50 }
 0x45f   : > { %1276 = vmatmul.msk.bf16.vlgmr.msra.gmra.mxu0 %vm584_vm5, %v867_v49 }
 0x46f   : > { %1288 = vmatmul.msk.bf16.vlgmr.msrb.gmra.mxu0 %vm490_vm0, %v939_v44 }
 0x4d1   : > { %v866_v58 = vpop.xlane.xlu1 %865 }
 0x4d2   : > { %1375 = vrcp.f32 %v866_v58 }
 0x4d8   : > { %v1376_v59 = vpop.eup %1375 }
 0x4dc   : > { %v883_v60 = vpop.f32.mrf.mxu0 }
 0x4dd   : > { %v888_v61 = vmul.f32 %v1376_v59, %v883_v60  ;;  %v1364_v59 = vld [vmem:[%s1768_s9] ss:$0 sm:$0xff] }
 0x4df   : > { %v889_v62 = vpack.c.bf16 %v888_v61, %v888_v61 }
 0x4e1   : > { %1285 = vmatmul.msk.bf16.vlgmr.msra.gmra.mxu1 %vm490_vm0, %v889_v62 }
 0x4e4   : > { %v885_v63 = vpop.f32.mrf.mxu0 }
 0x4ec   : > { %v966_v5 = vpop.f32.mrf.mxu0 }
 0x4ed   : > { %v970_v6 = vpack.c.bf16 %v966_v5, %v966_v5 }
 0x4ef   : > { %v1006_v12 = vsel %vm598_vm6, %v970_v6, 0 }
 0x4f0   : > { %1015 = vmatpush.bf16.msrb.mxu2 %v1006_v12 }
 0x4f1   : > { %1289 = vmatmul.msk.bf16.vlgmr.msrb.gmra.mxu1 %vm490_vm0, %v937_v9 }
 0x4f4   : > { %v968_v13 = vpop.f32.mrf.mxu0 }
 0x55e   : > { %v914_v16 = vpop.f32.mrf.mxu1 }
 0x55f   : > { %v918_v17 = vadd.f32 %v914_v16, %v782_v14 }
 0x566   : > { %v916_v18 = vpop.f32.mrf.mxu1 }
 0x56e   : > { %v986_v19 = vpop.f32.mrf.mxu1 }
 0x56f   : > { %v990_v20 = vsel %vm1655_vm4, %v986_v19, -1e+20 }
 0x570   : > { %v991_v21 = vmul.f32 0.088388346, %v990_v20 }
 0x572   : > { %v992_v22 = vsel %vm584_vm5, %v991_v21, -inf }
 0x573   : > { %993 = vmax.xlane.f32.xlu2 %v992_v22 }
 0x576   : > { %v988_v23 = vpop.f32.mrf.mxu1 }
 0x5e6   : > { %v994_v24 = vpop.xlane.xlu2 %993 }
 0x5e7   : > { %v995_v25 = vsub.f32 %v991_v21, %v994_v24 }
 0x5e9   : > { %v996_v26 = vmul.f32 1.442695, %v995_v25 }
 0x5eb   : > { %1377 = vpow2.f32 %v996_v26 }
 0x5f1   : > { %v1378_v27 = vpop.eup %1377 }
 0x5f2   : > { %v1001_v28 = vpack.c.bf16 %v1378_v27, %v1378_v27  ;;  %v998_v15 = vsel %vm584_vm5, %v1378_v27, 0.0 }
 0x5f3   : > { %999 = vadd.xlane.f32.xlu0 %v998_v15 }
 0x5f4   : > { %1290 = vmatmul.msk.bf16.vlgmr.msrb.gmra.mxu2 %vm584_vm5, %v1001_v28 }
 0x666   : > { %v1000_v31 = vpop.xlane.xlu0 %999 }
 0x667   : > { %1379 = vrcp.f32 %v1000_v31 }
 0x668   : > { %1381 = vrcp.f32 %v1500_v3 }
 0x66d   : > { %v1380_v32 = vpop.eup %1379 }
 0x66e   : > { %v1382_v42 = vpop.eup %1381 }
 0x66f   : > { %v1063_v43 = vmul.f32 128.0, %v1382_v42  ;;  %vm1067_vm7 = vweird.f32 %v1382_v42 }
 0x671   : > { %v1064_v7 = vsub.f32 1.0, %v1063_v43 }
 0x673   : > { %v1065_v11 = vmul.f32 %v1382_v42, %v1064_v7 }
 0x675   : > { %v1066_v44 = vadd.f32 %v1382_v42, %v1065_v11 }
 0x677   : > { %v1017_v33 = vpop.f32.mrf.mxu2  ;;  %v1068_v45 = vsel %vm1067_vm7, %v1382_v42, %v1066_v44 }
 0x678   : > { %v1022_v34 = vmul.f32 %v1380_v32, %v1017_v33 }
 0x67a   : > { %v1023_v35 = vpack.c.bf16 %v1022_v34, %v1022_v34 }
 0x67c   : > { %1299 = vmatmul.msk.bf16.vlgmr.msrb.gmra.mxu3 %vm490_vm0, %v1023_v35 }
 0x67f   : > { %v1019_v36 = vpop.f32.mrf.mxu2 }
 0x6ff   : > { %v1048_v38 = vpop.f32.mrf.mxu3 }
 0x700   : > { %v1052_v2 = vadd.f32 %v1048_v38, %v918_v17 }
 0x702   : > { %v1057_v39 = vadd.f32 %v1362_v37, %v1052_v2 }
 0x704   : > { %v1059_v40 = vadd.f32 %v1058_v0, %v1057_v39 }
 0x706   : > { %1060 = vadd.xlane.f32.xlu2 %v1059_v40  ;;  %v1070_v41 = vmul.f32 %v1059_v40, %v1059_v40 }
 0x707   : > { %v1050_v1 = vpop.f32.mrf.mxu3 }
 0x708   : > { %1071 = vadd.xlane.f32.xlu0 %v1070_v41 }
 0x779   : > { %v1061_v46 = vpop.xlane.xlu2 %1060 }
 0x77a   : > { %v1069_v8 = vmul.f32 %v1068_v45, %v1061_v46 }
 0x77b   : > { %v1072_v47 = vpop.xlane.xlu0 %1071 }
 0x77c   : > { %v1074_v4 = vmul.f32 %v1069_v8, %v1069_v8  ;;  %v1073_v48 = vmul.f32 %v1072_v47, %v1068_v45  ;;  %v1076_v56 = vsub.f32 %v1059_v40, %v1069_v8 }
 0x77e   : > { %v1075_v49 = vsub.f32 %v1073_v48, %v1074_v4 }
 0x780   : > { %v1077_v50 = vadd.f32 1e-05, %v1075_v49 }
 0x782   : > { %1383 = vrsqrt.f32 %v1077_v50  ;;  %vm1084_vm9 = vweird.f32 %v1077_v50 }
 0x788   : > { %v1384_v10 = vpop.eup %1383 }
 0x789   : > { %v1079_v51 = vmul.f32 %v1384_v10, %v1077_v50  ;;  %vm1085_vm8 = vweird.f32 %v1384_v10 }
 0x78a   : > { %vm1086_vm10 = vmor %vm1084_vm9, %vm1085_vm8 }
 0x78b   : > { %v1080_v52 = vmul.f32 %v1384_v10, %v1079_v51 }
 0x78d   : > { %v1081_v53 = vmul.f32 0.5, %v1080_v52 }
 0x78f   : > { %v1082_v54 = vsub.f32 1.5, %v1081_v53 }
 0x791   : > { %v1083_v55 = vmul.f32 %v1384_v10, %v1082_v54 }
 0x793   : > { %v1087_v58 = vsel %vm1086_vm10, %v1384_v10, %v1083_v55 }
 0x794   : > { %v1088_v60 = vmul.f32 %v1087_v58, %v1076_v56 }
 0x796   : > { %v1093_v61 = vmul.f32 %v1363_v57, %v1088_v60 }
 0x798   : > { %v1098_v62 = vadd.f32 %v1364_v59, %v1093_v61 }
 0x79a   : > { %v1099_v63 = vpack.c.bf16 %v1098_v62, %v1098_v62 }
 0x79c   : > { %1100 = vst [vmem:[%s435_s16] sm:$0xf] %v1099_v63 }
 0x79d PF: > { %s22_s13 = sadd.s32 1, %s1489_s13  }
 0x79e   : > { %p19_p7 = scmp.ge.s32.totalorder %s22_s13, 4  }
 0x7a0   :  { %21 = sbr.rel (!%p19_p7) target bundleno = 2 (0x2), region = 109 }
 0x7a5   :  { %1120 = vsyncpa [#allocation3], 1 }
 0x7a6   :  { %1122 = vsyncpa [#allocation3 + $0x1], 1 }
 0x7a7   :  { %1123 = vsyncpa [#allocation5], 1 }

// kernel: transformer_fwd.16
= control target key start
LH: loop header
LB: loop body
LE: loop exit
PB: predicated region body
PF: predicated region fallthrough
CT: control target
= control target key end

     0   :  { %15 = vsyncpa [#allocation3], 0  ;;  %s1987_s0 = inlined_call_operand.vmem [shape: bf16[2,8,128], index: 0, kind: input, shape index: {}]   ;;  %s1988_s1 = inlined_call_operand.vmem [shape: bf16[2,8,128], index: 1, kind: input, shape index: {}]   ;;  %s1989_s2 = inlined_call_operand.vmem [shape: f32[2,1,8], index: 2, kind: input, shape index: {}]   ;;  %s1990_s3 = inlined_call_operand.hbm [shape: bf16[32,32], index: 3, kind: input, shape index: {}]   ;;  %s1991_s4 = inlined_call_operand.hbm [shape: bf16[32,32], index: 4, kind: input, shape index: {}]   ;;  %s1992_s5 = inlined_call_operand.hbm [shape: bf16[32,32], index: 5, kind: input, shape index: {}]   ;;  %s1993_s6 = inlined_call_operand.vmem [shape: bf16[128,128], index: 6, kind: input, shape index: {}]   ;;  %s1994_s7 = inlined_call_operand.hbm [shape: f32[1,128], index: 7, kind: input, shape index: {}]   ;;  %s1995_s8 = inlined_call_operand.hbm [shape: f32[1,128], index: 8, kind: input, shape index: {}]   ;;  %s1996_s9 = inlined_call_operand.hbm [shape: f32[1,128], index: 9, kind: input, shape index: {}]   ;;  %s1997_s10 = inlined_call_operand.vmem [shape: bf16[2,8,128], index: 10, kind: output, shape index: {}]  }
   0x1   :  { %16 = vsyncpa [#allocation5], 0 }
   0x2   :  { %17 = vsyncpa [#allocation8], 0 }
   0x3   :  { %18 = vsyncpa [#allocation11], 0  ;;  %s1760_s13 = smov 0  }
   0x4 LB: > { %s1766_s14 = sadd.s32 4294967295, %s1690_s13   ;;  %p1275_p0 = scmp.ge.s32.totalorder %s1690_s13, 1  ;;  %s1690_s13 = sphi %s1760_s13, %s24_s13  }
   0x5   : > { %p280_p1 = scmp.lt.s32.totalorder %s1690_s13, 3  ;;  %p1432_p2 = scmp.eq.s32.totalorder %s1766_s14, 0 }
   0x6   : > { %s305_s17 = sshll.u32 %s1991_s4, 4  ;;  %s337_s21 = sshll.u32 %s1994_s7, 4  ;;  %s306_s17 = int_to_ptr.hbm [resolvable:$true] %s305_s17  ;;  %s338_s21 = int_to_ptr.hbm [resolvable:$true] %s337_s21 }
   0x7   : > { %p1774_p3 = pnand %p1275_p0, %p280_p1  ;;  %s1692_s22 = smov [#allocation4]  }
   0x8   : > { %s307_s23 = sshll.u32 %s1692_s22, 4  ;;  %s1693_s25 = smov [#allocation7]   ;;  %s308_s23 = int_to_ptr.vmem [resolvable:$true] %s307_s23 }
   0x9   : > { %p1413_p4 = pneg %p1774_p3  ;;  %s339_s26 = sshll.u32 %s1693_s25, 4  ;;  %s340_s26 = int_to_ptr.vmem [resolvable:$true] %s339_s26 }
   0xa   : > { %s291_s29 = sshll.u32 %s1990_s3, 4  ;;  %s1694_s30 = smov 64   ;;  %s292_s29 = int_to_ptr.hbm [resolvable:$true] %s291_s29 }
   0xb   : > { %p1785_p5 = pnand %p1432_p2, %p1413_p4  ;;  %s1695_s11 = smov 4  }
   0xc   : > { %s1696_s12 = smov [#allocation2]   ;;  %s319_s20 = sshll.u32 %s1992_s5, 4  ;;  %s320_s20 = int_to_ptr.hbm [resolvable:$true] %s319_s20 }
   0xd   : > { %1419 = dma.hbm_to_vmem [thread:$0]  (!%p1785_p5), %s306_s17, 256, %s308_s23, [#allocation5], %s1694_s30, %s1694_s30, %s1695_s11  }
   0xe   : > { %1425 = dma.hbm_to_vmem [thread:$0]  (!%p1785_p5), %s338_s21, 16, %s340_s26, [#allocation8]  }
   0xf   : > { %s293_s15 = sshll.u32 %s1696_s12, 4  ;;  %s349_s27 = sshll.u32 %s1995_s8, 4  ;;  %s294_s15 = int_to_ptr.vmem [resolvable:$true] %s293_s15  ;;  %s350_s27 = int_to_ptr.hbm [resolvable:$true] %s349_s27 }
  0x10   : > { %1416 = dma.hbm_to_vmem [thread:$0]  (!%p1785_p5), %s292_s29, 256, %s294_s15, [#allocation3], %s1694_s30, %s1694_s30, %s1695_s11  }
  0x11   : > { %s1697_s17 = smov [#allocation6]   ;;  %s1698_s21 = smov [#allocation9]  }
  0x12   : > { %s321_s23 = sshll.u32 %s1697_s17, 4  ;;  %s351_s26 = sshll.u32 %s1698_s21, 4  ;;  %s322_s23 = int_to_ptr.vmem [resolvable:$true] %s321_s23  ;;  %s352_s26 = int_to_ptr.vmem [resolvable:$true] %s351_s26 }
  0x13   : > { %1422 = dma.hbm_to_vmem [thread:$0]  (!%p1785_p5), %s320_s20, 256, %s322_s23, [#allocation5], %s1694_s30, %s1694_s30, %s1695_s11  }
  0x14   : > { %s361_s16 = sshll.u32 %s1996_s9, 4  ;;  %s1699_s29 = smov [#allocation10]   ;;  %s362_s16 = int_to_ptr.hbm [resolvable:$true] %s361_s16 }
  0x15   : > { %1428 = dma.hbm_to_vmem [thread:$0]  (!%p1785_p5), %s350_s27, 16, %s352_s26, [#allocation8]  }
  0x16   : > { %s363_s15 = sshll.u32 %s1699_s29, 4  ;;  %396 = sbr.rel (%p1774_p3) target bundleno = 1965 (0x7ad), region = 60  ;;  %s364_s15 = int_to_ptr.vmem [resolvable:$true] %s363_s15 }
  0x17   : > { %1431 = dma.hbm_to_vmem [thread:$0]  (!%p1785_p5), %s362_s16, 16, %s364_s15, [#allocation11]  }
  0x1b   : > { %1673 = dma.done.wait (%p1432_p2), [#allocation3], 256  }
  0x1c   : > { %1675 = vsyncadd (%p1432_p2), [#allocation3], 4294967040 }
  0x1d   : > { %1677 = dma.done.wait (%p1432_p2), [#allocation5], 512  }
  0x1e   : > { %1679 = vsyncadd (%p1432_p2), [#allocation5], 4294966784 }
  0x1f   : > { %1681 = dma.done.wait (%p1432_p2), [#allocation8], 32  }
  0x20   : > { %1683 = vsyncadd (%p1432_p2), [#allocation8], 4294967264 }
  0x21   : > { %1685 = dma.done.wait (%p1432_p2), [#allocation11], 16  }
  0x22   : > { %1687 = vsyncadd (%p1432_p2), [#allocation11], 4294967280  ;;  %p465_p6 = scmp.lt.s32.totalorder %s1766_s14, 1  ;;  %v1835_v0 = vld [vmem:[#allocation2 + $0x8] sm:$0xff]  ;;  %v1837_v1 = vld [vmem:[#allocation4 + $0x8] sm:$0xff]  ;;  %vm528_vm0 = vcmask 261120  }
  0x23   : > { %v1842_v2 = vld [vmem:[#allocation2] sm:$0xff]  ;;  %v1844_v3 = vld [vmem:[#allocation4] sm:$0xff]  ;;  %538 = vmatpush.bf16.msra.mxu0 %v1835_v0  ;;  %567 = vmatpush.bf16.msra.mxu1 %v1837_v1  ;;  %v1867_v8 = vld [vmem:[#allocation6 + $0x8] sm:$0xff]  ;;  %s1700_s25 = smov 96   ;;  %v1701_v24 = vmov 0   ;;  %vm622_vm3 = vcmask 64512  }
  0x24   : > { %s2003_s14 = smov (!%p465_p6, %s1766_s14), 1  ;;  %593 = vmatpush.bf16.msra.mxu2 %v1867_v8  ;;  %v1872_v10 = vld [vmem:[#allocation6] sm:$0xff]  ;;  %vm636_vm4 = vcmask 1043456   ;;  %v1382_v52 = vld [vmem:[%s1993_s6 + $0x8] sm:$0xff]  ;;  %s1703_s30 = smov 32   ;;  %v1388_v27 = vld [vmem:[%s1993_s6 + $0x38] sm:$0xff] }
  0x25   : > { %s1840_s18 = sshll.u32 %s2003_s14, 2  ;;  %s475_s23 = scalar_lea.vmem %s1989_s2, %s2003_s14  ;;  %v1381_v53 = vld [vmem:[%s1993_s6] sm:$0xff] }
  0x26   : > { %s468_s11 = scalar_lea.vmem %s1987_s0, %s1840_s18  ;;  %s472_s22 = scalar_lea.vmem %s1988_s1, %s1840_s18  ;;  %v511_v22 = vld [vmem:[%s475_s23] sm:$0x1] }
  0x27   : > { %539 = vmatpush.bf16.msra.mxu0 %v1842_v2  ;;  %568 = vmatpush.bf16.msra.mxu1 %v1844_v3  ;;  %v1858_v4 = vld [vmem:[%s468_s11] sm:$0xf]  ;;  %vm512_vm1 = vcmp.gt.f32.partialorder %v511_v22, 0.0  ;;  %s1702_s14 = smov 64   ;;  %s479_s26 = scalar_lea.vmem %s1997_s10, %s1840_s18 }
  0x28   : > { %v482_v5 = vld [vmem:[%s472_s22] sm:$0xf]  ;;  %v657_v9 = vunpack.c.l.b16 %v1858_v4  ;;  %594 = vmatpush.bf16.msra.mxu2 %v1872_v10  ;;  %v513_v25 = vsel %vm512_vm1, 1, %v1701_v24 }
  0x29   : > { %v679_v6 = vunpack.c.l.b16 %v482_v5  ;;  %v514_v26 = vperm.slane %v513_v25, 0 }
  0x2a   : > { %1301 = vmatmul.msk.bf16.vlgmr.msra.gmra.mxu0 %vm528_vm0, %v1858_v4  ;;  %1310 = vmatmul.msk.bf16.vlgmr.msra.gmra.mxu1 %vm528_vm0, %v482_v5  ;;  %v1874_v11 = vpack.c.b16 %v657_v9, %v657_v9 }
  0x2b   : > { %670 = vmatpush.bf16.msrb.mxu1 %v1835_v0  ;;  %v1865_v7 = vpack.c.b16 %v679_v6, %v679_v6  ;;  %1319 = vmatmul.msk.bf16.vlgmr.msra.gmra.mxu2 %vm528_vm0, %v482_v5  ;;  %vm1892_vm2 = vcmp.eq.s32.totalorder %v514_v26, 1 }
  0x2c   : > { %692 = vmatpush.bf16.msrb.mxu2 %v1837_v1 }
  0x2d   : > { %681 = vrot.lane.b32.xlu0 %v1865_v7, %s1700_s25  ;;  %842 = vrot.lane.b32.xlu2 %v1865_v7, %s1702_s14 }
  0x2f   : > { %671 = vmatpush.bf16.msrb.mxu1 %v1842_v2 }
  0x30   : > { %693 = vmatpush.bf16.msrb.mxu2 %v1844_v3 }
  0x35   : > { %659 = vrot.lane.b32.xlu0 %v1874_v11, %s1700_s25  ;;  %823 = vrot.lane.b32.xlu2 %v1874_v11, %s1702_s14 }
  0x87   : > { %v843_v6 = vpop.permute.xlu2 %842 }
  0x8f   : > { %v824_v9 = vpop.permute.xlu2 %823 }
  0x9f   : > { %v682_v19 = vpop.permute.xlu0 %681 }
  0xa0   : > { %1323 = vmatmul.msk.bf16.vlgmr.msrb.gmra.mxu2 %vm528_vm0, %v682_v19 }
  0xa7   : > { %v541_v12 = vpop.f32.mrf.mxu0  ;;  %v570_v13 = vpop.f32.mrf.mxu1 }
  0xa8   : > { %v574_v14 = vpack.c.bf16 %v570_v13, %v570_v13  ;;  %v545_v16 = vpack.c.bf16 %v541_v12, %v541_v12  ;;  %v660_v20 = vpop.permute.xlu0 %659 }
  0xa9   : > { %1322 = vmatmul.msk.bf16.vlgmr.msrb.gmra.mxu1 %vm528_vm0, %v660_v20  ;;  %v1384_v20 = vld [vmem:[%s1993_s6 + $0x18] sm:$0xff] }
  0xaa   : > { %v605_v15 = vsel %vm528_vm0, %v574_v14, 0  ;;  %788 = vmatpush.bf16.msra.mxu2 %v1384_v20 }
  0xab   : > { %614 = vmatpush.bf16.xpose.msra.mxu3 %v605_v15 }
  0xae   : > { %v596_v21 = vpop.f32.mrf.mxu2 }
  0xaf   : > { %v543_v17 = vpop.f32.mrf.mxu0  ;;  %v572_v18 = vpop.f32.mrf.mxu1  ;;  %v600_v33 = vpack.c.bf16 %v596_v21, %v596_v21  ;;  %v1383_v21 = vld [vmem:[%s1993_s6 + $0x10] sm:$0xff] }
  0xb0   : > { %789 = vmatpush.bf16.msra.mxu2 %v1383_v21 }
  0xb1   : > { %v638_v36 = vsel %vm636_vm4, %v600_v33, 0 }
  0xb2   : > { %1320 = vmatmul.msk.bf16.vlgmr.msra.gmra.mxu3 %vm528_vm0, %v545_v16  ;;  %647 = vmatpush.bf16.msrb.mxu0 %v638_v36 }
  0xb3   : > { %706 = vmatpush.bf16.msrb.mxu3 %v1867_v8 }
  0xb4   : > { %867 = vmatpush.bf16.msrb.mxu2 %v1867_v8 }
  0xb6   : > { %v598_v23 = vpop.f32.mrf.mxu2 }
  0xb7   : > { %707 = vmatpush.bf16.msrb.mxu3 %v1872_v10 }
  0xb8   : > { %868 = vmatpush.bf16.msrb.mxu2 %v1872_v10 }
  0xbb   : > { %816 = vmatpush.bf16.msra.mxu3 %v1382_v52 }
  0xbf   : > { %817 = vmatpush.bf16.msra.mxu3 %v1381_v53 }
  0xc2   : > { %1324 = vmatmul.msk.bf16.vlgmr.msrb.gmra.mxu3 %vm528_vm0, %v682_v19 }
 0x123   : > { %v695_v34 = vpop.f32.mrf.mxu2 }
 0x124   : > { %v699_v37 = vpack.c.bf16 %v695_v34, %v695_v34 }
 0x126   : > { %v718_v39 = vsel %vm528_vm0, %v699_v37, 0  ;;  %v673_v43 = vpop.f32.mrf.mxu1 }
 0x127   : > { %727 = vmatpush.bf16.xpose.msra.mxu0 %v718_v39  ;;  %v677_v51 = vpack.c.bf16 %v673_v43, %v673_v43 }
 0x12b   : > { %v697_v41 = vpop.f32.mrf.mxu2 }
 0x12e   : > { %v675_v44 = vpop.f32.mrf.mxu1 }
 0x135   : > { %v616_v28 = vpop.f32.mrf.mxu3 }
 0x136   : > { %v620_v29 = vsel %vm1892_vm2, %v616_v28, -1e+20 }
 0x137   : > { %v621_v30 = vmul.f32 0.088388346, %v620_v29 }
 0x139   : > { %v623_v31 = vsel %vm622_vm3, %v621_v30, -inf }
 0x13a   : > { %624 = vmax.xlane.f32.xlu1 %v623_v31 }
 0x13d   : > { %v618_v32 = vpop.f32.mrf.mxu3 }
 0x145   : > { %v709_v35 = vpop.f32.mrf.mxu3 }
 0x146   : > { %v713_v38 = vpack.c.bf16 %v709_v35, %v709_v35 }
 0x148   : > { %v749_v40 = vsel %vm636_vm4, %v713_v38, 0 }
 0x149   : > { %758 = vmatpush.bf16.msra.mxu1 %v749_v40 }
 0x14d   : > { %853 = vmatpush.bf16.msrb.mxu1 %v1837_v1  ;;  %v711_v42 = vpop.f32.mrf.mxu3 }
 0x151   : > { %854 = vmatpush.bf16.msrb.mxu1 %v1844_v3 }
 0x1ad   : > { %v625_v45 = vpop.xlane.xlu1 %624 }
 0x1ae   : > { %v626_v46 = vsub.f32 %v621_v30, %v625_v45 }
 0x1b0   : > { %v627_v47 = vmul.f32 1.442695, %v626_v46 }
 0x1b2   : > { %1468 = vpow2.f32 %v627_v47 }
 0x1b8   : > { %v1469_v48 = vpop.eup %1468 }
 0x1b9   : > { %v629_v49 = vsel %vm622_vm3, %v1469_v48, 0.0  ;;  %v632_v50 = vpack.c.bf16 %v1469_v48, %v1469_v48  ;;  %v1385_v48 = vld [vmem:[%s1993_s6 + $0x20] sm:$0xff] }
 0x1ba   : > { %630 = vadd.xlane.f32.xlu0 %v629_v49 }
 0x1bb   : > { %1321 = vmatmul.msk.bf16.vlgmr.msrb.gmra.mxu0 %vm622_vm3, %v632_v50 }
 0x1bc   : > { %834 = vmatpush.bf16.msrb.mxu0 %v1835_v0 }
 0x1c0   : > { %835 = vmatpush.bf16.msrb.mxu0 %v1842_v2 }
 0x1cb   : > { %1325 = vmatmul.msk.bf16.vlgmr.msra.gmra.mxu0 %vm528_vm0, %v677_v51 }
 0x1db   : > { %1345 = vmatmul.msk.bf16.vlgmr.msrb.gmra.mxu0 %vm528_vm0, %v824_v9 }
 0x22d   : > { %v631_v54 = vpop.xlane.xlu0 %630 }
 0x22e   : > { %1470 = vrcp.f32 %v631_v54 }
 0x234   : > { %v1471_v55 = vpop.eup %1470 }
 0x238   : > { %v649_v56 = vpop.f32.mrf.mxu0 }
 0x239   : > { %v654_v57 = vmul.f32 %v1471_v55, %v649_v56 }
 0x23b   : > { %v655_v58 = vpack.c.bf16 %v654_v57, %v654_v57 }
 0x23d   : > { %1344 = vmatmul.msk.bf16.vlgmr.msra.gmra.mxu3 %vm528_vm0, %v655_v58 }
 0x240   : > { %v651_v59 = vpop.f32.mrf.mxu0 }
 0x248   : > { %v729_v60 = vpop.f32.mrf.mxu0 }
 0x249   : > { %v733_v61 = vsel %vm1892_vm2, %v729_v60, -1e+20 }
 0x24a   : > { %v734_v62 = vmul.f32 0.088388346, %v733_v61 }
 0x24c   : > { %v735_v63 = vsel %vm622_vm3, %v734_v62, -inf }
 0x24d   : > { %736 = vmax.xlane.f32.xlu1 %v735_v63 }
 0x250   : > { %v731_v5 = vpop.f32.mrf.mxu0 }
 0x258   : > { %v837_v22 = vpop.f32.mrf.mxu0 }
 0x259   : > { %v841_v34 = vpack.c.bf16 %v837_v22, %v837_v22 }
 0x260   : > { %v839_v24 = vpop.f32.mrf.mxu0 }
 0x2c0   : > { %v1922_v12 = vpop.f32.mrf.mxu3  ;;  %v737_v13 = vpop.xlane.xlu1 %736 }
 0x2c1   : > { %v738_v14 = vsub.f32 %v734_v62, %v737_v13 }
 0x2c3   : > { %v739_v15 = vmul.f32 1.442695, %v738_v14 }
 0x2c5   : > { %1472 = vpow2.f32 %v739_v15 }
 0x2c8   : > { %v821_v16 = vpop.f32.mrf.mxu3 }
 0x2cb   : > { %v1473_v17 = vpop.eup %1472 }
 0x2cc   : > { %v744_v18 = vpack.c.bf16 %v1473_v17, %v1473_v17  ;;  %v741_v19 = vsel %vm622_vm3, %v1473_v17, 0.0 }
 0x2cd   : > { %742 = vadd.xlane.f32.xlu1 %v741_v19 }
 0x2ce   : > { %1326 = vmatmul.msk.bf16.vlgmr.msra.gmra.mxu1 %vm622_vm3, %v744_v18 }
 0x2de   : > { %1346 = vmatmul.msk.bf16.vlgmr.msrb.gmra.mxu1 %vm528_vm0, %v843_v6 }
 0x2e6   : > { %976 = vrot.lane.b32.xlu1 %v1865_v7, %s1703_s30 }
 0x2ee   : > { %957 = vrot.lane.b32.xlu1 %v1874_v11, %s1703_s30 }
 0x340   : > { %v743_v23 = vpop.xlane.xlu1 %742 }
 0x341   : > { %1474 = vrcp.f32 %v743_v23 }
 0x347   : > { %v1475_v25 = vpop.eup %1474 }
 0x34b   : > { %v760_v26 = vpop.f32.mrf.mxu1 }
 0x34c   : > { %v765_v28 = vmul.f32 %v1475_v25, %v760_v26  ;;  %v1387_v26 = vld [vmem:[%s1993_s6 + $0x30] sm:$0xff] }
 0x34e   : > { %v766_v29 = vpack.c.bf16 %v765_v28, %v765_v28 }
 0x350   : > { %1335 = vmatmul.msk.bf16.vlgmr.msra.gmra.mxu2 %vm528_vm0, %v766_v29 }
 0x351   : > { %968 = vmatpush.bf16.msra.mxu2 %v1835_v0 }
 0x353   : > { %v762_v30 = vpop.f32.mrf.mxu1 }
 0x355   : > { %969 = vmatpush.bf16.msra.mxu2 %v1842_v2 }
 0x358   : > { %v977_v41 = vpop.permute.xlu1 %976 }
 0x35b   : > { %v856_v31 = vpop.f32.mrf.mxu1 }
 0x35c   : > { %v860_v32 = vpack.c.bf16 %v856_v31, %v856_v31 }
 0x35e   : > { %v879_v33 = vsel %vm528_vm0, %v860_v32, 0 }
 0x35f   : > { %888 = vmatpush.bf16.xpose.msrb.mxu3 %v879_v33 }
 0x360   : > { %1347 = vmatmul.msk.bf16.vlgmr.msrb.gmra.mxu2 %vm528_vm0, %v843_v6  ;;  %v958_v42 = vpop.permute.xlu1 %957 }
 0x363   : > { %v858_v35 = vpop.f32.mrf.mxu1 }
 0x366   : > { %1348 = vmatmul.msk.bf16.vlgmr.msrb.gmra.mxu3 %vm528_vm0, %v841_v34  ;;  %v1465_v34 = vld [vmem:[#allocation7] ss:$0 sm:$0xff] }
 0x367   : > { %987 = vmatpush.bf16.msra.mxu3 %v1837_v1 }
 0x36b   : > { %988 = vmatpush.bf16.msra.mxu3 %v1844_v3 }
 0x36f   : > { %1083 = vmatpush.bf16.msrb.mxu3 %v1388_v27 }
 0x370   : > { %1359 = vmatmul.msk.bf16.vlgmr.msra.gmra.mxu2 %vm528_vm0, %v958_v42 }
 0x373   : > { %1084 = vmatpush.bf16.msrb.mxu3 %v1387_v26 }
 0x376   : > { %1360 = vmatmul.msk.bf16.vlgmr.msra.gmra.mxu3 %vm528_vm0, %v977_v41 }
 0x3d3   : > { %v791_v0 = vpop.f32.mrf.mxu2 }
 0x3d4   : > { %v820_v9 = vadd.f32 %v1922_v12, %v791_v0  ;;  %v1096_v0 = vunpack.c.l.bf16 %v1858_v4 }
 0x3db   : > { %v793_v2 = vpop.f32.mrf.mxu2 }
 0x3e3   : > { %v870_v36 = vpop.f32.mrf.mxu2 }
 0x3e4   : > { %v874_v37 = vpack.c.bf16 %v870_v36, %v870_v36 }
 0x3e6   : > { %v910_v38 = vsel %vm636_vm4, %v874_v37, 0 }
 0x3e7   : > { %919 = vmatpush.bf16.msra.mxu0 %v910_v38 }
 0x3e9   : > { %v890_v1 = vpop.f32.mrf.mxu3 }
 0x3ea   : > { %v894_v3 = vsel %vm1892_vm2, %v890_v1, -1e+20 }
 0x3eb   : > { %1001 = vmatpush.bf16.msrb.mxu0 %v1867_v8  ;;  %v895_v39 = vmul.f32 0.088388346, %v894_v3  ;;  %v872_v40 = vpop.f32.mrf.mxu2  ;;  %v1704_v3 = vmov 128.0  }
 0x3ed   : > { %v896_v7 = vsel %vm622_vm3, %v895_v39, -inf }
 0x3ee   : > { %897 = vmax.xlane.f32.xlu2 %v896_v7 }
 0x3ef   : > { %1002 = vmatpush.bf16.msrb.mxu0 %v1872_v10  ;;  %v1386_v10 = vld [vmem:[%s1993_s6 + $0x28] sm:$0xff] }
 0x3f0   : > { %949 = vmatpush.bf16.msra.mxu1 %v1386_v10 }
 0x3f1   : > { %v892_v11 = vpop.f32.mrf.mxu3 }
 0x3f3   : > { %v971_v53 = vpop.f32.mrf.mxu2 }
 0x3f4   : > { %950 = vmatpush.bf16.msra.mxu1 %v1385_v48  ;;  %v975_v63 = vpack.c.bf16 %v971_v53, %v971_v53 }
 0x3f9   : > { %v990_v49 = vpop.f32.mrf.mxu3 }
 0x3fa   : > { %v994_v50 = vpack.c.bf16 %v990_v49, %v990_v49 }
 0x3fb   : > { %v973_v54 = vpop.f32.mrf.mxu2 }
 0x3fc   : > { %v1013_v51 = vsel %vm528_vm0, %v994_v50, 0  ;;  %v1466_v54 = vld [vmem:[#allocation9] ss:$0 sm:$0xff] }
 0x3fd   : > { %1022 = vmatpush.bf16.xpose.msrb.mxu1 %v1013_v51 }
 0x401   : > { %v992_v52 = vpop.f32.mrf.mxu3 }
 0x461   : > { %v898_v43 = vpop.xlane.xlu2 %897 }
 0x462   : > { %v899_v8 = vsub.f32 %v895_v39, %v898_v43 }
 0x464   : > { %v900_v44 = vmul.f32 1.442695, %v899_v8 }
 0x466   : > { %1476 = vpow2.f32 %v900_v44 }
 0x46c   : > { %v1477_v45 = vpop.eup %1476 }
 0x46d   : > { %v905_v46 = vpack.c.bf16 %v1477_v45, %v1477_v45  ;;  %v902_v47 = vsel %vm622_vm3, %v1477_v45, 0.0 }
 0x46e   : > { %903 = vadd.xlane.f32.xlu1 %v902_v47 }
 0x46f   : > { %1349 = vmatmul.msk.bf16.vlgmr.msra.gmra.mxu0 %vm622_vm3, %v905_v46 }
 0x47f   : > { %1361 = vmatmul.msk.bf16.vlgmr.msrb.gmra.mxu0 %vm528_vm0, %v977_v41 }
 0x4e1   : > { %v904_v55 = vpop.xlane.xlu1 %903 }
 0x4e2   : > { %1478 = vrcp.f32 %v904_v55 }
 0x4e8   : > { %v1479_v56 = vpop.eup %1478 }
 0x4ec   : > { %v921_v57 = vpop.f32.mrf.mxu0 }
 0x4ed   : > { %v926_v58 = vmul.f32 %v1479_v56, %v921_v57  ;;  %v1467_v56 = vld [vmem:[#allocation10] ss:$0 sm:$0xff] }
 0x4ef   : > { %v927_v59 = vpack.c.bf16 %v926_v58, %v926_v58 }
 0x4f1   : > { %1358 = vmatmul.msk.bf16.vlgmr.msra.gmra.mxu1 %vm528_vm0, %v927_v59 }
 0x4f4   : > { %v923_v60 = vpop.f32.mrf.mxu0 }
 0x4fc   : > { %v1004_v61 = vpop.f32.mrf.mxu0 }
 0x4fd   : > { %v1008_v62 = vpack.c.bf16 %v1004_v61, %v1004_v61 }
 0x4ff   : > { %v1044_v5 = vsel %vm636_vm4, %v1008_v62, 0 }
 0x500   : > { %1053 = vmatpush.bf16.msrb.mxu2 %v1044_v5 }
 0x501   : > { %1362 = vmatmul.msk.bf16.vlgmr.msrb.gmra.mxu1 %vm528_vm0, %v975_v63 }
 0x504   : > { %v1006_v6 = vpop.f32.mrf.mxu0 }
 0x56e   : > { %v952_v13 = vpop.f32.mrf.mxu1 }
 0x56f   : > { %v956_v14 = vadd.f32 %v952_v13, %v820_v9 }
 0x576   : > { %v954_v15 = vpop.f32.mrf.mxu1 }
 0x57e   : > { %v1024_v16 = vpop.f32.mrf.mxu1 }
 0x57f   : > { %v1028_v17 = vsel %vm1892_vm2, %v1024_v16, -1e+20 }
 0x580   : > { %v1029_v18 = vmul.f32 0.088388346, %v1028_v17 }
 0x582   : > { %v1030_v19 = vsel %vm622_vm3, %v1029_v18, -inf }
 0x583   : > { %1031 = vmax.xlane.f32.xlu2 %v1030_v19 }
 0x586   : > { %v1026_v20 = vpop.f32.mrf.mxu1 }
 0x5f6   : > { %v1032_v21 = vpop.xlane.xlu2 %1031 }
 0x5f7   : > { %v1033_v22 = vsub.f32 %v1029_v18, %v1032_v21 }
 0x5f9   : > { %v1034_v23 = vmul.f32 1.442695, %v1033_v22 }
 0x5fb   : > { %1480 = vpow2.f32 %v1034_v23 }
 0x601   : > { %v1481_v24 = vpop.eup %1480 }
 0x602   : > { %v1039_v25 = vpack.c.bf16 %v1481_v24, %v1481_v24  ;;  %v1036_v12 = vsel %vm622_vm3, %v1481_v24, 0.0 }
 0x603   : > { %1037 = vadd.xlane.f32.xlu0 %v1036_v12 }
 0x604   : > { %1363 = vmatmul.msk.bf16.vlgmr.msrb.gmra.mxu2 %vm622_vm3, %v1039_v25 }
 0x676   : > { %v1038_v28 = vpop.xlane.xlu0 %1037 }
 0x677   : > { %1482 = vrcp.f32 %v1038_v28 }
 0x678   : > { %1484 = vrcp.f32 %v1704_v3 }
 0x67d   : > { %v1483_v29 = vpop.eup %1482 }
 0x67e   : > { %v1485_v39 = vpop.eup %1484 }
 0x67f   : > { %v1101_v40 = vmul.f32 128.0, %v1485_v39  ;;  %vm1105_vm5 = vweird.f32 %v1485_v39 }
 0x681   : > { %v1102_v7 = vsub.f32 1.0, %v1101_v40 }
 0x683   : > { %v1103_v11 = vmul.f32 %v1485_v39, %v1102_v7 }
 0x685   : > { %v1104_v41 = vadd.f32 %v1485_v39, %v1103_v11 }
 0x687   : > { %v1055_v30 = vpop.f32.mrf.mxu2  ;;  %v1106_v42 = vsel %vm1105_vm5, %v1485_v39, %v1104_v41 }
 0x688   : > { %v1060_v31 = vmul.f32 %v1483_v29, %v1055_v30 }
 0x68a   : > { %v1061_v32 = vpack.c.bf16 %v1060_v31, %v1060_v31 }
 0x68c   : > { %1372 = vmatmul.msk.bf16.vlgmr.msrb.gmra.mxu3 %vm528_vm0, %v1061_v32 }
 0x68f   : > { %v1057_v33 = vpop.f32.mrf.mxu2 }
 0x70f   : > { %v1086_v35 = vpop.f32.mrf.mxu3 }
 0x710   : > { %v1090_v2 = vadd.f32 %v1086_v35, %v956_v14 }
 0x712   : > { %v1095_v36 = vadd.f32 %v1465_v34, %v1090_v2 }
 0x714   : > { %v1097_v37 = vadd.f32 %v1096_v0, %v1095_v36 }
 0x716   : > { %1098 = vadd.xlane.f32.xlu2 %v1097_v37  ;;  %v1108_v38 = vmul.f32 %v1097_v37, %v1097_v37 }
 0x717   : > { %v1088_v1 = vpop.f32.mrf.mxu3 }
 0x718   : > { %1109 = vadd.xlane.f32.xlu0 %v1108_v38 }
 0x789   : > { %v1099_v43 = vpop.xlane.xlu2 %1098 }
 0x78a   : > { %v1107_v8 = vmul.f32 %v1106_v42, %v1099_v43 }
 0x78b   : > { %v1110_v44 = vpop.xlane.xlu0 %1109 }
 0x78c   : > { %v1112_v4 = vmul.f32 %v1107_v8, %v1107_v8  ;;  %v1111_v45 = vmul.f32 %v1110_v44, %v1106_v42  ;;  %v1114_v53 = vsub.f32 %v1097_v37, %v1107_v8 }
 0x78e   : > { %v1113_v46 = vsub.f32 %v1111_v45, %v1112_v4 }
 0x790   : > { %v1115_v47 = vadd.f32 1e-05, %v1113_v46 }
 0x792   : > { %1486 = vrsqrt.f32 %v1115_v47  ;;  %vm1122_vm7 = vweird.f32 %v1115_v47 }
 0x798   : > { %v1487_v10 = vpop.eup %1486 }
 0x799   : > { %v1117_v48 = vmul.f32 %v1487_v10, %v1115_v47  ;;  %vm1123_vm6 = vweird.f32 %v1487_v10 }
 0x79a   : > { %vm1124_vm8 = vmor %vm1122_vm7, %vm1123_vm6 }
 0x79b   : > { %v1118_v49 = vmul.f32 %v1487_v10, %v1117_v48 }
 0x79d   : > { %v1119_v50 = vmul.f32 0.5, %v1118_v49 }
 0x79f   : > { %v1120_v51 = vsub.f32 1.5, %v1119_v50 }
 0x7a1   : > { %v1121_v52 = vmul.f32 %v1487_v10, %v1120_v51 }
 0x7a3   : > { %v1125_v55 = vsel %vm1124_vm8, %v1487_v10, %v1121_v52 }
 0x7a4   : > { %v1126_v57 = vmul.f32 %v1125_v55, %v1114_v53 }
 0x7a6   : > { %v1131_v58 = vmul.f32 %v1466_v54, %v1126_v57 }
 0x7a8   : > { %v1136_v59 = vadd.f32 %v1467_v56, %v1131_v58 }
 0x7aa   : > { %v1137_v60 = vpack.c.bf16 %v1136_v59, %v1136_v59 }
 0x7ac   : > { %1138 = vst [vmem:[%s479_s26] sm:$0xf] %v1137_v60 }
 0x7ad PF: > { %s24_s13 = sadd.s32 1, %s1690_s13  }
 0x7ae   : > { %p21_p7 = scmp.ge.s32.totalorder %s24_s13, 4  }
 0x7b0   :  { %23 = sbr.rel (!%p21_p7) target bundleno = 4 (0x4), region = 121 }
 0x7b5   :  { %1158 = vsyncpa [#allocation3], 1 }
 0x7b6   :  { %1160 = vsyncpa [#allocation3 + $0x1], 1 }
 0x7b7   :  { %1161 = vsyncpa [#allocation5], 1 }
 0x7b8   :  { %1162 = vsyncpa [#allocation8], 1 }
 0x7b9   :  { %1163 = vsyncpa [#allocation11], 1 }

// kernel: transformer_fwd.18
= control target key start
LH: loop header
LB: loop body
LE: loop exit
PB: predicated region body
PF: predicated region fallthrough
CT: control target
= control target key end

     0   :  { %15 = vsyncpa [#allocation3], 0  ;;  %s2042_s0 = inlined_call_operand.vmem [shape: bf16[2,8,128], index: 0, kind: input, shape index: {}, may-alias: {0,1}]   ;;  %s2043_s1 = inlined_call_operand.vmem [shape: bf16[2,8,128], index: 1, kind: input, shape index: {}, may-alias: {0,1}]   ;;  %s2044_s2 = inlined_call_operand.vmem [shape: f32[2,1,8], index: 2, kind: input, shape index: {}]   ;;  %s2045_s3 = inlined_call_operand.hbm [shape: bf16[32,32], index: 3, kind: input, shape index: {}]   ;;  %s2046_s4 = inlined_call_operand.hbm [shape: bf16[32,32], index: 4, kind: input, shape index: {}]   ;;  %s2047_s5 = inlined_call_operand.hbm [shape: bf16[32,32], index: 5, kind: input, shape index: {}]   ;;  %s2048_s6 = inlined_call_operand.hbm [shape: bf16[128,128], index: 6, kind: input, shape index: {}]   ;;  %s2049_s7 = inlined_call_operand.hbm [shape: f32[1,128], index: 7, kind: input, shape index: {}]   ;;  %s2050_s8 = inlined_call_operand.hbm [shape: f32[1,128], index: 8, kind: input, shape index: {}]   ;;  %s2051_s9 = inlined_call_operand.hbm [shape: f32[1,128], index: 9, kind: input, shape index: {}]   ;;  %s2052_s10 = inlined_call_operand.vmem [shape: bf16[2,8,128], index: 10, kind: output, shape index: {}]  }
   0x1   :  { %16 = vsyncpa [#allocation5], 0 }
   0x2   :  { %17 = vsyncpa [#allocation8], 0 }
   0x3   :  { %18 = vsyncpa [#allocation11], 0  ;;  %s1834_s13 = smov 0  }
   0x4 LB: > { %s1840_s14 = sadd.s32 4294967295, %s1763_s13   ;;  %p1306_p0 = scmp.ge.s32.totalorder %s1763_s13, 1  ;;  %s1763_s13 = sphi %s1834_s13, %s24_s13  }
   0x5   : > { %p280_p1 = scmp.lt.s32.totalorder %s1763_s13, 3  ;;  %p1472_p2 = scmp.eq.s32.totalorder %s1840_s14, 0 }
   0x6   : > { %s305_s17 = sshll.u32 %s2046_s4, 4  ;;  %s333_s21 = sshll.u32 %s2048_s6, 4  ;;  %s306_s17 = int_to_ptr.hbm [resolvable:$true] %s305_s17  ;;  %s334_s21 = int_to_ptr.hbm [resolvable:$true] %s333_s21 }
   0x7   : > { %p1848_p3 = pnand %p1306_p0, %p280_p1  ;;  %s1765_s22 = smov [#allocation4]  }
   0x8   : > { %s307_s23 = sshll.u32 %s1765_s22, 4  ;;  %s1766_s25 = smov [#allocation7]   ;;  %s308_s23 = int_to_ptr.vmem [resolvable:$true] %s307_s23 }
   0x9   : > { %p1450_p4 = pneg %p1848_p3  ;;  %s335_s26 = sshll.u32 %s1766_s25, 4  ;;  %s336_s26 = int_to_ptr.vmem [resolvable:$true] %s335_s26 }
   0xa   : > { %s360_s29 = sshll.u32 %s2050_s8, 4  ;;  %s1767_s30 = smov 64   ;;  %s361_s29 = int_to_ptr.hbm [resolvable:$true] %s360_s29 }
   0xb   : > { %p1859_p5 = pnand %p1472_p2, %p1450_p4  ;;  %s1768_s11 = smov 4  }
   0xc   : > { %s1769_s12 = smov [#allocation10]   ;;  %s291_s20 = sshll.u32 %s2045_s3, 4  ;;  %s292_s20 = int_to_ptr.hbm [resolvable:$true] %s291_s20 }
   0xd   : > { %1456 = dma.hbm_to_vmem [thread:$0]  (!%p1859_p5), %s306_s17, 256, %s308_s23, [#allocation5], %s1767_s30, %s1767_s30, %s1768_s11  }
   0xe   : > { %1462 = dma.hbm_to_vmem [thread:$0]  (!%p1859_p5), %s334_s21, 1024, %s336_s26, [#allocation8], %s1767_s30, %s1767_s30, %s1768_s11  }
   0xf   : > { %s362_s15 = sshll.u32 %s1769_s12, 4  ;;  %s319_s27 = sshll.u32 %s2047_s5, 4  ;;  %s363_s15 = int_to_ptr.vmem [resolvable:$true] %s362_s15  ;;  %s320_s27 = int_to_ptr.hbm [resolvable:$true] %s319_s27 }
  0x10   : > { %1468 = dma.hbm_to_vmem [thread:$0]  (!%p1859_p5), %s361_s29, 16, %s363_s15, [#allocation11]  }
  0x11   : > { %s1770_s28 = smov [#allocation2]   ;;  %s1771_s21 = smov [#allocation6]  }
  0x12   : > { %s293_s17 = sshll.u32 %s1770_s28, 4  ;;  %s321_s23 = sshll.u32 %s1771_s21, 4  ;;  %s294_s17 = int_to_ptr.vmem [resolvable:$true] %s293_s17  ;;  %s322_s23 = int_to_ptr.vmem [resolvable:$true] %s321_s23 }
  0x13   : > { %1453 = dma.hbm_to_vmem [thread:$0]  (!%p1859_p5), %s292_s20, 256, %s294_s17, [#allocation3], %s1767_s30, %s1767_s30, %s1768_s11  }
  0x14   : > { %s348_s16 = sshll.u32 %s2049_s7, 4  ;;  %s372_s19 = sshll.u32 %s2051_s9, 4  ;;  %s349_s16 = int_to_ptr.hbm [resolvable:$true] %s348_s16  ;;  %s373_s19 = int_to_ptr.hbm [resolvable:$true] %s372_s19 }
  0x15   : > { %1459 = dma.hbm_to_vmem [thread:$0]  (!%p1859_p5), %s320_s27, 256, %s322_s23, [#allocation5], %s1767_s30, %s1767_s30, %s1768_s11  }
  0x16   : > { %s1772_s22 = smov [#allocation9]   ;;  %s1773_s20 = smov [#allocation12]  }
  0x17   : > { %s350_s25 = sshll.u32 %s1772_s22, 4  ;;  %s374_s28 = sshll.u32 %s1773_s20, 4  ;;  %s351_s25 = int_to_ptr.vmem [resolvable:$true] %s350_s25  ;;  %s375_s28 = int_to_ptr.vmem [resolvable:$true] %s374_s28 }
  0x18   : > { %1465 = dma.hbm_to_vmem [thread:$0]  (!%p1859_p5), %s349_s16, 16, %s351_s25, [#allocation8]  }
  0x19   : > { %1471 = dma.hbm_to_vmem [thread:$0]  (!%p1859_p5), %s373_s19, 16, %s375_s28, [#allocation11]  }
  0x1a   : > { %407 = sbr.rel (%p1848_p3) target bundleno = 1969 (0x7b1), region = 60 }
  0x1f   : > { %1746 = dma.done.wait (%p1472_p2), [#allocation3], 256  }
  0x20   : > { %1748 = vsyncadd (%p1472_p2), [#allocation3], 4294967040 }
  0x21   : > { %1750 = dma.done.wait (%p1472_p2), [#allocation5], 512  }
  0x22   : > { %1752 = vsyncadd (%p1472_p2), [#allocation5], 4294966784 }
  0x23   : > { %1754 = dma.done.wait (%p1472_p2), [#allocation8], 1040  }
  0x24   : > { %1756 = vsyncadd (%p1472_p2), [#allocation8], 4294966256 }
  0x25   : > { %1758 = dma.done.wait (%p1472_p2), [#allocation11], 32  }
  0x26   : > { %1760 = vsyncadd (%p1472_p2), [#allocation11], 4294967264  ;;  %p481_p6 = scmp.lt.s32.totalorder %s1840_s14, 1  ;;  %v1914_v0 = vld [vmem:[#allocation2 + $0x8] sm:$0xff]  ;;  %v1916_v1 = vld [vmem:[#allocation4 + $0x8] sm:$0xff]  ;;  %vm550_vm0 = vcmask 261120   ;;  %v532_v24 = vlaneseq }
  0x27   : > { %v1921_v2 = vld [vmem:[#allocation2] sm:$0xff]  ;;  %v1923_v3 = vld [vmem:[#allocation4] sm:$0xff]  ;;  %560 = vmatpush.bf16.msra.mxu0 %v1914_v0  ;;  %589 = vmatpush.bf16.msra.mxu1 %v1916_v1  ;;  %v1946_v8 = vld [vmem:[#allocation6 + $0x8] sm:$0xff]  ;;  %s1774_s23 = smov 96   ;;  %v1775_v25 = vmov 0   ;;  %vm644_vm5 = vcmask 64512  }
  0x28   : > { %s2058_s14 = smov (!%p481_p6, %s1840_s14), 1  ;;  %615 = vmatpush.bf16.msra.mxu2 %v1946_v8  ;;  %v1951_v10 = vld [vmem:[#allocation6] sm:$0xff]  ;;  %v533_v28 = vshrl.u32 %v532_v24, 7  ;;  %v535_v29 = vand.u32 127, %v532_v24  ;;  %vm658_vm6 = vcmask 1043456   ;;  %v1415_v55 = vld [vmem:[#allocation7 + $0x8] sm:$0xff] }
  0x29   : > { %s1919_s18 = sshll.u32 %s2058_s14, 2  ;;  %s491_s16 = scalar_lea.vmem %s2044_s2, %s2058_s14  ;;  %v1414_v56 = vld [vmem:[#allocation7] sm:$0xff]  ;;  %v1416_v24 = vld [vmem:[#allocation7 + $0x10] sm:$0xff] }
  0x2a   : > { %s484_s11 = scalar_lea.vmem %s2042_s0, %s1919_s18  ;;  %s488_s21 = scalar_lea.vmem %s2043_s1, %s1919_s18  ;;  %v527_v22 = vld [vmem:[%s491_s16] sm:$0x1]  ;;  %vm536_vm3 = vcmp.ge.s32.totalorder %v533_v28, %v535_v29 }
  0x2b   : > { %561 = vmatpush.bf16.msra.mxu0 %v1921_v2  ;;  %590 = vmatpush.bf16.msra.mxu1 %v1923_v3  ;;  %v1937_v4 = vld [vmem:[%s484_s11] sm:$0xf]  ;;  %vm528_vm1 = vcmp.gt.f32.partialorder %v527_v22, 0.0  ;;  %s1776_s14 = smov 64   ;;  %s1777_s29 = smov 32  }
  0x2c   : > { %v498_v5 = vld [vmem:[%s488_s21] sm:$0xf]  ;;  %v679_v9 = vunpack.c.l.b16 %v1937_v4  ;;  %616 = vmatpush.bf16.msra.mxu2 %v1951_v10  ;;  %v529_v26 = vsel %vm528_vm1, 1, %v1775_v25  ;;  %s495_s22 = scalar_lea.vmem %s2052_s10, %s1919_s18 }
  0x2d   : > { %v701_v6 = vunpack.c.l.b16 %v498_v5  ;;  %v530_v27 = vperm.slane %v529_v26, 0  ;;  %v1420_v30 = vld [vmem:[#allocation7 + $0x30] sm:$0xff] }
  0x2e   : > { %1334 = vmatmul.msk.bf16.vlgmr.msra.gmra.mxu0 %vm550_vm0, %v1937_v4  ;;  %1343 = vmatmul.msk.bf16.vlgmr.msra.gmra.mxu1 %vm550_vm0, %v498_v5  ;;  %v1953_v11 = vpack.c.b16 %v679_v9, %v679_v9 }
  0x2f   : > { %692 = vmatpush.bf16.msrb.mxu1 %v1914_v0  ;;  %v1944_v7 = vpack.c.b16 %v701_v6, %v701_v6  ;;  %1352 = vmatmul.msk.bf16.vlgmr.msra.gmra.mxu2 %vm550_vm0, %v498_v5  ;;  %vm531_vm2 = vcmp.eq.s32.totalorder %v530_v27, 1 }
  0x30   : > { %714 = vmatpush.bf16.msrb.mxu2 %v1916_v1  ;;  %vm1971_vm4 = vmand %vm531_vm2, %vm536_vm3 }
  0x31   : > { %703 = vrot.lane.b32.xlu0 %v1944_v7, %s1774_s23  ;;  %864 = vrot.lane.b32.xlu2 %v1944_v7, %s1776_s14 }
  0x33   : > { %693 = vmatpush.bf16.msrb.mxu1 %v1921_v2 }
  0x34   : > { %715 = vmatpush.bf16.msrb.mxu2 %v1923_v3 }
  0x39   : > { %681 = vrot.lane.b32.xlu0 %v1953_v11, %s1774_s23  ;;  %845 = vrot.lane.b32.xlu2 %v1953_v11, %s1776_s14 }
  0xa3   : > { %v704_v19 = vpop.permute.xlu0 %703 }
  0xa4   : > { %1356 = vmatmul.msk.bf16.vlgmr.msrb.gmra.mxu2 %vm550_vm0, %v704_v19 }
  0xab   : > { %v563_v12 = vpop.f32.mrf.mxu0  ;;  %v592_v13 = vpop.f32.mrf.mxu1 }
  0xac   : > { %v596_v14 = vpack.c.bf16 %v592_v13, %v592_v13  ;;  %v567_v16 = vpack.c.bf16 %v563_v12, %v563_v12  ;;  %v682_v20 = vpop.permute.xlu0 %681  ;;  %v865_v13 = vpop.permute.xlu2 %864 }
  0xad   : > { %1355 = vmatmul.msk.bf16.vlgmr.msrb.gmra.mxu1 %vm550_vm0, %v682_v20 }
  0xae   : > { %v627_v15 = vsel %vm550_vm0, %v596_v14, 0 }
  0xaf   : > { %636 = vmatpush.bf16.xpose.msra.mxu3 %v627_v15 }
  0xb2   : > { %v618_v21 = vpop.f32.mrf.mxu2 }
  0xb3   : > { %v565_v17 = vpop.f32.mrf.mxu0  ;;  %v594_v18 = vpop.f32.mrf.mxu1  ;;  %v622_v36 = vpack.c.bf16 %v618_v21, %v618_v21 }
  0xb4   : > { %v846_v14 = vpop.permute.xlu2 %845 }
  0xb5   : > { %v660_v39 = vsel %vm658_vm6, %v622_v36, 0 }
  0xb6   : > { %1353 = vmatmul.msk.bf16.vlgmr.msra.gmra.mxu3 %vm550_vm0, %v567_v16  ;;  %669 = vmatpush.bf16.msrb.mxu0 %v660_v39 }
  0xb7   : > { %728 = vmatpush.bf16.msrb.mxu3 %v1946_v8 }
  0xba   : > { %v620_v23 = vpop.f32.mrf.mxu2 }
  0xbb   : > { %729 = vmatpush.bf16.msrb.mxu3 %v1951_v10  ;;  %v1417_v23 = vld [vmem:[#allocation7 + $0x18] sm:$0xff] }
  0xbc   : > { %810 = vmatpush.bf16.msra.mxu2 %v1417_v23 }
  0xbf   : > { %838 = vmatpush.bf16.msra.mxu3 %v1415_v55 }
  0xc0   : > { %811 = vmatpush.bf16.msra.mxu2 %v1416_v24 }
  0xc3   : > { %839 = vmatpush.bf16.msra.mxu3 %v1414_v56 }
  0xc4   : > { %889 = vmatpush.bf16.msrb.mxu2 %v1946_v8 }
  0xc6   : > { %1357 = vmatmul.msk.bf16.vlgmr.msrb.gmra.mxu3 %vm550_vm0, %v704_v19 }
  0xc8   : > { %890 = vmatpush.bf16.msrb.mxu2 %v1951_v10 }
 0x127   : > { %v717_v37 = vpop.f32.mrf.mxu2 }
 0x128   : > { %v721_v40 = vpack.c.bf16 %v717_v37, %v717_v37 }
 0x12a   : > { %v740_v42 = vsel %vm550_vm0, %v721_v40, 0  ;;  %v695_v46 = vpop.f32.mrf.mxu1 }
 0x12b   : > { %749 = vmatpush.bf16.xpose.msra.mxu0 %v740_v42  ;;  %v699_v54 = vpack.c.bf16 %v695_v46, %v695_v46 }
 0x12f   : > { %v719_v44 = vpop.f32.mrf.mxu2 }
 0x132   : > { %v697_v47 = vpop.f32.mrf.mxu1 }
 0x139   : > { %v638_v31 = vpop.f32.mrf.mxu3 }
 0x13a   : > { %v642_v32 = vsel %vm1971_vm4, %v638_v31, -1e+20 }
 0x13b   : > { %v643_v33 = vmul.f32 0.088388346, %v642_v32 }
 0x13d   : > { %v645_v34 = vsel %vm644_vm5, %v643_v33, -inf }
 0x13e   : > { %646 = vmax.xlane.f32.xlu1 %v645_v34 }
 0x141   : > { %v640_v35 = vpop.f32.mrf.mxu3 }
 0x149   : > { %v731_v38 = vpop.f32.mrf.mxu3 }
 0x14a   : > { %v735_v41 = vpack.c.bf16 %v731_v38, %v731_v38 }
 0x14c   : > { %v771_v43 = vsel %vm658_vm6, %v735_v41, 0 }
 0x14d   : > { %780 = vmatpush.bf16.msra.mxu1 %v771_v43 }
 0x151   : > { %875 = vmatpush.bf16.msrb.mxu1 %v1916_v1  ;;  %v733_v45 = vpop.f32.mrf.mxu3 }
 0x155   : > { %876 = vmatpush.bf16.msrb.mxu1 %v1923_v3 }
 0x1b1   : > { %v647_v48 = vpop.xlane.xlu1 %646 }
 0x1b2   : > { %v648_v49 = vsub.f32 %v643_v33, %v647_v48 }
 0x1b4   : > { %v649_v50 = vmul.f32 1.442695, %v648_v49 }
 0x1b6   : > { %1511 = vpow2.f32 %v649_v50 }
 0x1bc   : > { %v1512_v51 = vpop.eup %1511 }
 0x1bd   : > { %v651_v52 = vsel %vm644_vm5, %v1512_v51, 0.0  ;;  %v654_v53 = vpack.c.bf16 %v1512_v51, %v1512_v51  ;;  %v1418_v51 = vld [vmem:[#allocation7 + $0x20] sm:$0xff] }
 0x1be   : > { %652 = vadd.xlane.f32.xlu0 %v651_v52 }
 0x1bf   : > { %1354 = vmatmul.msk.bf16.vlgmr.msrb.gmra.mxu0 %vm644_vm5, %v654_v53 }
 0x1c0   : > { %856 = vmatpush.bf16.msrb.mxu0 %v1914_v0 }
 0x1c4   : > { %857 = vmatpush.bf16.msrb.mxu0 %v1921_v2 }
 0x1cf   : > { %1358 = vmatmul.msk.bf16.vlgmr.msra.gmra.mxu0 %vm550_vm0, %v699_v54 }
 0x1df   : > { %1378 = vmatmul.msk.bf16.vlgmr.msrb.gmra.mxu0 %vm550_vm0, %v846_v14 }
 0x231   : > { %v653_v57 = vpop.xlane.xlu0 %652 }
 0x232   : > { %1513 = vrcp.f32 %v653_v57 }
 0x238   : > { %v1514_v58 = vpop.eup %1513 }
 0x23c   : > { %v671_v59 = vpop.f32.mrf.mxu0 }
 0x23d   : > { %v676_v60 = vmul.f32 %v1514_v58, %v671_v59 }
 0x23f   : > { %v677_v61 = vpack.c.bf16 %v676_v60, %v676_v60 }
 0x241   : > { %1377 = vmatmul.msk.bf16.vlgmr.msra.gmra.mxu3 %vm550_vm0, %v677_v61 }
 0x244   : > { %v673_v62 = vpop.f32.mrf.mxu0 }
 0x24c   : > { %v751_v63 = vpop.f32.mrf.mxu0 }
 0x24d   : > { %v755_v5 = vsel %vm1971_vm4, %v751_v63, -1e+20 }
 0x24e   : > { %v756_v6 = vmul.f32 0.088388346, %v755_v5 }
 0x250   : > { %v757_v9 = vsel %vm644_vm5, %v756_v6, -inf }
 0x251   : > { %758 = vmax.xlane.f32.xlu1 %v757_v9 }
 0x254   : > { %v753_v12 = vpop.f32.mrf.mxu0 }
 0x25c   : > { %v859_v25 = vpop.f32.mrf.mxu0 }
 0x25d   : > { %v863_v37 = vpack.c.bf16 %v859_v25, %v859_v25 }
 0x264   : > { %v861_v27 = vpop.f32.mrf.mxu0 }
 0x2c4   : > { %v1995_v15 = vpop.f32.mrf.mxu3  ;;  %v759_v16 = vpop.xlane.xlu1 %758 }
 0x2c5   : > { %v760_v17 = vsub.f32 %v756_v6, %v759_v16 }
 0x2c7   : > { %v761_v18 = vmul.f32 1.442695, %v760_v17 }
 0x2c9   : > { %1515 = vpow2.f32 %v761_v18 }
 0x2cc   : > { %v843_v19 = vpop.f32.mrf.mxu3 }
 0x2cf   : > { %v1516_v20 = vpop.eup %1515 }
 0x2d0   : > { %v766_v21 = vpack.c.bf16 %v1516_v20, %v1516_v20  ;;  %v763_v22 = vsel %vm644_vm5, %v1516_v20, 0.0 }
 0x2d1   : > { %764 = vadd.xlane.f32.xlu1 %v763_v22 }
 0x2d2   : > { %1359 = vmatmul.msk.bf16.vlgmr.msra.gmra.mxu1 %vm644_vm5, %v766_v21 }
 0x2e2   : > { %1379 = vmatmul.msk.bf16.vlgmr.msrb.gmra.mxu1 %vm550_vm0, %v865_v13 }
 0x2ea   : > { %998 = vrot.lane.b32.xlu1 %v1944_v7, %s1777_s29 }
 0x2f2   : > { %979 = vrot.lane.b32.xlu1 %v1953_v11, %s1777_s29 }
 0x344   : > { %v765_v26 = vpop.xlane.xlu1 %764 }
 0x345   : > { %1517 = vrcp.f32 %v765_v26 }
 0x34b   : > { %v1518_v28 = vpop.eup %1517 }
 0x34f   : > { %v782_v29 = vpop.f32.mrf.mxu1 }
 0x350   : > { %v787_v31 = vmul.f32 %v1518_v28, %v782_v29  ;;  %v1421_v29 = vld [vmem:[#allocation7 + $0x38] sm:$0xff] }
 0x352   : > { %v788_v32 = vpack.c.bf16 %v787_v31, %v787_v31 }
 0x354   : > { %1368 = vmatmul.msk.bf16.vlgmr.msra.gmra.mxu2 %vm550_vm0, %v788_v32 }
 0x355   : > { %990 = vmatpush.bf16.msra.mxu2 %v1914_v0 }
 0x357   : > { %v784_v33 = vpop.f32.mrf.mxu1 }
 0x359   : > { %991 = vmatpush.bf16.msra.mxu2 %v1921_v2 }
 0x35c   : > { %v999_v44 = vpop.permute.xlu1 %998 }
 0x35f   : > { %v878_v34 = vpop.f32.mrf.mxu1 }
 0x360   : > { %v882_v35 = vpack.c.bf16 %v878_v34, %v878_v34 }
 0x362   : > { %v901_v36 = vsel %vm550_vm0, %v882_v35, 0 }
 0x363   : > { %910 = vmatpush.bf16.xpose.msrb.mxu3 %v901_v36 }
 0x364   : > { %1380 = vmatmul.msk.bf16.vlgmr.msrb.gmra.mxu2 %vm550_vm0, %v865_v13  ;;  %v980_v45 = vpop.permute.xlu1 %979 }
 0x367   : > { %v880_v38 = vpop.f32.mrf.mxu1 }
 0x36a   : > { %1381 = vmatmul.msk.bf16.vlgmr.msrb.gmra.mxu3 %vm550_vm0, %v863_v37  ;;  %v1508_v37 = vld [vmem:[#allocation9] ss:$0 sm:$0xff] }
 0x36b   : > { %1009 = vmatpush.bf16.msra.mxu3 %v1916_v1 }
 0x36f   : > { %1010 = vmatpush.bf16.msra.mxu3 %v1923_v3 }
 0x373   : > { %1105 = vmatpush.bf16.msrb.mxu3 %v1421_v29 }
 0x374   : > { %1392 = vmatmul.msk.bf16.vlgmr.msra.gmra.mxu2 %vm550_vm0, %v980_v45 }
 0x377   : > { %1106 = vmatpush.bf16.msrb.mxu3 %v1420_v30 }
 0x37a   : > { %1393 = vmatmul.msk.bf16.vlgmr.msra.gmra.mxu3 %vm550_vm0, %v999_v44 }
 0x3d7   : > { %v813_v0 = vpop.f32.mrf.mxu2 }
 0x3d8   : > { %v842_v14 = vadd.f32 %v1995_v15, %v813_v0  ;;  %v1118_v0 = vunpack.c.l.bf16 %v1937_v4 }
 0x3df   : > { %v815_v2 = vpop.f32.mrf.mxu2 }
 0x3e7   : > { %v892_v39 = vpop.f32.mrf.mxu2 }
 0x3e8   : > { %v896_v40 = vpack.c.bf16 %v892_v39, %v892_v39 }
 0x3ea   : > { %v932_v41 = vsel %vm658_vm6, %v896_v40, 0 }
 0x3eb   : > { %941 = vmatpush.bf16.msra.mxu0 %v932_v41 }
 0x3ed   : > { %v912_v1 = vpop.f32.mrf.mxu3 }
 0x3ee   : > { %v916_v3 = vsel %vm1971_vm4, %v912_v1, -1e+20 }
 0x3ef   : > { %1023 = vmatpush.bf16.msrb.mxu0 %v1946_v8  ;;  %v917_v42 = vmul.f32 0.088388346, %v916_v3  ;;  %v894_v43 = vpop.f32.mrf.mxu2  ;;  %v1778_v3 = vmov 128.0  }
 0x3f1   : > { %v918_v7 = vsel %vm644_vm5, %v917_v42, -inf }
 0x3f2   : > { %919 = vmax.xlane.f32.xlu2 %v918_v7 }
 0x3f3   : > { %1024 = vmatpush.bf16.msrb.mxu0 %v1951_v10  ;;  %v1419_v10 = vld [vmem:[#allocation7 + $0x28] sm:$0xff] }
 0x3f4   : > { %971 = vmatpush.bf16.msra.mxu1 %v1419_v10 }
 0x3f5   : > { %v914_v11 = vpop.f32.mrf.mxu3 }
 0x3f7   : > { %v993_v56 = vpop.f32.mrf.mxu2 }
 0x3f8   : > { %972 = vmatpush.bf16.msra.mxu1 %v1418_v51  ;;  %v997_v9 = vpack.c.bf16 %v993_v56, %v993_v56 }
 0x3fd   : > { %v1012_v52 = vpop.f32.mrf.mxu3 }
 0x3fe   : > { %v1016_v53 = vpack.c.bf16 %v1012_v52, %v1012_v52 }
 0x3ff   : > { %v995_v57 = vpop.f32.mrf.mxu2 }
 0x400   : > { %v1035_v54 = vsel %vm550_vm0, %v1016_v53, 0  ;;  %v1509_v57 = vld [vmem:[#allocation10] ss:$0 sm:$0xff] }
 0x401   : > { %1044 = vmatpush.bf16.xpose.msrb.mxu1 %v1035_v54 }
 0x405   : > { %v1014_v55 = vpop.f32.mrf.mxu3 }
 0x465   : > { %v920_v46 = vpop.xlane.xlu2 %919 }
 0x466   : > { %v921_v8 = vsub.f32 %v917_v42, %v920_v46 }
 0x468   : > { %v922_v47 = vmul.f32 1.442695, %v921_v8 }
 0x46a   : > { %1519 = vpow2.f32 %v922_v47 }
 0x470   : > { %v1520_v48 = vpop.eup %1519 }
 0x471   : > { %v927_v49 = vpack.c.bf16 %v1520_v48, %v1520_v48  ;;  %v924_v50 = vsel %vm644_vm5, %v1520_v48, 0.0 }
 0x472   : > { %925 = vadd.xlane.f32.xlu1 %v924_v50 }
 0x473   : > { %1382 = vmatmul.msk.bf16.vlgmr.msra.gmra.mxu0 %vm644_vm5, %v927_v49 }
 0x483   : > { %1394 = vmatmul.msk.bf16.vlgmr.msrb.gmra.mxu0 %vm550_vm0, %v999_v44 }
 0x4e5   : > { %v926_v58 = vpop.xlane.xlu1 %925 }
 0x4e6   : > { %1521 = vrcp.f32 %v926_v58 }
 0x4ec   : > { %v1522_v59 = vpop.eup %1521 }
 0x4f0   : > { %v943_v60 = vpop.f32.mrf.mxu0 }
 0x4f1   : > { %v948_v61 = vmul.f32 %v1522_v59, %v943_v60  ;;  %v1510_v59 = vld [vmem:[#allocation12] ss:$0 sm:$0xff] }
 0x4f3   : > { %v949_v62 = vpack.c.bf16 %v948_v61, %v948_v61 }
 0x4f5   : > { %1391 = vmatmul.msk.bf16.vlgmr.msra.gmra.mxu1 %vm550_vm0, %v949_v62 }
 0x4f8   : > { %v945_v63 = vpop.f32.mrf.mxu0 }
 0x500   : > { %v1026_v5 = vpop.f32.mrf.mxu0 }
 0x501   : > { %v1030_v6 = vpack.c.bf16 %v1026_v5, %v1026_v5 }
 0x503   : > { %v1066_v12 = vsel %vm658_vm6, %v1030_v6, 0 }
 0x504   : > { %1075 = vmatpush.bf16.msrb.mxu2 %v1066_v12 }
 0x505   : > { %1395 = vmatmul.msk.bf16.vlgmr.msrb.gmra.mxu1 %vm550_vm0, %v997_v9 }
 0x508   : > { %v1028_v13 = vpop.f32.mrf.mxu0 }
 0x572   : > { %v974_v16 = vpop.f32.mrf.mxu1 }
 0x573   : > { %v978_v17 = vadd.f32 %v974_v16, %v842_v14 }
 0x57a   : > { %v976_v18 = vpop.f32.mrf.mxu1 }
 0x582   : > { %v1046_v19 = vpop.f32.mrf.mxu1 }
 0x583   : > { %v1050_v20 = vsel %vm1971_vm4, %v1046_v19, -1e+20 }
 0x584   : > { %v1051_v21 = vmul.f32 0.088388346, %v1050_v20 }
 0x586   : > { %v1052_v22 = vsel %vm644_vm5, %v1051_v21, -inf }
 0x587   : > { %1053 = vmax.xlane.f32.xlu2 %v1052_v22 }
 0x58a   : > { %v1048_v23 = vpop.f32.mrf.mxu1 }
 0x5fa   : > { %v1054_v24 = vpop.xlane.xlu2 %1053 }
 0x5fb   : > { %v1055_v25 = vsub.f32 %v1051_v21, %v1054_v24 }
 0x5fd   : > { %v1056_v26 = vmul.f32 1.442695, %v1055_v25 }
 0x5ff   : > { %1523 = vpow2.f32 %v1056_v26 }
 0x605   : > { %v1524_v27 = vpop.eup %1523 }
 0x606   : > { %v1061_v28 = vpack.c.bf16 %v1524_v27, %v1524_v27  ;;  %v1058_v15 = vsel %vm644_vm5, %v1524_v27, 0.0 }
 0x607   : > { %1059 = vadd.xlane.f32.xlu0 %v1058_v15 }
 0x608   : > { %1396 = vmatmul.msk.bf16.vlgmr.msrb.gmra.mxu2 %vm644_vm5, %v1061_v28 }
 0x67a   : > { %v1060_v31 = vpop.xlane.xlu0 %1059 }
 0x67b   : > { %1525 = vrcp.f32 %v1060_v31 }
 0x67c   : > { %1527 = vrcp.f32 %v1778_v3 }
 0x681   : > { %v1526_v32 = vpop.eup %1525 }
 0x682   : > { %v1528_v42 = vpop.eup %1527 }
 0x683   : > { %v1123_v43 = vmul.f32 128.0, %v1528_v42  ;;  %vm1127_vm7 = vweird.f32 %v1528_v42 }
 0x685   : > { %v1124_v7 = vsub.f32 1.0, %v1123_v43 }
 0x687   : > { %v1125_v11 = vmul.f32 %v1528_v42, %v1124_v7 }
 0x689   : > { %v1126_v44 = vadd.f32 %v1528_v42, %v1125_v11 }
 0x68b   : > { %v1077_v33 = vpop.f32.mrf.mxu2  ;;  %v1128_v45 = vsel %vm1127_vm7, %v1528_v42, %v1126_v44 }
 0x68c   : > { %v1082_v34 = vmul.f32 %v1526_v32, %v1077_v33 }
 0x68e   : > { %v1083_v35 = vpack.c.bf16 %v1082_v34, %v1082_v34 }
 0x690   : > { %1405 = vmatmul.msk.bf16.vlgmr.msrb.gmra.mxu3 %vm550_vm0, %v1083_v35 }
 0x693   : > { %v1079_v36 = vpop.f32.mrf.mxu2 }
 0x713   : > { %v1108_v38 = vpop.f32.mrf.mxu3 }
 0x714   : > { %v1112_v2 = vadd.f32 %v1108_v38, %v978_v17 }
 0x716   : > { %v1117_v39 = vadd.f32 %v1508_v37, %v1112_v2 }
 0x718   : > { %v1119_v40 = vadd.f32 %v1118_v0, %v1117_v39 }
 0x71a   : > { %1120 = vadd.xlane.f32.xlu2 %v1119_v40  ;;  %v1130_v41 = vmul.f32 %v1119_v40, %v1119_v40 }
 0x71b   : > { %v1110_v1 = vpop.f32.mrf.mxu3 }
 0x71c   : > { %1131 = vadd.xlane.f32.xlu0 %v1130_v41 }
 0x78d   : > { %v1121_v46 = vpop.xlane.xlu2 %1120 }
 0x78e   : > { %v1129_v8 = vmul.f32 %v1128_v45, %v1121_v46 }
 0x78f   : > { %v1132_v47 = vpop.xlane.xlu0 %1131 }
 0x790   : > { %v1134_v4 = vmul.f32 %v1129_v8, %v1129_v8  ;;  %v1133_v48 = vmul.f32 %v1132_v47, %v1128_v45  ;;  %v1136_v56 = vsub.f32 %v1119_v40, %v1129_v8 }
 0x792   : > { %v1135_v49 = vsub.f32 %v1133_v48, %v1134_v4 }
 0x794   : > { %v1137_v50 = vadd.f32 1e-05, %v1135_v49 }
 0x796   : > { %1529 = vrsqrt.f32 %v1137_v50  ;;  %vm1144_vm9 = vweird.f32 %v1137_v50 }
 0x79c   : > { %v1530_v10 = vpop.eup %1529 }
 0x79d   : > { %v1139_v51 = vmul.f32 %v1530_v10, %v1137_v50  ;;  %vm1145_vm8 = vweird.f32 %v1530_v10 }
 0x79e   : > { %vm1146_vm10 = vmor %vm1144_vm9, %vm1145_vm8 }
 0x79f   : > { %v1140_v52 = vmul.f32 %v1530_v10, %v1139_v51 }
 0x7a1   : > { %v1141_v53 = vmul.f32 0.5, %v1140_v52 }
 0x7a3   : > { %v1142_v54 = vsub.f32 1.5, %v1141_v53 }
 0x7a5   : > { %v1143_v55 = vmul.f32 %v1530_v10, %v1142_v54 }
 0x7a7   : > { %v1147_v58 = vsel %vm1146_vm10, %v1530_v10, %v1143_v55 }
 0x7a8   : > { %v1148_v60 = vmul.f32 %v1147_v58, %v1136_v56 }
 0x7aa   : > { %v1153_v61 = vmul.f32 %v1509_v57, %v1148_v60 }
 0x7ac   : > { %v1158_v62 = vadd.f32 %v1510_v59, %v1153_v61 }
 0x7ae   : > { %v1159_v63 = vpack.c.bf16 %v1158_v62, %v1158_v62 }
 0x7b0   : > { %1160 = vst [vmem:[%s495_s22] sm:$0xf] %v1159_v63 }
 0x7b1 PF: > { %s24_s13 = sadd.s32 1, %s1763_s13  }
 0x7b2   : > { %p21_p7 = scmp.ge.s32.totalorder %s24_s13, 4  }
 0x7b4   :  { %23 = sbr.rel (!%p21_p7) target bundleno = 4 (0x4), region = 125 }
 0x7b9   :  { %1180 = vsyncpa [#allocation3], 1 }
 0x7ba   :  { %1182 = vsyncpa [#allocation3 + $0x1], 1 }
 0x7bb   :  { %1183 = vsyncpa [#allocation5], 1 }
 0x7bc   :  { %1184 = vsyncpa [#allocation8], 1 }
 0x7bd   :  { %1185 = vsyncpa [#allocation11], 1 }

// kernel: transformer_fwd.21
= control target key start
LH: loop header
LB: loop body
LE: loop exit
PB: predicated region body
PF: predicated region fallthrough
CT: control target
= control target key end

     0   :  { %8 = vsyncpa [#allocation3], 0  ;;  %s284_s0 = inlined_call_operand.vmem [shape: bf16[16,128], index: 0, kind: input, shape index: {}]   ;;  %s285_s1 = inlined_call_operand.hbm [shape: bf16[128,128], index: 1, kind: input, shape index: {}]   ;;  %s286_s2 = inlined_call_operand.vmem [shape: f32[1,128], index: 2, kind: input, shape index: {}]   ;;  %s287_s3 = inlined_call_operand.hbm [shape: f32[16,128], index: 3, kind: output, shape index: {}]  }
   0x1   :  { %9 = vsyncpa [#allocation4], 0  ;;  %s16_s14 = sshll.u32 %s285_s1, 4  ;;  %s246_s15 = smov [#allocation2]   ;;  %s17_s14 = int_to_ptr.hbm [resolvable:$true] %s16_s14 }
   0x2   :  { %s18_s16 = sshll.u32 %s246_s15, 4  ;;  %s247_s17 = smov 64   ;;  %s19_s16 = int_to_ptr.vmem [resolvable:$true] %s18_s16 }
   0x3   :  { %s248_s18 = smov 4  }
   0x4   :  { %24 = dma.hbm_to_vmem [thread:$0]  %s17_s14, 1024, %s19_s16, [#allocation3], %s247_s17, %s247_s17, %s248_s18  }
   0x5   :  { %242 = dma.done.wait [#allocation3], 1024  }
   0x6   :  { %243 = vsyncadd [#allocation3], 4294966272  ;;  %v186_v0 = vld [vmem:[#allocation2 + $0x38] sm:$0xff]  ;;  %v185_v1 = vld [vmem:[#allocation2 + $0x30] sm:$0xff]  ;;  %s249_s22 = smov [#allocation5]   ;;  %s129_s26 = sshll.u32 %s287_s3, 4  ;;  %s130_s26 = int_to_ptr.hbm [resolvable:$true] %s129_s26 }
   0x7   :  { %107 = vmatpush.bf16.msra.mxu0 %v186_v0  ;;  %v184_v2 = vld [vmem:[#allocation2 + $0x28] sm:$0xff]  ;;  %v183_v3 = vld [vmem:[#allocation2 + $0x20] sm:$0xff]  ;;  %v182_v4 = vld [vmem:[#allocation2 + $0x18] sm:$0xff]  ;;  %s127_s23 = sshll.u32 %s249_s22, 4  ;;  %s251_s27 = smov 8   ;;  %s128_s23 = int_to_ptr.vmem [resolvable:$true] %s127_s23 }
   0x8   :  { %v181_v5 = vld [vmem:[#allocation2 + $0x10] sm:$0xff]  ;;  %v180_v6 = vld [vmem:[#allocation2 + $0x8] sm:$0xff]  ;;  %v179_v7 = vld [vmem:[#allocation2] sm:$0xff] }
   0x9   :  { %v178_v8 = vld [vmem:[%s284_s0] sm:$0xff]  ;;  %s250_s0 = smov 128  }
   0xa   :  { %v193_v9 = vld [vmem:[%s286_s2] ss:$0 sm:$0xff] }
   0xb   :  { %108 = vmatpush.bf16.msra.mxu0 %v185_v1 }
   0xf   :  { %109 = vmatpush.bf16.msra.mxu0 %v184_v2 }
  0x13   :  { %110 = vmatpush.bf16.msra.mxu0 %v183_v3 }
  0x17   :  { %111 = vmatpush.bf16.msra.mxu0 %v182_v4 }
  0x1b   :  { %112 = vmatpush.bf16.msra.mxu0 %v181_v5 }
  0x1f   :  { %113 = vmatpush.bf16.msra.mxu0 %v180_v6 }
  0x23   :  { %114 = vmatpush.bf16.msra.mxu0 %v179_v7 }
  0x26   :  { %115 = vmatmul.bf16.vlgmr.msra.gmra.mxu0 %v178_v8 }
  0xa3   :  { %v116_v10 = vpop.f32.mrf.mxu0 }
  0xa4   :  { %v117_v11 = vadd.f32 %v193_v9, %v116_v10 }
  0xa6   :  { %121 = vst [vmem:[#allocation5] sm:$0xff] %v117_v11 }
  0xab   :  { %v118_v12 = vpop.f32.mrf.mxu0 }
  0xac   :  { %v119_v13 = vadd.f32 %v193_v9, %v118_v12 }
  0xae   :  { %122 = vst [vmem:[#allocation5 + $0x8] sm:$0xff] %v119_v13 }
  0xaf   :  { %135 = dma.vmem_to_hbm [thread:$0]  %s128_s23, 256, %s130_s26, [#allocation4], %s250_s0, %s250_s0, %s251_s27  }
  0xb0   :  { %244 = dma.done.wait [#allocation4], 256  }
  0xb1   :  { %245 = vsyncadd [#allocation4], 4294967040 }
  0xb2   :  { %140 = vsyncpa [#allocation3], 1 }
  0xb3   :  { %141 = vsyncpa [#allocation4], 1 }

</bundles_post_ra>
